<compile_context>
chip_gen: v5e
topology: v5e:2x2
jax: 0.10.0
libtpu: 0.0.40
codegen_flags: <defaults>
</compile_context>

<pallas_src>
import jax
import jax.numpy as jnp
import numpy as np
from jax.experimental import pallas as pl
from jax.experimental.pallas import tpu as pltpu

BN_EPS = 1e-5
LANE = 128        # lane-dense channel padding
ROW_CHUNK = 128   # conv row tile: (128, 128) f32 accumulator = 16 vregs
GUARD = 8         # sublane-aligned guard rows around each padded activation


def _round_up(v, m):
    return (v + m - 1) // m * m


def _geoms(H, W, n_blocks=4):
    """Per-block spatial geometry of the flat 'padded row' VMEM buffers.

    Each padded activation is a flat buffer of rows (y * Wp + x) with a
    1-pixel zero halo; Wp is rounded up to a multiple of 8 so the +/-Wp tap
    shifts stay sublane-aligned.  Conv outputs keep only the H interior
    row-lines (rows for y in [1, H], all x in [0, Wp))."""
    gs = []
    h, w = H, W
    for _ in range(n_blocks):
        gs.append(dict(H=h, W=w, Wp=_round_up(w + 2, 8)))
        h, w = h // 2, w // 2            # MaxPool2d(2) between blocks
    return gs


# -------------------------------- parameters --------------------------------

def fold_bn(w_hwio, conv_b, gamma, beta, mean, var):
    """Fold eval-mode BatchNorm into the conv weight / bias."""
    inv = gamma / jnp.sqrt(var + BN_EPS)
    return w_hwio * inv, (conv_b - mean) * inv + beta


def init_params(key, outputs=2):
    """Random EyeCNN parameters (HWIO conv weights), BN already folded."""
    chans = [(3, 32), (32, 64), (64, 128), (128, 256)]
    convs = []
    for i, (cin, cout) in enumerate(chans):
        k = jax.random.fold_in(key, i)
        kw, kb, kg, kbe, km, kv = jax.random.split(k, 6)
        w = jax.random.normal(kw, (3, 3, cin, cout), jnp.float32) * 0.1
        b = jax.random.normal(kb, (cout,), jnp.float32) * 0.05
        gamma = 1.0 + 0.1 * jax.random.normal(kg, (cout,), jnp.float32)
        beta = 0.05 * jax.random.normal(kbe, (cout,), jnp.float32)
        mean = 0.05 * jax.random.normal(km, (cout,), jnp.float32)
        var = 1.0 + 0.1 * jnp.abs(jax.random.normal(kv, (cout,), jnp.float32))
        convs.append(fold_bn(w, b, gamma, beta, mean, var))
    kf = jax.random.fold_in(key, 100)
    kfw, kfb = jax.random.split(kf)
    fc_w = jax.random.normal(kfw, (256, outputs), jnp.float32) * 0.05
    fc_b = jax.random.normal(kfb, (outputs,), jnp.float32) * 0.05
    return convs, fc_w, fc_b


def prepare_kernel_params(convs, fc_w, fc_b):
    """Pack weights for the kernel.

    Block 1: single (128, 128) im2col weight (rows 0..26 = (dy*3+dx)*3 + c).
    Blocks 2-4: tap-stacked (9*cin_p, cout_p) layout; rows [t*cin_p:(t+1)*cin_p]
    hold tap t = dy*3+dx.  All matmul operands bf16, biases f32 lane-padded."""
    w1, b1 = convs[0]
    cout1 = w1.shape[-1]
    w1p = jnp.zeros((LANE, LANE), jnp.float32)
    w1p = w1p.at[:27, :cout1].set(w1.reshape(27, cout1))
    ws = [w1p.astype(jnp.bfloat16)]
    bs = [jnp.zeros((1, LANE), jnp.float32).at[0, :cout1].set(b1)]
    for w, b in convs[1:]:
        kh, kw, cin, cout = w.shape
        cin_p, cout_p = _round_up(cin, LANE), _round_up(cout, LANE)
        wp = jnp.zeros((kh, kw, cin_p, cout_p), jnp.float32)
        wp = wp.at[:, :, :cin, :cout].set(w)
        ws.append(wp.reshape(kh * kw * cin_p, cout_p).astype(jnp.bfloat16))
        bs.append(jnp.zeros((1, cout_p), jnp.float32).at[0, :cout].set(b))
    return dict(w=ws, b=bs,
                fc_w=fc_w.astype(jnp.float32),
                fc_b=fc_b.reshape(1, -1).astype(jnp.float32))


# ------------------------------- fused forward -------------------------------

@jax.jit
def eyecnn_forward(x_nchw, kp):
    N, C, H, W = x_nchw.shape
    assert H % 8 == 0 and W % 8 == 0, "needs three even 2x2 pools"
    assert 9 * C <= LANE
    g1, g2, g3, g4 = _geoms(H, W)
    H1, W1, Wp1 = g1["H"], g1["W"], g1["Wp"]
    H2, W2, Wp2 = g2["H"], g2["W"], g2["Wp"]
    H3, W3, Wp3 = g3["H"], g3["W"], g3["Wp"]
    H4, W4, Wp4 = g4["H"], g4["W"], g4["Wp"]
    c1, c2, c3, c4 = (kp["w"][i].shape[1] for i in range(4))
    outputs = kp["fc_w"].shape[1]
    R1 = H1 * Wp1                       # block-1 output rows per image

    # --- wrapper-side input prep: im2col-pack the 3x3xC patch into lanes ---
    # lane (dy*3+dx)*C + c ; rows = (y, x) with y in [1, H], x in [0, Wp1)
    # (x == 0 and x > W rows are never-read garbage).
    x = jnp.transpose(x_nchw, (0, 2, 3, 1)).astype(jnp.float32)      # NHWC
    xp = jnp.pad(x, ((0, 0), (1, 1), (1, 1), (0, 0)))                # halo
    patches = jnp.concatenate(
        [xp[:, dy:dy + H, dx:dx + W, :] for dy in range(3) for dx in range(3)],
        axis=-1)                                                     # (N,H,W,9C)
    patches = jnp.pad(patches, ((0, 0), (0, 0), (1, Wp1 - 1 - W), (0, 0)))
    patches = jnp.pad(patches, ((0, 0), (0, 0), (0, 0), (0, LANE - 9 * C)))
    x_packed = patches.reshape(N, R1, LANE).astype(jnp.bfloat16)

    def kernel(x_ref, w1, b1, w2, b2, w3, b3, w4, b4, fcw, fcb,
               out_ref, o1, p2, o2, p3, o3, p4):
        # Zero the padded buffers each image so halos/guards are exact zeros
        # (independent per grid step -> safe under "parallel" semantics).
        p2[...] = jnp.zeros_like(p2)
        p3[...] = jnp.zeros_like(p3)
        p4[...] = jnp.zeros_like(p4)

        # ---- block 1: pre-packed patches -> ONE matmul per row chunk ----
        bias1 = b1[...]
        for r0 in range(0, R1, ROW_CHUNK):
            rc = min(ROW_CHUNK, R1 - r0)
            acc = jnp.dot(x_ref[r0:r0 + rc, :], w1[...],
                          preferred_element_type=jnp.float32)
            o1[r0:r0 + rc, :] = jnp.maximum(acc + bias1, 0.0).astype(o1.dtype)

        def conv3x3(src, Wp, n_rows, w_ref, b_ref, dst):
            # 3x3 "same" conv over flat padded rows: 9 constant-shift bf16
            # matmuls, f32 accumulation kept in registers, + bias + ReLU.
            cin_p = src.shape[-1]
            bias = b_ref[...]
            for r0 in range(0, n_rows, ROW_CHUNK):
                rc = min(ROW_CHUNK, n_rows - r0)
                acc = None
                for t in range(9):
                    dy, dx = divmod(t, 3)
                    sh = GUARD + r0 + dy * Wp + dx - 1
                    d = jnp.dot(src[sh:sh + rc, :],
                                w_ref[t * cin_p:(t + 1) * cin_p, :],
                                preferred_element_type=jnp.float32)
                    acc = d if acc is None else acc + d
                dst[r0:r0 + rc, :] = jnp.maximum(acc + bias,
                                                 0.0).astype(dst.dtype)

        def maxpool2(src, Hs, Ws, Wps, dst, Wpd):
            # 2x2/2 max-pool: contiguous slice loads + element-wise maxes,
            # scattered into the interior rows of the next padded buffer.
            Wo = Ws // 2
            Cc = src.shape[-1]
            for i in range(Hs // 2):
                top = src[2 * i * Wps + 1: 2 * i * Wps + 1 + Ws, :]
                bot = src[(2 * i + 1) * Wps + 1: (2 * i + 1) * Wps + 1 + Ws, :]
                v = jnp.maximum(top, bot).astype(jnp.float32)       # (Ws, C)
                vr = v.reshape(Wo, 2, Cc)
                p = jnp.maximum(vr[:, 0, :], vr[:, 1, :])            # (Wo, C)
                d0 = GUARD + (i + 1) * Wpd + 1
                dst[d0:d0 + Wo, :] = p.astype(dst.dtype)

        # blocks 1..3: Conv+BN+ReLU (+Dropout=identity) + MaxPool(2)
        maxpool2(o1, H1, W1, Wp1, p2, Wp2)
        conv3x3(p2, Wp2, H2 * Wp2, w2, b2, o2)
        maxpool2(o2, H2, W2, Wp2, p3, Wp3)
        conv3x3(p3, Wp3, H3 * Wp3, w3, b3, o3)
        maxpool2(o3, H3, W3, Wp3, p4, Wp4)

        # block 4: Conv+BN+ReLU kept as an f32 value, then GAP + FC.
        bias4 = b4[...]
        cin_p = p4.shape[-1]
        n4 = H4 * Wp4
        acc = None
        for t in range(9):
            dy, dx = divmod(t, 3)
            sh = GUARD + dy * Wp4 + dx - 1
            d = jnp.dot(p4[sh:sh + n4, :], w4[t * cin_p:(t + 1) * cin_p, :],
                        preferred_element_type=jnp.float32)
            acc = d if acc is None else acc + d
        act4 = jnp.maximum(acc + bias4, 0.0)                         # (n4, c4)

        s = None                                                     # GAP
        for y in range(H4):
            row = act4[y * Wp4 + 1: y * Wp4 + 1 + W4, :]             # (W4, c4)
            s = row if s is None else s + row
        gap = jnp.sum(s, axis=0, keepdims=True) * (1.0 / (H4 * W4))  # (1, c4)

        out_ref[...] = (jnp.dot(gap, fcw[...],
                                preferred_element_type=jnp.float32) + fcb[...])

    grid_spec = pltpu.PrefetchScalarGridSpec(
        num_scalar_prefetch=0,
        grid=(N,),                                   # one image per grid step
        in_specs=[
            pl.BlockSpec((None, R1, LANE), lambda n: (n, 0, 0)),
            pl.BlockSpec(kp["w"][0].shape, lambda n: (0, 0)),
            pl.BlockSpec(kp["b"][0].shape, lambda n: (0, 0)),
            pl.BlockSpec(kp["w"][1].shape, lambda n: (0, 0)),
            pl.BlockSpec(kp["b"][1].shape, lambda n: (0, 0)),
            pl.BlockSpec(kp["w"][2].shape, lambda n: (0, 0)),
            pl.BlockSpec(kp["b"][2].shape, lambda n: (0, 0)),
            pl.BlockSpec(kp["w"][3].shape, lambda n: (0, 0)),
            pl.BlockSpec(kp["b"][3].shape, lambda n: (0, 0)),
            pl.BlockSpec(kp["fc_w"].shape, lambda n: (0, 0)),
            pl.BlockSpec(kp["fc_b"].shape, lambda n: (0, 0)),
        ],
        out_specs=pl.BlockSpec((None, 1, outputs), lambda n: (n, 0, 0)),
        scratch_shapes=[
            pltpu.VMEM((R1, c1), jnp.bfloat16),                          # o1
            pltpu.VMEM((2 * GUARD + (H2 + 2) * Wp2, c1), jnp.bfloat16),  # p2
            pltpu.VMEM((H2 * Wp2, c2), jnp.bfloat16),                    # o2
            pltpu.VMEM((2 * GUARD + (H3 + 2) * Wp3, c2), jnp.bfloat16),  # p3
            pltpu.VMEM((H3 * Wp3, c3), jnp.bfloat16),                    # o3
            pltpu.VMEM((2 * GUARD + (H4 + 2) * Wp4, c3), jnp.bfloat16),  # p4
        ],
    )
    out = pl.pallas_call(
        kernel,
        out_shape=jax.ShapeDtypeStruct((N, 1, outputs), jnp.float32),
        grid_spec=grid_spec,
        compiler_params=pltpu.CompilerParams(
            dimension_semantics=("parallel",)),      # megacore batch split
    )(x_packed, kp["w"][0], kp["b"][0], kp["w"][1], kp["b"][1],
      kp["w"][2], kp["b"][2], kp["w"][3], kp["b"][3],
      kp["fc_w"], kp["fc_b"])
    return out.reshape(N, outputs)


# ------------------------------ pure-JAX reference ---------------------------

def eyecnn_reference(x_nchw, convs, fc_w, fc_b):
    x = jnp.transpose(x_nchw, (0, 2, 3, 1)).astype(jnp.float32)
    for i, (w, b) in enumerate(convs):
        x = jax.lax.conv_general_dilated(
            x, w, window_strides=(1, 1), padding="SAME",
            dimension_numbers=("NHWC", "HWIO", "NHWC"))
        x = jnp.maximum(x + b, 0.0)
        if i < 3:
            n_, h_, w_, c_ = x.shape
            x = x.reshape(n_, h_ // 2, 2, w_ // 2, 2, c_).max(axis=(2, 4))
    return jnp.mean(x, axis=(1, 2)) @ fc_w + fc_b[None, :]


if __name__ == "__main__":
    key = jax.random.PRNGKey(0)
    kx, kparam = jax.random.split(key)
    # NCHW input like the PyTorch module (input channels must be 3)
    x = jax.random.normal(kx, (2, 3, 16, 16), jnp.float32)
    convs, fc_w, fc_b = init_params(kparam, outputs=2)
    kp = prepare_kernel_params(convs, fc_w, fc_b)

    out = eyecnn_forward(x, kp)
    jax.block_until_ready(out)
    assert out.shape == (2, 2) and out.dtype == jnp.float32

    ref = eyecnn_reference(x, convs, fc_w, fc_b)
    np.testing.assert_allclose(np.asarray(out), np.asarray(ref),
                               rtol=1.5e-1, atol=1.5e-1)   # bf16 matmul path
    print("KERNEL_OK")
</pallas_src>

<mosaic_0001>
module attributes {stable_mosaic.version = 11 : i64} {
  func.func @kernel(%arg0: i32, %arg1: memref<1x384x128xbf16, #tpu.memory_space<vmem>>, %arg2: memref<128x128xbf16, #tpu.memory_space<vmem>>, %arg3: memref<1x128xf32, #tpu.memory_space<vmem>>, %arg4: memref<1152x128xbf16, #tpu.memory_space<vmem>>, %arg5: memref<1x128xf32, #tpu.memory_space<vmem>>, %arg6: memref<1152x128xbf16, #tpu.memory_space<vmem>>, %arg7: memref<1x128xf32, #tpu.memory_space<vmem>>, %arg8: memref<1152x256xbf16, #tpu.memory_space<vmem>>, %arg9: memref<1x256xf32, #tpu.memory_space<vmem>>, %arg10: memref<256x2xf32, #tpu.memory_space<vmem>>, %arg11: memref<1x2xf32, #tpu.memory_space<vmem>>, %arg12: memref<1x1x2xf32, #tpu.memory_space<vmem>>, %arg13: memref<384x128xbf16, #tpu.memory_space<vmem>>, %arg14: memref<176x128xbf16, #tpu.memory_space<vmem>>, %arg15: memref<128x128xbf16, #tpu.memory_space<vmem>>, %arg16: memref<64x128xbf16, #tpu.memory_space<vmem>>, %arg17: memref<32x128xbf16, #tpu.memory_space<vmem>>, %arg18: memref<48x128xbf16, #tpu.memory_space<vmem>>) attributes {dimension_semantics = [#tpu.dimension_semantics<parallel>], iteration_bounds = array<i64: 2>, scalar_prefetch = 0 : i64, scratch_operands = 6 : i64, tpu.core_type = #tpu.core_type<tc>, window_params = [{transform_indices = @transform_0, window_bounds = array<i64: 1, 384, 128>}, {pipeline_mode = #tpu.pipeline_mode<synchronous>, transform_indices = @transform_1, window_bounds = array<i64: 128, 128>}, {pipeline_mode = #tpu.pipeline_mode<synchronous>, transform_indices = @transform_2, window_bounds = array<i64: 1, 128>}, {pipeline_mode = #tpu.pipeline_mode<synchronous>, transform_indices = @transform_3, window_bounds = array<i64: 1152, 128>}, {pipeline_mode = #tpu.pipeline_mode<synchronous>, transform_indices = @transform_4, window_bounds = array<i64: 1, 128>}, {pipeline_mode = #tpu.pipeline_mode<synchronous>, transform_indices = @transform_5, window_bounds = array<i64: 1152, 128>}, {pipeline_mode = #tpu.pipeline_mode<synchronous>, transform_indices = @transform_6, window_bounds = array<i64: 1, 128>}, {pipeline_mode = #tpu.pipeline_mode<synchronous>, transform_indices = @transform_7, window_bounds = array<i64: 1152, 256>}, {pipeline_mode = #tpu.pipeline_mode<synchronous>, transform_indices = @transform_8, window_bounds = array<i64: 1, 256>}, {pipeline_mode = #tpu.pipeline_mode<synchronous>, transform_indices = @transform_9, window_bounds = array<i64: 256, 2>}, {pipeline_mode = #tpu.pipeline_mode<synchronous>, transform_indices = @transform_10, window_bounds = array<i64: 1, 2>}, {transform_indices = @transform_11, window_bounds = array<i64: 1, 1, 2>}]} {
    %cst = arith.constant 0.000000e+00 : bf16
    %0 = vector.broadcast %cst : bf16 to vector<176x128xbf16>
    %c0 = arith.constant 0 : index
    %c0_0 = arith.constant 0 : index
    %1 = vector.load %arg14[%c0, %c0_0] : memref<176x128xbf16, #tpu.memory_space<vmem>>, vector<176x128xbf16>
    tpu.vector_store %arg14[%c0, %c0_0], %0 {strides = array<i32>} : memref<176x128xbf16, #tpu.memory_space<vmem>>, vector<176x128xbf16>,
    %cst_1 = arith.constant 0.000000e+00 : bf16
    %2 = vector.broadcast %cst_1 : bf16 to vector<64x128xbf16>
    %c0_2 = arith.constant 0 : index
    %c0_3 = arith.constant 0 : index
    %3 = vector.load %arg16[%c0_2, %c0_3] : memref<64x128xbf16, #tpu.memory_space<vmem>>, vector<64x128xbf16>
    tpu.vector_store %arg16[%c0_2, %c0_3], %2 {strides = array<i32>} : memref<64x128xbf16, #tpu.memory_space<vmem>>, vector<64x128xbf16>,
    %cst_4 = arith.constant 0.000000e+00 : bf16
    %4 = vector.broadcast %cst_4 : bf16 to vector<48x128xbf16>
    %c0_5 = arith.constant 0 : index
    %c0_6 = arith.constant 0 : index
    %5 = vector.load %arg18[%c0_5, %c0_6] : memref<48x128xbf16, #tpu.memory_space<vmem>>, vector<48x128xbf16>
    tpu.vector_store %arg18[%c0_5, %c0_6], %4 {strides = array<i32>} : memref<48x128xbf16, #tpu.memory_space<vmem>>, vector<48x128xbf16>,
    %c0_7 = arith.constant 0 : index
    %c0_8 = arith.constant 0 : index
    %6 = vector.load %arg3[%c0_7, %c0_8] : memref<1x128xf32, #tpu.memory_space<vmem>>, vector<1x128xf32>
    %c0_9 = arith.constant 0 : index
    %c0_10 = arith.constant 0 : index
    %c0_11 = arith.constant 0 : index
    %7 = vector.load %arg1[%c0_9, %c0_10, %c0_11] : memref<1x384x128xbf16, #tpu.memory_space<vmem>>, vector<1x128x128xbf16>
    %8 = vector.shape_cast %7 : vector<1x128x128xbf16> to vector<128x128xbf16>
    %c0_12 = arith.constant 0 : index
    %c0_13 = arith.constant 0 : index
    %9 = vector.load %arg2[%c0_12, %c0_13] : memref<128x128xbf16, #tpu.memory_space<vmem>>, vector<128x128xbf16>
    %cst_14 = arith.constant dense<0.000000e+00> : vector<128x128xf32>
    %10 = tpu.matmul %8, %9, %cst_14 {dimension_numbers = #tpu.dot_dimension_numbers<[1], [0], [0], [1], [0, 0, 1, 1], [], []>} : vector<128x128xbf16>, vector<128x128xbf16>, vector<128x128xf32> -> vector<128x128xf32>
    %11 = vector.broadcast %6 : vector<1x128xf32> to vector<128x128xf32>
    %12 = arith.addf %10, %11 : vector<128x128xf32>
    %cst_15 = arith.constant 0.000000e+00 : f32
    %13 = vector.broadcast %cst_15 : f32 to vector<128x128xf32>
    %14 = arith.maximumf %12, %13 : vector<128x128xf32>
    %15 = arith.truncf %14 : vector<128x128xf32> to vector<128x128xbf16>
    %c0_16 = arith.constant 0 : index
    %c0_17 = arith.constant 0 : index
    %16 = vector.load %arg13[%c0_16, %c0_17] : memref<384x128xbf16, #tpu.memory_space<vmem>>, vector<128x128xbf16>
    tpu.vector_store %arg13[%c0_16, %c0_17], %15 {strides = array<i32>} : memref<384x128xbf16, #tpu.memory_space<vmem>>, vector<128x128xbf16>,
    %c0_18 = arith.constant 0 : index
    %c128 = arith.constant 128 : index
    %c0_19 = arith.constant 0 : index
    %17 = vector.load %arg1[%c0_18, %c128, %c0_19] : memref<1x384x128xbf16, #tpu.memory_space<vmem>>, vector<1x128x128xbf16>
    %18 = vector.shape_cast %17 : vector<1x128x128xbf16> to vector<128x128xbf16>
    %c0_20 = arith.constant 0 : index
    %c0_21 = arith.constant 0 : index
    %19 = vector.load %arg2[%c0_20, %c0_21] : memref<128x128xbf16, #tpu.memory_space<vmem>>, vector<128x128xbf16>
    %cst_22 = arith.constant dense<0.000000e+00> : vector<128x128xf32>
    %20 = tpu.matmul %18, %19, %cst_22 {dimension_numbers = #tpu.dot_dimension_numbers<[1], [0], [0], [1], [0, 0, 1, 1], [], []>} : vector<128x128xbf16>, vector<128x128xbf16>, vector<128x128xf32> -> vector<128x128xf32>
    %21 = vector.broadcast %6 : vector<1x128xf32> to vector<128x128xf32>
    %22 = arith.addf %20, %21 : vector<128x128xf32>
    %cst_23 = arith.constant 0.000000e+00 : f32
    %23 = vector.broadcast %cst_23 : f32 to vector<128x128xf32>
    %24 = arith.maximumf %22, %23 : vector<128x128xf32>
    %25 = arith.truncf %24 : vector<128x128xf32> to vector<128x128xbf16>
    %c128_24 = arith.constant 128 : index
    %c0_25 = arith.constant 0 : index
    %26 = vector.load %arg13[%c128_24, %c0_25] : memref<384x128xbf16, #tpu.memory_space<vmem>>, vector<128x128xbf16>
    tpu.vector_store %arg13[%c128_24, %c0_25], %25 {strides = array<i32>} : memref<384x128xbf16, #tpu.memory_space<vmem>>, vector<128x128xbf16>,
    %c0_26 = arith.constant 0 : index
    %c256 = arith.constant 256 : index
    %c0_27 = arith.constant 0 : index
    %27 = vector.load %arg1[%c0_26, %c256, %c0_27] : memref<1x384x128xbf16, #tpu.memory_space<vmem>>, vector<1x128x128xbf16>
    %28 = vector.shape_cast %27 : vector<1x128x128xbf16> to vector<128x128xbf16>
    %c0_28 = arith.constant 0 : index
    %c0_29 = arith.constant 0 : index
    %29 = vector.load %arg2[%c0_28, %c0_29] : memref<128x128xbf16, #tpu.memory_space<vmem>>, vector<128x128xbf16>
    %cst_30 = arith.constant dense<0.000000e+00> : vector<128x128xf32>
    %30 = tpu.matmul %28, %29, %cst_30 {dimension_numbers = #tpu.dot_dimension_numbers<[1], [0], [0], [1], [0, 0, 1, 1], [], []>} : vector<128x128xbf16>, vector<128x128xbf16>, vector<128x128xf32> -> vector<128x128xf32>
    %31 = vector.broadcast %6 : vector<1x128xf32> to vector<128x128xf32>
    %32 = arith.addf %30, %31 : vector<128x128xf32>
    %cst_31 = arith.constant 0.000000e+00 : f32
    %33 = vector.broadcast %cst_31 : f32 to vector<128x128xf32>
    %34 = arith.maximumf %32, %33 : vector<128x128xf32>
    %35 = arith.truncf %34 : vector<128x128xf32> to vector<128x128xbf16>
    %c256_32 = arith.constant 256 : index
    %c0_33 = arith.constant 0 : index
    %36 = vector.load %arg13[%c256_32, %c0_33] : memref<384x128xbf16, #tpu.memory_space<vmem>>, vector<128x128xbf16>
    tpu.vector_store %arg13[%c256_32, %c0_33], %35 {strides = array<i32>} : memref<384x128xbf16, #tpu.memory_space<vmem>>, vector<128x128xbf16>,
    %c1 = arith.constant 1 : index
    %c0_34 = arith.constant 0 : index
    %37 = vector.load %arg13[%c1, %c0_34] : memref<384x128xbf16, #tpu.memory_space<vmem>>, vector<16x128xbf16>
    %c25 = arith.constant 25 : index
    %c0_35 = arith.constant 0 : index
    %38 = vector.load %arg13[%c25, %c0_35] : memref<384x128xbf16, #tpu.memory_space<vmem>>, vector<16x128xbf16>
    %39 = arith.maximumf %37, %38 : vector<16x128xbf16>
    %40 = arith.extf %39 : vector<16x128xbf16> to vector<16x128xf32>
    %41 = vector.shape_cast %40 : vector<16x128xf32> to vector<8x2x128xf32>
    %42 = vector.extract_strided_slice %41 {offsets = [0, 0, 0], sizes = [8, 1, 128], strides = [1, 1, 1]} : vector<8x2x128xf32> to vector<8x1x128xf32>
    %43 = vector.shape_cast %42 : vector<8x1x128xf32> to vector<8x128xf32>
    %44 = vector.extract_strided_slice %41 {offsets = [0, 1, 0], sizes = [8, 1, 128], strides = [1, 1, 1]} : vector<8x2x128xf32> to vector<8x1x128xf32>
    %45 = vector.shape_cast %44 : vector<8x1x128xf32> to vector<8x128xf32>
    %46 = arith.maximumf %43, %45 : vector<8x128xf32>
    %47 = arith.truncf %46 : vector<8x128xf32> to vector<8x128xbf16>
    %c25_36 = arith.constant 25 : index
    %c0_37 = arith.constant 0 : index
    %48 = vector.load %arg14[%c25_36, %c0_37] : memref<176x128xbf16, #tpu.memory_space<vmem>>, vector<8x128xbf16>
    tpu.vector_store %arg14[%c25_36, %c0_37], %47 {strides = array<i32>} : memref<176x128xbf16, #tpu.memory_space<vmem>>, vector<8x128xbf16>,
    %c49 = arith.constant 49 : index
    %c0_38 = arith.constant 0 : index
    %49 = vector.load %arg13[%c49, %c0_38] : memref<384x128xbf16, #tpu.memory_space<vmem>>, vector<16x128xbf16>
    %c73 = arith.constant 73 : index
    %c0_39 = arith.constant 0 : index
    %50 = vector.load %arg13[%c73, %c0_39] : memref<384x128xbf16, #tpu.memory_space<vmem>>, vector<16x128xbf16>
    %51 = arith.maximumf %49, %50 : vector<16x128xbf16>
    %52 = arith.extf %51 : vector<16x128xbf16> to vector<16x128xf32>
    %53 = vector.shape_cast %52 : vector<16x128xf32> to vector<8x2x128xf32>
    %54 = vector.extract_strided_slice %53 {offsets = [0, 0, 0], sizes = [8, 1, 128], strides = [1, 1, 1]} : vector<8x2x128xf32> to vector<8x1x128xf32>
    %55 = vector.shape_cast %54 : vector<8x1x128xf32> to vector<8x128xf32>
    %56 = vector.extract_strided_slice %53 {offsets = [0, 1, 0], sizes = [8, 1, 128], strides = [1, 1, 1]} : vector<8x2x128xf32> to vector<8x1x128xf32>
    %57 = vector.shape_cast %56 : vector<8x1x128xf32> to vector<8x128xf32>
    %58 = arith.maximumf %55, %57 : vector<8x128xf32>
    %59 = arith.truncf %58 : vector<8x128xf32> to vector<8x128xbf16>
    %c41 = arith.constant 41 : index
    %c0_40 = arith.constant 0 : index
    %60 = vector.load %arg14[%c41, %c0_40] : memref<176x128xbf16, #tpu.memory_space<vmem>>, vector<8x128xbf16>
    tpu.vector_store %arg14[%c41, %c0_40], %59 {strides = array<i32>} : memref<176x128xbf16, #tpu.memory_space<vmem>>, vector<8x128xbf16>,
    %c97 = arith.constant 97 : index
    %c0_41 = arith.constant 0 : index
    %61 = vector.load %arg13[%c97, %c0_41] : memref<384x128xbf16, #tpu.memory_space<vmem>>, vector<16x128xbf16>
    %c121 = arith.constant 121 : index
    %c0_42 = arith.constant 0 : index
    %62 = vector.load %arg13[%c121, %c0_42] : memref<384x128xbf16, #tpu.memory_space<vmem>>, vector<16x128xbf16>
    %63 = arith.maximumf %61, %62 : vector<16x128xbf16>
    %64 = arith.extf %63 : vector<16x128xbf16> to vector<16x128xf32>
    %65 = vector.shape_cast %64 : vector<16x128xf32> to vector<8x2x128xf32>
    %66 = vector.extract_strided_slice %65 {offsets = [0, 0, 0], sizes = [8, 1, 128], strides = [1, 1, 1]} : vector<8x2x128xf32> to vector<8x1x128xf32>
    %67 = vector.shape_cast %66 : vector<8x1x128xf32> to vector<8x128xf32>
    %68 = vector.extract_strided_slice %65 {offsets = [0, 1, 0], sizes = [8, 1, 128], strides = [1, 1, 1]} : vector<8x2x128xf32> to vector<8x1x128xf32>
    %69 = vector.shape_cast %68 : vector<8x1x128xf32> to vector<8x128xf32>
    %70 = arith.maximumf %67, %69 : vector<8x128xf32>
    %71 = arith.truncf %70 : vector<8x128xf32> to vector<8x128xbf16>
    %c57 = arith.constant 57 : index
    %c0_43 = arith.constant 0 : index
    %72 = vector.load %arg14[%c57, %c0_43] : memref<176x128xbf16, #tpu.memory_space<vmem>>, vector<8x128xbf16>
    tpu.vector_store %arg14[%c57, %c0_43], %71 {strides = array<i32>} : memref<176x128xbf16, #tpu.memory_space<vmem>>, vector<8x128xbf16>,
    %c145 = arith.constant 145 : index
    %c0_44 = arith.constant 0 : index
    %73 = vector.load %arg13[%c145, %c0_44] : memref<384x128xbf16, #tpu.memory_space<vmem>>, vector<16x128xbf16>
    %c169 = arith.constant 169 : index
    %c0_45 = arith.constant 0 : index
    %74 = vector.load %arg13[%c169, %c0_45] : memref<384x128xbf16, #tpu.memory_space<vmem>>, vector<16x128xbf16>
    %75 = arith.maximumf %73, %74 : vector<16x128xbf16>
    %76 = arith.extf %75 : vector<16x128xbf16> to vector<16x128xf32>
    %77 = vector.shape_cast %76 : vector<16x128xf32> to vector<8x2x128xf32>
    %78 = vector.extract_strided_slice %77 {offsets = [0, 0, 0], sizes = [8, 1, 128], strides = [1, 1, 1]} : vector<8x2x128xf32> to vector<8x1x128xf32>
    %79 = vector.shape_cast %78 : vector<8x1x128xf32> to vector<8x128xf32>
    %80 = vector.extract_strided_slice %77 {offsets = [0, 1, 0], sizes = [8, 1, 128], strides = [1, 1, 1]} : vector<8x2x128xf32> to vector<8x1x128xf32>
    %81 = vector.shape_cast %80 : vector<8x1x128xf32> to vector<8x128xf32>
    %82 = arith.maximumf %79, %81 : vector<8x128xf32>
    %83 = arith.truncf %82 : vector<8x128xf32> to vector<8x128xbf16>
    %c73_46 = arith.constant 73 : index
    %c0_47 = arith.constant 0 : index
    %84 = vector.load %arg14[%c73_46, %c0_47] : memref<176x128xbf16, #tpu.memory_space<vmem>>, vector<8x128xbf16>
    tpu.vector_store %arg14[%c73_46, %c0_47], %83 {strides = array<i32>} : memref<176x128xbf16, #tpu.memory_space<vmem>>, vector<8x128xbf16>,
    %c193 = arith.constant 193 : index
    %c0_48 = arith.constant 0 : index
    %85 = vector.load %arg13[%c193, %c0_48] : memref<384x128xbf16, #tpu.memory_space<vmem>>, vector<16x128xbf16>
    %c217 = arith.constant 217 : index
    %c0_49 = arith.constant 0 : index
    %86 = vector.load %arg13[%c217, %c0_49] : memref<384x128xbf16, #tpu.memory_space<vmem>>, vector<16x128xbf16>
    %87 = arith.maximumf %85, %86 : vector<16x128xbf16>
    %88 = arith.extf %87 : vector<16x128xbf16> to vector<16x128xf32>
    %89 = vector.shape_cast %88 : vector<16x128xf32> to vector<8x2x128xf32>
    %90 = vector.extract_strided_slice %89 {offsets = [0, 0, 0], sizes = [8, 1, 128], strides = [1, 1, 1]} : vector<8x2x128xf32> to vector<8x1x128xf32>
    %91 = vector.shape_cast %90 : vector<8x1x128xf32> to vector<8x128xf32>
    %92 = vector.extract_strided_slice %89 {offsets = [0, 1, 0], sizes = [8, 1, 128], strides = [1, 1, 1]} : vector<8x2x128xf32> to vector<8x1x128xf32>
    %93 = vector.shape_cast %92 : vector<8x1x128xf32> to vector<8x128xf32>
    %94 = arith.maximumf %91, %93 : vector<8x128xf32>
    %95 = arith.truncf %94 : vector<8x128xf32> to vector<8x128xbf16>
    %c89 = arith.constant 89 : index
    %c0_50 = arith.constant 0 : index
    %96 = vector.load %arg14[%c89, %c0_50] : memref<176x128xbf16, #tpu.memory_space<vmem>>, vector<8x128xbf16>
    tpu.vector_store %arg14[%c89, %c0_50], %95 {strides = array<i32>} : memref<176x128xbf16, #tpu.memory_space<vmem>>, vector<8x128xbf16>,
    %c241 = arith.constant 241 : index
    %c0_51 = arith.constant 0 : index
    %97 = vector.load %arg13[%c241, %c0_51] : memref<384x128xbf16, #tpu.memory_space<vmem>>, vector<16x128xbf16>
    %c265 = arith.constant 265 : index
    %c0_52 = arith.constant 0 : index
    %98 = vector.load %arg13[%c265, %c0_52] : memref<384x128xbf16, #tpu.memory_space<vmem>>, vector<16x128xbf16>
    %99 = arith.maximumf %97, %98 : vector<16x128xbf16>
    %100 = arith.extf %99 : vector<16x128xbf16> to vector<16x128xf32>
    %101 = vector.shape_cast %100 : vector<16x128xf32> to vector<8x2x128xf32>
    %102 = vector.extract_strided_slice %101 {offsets = [0, 0, 0], sizes = [8, 1, 128], strides = [1, 1, 1]} : vector<8x2x128xf32> to vector<8x1x128xf32>
    %103 = vector.shape_cast %102 : vector<8x1x128xf32> to vector<8x128xf32>
    %104 = vector.extract_strided_slice %101 {offsets = [0, 1, 0], sizes = [8, 1, 128], strides = [1, 1, 1]} : vector<8x2x128xf32> to vector<8x1x128xf32>
    %105 = vector.shape_cast %104 : vector<8x1x128xf32> to vector<8x128xf32>
    %106 = arith.maximumf %103, %105 : vector<8x128xf32>
    %107 = arith.truncf %106 : vector<8x128xf32> to vector<8x128xbf16>
    %c105 = arith.constant 105 : index
    %c0_53 = arith.constant 0 : index
    %108 = vector.load %arg14[%c105, %c0_53] : memref<176x128xbf16, #tpu.memory_space<vmem>>, vector<8x128xbf16>
    tpu.vector_store %arg14[%c105, %c0_53], %107 {strides = array<i32>} : memref<176x128xbf16, #tpu.memory_space<vmem>>, vector<8x128xbf16>,
    %c289 = arith.constant 289 : index
    %c0_54 = arith.constant 0 : index
    %109 = vector.load %arg13[%c289, %c0_54] : memref<384x128xbf16, #tpu.memory_space<vmem>>, vector<16x128xbf16>
    %c313 = arith.constant 313 : index
    %c0_55 = arith.constant 0 : index
    %110 = vector.load %arg13[%c313, %c0_55] : memref<384x128xbf16, #tpu.memory_space<vmem>>, vector<16x128xbf16>
    %111 = arith.maximumf %109, %110 : vector<16x128xbf16>
    %112 = arith.extf %111 : vector<16x128xbf16> to vector<16x128xf32>
    %113 = vector.shape_cast %112 : vector<16x128xf32> to vector<8x2x128xf32>
    %114 = vector.extract_strided_slice %113 {offsets = [0, 0, 0], sizes = [8, 1, 128], strides = [1, 1, 1]} : vector<8x2x128xf32> to vector<8x1x128xf32>
    %115 = vector.shape_cast %114 : vector<8x1x128xf32> to vector<8x128xf32>
    %116 = vector.extract_strided_slice %113 {offsets = [0, 1, 0], sizes = [8, 1, 128], strides = [1, 1, 1]} : vector<8x2x128xf32> to vector<8x1x128xf32>
    %117 = vector.shape_cast %116 : vector<8x1x128xf32> to vector<8x128xf32>
    %118 = arith.maximumf %115, %117 : vector<8x128xf32>
    %119 = arith.truncf %118 : vector<8x128xf32> to vector<8x128xbf16>
    %c121_56 = arith.constant 121 : index
    %c0_57 = arith.constant 0 : index
    %120 = vector.load %arg14[%c121_56, %c0_57] : memref<176x128xbf16, #tpu.memory_space<vmem>>, vector<8x128xbf16>
    tpu.vector_store %arg14[%c121_56, %c0_57], %119 {strides = array<i32>} : memref<176x128xbf16, #tpu.memory_space<vmem>>, vector<8x128xbf16>,
    %c337 = arith.constant 337 : index
    %c0_58 = arith.constant 0 : index
    %121 = vector.load %arg13[%c337, %c0_58] : memref<384x128xbf16, #tpu.memory_space<vmem>>, vector<16x128xbf16>
    %c361 = arith.constant 361 : index
    %c0_59 = arith.constant 0 : index
    %122 = vector.load %arg13[%c361, %c0_59] : memref<384x128xbf16, #tpu.memory_space<vmem>>, vector<16x128xbf16>
    %123 = arith.maximumf %121, %122 : vector<16x128xbf16>
    %124 = arith.extf %123 : vector<16x128xbf16> to vector<16x128xf32>
    %125 = vector.shape_cast %124 : vector<16x128xf32> to vector<8x2x128xf32>
    %126 = vector.extract_strided_slice %125 {offsets = [0, 0, 0], sizes = [8, 1, 128], strides = [1, 1, 1]} : vector<8x2x128xf32> to vector<8x1x128xf32>
    %127 = vector.shape_cast %126 : vector<8x1x128xf32> to vector<8x128xf32>
    %128 = vector.extract_strided_slice %125 {offsets = [0, 1, 0], sizes = [8, 1, 128], strides = [1, 1, 1]} : vector<8x2x128xf32> to vector<8x1x128xf32>
    %129 = vector.shape_cast %128 : vector<8x1x128xf32> to vector<8x128xf32>
    %130 = arith.maximumf %127, %129 : vector<8x128xf32>
    %131 = arith.truncf %130 : vector<8x128xf32> to vector<8x128xbf16>
    %c137 = arith.constant 137 : index
    %c0_60 = arith.constant 0 : index
    %132 = vector.load %arg14[%c137, %c0_60] : memref<176x128xbf16, #tpu.memory_space<vmem>>, vector<8x128xbf16>
    tpu.vector_store %arg14[%c137, %c0_60], %131 {strides = array<i32>} : memref<176x128xbf16, #tpu.memory_space<vmem>>, vector<8x128xbf16>,
    %c0_61 = arith.constant 0 : index
    %c0_62 = arith.constant 0 : index
    %133 = vector.load %arg5[%c0_61, %c0_62] : memref<1x128xf32, #tpu.memory_space<vmem>>, vector<1x128xf32>
    %c7 = arith.constant 7 : index
    %c0_63 = arith.constant 0 : index
    %134 = vector.load %arg14[%c7, %c0_63] : memref<176x128xbf16, #tpu.memory_space<vmem>>, vector<128x128xbf16>
    %c0_64 = arith.constant 0 : index
    %c0_65 = arith.constant 0 : index
    %135 = vector.load %arg4[%c0_64, %c0_65] : memref<1152x128xbf16, #tpu.memory_space<vmem>>, vector<128x128xbf16>
    %cst_66 = arith.constant dense<0.000000e+00> : vector<128x128xf32>
    %136 = tpu.matmul %134, %135, %cst_66 {dimension_numbers = #tpu.dot_dimension_numbers<[1], [0], [0], [1], [0, 0, 1, 1], [], []>} : vector<128x128xbf16>, vector<128x128xbf16>, vector<128x128xf32> -> vector<128x128xf32>
    %c8 = arith.constant 8 : index
    %c0_67 = arith.constant 0 : index
    %137 = vector.load %arg14[%c8, %c0_67] : memref<176x128xbf16, #tpu.memory_space<vmem>>, vector<128x128xbf16>
    %c128_68 = arith.constant 128 : index
    %c0_69 = arith.constant 0 : index
    %138 = vector.load %arg4[%c128_68, %c0_69] : memref<1152x128xbf16, #tpu.memory_space<vmem>>, vector<128x128xbf16>
    %cst_70 = arith.constant dense<0.000000e+00> : vector<128x128xf32>
    %139 = tpu.matmul %137, %138, %cst_70 {dimension_numbers = #tpu.dot_dimension_numbers<[1], [0], [0], [1], [0, 0, 1, 1], [], []>} : vector<128x128xbf16>, vector<128x128xbf16>, vector<128x128xf32> -> vector<128x128xf32>
    %140 = arith.addf %136, %139 : vector<128x128xf32>
    %c9 = arith.constant 9 : index
    %c0_71 = arith.constant 0 : index
    %141 = vector.load %arg14[%c9, %c0_71] : memref<176x128xbf16, #tpu.memory_space<vmem>>, vector<128x128xbf16>
    %c256_72 = arith.constant 256 : index
    %c0_73 = arith.constant 0 : index
    %142 = vector.load %arg4[%c256_72, %c0_73] : memref<1152x128xbf16, #tpu.memory_space<vmem>>, vector<128x128xbf16>
    %cst_74 = arith.constant dense<0.000000e+00> : vector<128x128xf32>
    %143 = tpu.matmul %141, %142, %cst_74 {dimension_numbers = #tpu.dot_dimension_numbers<[1], [0], [0], [1], [0, 0, 1, 1], [], []>} : vector<128x128xbf16>, vector<128x128xbf16>, vector<128x128xf32> -> vector<128x128xf32>
    %144 = arith.addf %140, %143 : vector<128x128xf32>
    %c23 = arith.constant 23 : index
    %c0_75 = arith.constant 0 : index
    %145 = vector.load %arg14[%c23, %c0_75] : memref<176x128xbf16, #tpu.memory_space<vmem>>, vector<128x128xbf16>
    %c384 = arith.constant 384 : index
    %c0_76 = arith.constant 0 : index
    %146 = vector.load %arg4[%c384, %c0_76] : memref<1152x128xbf16, #tpu.memory_space<vmem>>, vector<128x128xbf16>
    %cst_77 = arith.constant dense<0.000000e+00> : vector<128x128xf32>
    %147 = tpu.matmul %145, %146, %cst_77 {dimension_numbers = #tpu.dot_dimension_numbers<[1], [0], [0], [1], [0, 0, 1, 1], [], []>} : vector<128x128xbf16>, vector<128x128xbf16>, vector<128x128xf32> -> vector<128x128xf32>
    %148 = arith.addf %144, %147 : vector<128x128xf32>
    %c24 = arith.constant 24 : index
    %c0_78 = arith.constant 0 : index
    %149 = vector.load %arg14[%c24, %c0_78] : memref<176x128xbf16, #tpu.memory_space<vmem>>, vector<128x128xbf16>
    %c512 = arith.constant 512 : index
    %c0_79 = arith.constant 0 : index
    %150 = vector.load %arg4[%c512, %c0_79] : memref<1152x128xbf16, #tpu.memory_space<vmem>>, vector<128x128xbf16>
    %cst_80 = arith.constant dense<0.000000e+00> : vector<128x128xf32>
    %151 = tpu.matmul %149, %150, %cst_80 {dimension_numbers = #tpu.dot_dimension_numbers<[1], [0], [0], [1], [0, 0, 1, 1], [], []>} : vector<128x128xbf16>, vector<128x128xbf16>, vector<128x128xf32> -> vector<128x128xf32>
    %152 = arith.addf %148, %151 : vector<128x128xf32>
    %c25_81 = arith.constant 25 : index
    %c0_82 = arith.constant 0 : index
    %153 = vector.load %arg14[%c25_81, %c0_82] : memref<176x128xbf16, #tpu.memory_space<vmem>>, vector<128x128xbf16>
    %c640 = arith.constant 640 : index
    %c0_83 = arith.constant 0 : index
    %154 = vector.load %arg4[%c640, %c0_83] : memref<1152x128xbf16, #tpu.memory_space<vmem>>, vector<128x128xbf16>
    %cst_84 = arith.constant dense<0.000000e+00> : vector<128x128xf32>
    %155 = tpu.matmul %153, %154, %cst_84 {dimension_numbers = #tpu.dot_dimension_numbers<[1], [0], [0], [1], [0, 0, 1, 1], [], []>} : vector<128x128xbf16>, vector<128x128xbf16>, vector<128x128xf32> -> vector<128x128xf32>
    %156 = arith.addf %152, %155 : vector<128x128xf32>
    %c39 = arith.constant 39 : index
    %c0_85 = arith.constant 0 : index
    %157 = vector.load %arg14[%c39, %c0_85] : memref<176x128xbf16, #tpu.memory_space<vmem>>, vector<128x128xbf16>
    %c768 = arith.constant 768 : index
    %c0_86 = arith.constant 0 : index
    %158 = vector.load %arg4[%c768, %c0_86] : memref<1152x128xbf16, #tpu.memory_space<vmem>>, vector<128x128xbf16>
    %cst_87 = arith.constant dense<0.000000e+00> : vector<128x128xf32>
    %159 = tpu.matmul %157, %158, %cst_87 {dimension_numbers = #tpu.dot_dimension_numbers<[1], [0], [0], [1], [0, 0, 1, 1], [], []>} : vector<128x128xbf16>, vector<128x128xbf16>, vector<128x128xf32> -> vector<128x128xf32>
    %160 = arith.addf %156, %159 : vector<128x128xf32>
    %c40 = arith.constant 40 : index
    %c0_88 = arith.constant 0 : index
    %161 = vector.load %arg14[%c40, %c0_88] : memref<176x128xbf16, #tpu.memory_space<vmem>>, vector<128x128xbf16>
    %c896 = arith.constant 896 : index
    %c0_89 = arith.constant 0 : index
    %162 = vector.load %arg4[%c896, %c0_89] : memref<1152x128xbf16, #tpu.memory_space<vmem>>, vector<128x128xbf16>
    %cst_90 = arith.constant dense<0.000000e+00> : vector<128x128xf32>
    %163 = tpu.matmul %161, %162, %cst_90 {dimension_numbers = #tpu.dot_dimension_numbers<[1], [0], [0], [1], [0, 0, 1, 1], [], []>} : vector<128x128xbf16>, vector<128x128xbf16>, vector<128x128xf32> -> vector<128x128xf32>
    %164 = arith.addf %160, %163 : vector<128x128xf32>
    %c41_91 = arith.constant 41 : index
    %c0_92 = arith.constant 0 : index
    %165 = vector.load %arg14[%c41_91, %c0_92] : memref<176x128xbf16, #tpu.memory_space<vmem>>, vector<128x128xbf16>
    %c1024 = arith.constant 1024 : index
    %c0_93 = arith.constant 0 : index
    %166 = vector.load %arg4[%c1024, %c0_93] : memref<1152x128xbf16, #tpu.memory_space<vmem>>, vector<128x128xbf16>
    %cst_94 = arith.constant dense<0.000000e+00> : vector<128x128xf32>
    %167 = tpu.matmul %165, %166, %cst_94 {dimension_numbers = #tpu.dot_dimension_numbers<[1], [0], [0], [1], [0, 0, 1, 1], [], []>} : vector<128x128xbf16>, vector<128x128xbf16>, vector<128x128xf32> -> vector<128x128xf32>
    %168 = arith.addf %164, %167 : vector<128x128xf32>
    %169 = vector.broadcast %133 : vector<1x128xf32> to vector<128x128xf32>
    %170 = arith.addf %168, %169 : vector<128x128xf32>
    %cst_95 = arith.constant 0.000000e+00 : f32
    %171 = vector.broadcast %cst_95 : f32 to vector<128x128xf32>
    %172 = arith.maximumf %170, %171 : vector<128x128xf32>
    %173 = arith.truncf %172 : vector<128x128xf32> to vector<128x128xbf16>
    %c0_96 = arith.constant 0 : index
    %c0_97 = arith.constant 0 : index
    %174 = vector.load %arg15[%c0_96, %c0_97] : memref<128x128xbf16, #tpu.memory_space<vmem>>, vector<128x128xbf16>
    tpu.vector_store %arg15[%c0_96, %c0_97], %173 {strides = array<i32>} : memref<128x128xbf16, #tpu.memory_space<vmem>>, vector<128x128xbf16>,
    %c1_98 = arith.constant 1 : index
    %c0_99 = arith.constant 0 : index
    %175 = vector.load %arg15[%c1_98, %c0_99] : memref<128x128xbf16, #tpu.memory_space<vmem>>, vector<8x128xbf16>
    %c17 = arith.constant 17 : index
    %c0_100 = arith.constant 0 : index
    %176 = vector.load %arg15[%c17, %c0_100] : memref<128x128xbf16, #tpu.memory_space<vmem>>, vector<8x128xbf16>
    %177 = arith.maximumf %175, %176 : vector<8x128xbf16>
    %178 = arith.extf %177 : vector<8x128xbf16> to vector<8x128xf32>
    %179 = vector.shape_cast %178 : vector<8x128xf32> to vector<4x2x128xf32>
    %180 = vector.extract_strided_slice %179 {offsets = [0, 0, 0], sizes = [4, 1, 128], strides = [1, 1, 1]} : vector<4x2x128xf32> to vector<4x1x128xf32>
    %181 = vector.shape_cast %180 : vector<4x1x128xf32> to vector<4x128xf32>
    %182 = vector.extract_strided_slice %179 {offsets = [0, 1, 0], sizes = [4, 1, 128], strides = [1, 1, 1]} : vector<4x2x128xf32> to vector<4x1x128xf32>
    %183 = vector.shape_cast %182 : vector<4x1x128xf32> to vector<4x128xf32>
    %184 = arith.maximumf %181, %183 : vector<4x128xf32>
    %185 = arith.truncf %184 : vector<4x128xf32> to vector<4x128xbf16>
    %c17_101 = arith.constant 17 : index
    %c0_102 = arith.constant 0 : index
    %186 = vector.load %arg16[%c17_101, %c0_102] : memref<64x128xbf16, #tpu.memory_space<vmem>>, vector<4x128xbf16>
    tpu.vector_store %arg16[%c17_101, %c0_102], %185 {strides = array<i32>} : memref<64x128xbf16, #tpu.memory_space<vmem>>, vector<4x128xbf16>,
    %c33 = arith.constant 33 : index
    %c0_103 = arith.constant 0 : index
    %187 = vector.load %arg15[%c33, %c0_103] : memref<128x128xbf16, #tpu.memory_space<vmem>>, vector<8x128xbf16>
    %c49_104 = arith.constant 49 : index
    %c0_105 = arith.constant 0 : index
    %188 = vector.load %arg15[%c49_104, %c0_105] : memref<128x128xbf16, #tpu.memory_space<vmem>>, vector<8x128xbf16>
    %189 = arith.maximumf %187, %188 : vector<8x128xbf16>
    %190 = arith.extf %189 : vector<8x128xbf16> to vector<8x128xf32>
    %191 = vector.shape_cast %190 : vector<8x128xf32> to vector<4x2x128xf32>
    %192 = vector.extract_strided_slice %191 {offsets = [0, 0, 0], sizes = [4, 1, 128], strides = [1, 1, 1]} : vector<4x2x128xf32> to vector<4x1x128xf32>
    %193 = vector.shape_cast %192 : vector<4x1x128xf32> to vector<4x128xf32>
    %194 = vector.extract_strided_slice %191 {offsets = [0, 1, 0], sizes = [4, 1, 128], strides = [1, 1, 1]} : vector<4x2x128xf32> to vector<4x1x128xf32>
    %195 = vector.shape_cast %194 : vector<4x1x128xf32> to vector<4x128xf32>
    %196 = arith.maximumf %193, %195 : vector<4x128xf32>
    %197 = arith.truncf %196 : vector<4x128xf32> to vector<4x128xbf16>
    %c25_106 = arith.constant 25 : index
    %c0_107 = arith.constant 0 : index
    %198 = vector.load %arg16[%c25_106, %c0_107] : memref<64x128xbf16, #tpu.memory_space<vmem>>, vector<4x128xbf16>
    tpu.vector_store %arg16[%c25_106, %c0_107], %197 {strides = array<i32>} : memref<64x128xbf16, #tpu.memory_space<vmem>>, vector<4x128xbf16>,
    %c65 = arith.constant 65 : index
    %c0_108 = arith.constant 0 : index
    %199 = vector.load %arg15[%c65, %c0_108] : memref<128x128xbf16, #tpu.memory_space<vmem>>, vector<8x128xbf16>
    %c81 = arith.constant 81 : index
    %c0_109 = arith.constant 0 : index
    %200 = vector.load %arg15[%c81, %c0_109] : memref<128x128xbf16, #tpu.memory_space<vmem>>, vector<8x128xbf16>
    %201 = arith.maximumf %199, %200 : vector<8x128xbf16>
    %202 = arith.extf %201 : vector<8x128xbf16> to vector<8x128xf32>
    %203 = vector.shape_cast %202 : vector<8x128xf32> to vector<4x2x128xf32>
    %204 = vector.extract_strided_slice %203 {offsets = [0, 0, 0], sizes = [4, 1, 128], strides = [1, 1, 1]} : vector<4x2x128xf32> to vector<4x1x128xf32>
    %205 = vector.shape_cast %204 : vector<4x1x128xf32> to vector<4x128xf32>
    %206 = vector.extract_strided_slice %203 {offsets = [0, 1, 0], sizes = [4, 1, 128], strides = [1, 1, 1]} : vector<4x2x128xf32> to vector<4x1x128xf32>
    %207 = vector.shape_cast %206 : vector<4x1x128xf32> to vector<4x128xf32>
    %208 = arith.maximumf %205, %207 : vector<4x128xf32>
    %209 = arith.truncf %208 : vector<4x128xf32> to vector<4x128xbf16>
    %c33_110 = arith.constant 33 : index
    %c0_111 = arith.constant 0 : index
    %210 = vector.load %arg16[%c33_110, %c0_111] : memref<64x128xbf16, #tpu.memory_space<vmem>>, vector<4x128xbf16>
    tpu.vector_store %arg16[%c33_110, %c0_111], %209 {strides = array<i32>} : memref<64x128xbf16, #tpu.memory_space<vmem>>, vector<4x128xbf16>,
    %c97_112 = arith.constant 97 : index
    %c0_113 = arith.constant 0 : index
    %211 = vector.load %arg15[%c97_112, %c0_113] : memref<128x128xbf16, #tpu.memory_space<vmem>>, vector<8x128xbf16>
    %c113 = arith.constant 113 : index
    %c0_114 = arith.constant 0 : index
    %212 = vector.load %arg15[%c113, %c0_114] : memref<128x128xbf16, #tpu.memory_space<vmem>>, vector<8x128xbf16>
    %213 = arith.maximumf %211, %212 : vector<8x128xbf16>
    %214 = arith.extf %213 : vector<8x128xbf16> to vector<8x128xf32>
    %215 = vector.shape_cast %214 : vector<8x128xf32> to vector<4x2x128xf32>
    %216 = vector.extract_strided_slice %215 {offsets = [0, 0, 0], sizes = [4, 1, 128], strides = [1, 1, 1]} : vector<4x2x128xf32> to vector<4x1x128xf32>
    %217 = vector.shape_cast %216 : vector<4x1x128xf32> to vector<4x128xf32>
    %218 = vector.extract_strided_slice %215 {offsets = [0, 1, 0], sizes = [4, 1, 128], strides = [1, 1, 1]} : vector<4x2x128xf32> to vector<4x1x128xf32>
    %219 = vector.shape_cast %218 : vector<4x1x128xf32> to vector<4x128xf32>
    %220 = arith.maximumf %217, %219 : vector<4x128xf32>
    %221 = arith.truncf %220 : vector<4x128xf32> to vector<4x128xbf16>
    %c41_115 = arith.constant 41 : index
    %c0_116 = arith.constant 0 : index
    %222 = vector.load %arg16[%c41_115, %c0_116] : memref<64x128xbf16, #tpu.memory_space<vmem>>, vector<4x128xbf16>
    tpu.vector_store %arg16[%c41_115, %c0_116], %221 {strides = array<i32>} : memref<64x128xbf16, #tpu.memory_space<vmem>>, vector<4x128xbf16>,
    %c0_117 = arith.constant 0 : index
    %c0_118 = arith.constant 0 : index
    %223 = vector.load %arg7[%c0_117, %c0_118] : memref<1x128xf32, #tpu.memory_space<vmem>>, vector<1x128xf32>
    %c7_119 = arith.constant 7 : index
    %c0_120 = arith.constant 0 : index
    %224 = vector.load %arg16[%c7_119, %c0_120] : memref<64x128xbf16, #tpu.memory_space<vmem>>, vector<32x128xbf16>
    %c0_121 = arith.constant 0 : index
    %c0_122 = arith.constant 0 : index
    %225 = vector.load %arg6[%c0_121, %c0_122] : memref<1152x128xbf16, #tpu.memory_space<vmem>>, vector<128x128xbf16>
    %cst_123 = arith.constant dense<0.000000e+00> : vector<32x128xf32>
    %226 = tpu.matmul %224, %225, %cst_123 {dimension_numbers = #tpu.dot_dimension_numbers<[1], [0], [0], [1], [0, 0, 1, 1], [], []>} : vector<32x128xbf16>, vector<128x128xbf16>, vector<32x128xf32> -> vector<32x128xf32>
    %c8_124 = arith.constant 8 : index
    %c0_125 = arith.constant 0 : index
    %227 = vector.load %arg16[%c8_124, %c0_125] : memref<64x128xbf16, #tpu.memory_space<vmem>>, vector<32x128xbf16>
    %c128_126 = arith.constant 128 : index
    %c0_127 = arith.constant 0 : index
    %228 = vector.load %arg6[%c128_126, %c0_127] : memref<1152x128xbf16, #tpu.memory_space<vmem>>, vector<128x128xbf16>
    %cst_128 = arith.constant dense<0.000000e+00> : vector<32x128xf32>
    %229 = tpu.matmul %227, %228, %cst_128 {dimension_numbers = #tpu.dot_dimension_numbers<[1], [0], [0], [1], [0, 0, 1, 1], [], []>} : vector<32x128xbf16>, vector<128x128xbf16>, vector<32x128xf32> -> vector<32x128xf32>
    %230 = arith.addf %226, %229 : vector<32x128xf32>
    %c9_129 = arith.constant 9 : index
    %c0_130 = arith.constant 0 : index
    %231 = vector.load %arg16[%c9_129, %c0_130] : memref<64x128xbf16, #tpu.memory_space<vmem>>, vector<32x128xbf16>
    %c256_131 = arith.constant 256 : index
    %c0_132 = arith.constant 0 : index
    %232 = vector.load %arg6[%c256_131, %c0_132] : memref<1152x128xbf16, #tpu.memory_space<vmem>>, vector<128x128xbf16>
    %cst_133 = arith.constant dense<0.000000e+00> : vector<32x128xf32>
    %233 = tpu.matmul %231, %232, %cst_133 {dimension_numbers = #tpu.dot_dimension_numbers<[1], [0], [0], [1], [0, 0, 1, 1], [], []>} : vector<32x128xbf16>, vector<128x128xbf16>, vector<32x128xf32> -> vector<32x128xf32>
    %234 = arith.addf %230, %233 : vector<32x128xf32>
    %c15 = arith.constant 15 : index
    %c0_134 = arith.constant 0 : index
    %235 = vector.load %arg16[%c15, %c0_134] : memref<64x128xbf16, #tpu.memory_space<vmem>>, vector<32x128xbf16>
    %c384_135 = arith.constant 384 : index
    %c0_136 = arith.constant 0 : index
    %236 = vector.load %arg6[%c384_135, %c0_136] : memref<1152x128xbf16, #tpu.memory_space<vmem>>, vector<128x128xbf16>
    %cst_137 = arith.constant dense<0.000000e+00> : vector<32x128xf32>
    %237 = tpu.matmul %235, %236, %cst_137 {dimension_numbers = #tpu.dot_dimension_numbers<[1], [0], [0], [1], [0, 0, 1, 1], [], []>} : vector<32x128xbf16>, vector<128x128xbf16>, vector<32x128xf32> -> vector<32x128xf32>
    %238 = arith.addf %234, %237 : vector<32x128xf32>
    %c16 = arith.constant 16 : index
    %c0_138 = arith.constant 0 : index
    %239 = vector.load %arg16[%c16, %c0_138] : memref<64x128xbf16, #tpu.memory_space<vmem>>, vector<32x128xbf16>
    %c512_139 = arith.constant 512 : index
    %c0_140 = arith.constant 0 : index
    %240 = vector.load %arg6[%c512_139, %c0_140] : memref<1152x128xbf16, #tpu.memory_space<vmem>>, vector<128x128xbf16>
    %cst_141 = arith.constant dense<0.000000e+00> : vector<32x128xf32>
    %241 = tpu.matmul %239, %240, %cst_141 {dimension_numbers = #tpu.dot_dimension_numbers<[1], [0], [0], [1], [0, 0, 1, 1], [], []>} : vector<32x128xbf16>, vector<128x128xbf16>, vector<32x128xf32> -> vector<32x128xf32>
    %242 = arith.addf %238, %241 : vector<32x128xf32>
    %c17_142 = arith.constant 17 : index
    %c0_143 = arith.constant 0 : index
    %243 = vector.load %arg16[%c17_142, %c0_143] : memref<64x128xbf16, #tpu.memory_space<vmem>>, vector<32x128xbf16>
    %c640_144 = arith.constant 640 : index
    %c0_145 = arith.constant 0 : index
    %244 = vector.load %arg6[%c640_144, %c0_145] : memref<1152x128xbf16, #tpu.memory_space<vmem>>, vector<128x128xbf16>
    %cst_146 = arith.constant dense<0.000000e+00> : vector<32x128xf32>
    %245 = tpu.matmul %243, %244, %cst_146 {dimension_numbers = #tpu.dot_dimension_numbers<[1], [0], [0], [1], [0, 0, 1, 1], [], []>} : vector<32x128xbf16>, vector<128x128xbf16>, vector<32x128xf32> -> vector<32x128xf32>
    %246 = arith.addf %242, %245 : vector<32x128xf32>
    %c23_147 = arith.constant 23 : index
    %c0_148 = arith.constant 0 : index
    %247 = vector.load %arg16[%c23_147, %c0_148] : memref<64x128xbf16, #tpu.memory_space<vmem>>, vector<32x128xbf16>
    %c768_149 = arith.constant 768 : index
    %c0_150 = arith.constant 0 : index
    %248 = vector.load %arg6[%c768_149, %c0_150] : memref<1152x128xbf16, #tpu.memory_space<vmem>>, vector<128x128xbf16>
    %cst_151 = arith.constant dense<0.000000e+00> : vector<32x128xf32>
    %249 = tpu.matmul %247, %248, %cst_151 {dimension_numbers = #tpu.dot_dimension_numbers<[1], [0], [0], [1], [0, 0, 1, 1], [], []>} : vector<32x128xbf16>, vector<128x128xbf16>, vector<32x128xf32> -> vector<32x128xf32>
    %250 = arith.addf %246, %249 : vector<32x128xf32>
    %c24_152 = arith.constant 24 : index
    %c0_153 = arith.constant 0 : index
    %251 = vector.load %arg16[%c24_152, %c0_153] : memref<64x128xbf16, #tpu.memory_space<vmem>>, vector<32x128xbf16>
    %c896_154 = arith.constant 896 : index
    %c0_155 = arith.constant 0 : index
    %252 = vector.load %arg6[%c896_154, %c0_155] : memref<1152x128xbf16, #tpu.memory_space<vmem>>, vector<128x128xbf16>
    %cst_156 = arith.constant dense<0.000000e+00> : vector<32x128xf32>
    %253 = tpu.matmul %251, %252, %cst_156 {dimension_numbers = #tpu.dot_dimension_numbers<[1], [0], [0], [1], [0, 0, 1, 1], [], []>} : vector<32x128xbf16>, vector<128x128xbf16>, vector<32x128xf32> -> vector<32x128xf32>
    %254 = arith.addf %250, %253 : vector<32x128xf32>
    %c25_157 = arith.constant 25 : index
    %c0_158 = arith.constant 0 : index
    %255 = vector.load %arg16[%c25_157, %c0_158] : memref<64x128xbf16, #tpu.memory_space<vmem>>, vector<32x128xbf16>
    %c1024_159 = arith.constant 1024 : index
    %c0_160 = arith.constant 0 : index
    %256 = vector.load %arg6[%c1024_159, %c0_160] : memref<1152x128xbf16, #tpu.memory_space<vmem>>, vector<128x128xbf16>
    %cst_161 = arith.constant dense<0.000000e+00> : vector<32x128xf32>
    %257 = tpu.matmul %255, %256, %cst_161 {dimension_numbers = #tpu.dot_dimension_numbers<[1], [0], [0], [1], [0, 0, 1, 1], [], []>} : vector<32x128xbf16>, vector<128x128xbf16>, vector<32x128xf32> -> vector<32x128xf32>
    %258 = arith.addf %254, %257 : vector<32x128xf32>
    %259 = vector.broadcast %223 : vector<1x128xf32> to vector<32x128xf32>
    %260 = arith.addf %258, %259 : vector<32x128xf32>
    %cst_162 = arith.constant 0.000000e+00 : f32
    %261 = vector.broadcast %cst_162 : f32 to vector<32x128xf32>
    %262 = arith.maximumf %260, %261 : vector<32x128xf32>
    %263 = arith.truncf %262 : vector<32x128xf32> to vector<32x128xbf16>
    %c0_163 = arith.constant 0 : index
    %c0_164 = arith.constant 0 : index
    %264 = vector.load %arg17[%c0_163, %c0_164] : memref<32x128xbf16, #tpu.memory_space<vmem>>, vector<32x128xbf16>
    tpu.vector_store %arg17[%c0_163, %c0_164], %263 {strides = array<i32>} : memref<32x128xbf16, #tpu.memory_space<vmem>>, vector<32x128xbf16>,
    %c1_165 = arith.constant 1 : index
    %c0_166 = arith.constant 0 : index
    %265 = vector.load %arg17[%c1_165, %c0_166] : memref<32x128xbf16, #tpu.memory_space<vmem>>, vector<4x128xbf16>
    %c9_167 = arith.constant 9 : index
    %c0_168 = arith.constant 0 : index
    %266 = vector.load %arg17[%c9_167, %c0_168] : memref<32x128xbf16, #tpu.memory_space<vmem>>, vector<4x128xbf16>
    %267 = arith.maximumf %265, %266 : vector<4x128xbf16>
    %268 = arith.extf %267 : vector<4x128xbf16> to vector<4x128xf32>
    %269 = vector.shape_cast %268 : vector<4x128xf32> to vector<2x2x128xf32>
    %270 = vector.extract_strided_slice %269 {offsets = [0, 0, 0], sizes = [2, 1, 128], strides = [1, 1, 1]} : vector<2x2x128xf32> to vector<2x1x128xf32>
    %271 = vector.shape_cast %270 : vector<2x1x128xf32> to vector<2x128xf32>
    %272 = vector.extract_strided_slice %269 {offsets = [0, 1, 0], sizes = [2, 1, 128], strides = [1, 1, 1]} : vector<2x2x128xf32> to vector<2x1x128xf32>
    %273 = vector.shape_cast %272 : vector<2x1x128xf32> to vector<2x128xf32>
    %274 = arith.maximumf %271, %273 : vector<2x128xf32>
    %275 = arith.truncf %274 : vector<2x128xf32> to vector<2x128xbf16>
    %c17_169 = arith.constant 17 : index
    %c0_170 = arith.constant 0 : index
    %276 = vector.load %arg18[%c17_169, %c0_170] : memref<48x128xbf16, #tpu.memory_space<vmem>>, vector<2x128xbf16>
    tpu.vector_store %arg18[%c17_169, %c0_170], %275 {strides = array<i32>} : memref<48x128xbf16, #tpu.memory_space<vmem>>, vector<2x128xbf16>,
    %c17_171 = arith.constant 17 : index
    %c0_172 = arith.constant 0 : index
    %277 = vector.load %arg17[%c17_171, %c0_172] : memref<32x128xbf16, #tpu.memory_space<vmem>>, vector<4x128xbf16>
    %c25_173 = arith.constant 25 : index
    %c0_174 = arith.constant 0 : index
    %278 = vector.load %arg17[%c25_173, %c0_174] : memref<32x128xbf16, #tpu.memory_space<vmem>>, vector<4x128xbf16>
    %279 = arith.maximumf %277, %278 : vector<4x128xbf16>
    %280 = arith.extf %279 : vector<4x128xbf16> to vector<4x128xf32>
    %281 = vector.shape_cast %280 : vector<4x128xf32> to vector<2x2x128xf32>
    %282 = vector.extract_strided_slice %281 {offsets = [0, 0, 0], sizes = [2, 1, 128], strides = [1, 1, 1]} : vector<2x2x128xf32> to vector<2x1x128xf32>
    %283 = vector.shape_cast %282 : vector<2x1x128xf32> to vector<2x128xf32>
    %284 = vector.extract_strided_slice %281 {offsets = [0, 1, 0], sizes = [2, 1, 128], strides = [1, 1, 1]} : vector<2x2x128xf32> to vector<2x1x128xf32>
    %285 = vector.shape_cast %284 : vector<2x1x128xf32> to vector<2x128xf32>
    %286 = arith.maximumf %283, %285 : vector<2x128xf32>
    %287 = arith.truncf %286 : vector<2x128xf32> to vector<2x128xbf16>
    %c25_175 = arith.constant 25 : index
    %c0_176 = arith.constant 0 : index
    %288 = vector.load %arg18[%c25_175, %c0_176] : memref<48x128xbf16, #tpu.memory_space<vmem>>, vector<2x128xbf16>
    tpu.vector_store %arg18[%c25_175, %c0_176], %287 {strides = array<i32>} : memref<48x128xbf16, #tpu.memory_space<vmem>>, vector<2x128xbf16>,
    %c0_177 = arith.constant 0 : index
    %c0_178 = arith.constant 0 : index
    %289 = vector.load %arg9[%c0_177, %c0_178] : memref<1x256xf32, #tpu.memory_space<vmem>>, vector<1x256xf32>
    %c7_179 = arith.constant 7 : index
    %c0_180 = arith.constant 0 : index
    %290 = vector.load %arg18[%c7_179, %c0_180] : memref<48x128xbf16, #tpu.memory_space<vmem>>, vector<16x128xbf16>
    %c0_181 = arith.constant 0 : index
    %c0_182 = arith.constant 0 : index
    %291 = vector.load %arg8[%c0_181, %c0_182] : memref<1152x256xbf16, #tpu.memory_space<vmem>>, vector<128x256xbf16>
    %cst_183 = arith.constant dense<0.000000e+00> : vector<16x256xf32>
    %292 = tpu.matmul %290, %291, %cst_183 {dimension_numbers = #tpu.dot_dimension_numbers<[1], [0], [0], [1], [0, 0, 1, 1], [], []>} : vector<16x128xbf16>, vector<128x256xbf16>, vector<16x256xf32> -> vector<16x256xf32>
    %c8_184 = arith.constant 8 : index
    %c0_185 = arith.constant 0 : index
    %293 = vector.load %arg18[%c8_184, %c0_185] : memref<48x128xbf16, #tpu.memory_space<vmem>>, vector<16x128xbf16>
    %c128_186 = arith.constant 128 : index
    %c0_187 = arith.constant 0 : index
    %294 = vector.load %arg8[%c128_186, %c0_187] : memref<1152x256xbf16, #tpu.memory_space<vmem>>, vector<128x256xbf16>
    %cst_188 = arith.constant dense<0.000000e+00> : vector<16x256xf32>
    %295 = tpu.matmul %293, %294, %cst_188 {dimension_numbers = #tpu.dot_dimension_numbers<[1], [0], [0], [1], [0, 0, 1, 1], [], []>} : vector<16x128xbf16>, vector<128x256xbf16>, vector<16x256xf32> -> vector<16x256xf32>
    %296 = arith.addf %292, %295 : vector<16x256xf32>
    %c9_189 = arith.constant 9 : index
    %c0_190 = arith.constant 0 : index
    %297 = vector.load %arg18[%c9_189, %c0_190] : memref<48x128xbf16, #tpu.memory_space<vmem>>, vector<16x128xbf16>
    %c256_191 = arith.constant 256 : index
    %c0_192 = arith.constant 0 : index
    %298 = vector.load %arg8[%c256_191, %c0_192] : memref<1152x256xbf16, #tpu.memory_space<vmem>>, vector<128x256xbf16>
    %cst_193 = arith.constant dense<0.000000e+00> : vector<16x256xf32>
    %299 = tpu.matmul %297, %298, %cst_193 {dimension_numbers = #tpu.dot_dimension_numbers<[1], [0], [0], [1], [0, 0, 1, 1], [], []>} : vector<16x128xbf16>, vector<128x256xbf16>, vector<16x256xf32> -> vector<16x256xf32>
    %300 = arith.addf %296, %299 : vector<16x256xf32>
    %c15_194 = arith.constant 15 : index
    %c0_195 = arith.constant 0 : index
    %301 = vector.load %arg18[%c15_194, %c0_195] : memref<48x128xbf16, #tpu.memory_space<vmem>>, vector<16x128xbf16>
    %c384_196 = arith.constant 384 : index
    %c0_197 = arith.constant 0 : index
    %302 = vector.load %arg8[%c384_196, %c0_197] : memref<1152x256xbf16, #tpu.memory_space<vmem>>, vector<128x256xbf16>
    %cst_198 = arith.constant dense<0.000000e+00> : vector<16x256xf32>
    %303 = tpu.matmul %301, %302, %cst_198 {dimension_numbers = #tpu.dot_dimension_numbers<[1], [0], [0], [1], [0, 0, 1, 1], [], []>} : vector<16x128xbf16>, vector<128x256xbf16>, vector<16x256xf32> -> vector<16x256xf32>
    %304 = arith.addf %300, %303 : vector<16x256xf32>
    %c16_199 = arith.constant 16 : index
    %c0_200 = arith.constant 0 : index
    %305 = vector.load %arg18[%c16_199, %c0_200] : memref<48x128xbf16, #tpu.memory_space<vmem>>, vector<16x128xbf16>
    %c512_201 = arith.constant 512 : index
    %c0_202 = arith.constant 0 : index
    %306 = vector.load %arg8[%c512_201, %c0_202] : memref<1152x256xbf16, #tpu.memory_space<vmem>>, vector<128x256xbf16>
    %cst_203 = arith.constant dense<0.000000e+00> : vector<16x256xf32>
    %307 = tpu.matmul %305, %306, %cst_203 {dimension_numbers = #tpu.dot_dimension_numbers<[1], [0], [0], [1], [0, 0, 1, 1], [], []>} : vector<16x128xbf16>, vector<128x256xbf16>, vector<16x256xf32> -> vector<16x256xf32>
    %308 = arith.addf %304, %307 : vector<16x256xf32>
    %c17_204 = arith.constant 17 : index
    %c0_205 = arith.constant 0 : index
    %309 = vector.load %arg18[%c17_204, %c0_205] : memref<48x128xbf16, #tpu.memory_space<vmem>>, vector<16x128xbf16>
    %c640_206 = arith.constant 640 : index
    %c0_207 = arith.constant 0 : index
    %310 = vector.load %arg8[%c640_206, %c0_207] : memref<1152x256xbf16, #tpu.memory_space<vmem>>, vector<128x256xbf16>
    %cst_208 = arith.constant dense<0.000000e+00> : vector<16x256xf32>
    %311 = tpu.matmul %309, %310, %cst_208 {dimension_numbers = #tpu.dot_dimension_numbers<[1], [0], [0], [1], [0, 0, 1, 1], [], []>} : vector<16x128xbf16>, vector<128x256xbf16>, vector<16x256xf32> -> vector<16x256xf32>
    %312 = arith.addf %308, %311 : vector<16x256xf32>
    %c23_209 = arith.constant 23 : index
    %c0_210 = arith.constant 0 : index
    %313 = vector.load %arg18[%c23_209, %c0_210] : memref<48x128xbf16, #tpu.memory_space<vmem>>, vector<16x128xbf16>
    %c768_211 = arith.constant 768 : index
    %c0_212 = arith.constant 0 : index
    %314 = vector.load %arg8[%c768_211, %c0_212] : memref<1152x256xbf16, #tpu.memory_space<vmem>>, vector<128x256xbf16>
    %cst_213 = arith.constant dense<0.000000e+00> : vector<16x256xf32>
    %315 = tpu.matmul %313, %314, %cst_213 {dimension_numbers = #tpu.dot_dimension_numbers<[1], [0], [0], [1], [0, 0, 1, 1], [], []>} : vector<16x128xbf16>, vector<128x256xbf16>, vector<16x256xf32> -> vector<16x256xf32>
    %316 = arith.addf %312, %315 : vector<16x256xf32>
    %c24_214 = arith.constant 24 : index
    %c0_215 = arith.constant 0 : index
    %317 = vector.load %arg18[%c24_214, %c0_215] : memref<48x128xbf16, #tpu.memory_space<vmem>>, vector<16x128xbf16>
    %c896_216 = arith.constant 896 : index
    %c0_217 = arith.constant 0 : index
    %318 = vector.load %arg8[%c896_216, %c0_217] : memref<1152x256xbf16, #tpu.memory_space<vmem>>, vector<128x256xbf16>
    %cst_218 = arith.constant dense<0.000000e+00> : vector<16x256xf32>
    %319 = tpu.matmul %317, %318, %cst_218 {dimension_numbers = #tpu.dot_dimension_numbers<[1], [0], [0], [1], [0, 0, 1, 1], [], []>} : vector<16x128xbf16>, vector<128x256xbf16>, vector<16x256xf32> -> vector<16x256xf32>
    %320 = arith.addf %316, %319 : vector<16x256xf32>
    %c25_219 = arith.constant 25 : index
    %c0_220 = arith.constant 0 : index
    %321 = vector.load %arg18[%c25_219, %c0_220] : memref<48x128xbf16, #tpu.memory_space<vmem>>, vector<16x128xbf16>
    %c1024_221 = arith.constant 1024 : index
    %c0_222 = arith.constant 0 : index
    %322 = vector.load %arg8[%c1024_221, %c0_222] : memref<1152x256xbf16, #tpu.memory_space<vmem>>, vector<128x256xbf16>
    %cst_223 = arith.constant dense<0.000000e+00> : vector<16x256xf32>
    %323 = tpu.matmul %321, %322, %cst_223 {dimension_numbers = #tpu.dot_dimension_numbers<[1], [0], [0], [1], [0, 0, 1, 1], [], []>} : vector<16x128xbf16>, vector<128x256xbf16>, vector<16x256xf32> -> vector<16x256xf32>
    %324 = arith.addf %320, %323 : vector<16x256xf32>
    %325 = vector.broadcast %289 : vector<1x256xf32> to vector<16x256xf32>
    %326 = arith.addf %324, %325 : vector<16x256xf32>
    %cst_224 = arith.constant 0.000000e+00 : f32
    %327 = vector.broadcast %cst_224 : f32 to vector<16x256xf32>
    %328 = arith.maximumf %326, %327 : vector<16x256xf32>
    %329 = vector.extract_strided_slice %328 {offsets = [1, 0], sizes = [2, 256], strides = [1, 1]} : vector<16x256xf32> to vector<2x256xf32>
    %330 = vector.extract_strided_slice %328 {offsets = [9, 0], sizes = [2, 256], strides = [1, 1]} : vector<16x256xf32> to vector<2x256xf32>
    %331 = arith.addf %329, %330 : vector<2x256xf32>
    %cst_225 = arith.constant dense<0.000000e+00> : vector<256xf32>
    %332 = vector.multi_reduction <add>, %331, %cst_225 [0] : vector<2x256xf32> to vector<256xf32>
    %333 = vector.shape_cast %332 : vector<256xf32> to vector<1x256xf32>
    %cst_226 = arith.constant 2.500000e-01 : f32
    %334 = vector.broadcast %cst_226 : f32 to vector<1x256xf32>
    %335 = arith.mulf %333, %334 : vector<1x256xf32>
    %c0_227 = arith.constant 0 : index
    %c0_228 = arith.constant 0 : index
    %336 = vector.load %arg10[%c0_227, %c0_228] : memref<256x2xf32, #tpu.memory_space<vmem>>, vector<256x2xf32>
    %cst_229 = arith.constant dense<0.000000e+00> : vector<1x2xf32>
    %337 = tpu.matmul %335, %336, %cst_229 {dimension_numbers = #tpu.dot_dimension_numbers<[1], [0], [0], [1], [0, 0, 1, 1], [], []>} : vector<1x256xf32>, vector<256x2xf32>, vector<1x2xf32> -> vector<1x2xf32>
    %c0_230 = arith.constant 0 : index
    %c0_231 = arith.constant 0 : index
    %338 = vector.load %arg11[%c0_230, %c0_231] : memref<1x2xf32, #tpu.memory_space<vmem>>, vector<1x2xf32>
    %339 = arith.addf %337, %338 : vector<1x2xf32>
    %c0_232 = arith.constant 0 : index
    %c0_233 = arith.constant 0 : index
    %c0_234 = arith.constant 0 : index
    %340 = vector.load %arg12[%c0_232, %c0_233, %c0_234] : memref<1x1x2xf32, #tpu.memory_space<vmem>>, vector<1x1x2xf32>
    %341 = vector.shape_cast %340 : vector<1x1x2xf32> to vector<1x2xf32>
    %342 = vector.shape_cast %339 : vector<1x2xf32> to vector<1x1x2xf32>
    tpu.vector_store %arg12[%c0_232, %c0_233, %c0_234], %342 {strides = array<i32>} : memref<1x1x2xf32, #tpu.memory_space<vmem>>, vector<1x1x2xf32>,
    return
  }
  func.func @transform_0(%arg0: i32) -> (i32, i32, i32) {
    %c0_i32 = arith.constant 0 : i32
    %c0_i32_0 = arith.constant 0 : i32
    %c0_i32_1 = arith.constant 0 : i32
    return %arg0, %c0_i32, %c0_i32_0 : i32, i32, i32
  }
  func.func @transform_1(%arg0: i32) -> (i32, i32) {
    %c0_i32 = arith.constant 0 : i32
    %c0_i32_0 = arith.constant 0 : i32
    %c0_i32_1 = arith.constant 0 : i32
    return %c0_i32, %c0_i32_0 : i32, i32
  }
  func.func @transform_2(%arg0: i32) -> (i32, i32) {
    %c0_i32 = arith.constant 0 : i32
    %c0_i32_0 = arith.constant 0 : i32
    %c0_i32_1 = arith.constant 0 : i32
    return %c0_i32, %c0_i32_0 : i32, i32
  }
  func.func @transform_3(%arg0: i32) -> (i32, i32) {
    %c0_i32 = arith.constant 0 : i32
    %c0_i32_0 = arith.constant 0 : i32
    %c0_i32_1 = arith.constant 0 : i32
    return %c0_i32, %c0_i32_0 : i32, i32
  }
  func.func @transform_4(%arg0: i32) -> (i32, i32) {
    %c0_i32 = arith.constant 0 : i32
    %c0_i32_0 = arith.constant 0 : i32
    %c0_i32_1 = arith.constant 0 : i32
    return %c0_i32, %c0_i32_0 : i32, i32
  }
  func.func @transform_5(%arg0: i32) -> (i32, i32) {
    %c0_i32 = arith.constant 0 : i32
    %c0_i32_0 = arith.constant 0 : i32
    %c0_i32_1 = arith.constant 0 : i32
    return %c0_i32, %c0_i32_0 : i32, i32
  }
  func.func @transform_6(%arg0: i32) -> (i32, i32) {
    %c0_i32 = arith.constant 0 : i32
    %c0_i32_0 = arith.constant 0 : i32
    %c0_i32_1 = arith.constant 0 : i32
    return %c0_i32, %c0_i32_0 : i32, i32
  }
  func.func @transform_7(%arg0: i32) -> (i32, i32) {
    %c0_i32 = arith.constant 0 : i32
    %c0_i32_0 = arith.constant 0 : i32
    %c0_i32_1 = arith.constant 0 : i32
    return %c0_i32, %c0_i32_0 : i32, i32
  }
  func.func @transform_8(%arg0: i32) -> (i32, i32) {
    %c0_i32 = arith.constant 0 : i32
    %c0_i32_0 = arith.constant 0 : i32
    %c0_i32_1 = arith.constant 0 : i32
    return %c0_i32, %c0_i32_0 : i32, i32
  }
  func.func @transform_9(%arg0: i32) -> (i32, i32) {
    %c0_i32 = arith.constant 0 : i32
    %c0_i32_0 = arith.constant 0 : i32
    %c0_i32_1 = arith.constant 0 : i32
    return %c0_i32, %c0_i32_0 : i32, i32
  }
  func.func @transform_10(%arg0: i32) -> (i32, i32) {
    %c0_i32 = arith.constant 0 : i32
    %c0_i32_0 = arith.constant 0 : i32
    %c0_i32_1 = arith.constant 0 : i32
    return %c0_i32, %c0_i32_0 : i32, i32
  }
  func.func @transform_11(%arg0: i32) -> (i32, i32, i32) {
    %c0_i32 = arith.constant 0 : i32
    %c0_i32_0 = arith.constant 0 : i32
    %c0_i32_1 = arith.constant 0 : i32
    return %arg0, %c0_i32, %c0_i32_0 : i32, i32, i32
  }
}

</mosaic_0001>

<bundles_post_ra>
// kernel: eyecnn_forward.1
= control target key start
LH: loop header
LB: loop body
LE: loop exit
PB: predicated region body
PF: predicated region fallthrough
CT: control target
= control target key end

     0   :  { %s12787_s0 = inlined_call_operand.vmem [shape: bf16[2,384,128], index: 0, kind: input, shape index: {}]   ;;  %s12788_s1 = inlined_call_operand.vmem [shape: bf16[128,128], index: 1, kind: input, shape index: {}]   ;;  %s12789_s2 = inlined_call_operand.vmem [shape: f32[1,128], index: 2, kind: input, shape index: {}]   ;;  %s12790_s3 = inlined_call_operand.vmem [shape: bf16[1152,128], index: 3, kind: input, shape index: {}]   ;;  %s12791_s4 = inlined_call_operand.vmem [shape: f32[1,128], index: 4, kind: input, shape index: {}]   ;;  %s12792_s5 = inlined_call_operand.hbm [shape: bf16[1152,128], index: 5, kind: input, shape index: {}]   ;;  %s12793_s6 = inlined_call_operand.vmem [shape: f32[1,128], index: 6, kind: input, shape index: {}]   ;;  %s12794_s7 = inlined_call_operand.vmem [shape: bf16[1152,256], index: 7, kind: input, shape index: {}]   ;;  %s12795_s8 = inlined_call_operand.vmem [shape: f32[1,256], index: 8, kind: input, shape index: {}]   ;;  %s12796_s9 = inlined_call_operand.vmem [shape: f32[256,2], index: 9, kind: input, shape index: {}]   ;;  %s12797_s10 = inlined_call_operand.vmem [shape: f32[1,2], index: 10, kind: input, shape index: {}]   ;;  %s12798_s11 = inlined_call_operand.hbm [shape: f32[2,1,2], index: 11, kind: output, shape index: {}]  }
   0x1   :  { %12826 = sst [smem:[#allocation37_spill]] %s12792_s5 }
   0x2   :  { %16 = vsyncpa [#allocation9], 0 }
   0x3   :  { %17 = vsyncpa [#allocation10], 0 }
   0x4   :  { %19 = vsyncpa [#allocation10 + $0x1], 0  ;;  %s9937_s17 = smov 0   ;;  %s9939_s18 = smov 0  }
   0x5   :  { %s9941_s19 = smov 0   ;;  %s9943_s20 = smov 0  }
   0x6 LB: > { %s9958_s21 = sadd.s32 4294967295, %s9871_s20   ;;  %s7292_s22 = sadd.s32 4294967294, %s9871_s20   ;;  %s9871_s20 = sphi %s9943_s20, %s12943_s20   ;;  %s9867_s19 = sphi %s9941_s19, %s12942_s19   ;;  %s9863_s18 = sphi %s9939_s18, %s12941_s18   ;;  %s9859_s17 = sphi %s9937_s17, %s12940_s17  }
   0x7   : > { %s9962_s23 = sadd.s32 1, %s9871_s20   ;;  %s268_s24 = sadd.s32 1, %s9867_s19 }
   0x8   : > { %s265_s25 = ssub.s32 %s9871_s20, %s9962_s23  ;;  %p278_p0 = scmp.ne.s32.totalorder %s9867_s19, %s9863_s18 }
   0x9   : > { %p266_p1 = scmp.eq.s32.totalorder %s265_s25, 0  ;;  %p279_p2 = scmp.eq.s32.totalorder %s9958_s21, 1 }
   0xa   : > { %p284_p3 = scmp.ne.s32.totalorder %s9863_s18, %s9859_s17  ;;  %p285_p4 = scmp.eq.s32.totalorder %s7292_s22, 1 }
   0xb   : > { %s9973_s26 = scalar_select %p266_p1, %s9867_s19, %s268_s24  }
   0xc   : > { %p9975_p5 = por %p279_p2, %p278_p0  ;;  %p9979_p6 = por %p285_p4, %p284_p3 }
   0xd   : > { %12827 = sst [smem:[#allocation14_spill]] %s9973_s26  ;;  %p7293_p7 = scmp.ge.s32.totalorder %s9871_s20, 1 }
   0xe   : > { %p292_p8 = scmp.lt.s32.totalorder %s9871_s20, 3  ;;  %p9727_p9 = scmp.eq.s32.totalorder %s9958_s21, 0 }
   0xf   : > { %s12830_s5 = sld [smem:[#allocation37_spill]]  ;;  %s9873_s13 = smov [#allocation8]  }
  0x10   : > { %p293_p10 = pnand %p7293_p7, %p292_p8  ;;  %s317_s14 = sshll.u32 %s9873_s13, 4  ;;  %s318_s14 = int_to_ptr.vmem [resolvable:$true] %s317_s14 }
  0x11   : > { %s9874_s15 = smov 64   ;;  %s9875_s16 = smov 4  }
  0x12   : > { %p9719_p11 = pneg %p293_p10  ;;  %356 = sbr.rel (%p293_p10) target bundleno = 1558 (0x616), region = 64 }
  0x14   : > { %p9720_p12 = pnand %p9727_p9, %p9719_p11 }
  0x15   : > { %s315_s12 = sshll.u32 %s12830_s5, 4  ;;  %s316_s12 = int_to_ptr.hbm [resolvable:$true] %s315_s12 }
  0x16   : > { %9722 = dma.hbm_to_vmem [thread:$0]  (!%p9720_p12), %s316_s12, 9216, %s318_s14, [#allocation9], %s9874_s15, %s9874_s15, %s9875_s16  }
  0x17   : > { %9849 = dma.done.wait (%p9727_p9), [#allocation9], 9216  }
  0x18   : > { %9851 = vsyncadd (%p9727_p9), [#allocation9], 4294958080  ;;  %v8868_v0 = vld [vmem:[%s12788_s1 + $0x38] sm:$0xff]  ;;  %v8867_v3 = vld [vmem:[%s12788_s1 + $0x30] sm:$0xff]  ;;  %p396_p13 = scmp.lt.s32.totalorder %s9958_s21, 1  ;;  %vm1147_vm0 = vcmask 1040384   ;;  %s7221_s13 = scalar_lea.hbm %s12798_s11, %s9958_s21 }
  0x19   : > { %v8884_v1 = vld [vmem:[%s12788_s1 + $0x38] sm:$0xff]  ;;  %570 = vmatpush.bf16.msra.mxu0 %v8868_v0  ;;  %v8883_v4 = vld [vmem:[%s12788_s1 + $0x30] sm:$0xff]  ;;  %v8866_v6 = vld [vmem:[%s12788_s1 + $0x28] sm:$0xff]  ;;  %vm1148_vm1 = vcmask 1042434   ;;  %vm1150_vm3 = vcmask 1044484   ;;  %vm1152_vm5 = vcmask 1046534  }
  0x1a   : > { %v8900_v2 = vld [vmem:[%s12788_s1 + $0x38] sm:$0xff]  ;;  %795 = vmatpush.bf16.msra.mxu1 %v8884_v1  ;;  %v8899_v5 = vld [vmem:[%s12788_s1 + $0x30] sm:$0xff]  ;;  %v8882_v7 = vld [vmem:[%s12788_s1 + $0x28] sm:$0xff]  ;;  %s397_s30 = scalar_select %p396_p13, %s9958_s21, 1  ;;  %vm1247_vm7 = vcmask 1043459   ;;  %vm1252_vm8 = vcmask 1045509  }
  0x1b   : > { %1020 = vmatpush.bf16.msra.mxu2 %v8900_v2  ;;  %v8898_v8 = vld [vmem:[%s12788_s1 + $0x28] sm:$0xff]  ;;  %v8865_v9 = vld [vmem:[%s12788_s1 + $0x20] sm:$0xff]  ;;  %v8864_v12 = vld [vmem:[%s12788_s1 + $0x18] sm:$0xff]  ;;  %vm1257_vm9 = vcmask 1047559   ;;  %vm1263_vm10 = vcmask 1043456   ;;  %s394_s24 = sand.u32 1, %s9863_s18  }
  0x1c   : > { %v8881_v10 = vld [vmem:[%s12788_s1 + $0x20] sm:$0xff]  ;;  %v8880_v13 = vld [vmem:[%s12788_s1 + $0x18] sm:$0xff]  ;;  %v8863_v15 = vld [vmem:[%s12788_s1 + $0x10] sm:$0xff]  ;;  %s9712_s22 = smul.u32 192, %s397_s30  ;;  %vm1264_vm11 = vsmask.f32 7938 }
  0x1d   : > { %571 = vmatpush.bf16.msra.mxu0 %v8867_v3  ;;  %v8897_v11 = vld [vmem:[%s12788_s1 + $0x20] sm:$0xff]  ;;  %v8896_v14 = vld [vmem:[%s12788_s1 + $0x18] sm:$0xff]  ;;  %v8879_v16 = vld [vmem:[%s12788_s1 + $0x10] sm:$0xff]  ;;  %vm1270_vm13 = vsmask.f32 256  ;;  %s395_s15 = scalar_lea.vmem [#allocation11], %s394_s24 }
  0x1e   : > { %796 = vmatpush.bf16.msra.mxu1 %v8883_v4  ;;  %v8895_v17 = vld [vmem:[%s12788_s1 + $0x10] sm:$0xff]  ;;  %v8862_v18 = vld [vmem:[%s12788_s1 + $0x8] sm:$0xff]  ;;  %v8861_v21 = vld [vmem:[%s12788_s1] sm:$0xff]  ;;  %s10069_s5 = scalar_lea.vmem %s12787_s0, %s9712_s22  ;;  %vm2737_vm15 = vsmask.f32 7424  ;;  %s7225_s30 = sshll.u32 %s7221_s13, 4  ;;  %s7226_s30 = int_to_ptr.hbm [resolvable:$true] %s7225_s30 }
  0x1f   : > { %1021 = vmatpush.bf16.msra.mxu2 %v8899_v5  ;;  %v8878_v19 = vld [vmem:[%s12788_s1 + $0x8] sm:$0xff]  ;;  %v8877_v22 = vld [vmem:[%s12788_s1] sm:$0xff]  ;;  %v8855_v30 = vld [vmem:[%s10069_s5 + $0x10] sm:$0xff]  ;;  %s7213_s16 = scalar_lea.sflag [#allocation10], %s394_s24  ;;  %s9818_s26 = sshra.s32 %s7226_s30, 4  ;;  %s9819_s26 = int_to_ptr.hbm [resolvable:$true] %s9818_s26 }
  0x20   : > { %v8894_v20 = vld [vmem:[%s12788_s1 + $0x8] sm:$0xff]  ;;  %v8893_v23 = vld [vmem:[%s12788_s1] sm:$0xff]  ;;  %v8871_v31 = vld [vmem:[%s10069_s5 + $0x50] sm:$0xff]  ;;  %s9820_s21 = scalar_lea.hbm %s9819_s26, 1  ;;  %s9824_s29 = scalar_lea.hbm %s12798_s11, 2 }
  0x21   : > { %572 = vmatpush.bf16.msra.mxu0 %v8866_v6  ;;  %v8853_v24 = vld [vmem:[%s10069_s5] sm:$0xff]  ;;  %v8854_v27 = vld [vmem:[%s10069_s5 + $0x8] sm:$0xff]  ;;  %v8887_v32 = vld [vmem:[%s10069_s5 + $0x90] sm:$0xff]  ;;  %p9821_p0 = scmp.ne.s32.totalorder %s9819_s26, %s9820_s21  ;;  %p9825_p3 = scmp.lt.s32.totalorder %s9819_s26, %s12798_s11 }
  0x22   : > { %797 = vmatpush.bf16.msra.mxu1 %v8882_v7  ;;  %v8869_v25 = vld [vmem:[%s10069_s5 + $0x40] sm:$0xff]  ;;  %v8870_v28 = vld [vmem:[%s10069_s5 + $0x48] sm:$0xff]  ;;  %v8856_v33 = vld [vmem:[%s10069_s5 + $0x18] sm:$0xff]  ;;  %p9826_p4 = scmp.lt.s32.totalorder %s9824_s29, %s9820_s21 }
  0x23   : > { %1022 = vmatpush.bf16.msra.mxu2 %v8898_v8  ;;  %v8885_v26 = vld [vmem:[%s10069_s5 + $0x80] sm:$0xff]  ;;  %v8886_v29 = vld [vmem:[%s10069_s5 + $0x88] sm:$0xff]  ;;  %v8872_v34 = vld [vmem:[%s10069_s5 + $0x58] sm:$0xff]  ;;  %p9822_p1 = pnand %p9821_p0, %p9975_p5 }
  0x24   : > { %v8888_v35 = vld [vmem:[%s10069_s5 + $0x98] sm:$0xff]  ;;  %v8857_v36 = vld [vmem:[%s10069_s5 + $0x20] sm:$0xff]  ;;  %v8858_v39 = vld [vmem:[%s10069_s5 + $0x28] sm:$0xff]  ;;  %p9827_p7 = por %p9826_p4, %p9825_p3 }
  0x25   : > { %573 = vmatpush.bf16.msra.mxu0 %v8865_v9  ;;  %v8873_v37 = vld [vmem:[%s10069_s5 + $0x60] sm:$0xff]  ;;  %v8874_v40 = vld [vmem:[%s10069_s5 + $0x68] sm:$0xff]  ;;  %v8859_v42 = vld [vmem:[%s10069_s5 + $0x30] sm:$0xff]  ;;  %p9823_p2 = pneg %p9822_p1 }
  0x26   : > { %798 = vmatpush.bf16.msra.mxu1 %v8881_v10  ;;  %v8889_v38 = vld [vmem:[%s10069_s5 + $0xa0] sm:$0xff]  ;;  %v8890_v41 = vld [vmem:[%s10069_s5 + $0xa8] sm:$0xff]  ;;  %v8875_v43 = vld [vmem:[%s10069_s5 + $0x70] sm:$0xff] }
  0x27   : > { %1023 = vmatpush.bf16.msra.mxu2 %v8897_v11  ;;  %v8891_v44 = vld [vmem:[%s10069_s5 + $0xb0] sm:$0xff]  ;;  %v8860_v45 = vld [vmem:[%s10069_s5 + $0x38] sm:$0xff]  ;;  %v10101_v50 = vld [vmem:[%s12789_s2] ss:$0 sm:$0xff]  ;;  %p9828_p8 = pnand %p9827_p7, %p9823_p2 }
  0x28   : > { %v8876_v46 = vld [vmem:[%s10069_s5 + $0x78] sm:$0xff]  ;;  %vm1149_vm2 = vmor %vm1147_vm0, %vm1148_vm1 }
  0x29   : > { %574 = vmatpush.bf16.msra.mxu0 %v8864_v12  ;;  %v8892_v47 = vld [vmem:[%s10069_s5 + $0xb8] sm:$0xff]  ;;  %vm1151_vm4 = vmor %vm1149_vm2, %vm1150_vm3  ;;  %vm4441_vm2 = vcmask 1042432   ;;  %s7223_s5 = sshll.u32 %s395_s15, 4  ;;  %s7224_s5 = int_to_ptr.vmem [resolvable:$true] %s7223_s5 }
  0x2a   : > { %799 = vmatpush.bf16.msra.mxu1 %v8880_v13  ;;  %vm10138_vm6 = vmor %vm1151_vm4, %vm1152_vm5  ;;  %vm4442_vm4 = vsmask.f32 2306 }
  0x2b   : > { %1024 = vmatpush.bf16.msra.mxu2 %v8896_v14  ;;  %vm10584_vm12 = vmand %vm1263_vm10, %vm1264_vm11 }
  0x2c   : > { %vm10595_vm14 = vmand %vm1147_vm0, %vm1270_vm13  ;;  %vm2475_vm0 = vsmask.f32 4352 }
  0x2d   : > { %575 = vmatpush.bf16.msra.mxu0 %v8863_v15 }
  0x2e   : > { %800 = vmatpush.bf16.msra.mxu1 %v8879_v16 }
  0x2f   : > { %1025 = vmatpush.bf16.msra.mxu2 %v8895_v17 }
  0x31   : > { %576 = vmatpush.bf16.msra.mxu0 %v8862_v18 }
  0x32   : > { %801 = vmatpush.bf16.msra.mxu1 %v8878_v19 }
  0x33   : > { %1026 = vmatpush.bf16.msra.mxu2 %v8894_v20 }
  0x35   : > { %577 = vmatpush.bf16.msra.mxu0 %v8861_v21 }
  0x36   : > { %802 = vmatpush.bf16.msra.mxu1 %v8877_v22 }
  0x37   : > { %1027 = vmatpush.bf16.msra.mxu2 %v8893_v23 }
  0x38   : > { %578 = vmatmul.bf16.vlgmr.msra.gmra.mxu0 %v8853_v24 }
  0x39   : > { %803 = vmatmul.bf16.vlgmr.msra.gmra.mxu1 %v8869_v25 }
  0x3a   : > { %1028 = vmatmul.bf16.vlgmr.msra.gmra.mxu2 %v8885_v26 }
  0x48   : > { %583 = vmatmul.bf16.gmra.mxu0 %v8854_v27 }
  0x49   : > { %808 = vmatmul.bf16.gmra.mxu1 %v8870_v28 }
  0x4a   : > { %1033 = vmatmul.bf16.gmra.mxu2 %v8886_v29 }
  0x58   : > { %588 = vmatmul.bf16.gmra.mxu0 %v8855_v30 }
  0x59   : > { %813 = vmatmul.bf16.gmra.mxu1 %v8871_v31 }
  0x5a   : > { %1038 = vmatmul.bf16.gmra.mxu2 %v8887_v32 }
  0x68   : > { %593 = vmatmul.bf16.gmra.mxu0 %v8856_v33 }
  0x69   : > { %818 = vmatmul.bf16.gmra.mxu1 %v8872_v34 }
  0x6a   : > { %1043 = vmatmul.bf16.gmra.mxu2 %v8888_v35 }
  0x78   : > { %598 = vmatmul.bf16.gmra.mxu0 %v8857_v36 }
  0x79   : > { %823 = vmatmul.bf16.gmra.mxu1 %v8873_v37 }
  0x7a   : > { %1048 = vmatmul.bf16.gmra.mxu2 %v8889_v38 }
  0x88   : > { %603 = vmatmul.bf16.gmra.mxu0 %v8858_v39 }
  0x89   : > { %828 = vmatmul.bf16.gmra.mxu1 %v8874_v40 }
  0x8a   : > { %1053 = vmatmul.bf16.gmra.mxu2 %v8890_v41 }
  0x98   : > { %608 = vmatmul.bf16.gmra.mxu0 %v8859_v42 }
  0x99   : > { %833 = vmatmul.bf16.gmra.mxu1 %v8875_v43 }
  0x9a   : > { %1058 = vmatmul.bf16.gmra.mxu2 %v8891_v44 }
  0xa8   : > { %613 = vmatmul.bf16.gmra.mxu0 %v8860_v45 }
  0xa9   : > { %838 = vmatmul.bf16.gmra.mxu1 %v8876_v46 }
  0xaa   : > { %1063 = vmatmul.bf16.gmra.mxu2 %v8892_v47 }
  0xb5   : > { %v579_v48 = vpop.f32.mrf.mxu0 }
  0xb6   : > { %v804_v49 = vpop.f32.mrf.mxu1  ;;  %v580_v52 = vadd.f32 %v10101_v50, %v579_v48 }
  0xb7   : > { %v805_v51 = vadd.f32 %v10101_v50, %v804_v49  ;;  %v8916_v49 = vld [vmem:[%s12790_s3 + $0x78] sm:$0xff] }
  0xb8   : > { %v619_v59 = vmax.f32 %v580_v52, 0.0  ;;  %2415 = vmatpush.bf16.msra.mxu3 %v8916_v49 }
  0xb9   : > { %v844_v56 = vmax.f32 %v805_v51, 0.0 }
  0xbd   : > { %v1029_v53 = vpop.f32.mrf.mxu2  ;;  %v581_v54 = vpop.f32.mrf.mxu0 }
  0xbe   : > { %v806_v55 = vpop.f32.mrf.mxu1  ;;  %v10106_v57 = vadd.f32 %v10101_v50, %v581_v54  ;;  %v1030_v62 = vadd.f32 %v10101_v50, %v1029_v53 }
  0xbf   : > { %v807_v58 = vadd.f32 %v10101_v50, %v806_v55  ;;  %v9128_v55 = vld [vmem:[%s12794_s7 + $0x1c4] sm:$0xf0] }
  0xc0   : > { %v620_v60 = vmax.f32 %v10106_v57, 0.0  ;;  %v1069_v1 = vmax.f32 %v1030_v62, 0.0  ;;  %v8913_v57 = vld [vmem:[%s12790_s3 + $0x60] sm:$0xff] }
  0xc1   : > { %v845_v61 = vmax.f32 %v807_v58, 0.0 }
  0xc3   : > { %v9259_v63 = vpack.c.bf16 %v845_v61, %v844_v56 }
  0xc5   : > { %v1031_v0 = vpop.f32.mrf.mxu2  ;;  %9529 = vst [vmem:[#allocation2 + $0x40] sm:$0xff] %v9259_v63   ;;  %v584_v3 = vpop.f32.mrf.mxu0 }
  0xc6   : > { %v1032_v2 = vadd.f32 %v10101_v50, %v1031_v0  ;;  %v809_v4 = vpop.f32.mrf.mxu1  ;;  %v585_v7 = vadd.f32 %v10101_v50, %v584_v3 }
  0xc7   : > { %v10115_v12 = vadd.f32 %v10101_v50, %v809_v4  ;;  %v8915_v4 = vld [vmem:[%s12790_s3 + $0x70] sm:$0xff] }
  0xc8   : > { %v1070_v5 = vmax.f32 %v1032_v2, 0.0  ;;  %v621_v13 = vmax.f32 %v585_v7, 0.0  ;;  %2416 = vmatpush.bf16.msra.mxu3 %v8915_v4 }
  0xc9   : > { %v846_v17 = vmax.f32 %v10115_v12, 0.0  ;;  %v8905_v12 = vld [vmem:[%s12790_s3 + $0x20] sm:$0xff] }
  0xca   : > { %v9299_v6 = vpack.c.bf16 %v1070_v5, %v1069_v1  ;;  %v8908_v1 = vld [vmem:[%s12790_s3 + $0x38] sm:$0xff] }
  0xcb   : > { %2612 = vmatpush.bf16.msrb.mxu0 %v8908_v1 }
  0xcc   : > { %9537 = vst [vmem:[#allocation2 + $0x80] sm:$0xff] %v9299_v6  }
  0xcd   : > { %v1034_v8 = vpop.f32.mrf.mxu2  ;;  %v586_v9 = vpop.f32.mrf.mxu0 }
  0xce   : > { %v811_v10 = vpop.f32.mrf.mxu1  ;;  %v587_v11 = vadd.f32 %v10101_v50, %v586_v9  ;;  %v1035_v15 = vadd.f32 %v10101_v50, %v1034_v8  ;;  %v10157_v9 = vld [vmem:[#allocation2 + $0x40] sm:$0xf] }
  0xcf   : > { %v10120_v18 = vadd.f32 %v10101_v50, %v811_v10 }
  0xd0   : > { %v622_v14 = vmax.f32 %v587_v11, 0.0  ;;  %v1071_v20 = vmax.f32 %v1035_v15, 0.0  ;;  %v8931_v11 = vld [vmem:[%s12790_s3 + $0xb0] sm:$0xff] }
  0xd1   : > { %v847_v21 = vmax.f32 %v10120_v18, 0.0 }
  0xd2   : > { %v9224_v16 = vpack.c.bf16 %v622_v14, %v621_v13  ;;  %v10163_v13 = vld [vmem:[#allocation2 + $0x44] sm:$0x1] }
  0xd3   : > { %v1845_v38 = vld [vmem:[#allocation2 + $0x80] sm:$0x1] }
  0xd4   : > { %9522 = vst [vmem:[#allocation2 + $0x8] sm:$0xff] %v9224_v16   ;;  %v1851_v47 = vunpack.c.l.bf16 %v1845_v38  ;;  %v8930_v38 = vld [vmem:[%s12790_s3 + $0xa8] sm:$0xff] }
  0xd5   : > { %v1036_v19 = vpop.f32.mrf.mxu2  ;;  %v589_v23 = vpop.f32.mrf.mxu0 }
  0xd6   : > { %v1037_v22 = vadd.f32 %v10101_v50, %v1036_v19  ;;  %v814_v24 = vpop.f32.mrf.mxu1  ;;  %v590_v30 = vadd.f32 %v10101_v50, %v589_v23  ;;  %v8907_v19 = vld [vmem:[%s12790_s3 + $0x30] sm:$0xff] }
  0xd7   : > { %v815_v27 = vadd.f32 %v10101_v50, %v814_v24  ;;  %v8914_v24 = vld [vmem:[%s12790_s3 + $0x68] sm:$0xff]  ;;  %2613 = vmatpush.bf16.msrb.mxu0 %v8907_v19 }
  0xd8   : > { %v1072_v25 = vmax.f32 %v1037_v22, 0.0  ;;  %v623_v40 = vmax.f32 %v590_v30, 0.0  ;;  %2417 = vmatpush.bf16.msra.mxu3 %v8914_v24 }
  0xd9   : > { %v848_v35 = vmax.f32 %v815_v27, 0.0 }
  0xda   : > { %v9304_v26 = vpack.c.bf16 %v1072_v25, %v1071_v20 }
  0xdb   : > { %v1120_v28 = vld [vmem:[#allocation2 + $0xc] sm:$0xf]  ;;  %v1119_v14 = vld [vmem:[#allocation2 + $0x8] sm:$0x1] }
  0xdc   : > { %9538 = vst [vmem:[#allocation2 + $0x88] sm:$0xff] %v9304_v26   ;;  %v1126_v29 = vunpack.c.l.bf16 %v1120_v28  ;;  %2418 = vmatpush.bf16.msra.mxu3 %v8913_v57 }
  0xdd   : > { %v1039_v31 = vpop.f32.mrf.mxu2  ;;  %v591_v32 = vpop.f32.mrf.mxu0 }
  0xde   : > { %v816_v33 = vpop.f32.mrf.mxu1  ;;  %v1129_v34 = vmax.f32 %v619_v59, %v1126_v29  ;;  %v592_v36 = vadd.f32 %v10101_v50, %v591_v32  ;;  %v10135_v53 = vadd.f32 %v10101_v50, %v1039_v31  ;;  %v8932_v59 = vld [vmem:[%s12790_s3 + $0xb8] sm:$0xff] }
  0xdf   : > { %v817_v37 = vadd.f32 %v10101_v50, %v816_v33  ;;  %2862 = vmatpush.bf16.msrb.mxu1 %v8932_v59  ;;  %v10182_v33 = vld [vmem:[#allocation2 + $0x84] sm:$0xf] }
  0xe0   : > { %v1132_v39 = vpack.c.bf16 %v1129_v34, %v1129_v34  ;;  %v624_v41 = vmax.f32 %v592_v36, 0.0  ;;  %v1073_v8 = vmax.f32 %v10135_v53, 0.0  ;;  %v1125_v34 = vunpack.c.l.bf16 %v1119_v14 }
  0xe1   : > { %v849_v42 = vmax.f32 %v817_v37, 0.0 }
  0xe2   : > { %v1135_v43 = vunpack.c.l.bf16 %v1132_v39  ;;  %v9229_v45 = vpack.c.bf16 %v624_v41, %v623_v40 }
  0xe3   : > { %v1848_v44 = vld [vmem:[#allocation2 + $0x8c] sm:$0x1]  ;;  %v9269_v46 = vpack.c.bf16 %v849_v42, %v848_v35  ;;  %2863 = vmatpush.bf16.msrb.mxu1 %v8931_v11  ;;  %v10187_v39 = vld [vmem:[#allocation2 + $0x88] sm:$0xf] }
  0xe4   : > { %v1854_v48 = vunpack.c.l.bf16 %v1848_v44  ;;  %v1141_v51 = vrot.slane %v1135_v43, 2  ;;  %v1142_v52 = vrot.slane %v1135_v43, 4  ;;  %9523 = vst [vmem:[#allocation2 + $0x10] sm:$0xff] %v9229_v45   ;;  %v1143_v61 = vrot.slane %v1135_v43, 6  ;;  %v8906_v44 = vld [vmem:[%s12790_s3 + $0x28] sm:$0xff] }
  0xe5   : > { %v1041_v54 = vpop.f32.mrf.mxu2  ;;  %9531 = vst [vmem:[#allocation2 + $0x50] sm:$0xff] %v9269_v46   ;;  %v594_v56 = vpop.f32.mrf.mxu0  ;;  %v7491_v62 = vrot.slane %v1135_v43, 9  ;;  %2614 = vmatpush.bf16.msrb.mxu0 %v8906_v44 }
  0xe6   : > { %v819_v58 = vpop.f32.mrf.mxu1  ;;  %v1156_v63 = vrot.slane %v1141_v51, 7  ;;  %v1159_v0 = vrot.slane %v1142_v52, 7  ;;  %v1857_v2 = vmax.f32 %v1851_v47, %v1854_v48  ;;  %v10149_v3 = vadd.f32 %v10101_v50, %v1041_v54 }
  0xe7   : > { %v10167_v16 = vrot.slane %v1143_v61, 7  ;;  %v10192_v42 = vadd.f32 %v10101_v50, %v594_v56  ;;  %v10195_v43 = vadd.f32 %v10101_v50, %v819_v58  ;;  %2864 = vmatpush.bf16.msrb.mxu1 %v8930_v38  ;;  %v8929_v61 = vld [vmem:[%s12790_s3 + $0xa0] sm:$0xff] }
  0xe8   : > { %v1157_v5 = vsel %vm10138_vm6, %v7491_v62, %v1156_v63  ;;  %v1158_v6 = vrot.slane %v1156_v63, 2  ;;  %v1161_v7 = vrot.slane %v1159_v0, 2  ;;  %v1074_v10 = vmax.f32 %v10149_v3, 0.0 }
  0xe9   : > { %v7492_v20 = vrot.slane %v1157_v5, 9  ;;  %v1860_v22 = vpack.c.bf16 %v1857_v2, %v1857_v2  ;;  %v1164_v56 = vrot.slane %v10167_v16, 2  ;;  %v850_v1 = vmax.f32 %v10195_v43, 0.0  ;;  %2615 = vmatpush.bf16.msrb.mxu0 %v8905_v12  ;;  %v8909_v43 = vld [vmem:[%s12790_s3 + $0x40] sm:$0xff] }
  0xea   : > { %v1160_v15 = vsel %vm10138_vm6, %v1158_v6, %v1159_v0  ;;  %v1163_v25 = vsel %vm10138_vm6, %v1161_v7, %v10167_v16  ;;  %v625_v0 = vmax.f32 %v10192_v42, 0.0  ;;  %v8912_v6 = vld [vmem:[%s12790_s3 + $0x58] sm:$0xff] }
  0xeb   : > { %v1121_v23 = vld [vmem:[#allocation2 + $0x10] sm:$0xf]  ;;  %v7493_v26 = vrot.slane %v1160_v15, 9  ;;  %v1122_v27 = vld [vmem:[#allocation2 + $0x14] sm:$0x1]  ;;  %v7494_v45 = vrot.slane %v1163_v25, 9  ;;  %v1211_v46 = vmax.f32 %v1157_v5, %v7492_v20  ;;  %v10200_v47 = vunpack.c.l.bf16 %v1860_v22  ;;  %2865 = vmatpush.bf16.msrb.mxu1 %v8929_v61  ;;  %2419 = vmatpush.bf16.msra.mxu3 %v8912_v6 }
  0xec   : > { %v1127_v28 = vunpack.c.l.bf16 %v1121_v23  ;;  %v1562_v29 = vld [vmem:[#allocation2 + $0x54] sm:$0xf]  ;;  %v1128_v35 = vunpack.c.l.bf16 %v1122_v27  ;;  %v10208_v52 = vld [vmem:[#allocation2 + $0x50] sm:$0x1] }
  0xed   : > { %v10178_v30 = vpop.f32.mrf.mxu2  ;;  %v596_v36 = vpop.f32.mrf.mxu0  ;;  %v1568_v41 = vunpack.c.l.bf16 %v1562_v29  ;;  %12833 = vst [vmem:[#allocation15_spill] sm:$0xff] %v10200_v47  ;;  %v10206_v49 = vmax.f32 %v1160_v15, %v7493_v26  ;;  %v1219_v2 = vpack.c.bf16 %v1211_v46, %v1211_v46  ;;  %v1567_v5 = vunpack.c.l.bf16 %v10208_v52 }
  0xee   : > { %v821_v37 = vpop.f32.mrf.mxu1  ;;  %v1130_v40 = vmax.f32 %v620_v60, %v1127_v28  ;;  %v1131_v48 = vmax.f32 %v1125_v34, %v1128_v35  ;;  %v10230_v20 = vadd.f32 %v10101_v50, %v596_v36  ;;  %v8904_v35 = vld [vmem:[%s12790_s3 + $0x18] sm:$0xff] }
  0xef   : > { %v1571_v54 = vmax.f32 %v846_v17, %v1568_v41  ;;  %v1213_v17 = vmax.f32 %v1163_v25, %v7494_v45  ;;  %v1220_v7 = vpack.c.bf16 %v10206_v49, %v10206_v49  ;;  %v822_v22 = vadd.f32 %v10101_v50, %v821_v37  ;;  %v8928_v25 = vld [vmem:[%s12790_s3 + $0x98] sm:$0xff]  ;;  %v8911_v41 = vld [vmem:[%s12790_s3 + $0x50] sm:$0xff]  ;;  %2616 = vmatpush.bf16.msrb.mxu0 %v8904_v35 }
  0xf0   : > { %v1133_v51 = vpack.c.bf16 %v1130_v40, %v1130_v40  ;;  %v1134_v59 = vpack.c.bf16 %v1131_v48, %v1131_v48  ;;  %2866 = vmatpush.bf16.msrb.mxu1 %v8928_v25  ;;  %v10252_v45 = vunpack.c.l.b16 %v1219_v2  ;;  %v10256_v48 = vadd.f32 %v10101_v50, %v10178_v30  ;;  %2420 = vmatpush.bf16.msra.mxu3 %v8911_v41  ;;  %v8927_v2 = vld [vmem:[%s12790_s3 + $0x90] sm:$0xff]  ;;  %v8926_v41 = vld [vmem:[%s12790_s3 + $0x88] sm:$0xff] }
  0xf1   : > { %v1574_v63 = vpack.c.bf16 %v1571_v54, %v1571_v54  ;;  %v1221_v44 = vpack.c.bf16 %v1213_v17, %v1213_v17  ;;  %v626_v54 = vmax.f32 %v10230_v20, 0.0 }
  0xf2   : > { %v1136_v62 = vunpack.c.l.bf16 %v1133_v51  ;;  %v1137_v16 = vunpack.c.l.bf16 %v1134_v59 }
  0xf3   : > { %v1577_v19 = vunpack.c.l.bf16 %v1574_v63 }
  0xf4   : > { %v1144_v11 = vrot.slane %v1136_v62, 2  ;;  %v1146_v14 = vrot.slane %v1136_v62, 6  ;;  %v1165_v15 = vrot.slane %v1136_v62, 7  ;;  %v1145_v26 = vrot.slane %v1136_v62, 4  ;;  %2867 = vmatpush.bf16.msrb.mxu1 %v8927_v2 }
  0xf5   : > { %v10233_v23 = vpop.f32.mrf.mxu2  ;;  %v10235_v24 = vpop.f32.mrf.mxu0  ;;  %v1583_v38 = vrot.slane %v1577_v19, 2  ;;  %v1584_v40 = vrot.slane %v1577_v19, 4  ;;  %v1585_v46 = vrot.slane %v1577_v19, 6  ;;  %v1177_v49 = vrot.slane %v1137_v16, 7  ;;  %v8903_v16 = vld [vmem:[%s12790_s3 + $0x10] sm:$0xff] }
  0xf6   : > { %v1166_v27 = vsel %vm10138_vm6, %v1164_v56, %v1165_v15  ;;  %v1167_v28 = vrot.slane %v1165_v15, 2  ;;  %v1168_v29 = vrot.slane %v1144_v11, 7  ;;  %v10242_v34 = vpop.f32.mrf.mxu1  ;;  %v10247_v36 = vrot.slane %v1146_v14, 7  ;;  %2617 = vmatpush.bf16.msrb.mxu0 %v8903_v16 }
  0xf7   : > { %v7495_v37 = vrot.slane %v1166_v27, 9  ;;  %v7518_v51 = vrot.slane %v1577_v19, 9  ;;  %v1171_v56 = vrot.slane %v1145_v26, 7  ;;  %v1591_v59 = vrot.slane %v1583_v38, 7  ;;  %v8910_v26 = vld [vmem:[%s12790_s3 + $0x48] sm:$0xff] }
  0xf8   : > { %v1176_v57 = vrot.slane %v10247_v36, 2  ;;  %v1594_v61 = vrot.slane %v1584_v40, 7  ;;  %v851_v62 = vmax.f32 %v822_v22, 0.0  ;;  %v1169_v63 = vsel %vm10138_vm6, %v1167_v28, %v1168_v29  ;;  %2421 = vmatpush.bf16.msra.mxu3 %v8910_v26  ;;  %2868 = vmatpush.bf16.msrb.mxu1 %v8926_v41 }
  0xf9   : > { %v1214_v30 = vmax.f32 %v1166_v27, %v7495_v37  ;;  %v10264_v17 = vrot.slane %v1585_v46, 7  ;;  %v1592_v11 = vsel %vm10138_vm6, %v7518_v51, %v1591_v59  ;;  %v1593_v14 = vrot.slane %v1591_v59, 2 }
  0xfa   : > { %v1178_v12 = vsel %vm10138_vm6, %v1176_v57, %v1177_v49  ;;  %v1596_v15 = vrot.slane %v1594_v61, 2  ;;  %v10274_v19 = vunpack.c.l.b16 %v1220_v7  ;;  %v1170_v22 = vrot.slane %v1168_v29, 2 }
  0xfb   : > { %v7499_v6 = vrot.slane %v1178_v12, 9  ;;  %v10279_v27 = vunpack.c.l.b16 %v1221_v44  ;;  %v7496_v28 = vrot.slane %v1169_v63, 9  ;;  %v1595_v35 = vsel %vm10138_vm6, %v1593_v14, %v1594_v61 }
  0xfc   : > { %v1243_v37 = vrot.slane %v10252_v45, 7  ;;  %v7519_v40 = vrot.slane %v1592_v11, 9  ;;  %v1075_v7 = vmax.f32 %v10256_v48, 0.0  ;;  %v1173_v46 = vrot.slane %v1171_v56, 2  ;;  %v8902_v48 = vld [vmem:[%s12790_s3 + $0x8] sm:$0xff]  ;;  %2422 = vmatpush.bf16.msra.mxu3 %v8909_v43 }
  0xfd   : > { %v601_v25 = vpop.f32.mrf.mxu0  ;;  %v1218_v38 = vmax.f32 %v1178_v12, %v7499_v6  ;;  %v1049_v29 = vpop.f32.mrf.mxu2  ;;  %v1222_v44 = vpack.c.bf16 %v1214_v30, %v1214_v30  ;;  %v1598_v57 = vsel %vm10138_vm6, %v1596_v15, %v10264_v17  ;;  %v9274_v49 = vpack.c.bf16 %v851_v62, %v850_v1  ;;  %2618 = vmatpush.bf16.msrb.mxu0 %v8902_v48 }
  0xfe   : > { %v826_v51 = vpop.f32.mrf.mxu1  ;;  %v1244_v59 = vrot.slane %v10274_v19, 6  ;;  %v1172_v61 = vsel %vm10138_vm6, %v1170_v22, %v1171_v56  ;;  %v7520_v12 = vrot.slane %v1595_v35, 9  ;;  %v1047_v30 = vadd.f32 %v10101_v50, %v10233_v23 }
  0xff   : > { %v10304_v1 = vmax.f32 %v1169_v63, %v7496_v28  ;;  %9532 = vst [vmem:[#allocation2 + $0x58] sm:$0xff] %v9274_v49   ;;  %v600_v62 = vadd.f32 %v10101_v50, %v10235_v24  ;;  %v602_v2 = vadd.f32 %v10101_v50, %v601_v25  ;;  %v1226_v6 = vpack.c.bf16 %v1218_v38, %v1218_v38 }
 0x100   : > { %v7521_v56 = vrot.slane %v1598_v57, 9  ;;  %v1646_v14 = vmax.f32 %v1592_v11, %v7519_v40  ;;  %v1076_v15 = vmax.f32 %v1047_v30, 0.0  ;;  %v9876_v23 = vmov 0  }
 0x101   : > { %402 = vst [vmem:[#allocation3] sm:$0xf] %v9876_v23  ;;  %v10310_v16 = vunpack.c.l.b16 %v1222_v44  ;;  %v627_v22 = vmax.f32 %v600_v62, 0.0  ;;  %v628_v63 = vmax.f32 %v602_v2, 0.0  ;;  %v1175_v24 = vsel %vm10138_vm6, %v1173_v46, %v10247_v36 }
 0x102   : > { %403 = vst [vmem:[#allocation3 + $0x4] sm:$0xf] %v9876_v23  ;;  %v1246_v25 = vrot.slane %v10279_v27, 5  ;;  %v7497_v26 = vrot.slane %v1172_v61, 9  ;;  %v1647_v28 = vmax.f32 %v1595_v35, %v7520_v12  ;;  %v9314_v11 = vpack.c.bf16 %v1076_v15, %v1075_v7 }
 0x103   : > { %404 = vst [vmem:[#allocation3 + $0x8] sm:$0xf] %v9876_v23  ;;  %v1223_v40 = vpack.c.bf16 %v10304_v1, %v10304_v1  ;;  %v10322_v41 = vadd.f32 %v10101_v50, %v10242_v34  ;;  %v1050_v44 = vadd.f32 %v10101_v50, %v1049_v29  ;;  %v9239_v49 = vpack.c.bf16 %v628_v63, %v627_v22 }
 0x104   : > { %405 = vst [vmem:[#allocation3 + $0xc] sm:$0xf] %v9876_v23  ;;  %v10326_v36 = vunpack.c.l.b16 %v1226_v6  ;;  %v1648_v46 = vmax.f32 %v1598_v57, %v7521_v56  ;;  %v1654_v35 = vpack.c.bf16 %v1646_v14, %v1646_v14  ;;  %v7498_v7 = vrot.slane %v1175_v24, 9 }
 0x105   : > { %v604_v38 = vpop.f32.mrf.mxu0  ;;  %9540 = vst [vmem:[#allocation2 + $0x98] sm:$0xff] %v9314_v11   ;;  %v1249_v48 = vrot.slane %v10310_v16, 4  ;;  %v1599_v12 = vrot.slane %v10264_v17, 2  ;;  %v1655_v30 = vpack.c.bf16 %v1647_v28, %v1647_v28  ;;  %v852_v1 = vmax.f32 %v10322_v41, 0.0  ;;  %v1051_v62 = vpop.f32.mrf.mxu2 }
 0x106   : > { %9525 = vst [vmem:[#allocation2 + $0x20] sm:$0xff] %v9239_v49   ;;  %v1563_v43 = vld [vmem:[#allocation2 + $0x58] sm:$0xf]  ;;  %v1564_v34 = vld [vmem:[#allocation2 + $0x5c] sm:$0x1]  ;;  %v1077_v29 = vmax.f32 %v1050_v44, 0.0  ;;  %v1216_v2 = vmax.f32 %v1172_v61, %v7497_v26  ;;  %v10332_v57 = vadd.f32 %v10101_v50, %v826_v51  ;;  %v1052_v56 = vadd.f32 %v10101_v50, %v1051_v62  ;;  %v829_v14 = vpop.f32.mrf.mxu1 }
 0x107   : > { %v1569_v15 = vunpack.c.l.bf16 %v1563_v43  ;;  %v1570_v6 = vunpack.c.l.bf16 %v1564_v34  ;;  %406 = vst [vmem:[#allocation3 + $0x10] sm:$0xf] %v9876_v23  ;;  %v1656_v63 = vpack.c.bf16 %v1648_v46, %v1648_v46  ;;  %v10338_v28 = vunpack.c.l.b16 %v1654_v35 }
 0x108   : > { %v1217_v11 = vmax.f32 %v1175_v24, %v7498_v7  ;;  %407 = vst [vmem:[#allocation3 + $0x14] sm:$0xf] %v9876_v23  ;;  %v1078_v44 = vmax.f32 %v1052_v56, 0.0  ;;  %v10347_v49 = vunpack.c.l.b16 %v1655_v30  ;;  %v10350_v46 = vadd.f32 %v10101_v50, %v604_v38 }
 0x109   : > { %v1572_v61 = vmax.f32 %v847_v21, %v1569_v15  ;;  %v1573_v51 = vmax.f32 %v1567_v5, %v1570_v6  ;;  %408 = vst [vmem:[#allocation3 + $0x18] sm:$0xf] %v9876_v23  ;;  %v10353_v24 = vadd.f32 %v10101_v50, %v829_v14  ;;  %v1224_v7 = vpack.c.bf16 %v1216_v2, %v1216_v2 }
 0x10a   : > { %409 = vst [vmem:[#allocation3 + $0x1c] sm:$0xf] %v9876_v23  ;;  %v9319_v52 = vpack.c.bf16 %v1078_v44, %v1077_v29  ;;  %v1245_v5 = vsel %vm1148_vm1, %v1244_v59, %v1243_v37  ;;  %v1225_v34 = vpack.c.bf16 %v1217_v11, %v1217_v11  ;;  %v10363_v62 = vunpack.c.l.b16 %v1656_v63 }
 0x10b   : > { %v1575_v18 = vpack.c.bf16 %v1572_v61, %v1572_v61  ;;  %410 = vst [vmem:[#allocation3 + $0x20] sm:$0xf] %v9876_v23  ;;  %v1576_v38 = vpack.c.bf16 %v1573_v51, %v1573_v51  ;;  %v10366_v15 = vunpack.c.l.b16 %v1223_v40  ;;  %v629_v56 = vmax.f32 %v10350_v46, 0.0 }
 0x10c   : > { %v1988_v21 = vld [vmem:[#allocation2 + $0x9c] sm:$0xf]  ;;  %411 = vst [vmem:[#allocation3 + $0x24] sm:$0xf] %v9876_v23  ;;  %v10372_v59 = vld [vmem:[#allocation2 + $0x98] sm:$0x1]  ;;  %v10378_v63 = vunpack.c.l.b16 %v1224_v7  ;;  %v1248_v40 = vsel %vm1247_vm7, %v1246_v25, %v1245_v5 }
 0x10d   : > { %v606_v35 = vpop.f32.mrf.mxu0  ;;  %v1994_v30 = vunpack.c.l.bf16 %v1988_v21  ;;  %v1278_v43 = vld [vmem:[#allocation2 + $0x24] sm:$0xf]  ;;  %v10370_v37 = vunpack.c.l.bf16 %v1575_v18  ;;  %9541 = vst [vmem:[#allocation2 + $0xa0] sm:$0xff] %v9319_v52   ;;  %v854_v14 = vmax.f32 %v10353_v24, 0.0  ;;  %v10384_v11 = vunpack.c.l.bf16 %v1576_v38  ;;  %v10386_v51 = vld [vmem:[#allocation2 + $0x20] sm:$0x1] }
 0x10e   : > { %v1284_v2 = vunpack.c.l.bf16 %v1278_v43  ;;  %v607_v29 = vadd.f32 %v10101_v50, %v606_v35  ;;  %412 = vst [vmem:[#allocation3 + $0x28] sm:$0xf] %v9876_v23  ;;  %v1993_v44 = vunpack.c.l.bf16 %v10372_v59  ;;  %v831_v27 = vpop.f32.mrf.mxu1  ;;  %v10397_v25 = vsel %vm1150_vm3, %v1249_v48, %v1248_v40 }
 0x10f   : > { %v1997_v6 = vmax.f32 %v1073_v8, %v1994_v30  ;;  %v10390_v8 = vunpack.c.l.b16 %v1225_v34  ;;  %413 = vst [vmem:[#allocation3 + $0x2c] sm:$0xf] %v9876_v23  ;;  %v1251_v35 = vrot.slane %v10366_v15, 3  ;;  %v1600_v42 = vrot.slane %v10370_v37, 7 }
 0x110   : > { %v1287_v53 = vmax.f32 %v625_v0, %v1284_v2  ;;  %v630_v46 = vmax.f32 %v607_v29, 0.0  ;;  %414 = vst [vmem:[#allocation3 + $0x30] sm:$0xf] %v9876_v23  ;;  %v10403_v18 = vadd.f32 %v10101_v50, %v831_v27  ;;  %v1586_v21 = vrot.slane %v10370_v37, 2 }
 0x111   : > { %v2000_v61 = vpack.c.bf16 %v1997_v6, %v1997_v6  ;;  %415 = vst [vmem:[#allocation3 + $0x34] sm:$0xf] %v9876_v23  ;;  %v1587_v16 = vrot.slane %v10370_v37, 4  ;;  %v1283_v48 = vunpack.c.l.bf16 %v10386_v51  ;;  %v1588_v52 = vrot.slane %v10370_v37, 6 }
 0x112   : > { %v1290_v7 = vpack.c.bf16 %v1287_v53, %v1287_v53  ;;  %416 = vst [vmem:[#allocation3 + $0x38] sm:$0xf] %v9876_v23  ;;  %v9244_v40 = vpack.c.bf16 %v630_v46, %v629_v56  ;;  %v10414_v19 = vrot.slane %v1586_v21, 7 }
 0x113   : > { %v2003_v0 = vunpack.c.l.bf16 %v2000_v61  ;;  %417 = vst [vmem:[#allocation3 + $0x3c] sm:$0xf] %v9876_v23  ;;  %v1602_v61 = vrot.slane %v1600_v42, 2 }
 0x114   : > { %v1293_v2 = vunpack.c.l.bf16 %v1290_v7  ;;  %v1989_v29 = vld [vmem:[#allocation2 + $0xa0] sm:$0xf]  ;;  %v1990_v6 = vld [vmem:[#allocation2 + $0xa4] sm:$0x1]  ;;  %418 = vst [vmem:[#allocation3 + $0x40] sm:$0xf] %v9876_v23 }
 0x115   : > { %v2009_v38 = vrot.slane %v2003_v0, 2  ;;  %v2010_v30 = vrot.slane %v2003_v0, 4  ;;  %v2011_v43 = vrot.slane %v2003_v0, 6  ;;  %v7545_v34 = vrot.slane %v2003_v0, 9  ;;  %9526 = vst [vmem:[#allocation2 + $0x28] sm:$0xff] %v9244_v40   ;;  %v1054_v40 = vpop.f32.mrf.mxu2 }
 0x116   : > { %v1995_v4 = vunpack.c.l.bf16 %v1989_v29  ;;  %v1299_v45 = vrot.slane %v1293_v2, 2  ;;  %v1300_v5 = vrot.slane %v1293_v2, 4  ;;  %v1996_v58 = vunpack.c.l.bf16 %v1990_v6  ;;  %419 = vst [vmem:[#allocation3 + $0x44] sm:$0xf] %v9876_v23  ;;  %v834_v24 = vpop.f32.mrf.mxu1 }
 0x117   : > { %v2017_v53 = vrot.slane %v2009_v38, 7  ;;  %v2020_v27 = vrot.slane %v2010_v30, 7  ;;  %v10416_v37 = vrot.slane %v2011_v43, 7  ;;  %v7500_v46 = vrot.slane %v1293_v2, 9  ;;  %420 = vst [vmem:[#allocation3 + $0x48] sm:$0xf] %v9876_v23 }
 0x118   : > { %v1307_v38 = vrot.slane %v1299_v45, 7  ;;  %v1310_v30 = vrot.slane %v1300_v5, 7  ;;  %v1301_v29 = vrot.slane %v1293_v2, 6  ;;  %421 = vst [vmem:[#allocation3 + $0x4c] sm:$0xf] %v9876_v23  ;;  %v10436_v2 = vrot.slane %v1587_v16, 7 }
 0x119   : > { %v2018_v0 = vsel %vm10138_vm6, %v7545_v34, %v2017_v53  ;;  %v2019_v7 = vrot.slane %v2017_v53, 2  ;;  %v2022_v32 = vrot.slane %v2020_v27, 2  ;;  %v1998_v34 = vmax.f32 %v1074_v10, %v1995_v4  ;;  %422 = vst [vmem:[#allocation3 + $0x50] sm:$0xf] %v9876_v23 }
 0x11a   : > { %v7546_v56 = vrot.slane %v2018_v0, 9  ;;  %v1308_v5 = vsel %vm10138_vm6, %v7500_v46, %v1307_v38  ;;  %v1309_v3 = vrot.slane %v1307_v38, 2  ;;  %v1312_v10 = vrot.slane %v1310_v30, 2  ;;  %423 = vst [vmem:[#allocation3 + $0x54] sm:$0xf] %v9876_v23 }
 0x11b   : > { %v2021_v21 = vsel %vm10138_vm6, %v2019_v7, %v2020_v27  ;;  %v2024_v43 = vsel %vm10138_vm6, %v2022_v32, %v10416_v37  ;;  %v1601_v32 = vsel %vm10138_vm6, %v1599_v12, %v1600_v42  ;;  %v10438_v4 = vrot.slane %v1588_v52, 7  ;;  %424 = vst [vmem:[#allocation5] sm:$0xf] %v9876_v23 }
 0x11c   : > { %v7547_v6 = vrot.slane %v2021_v21, 9  ;;  %v7548_v53 = vrot.slane %v2024_v43, 9  ;;  %v2072_v45 = vmax.f32 %v2018_v0, %v7546_v56  ;;  %v7501_v7 = vrot.slane %v1308_v5, 9  ;;  %425 = vst [vmem:[#allocation5 + $0x4] sm:$0xf] %v9876_v23 }
 0x11d   : > { %v10441_v0 = vadd.f32 %v10101_v50, %v1054_v40  ;;  %v1311_v17 = vsel %vm10138_vm6, %v1309_v3, %v1310_v30  ;;  %v10446_v46 = vrot.slane %v1301_v29, 7  ;;  %v2001_v12 = vpack.c.bf16 %v1998_v34, %v1998_v34  ;;  %426 = vst [vmem:[#allocation5 + $0x8] sm:$0xf] %v9876_v23 }
 0x11e   : > { %v2073_v27 = vmax.f32 %v2021_v21, %v7547_v6  ;;  %v2074_v56 = vmax.f32 %v2024_v43, %v7548_v53  ;;  %v10452_v42 = vsel %vm10138_vm6, %v1602_v61, %v10414_v19  ;;  %v7522_v16 = vrot.slane %v1601_v32, 9  ;;  %427 = vst [vmem:[#allocation5 + $0xc] sm:$0xf] %v9876_v23  ;;  %v1280_v6 = vld [vmem:[#allocation2 + $0x2c] sm:$0x1] }
 0x11f   : > { %v2080_v52 = vpack.c.bf16 %v2072_v45, %v2072_v45  ;;  %v1999_v38 = vmax.f32 %v1993_v44, %v1996_v58  ;;  %v1314_v43 = vsel %vm10138_vm6, %v1312_v10, %v10446_v46  ;;  %v2004_v29 = vunpack.c.l.bf16 %v2001_v12  ;;  %v1279_v12 = vld [vmem:[#allocation2 + $0x28] sm:$0xf]  ;;  %428 = vst [vmem:[#allocation5 + $0x10] sm:$0xf] %v9876_v23  ;;  %v1056_v58 = vpop.f32.mrf.mxu2 }
 0x120   : > { %v2081_v61 = vpack.c.bf16 %v2073_v27, %v2073_v27  ;;  %v7502_v34 = vrot.slane %v1311_v17, 9  ;;  %v1362_v40 = vmax.f32 %v1308_v5, %v7501_v7  ;;  %v2025_v59 = vrot.slane %v10416_v37, 2  ;;  %v8925_v5 = vld [vmem:[%s12790_s3 + $0x80] sm:$0xff]  ;;  %429 = vst [vmem:[#allocation5 + $0x14] sm:$0xf] %v9876_v23 }
 0x121   : > { %v2082_v44 = vpack.c.bf16 %v2074_v56, %v2074_v56  ;;  %v2012_v53 = vrot.slane %v2004_v29, 2  ;;  %v10468_v45 = vunpack.c.l.b16 %v2080_v52  ;;  %v7503_v3 = vrot.slane %v1314_v43, 9  ;;  %v8901_v52 = vld [vmem:[%s12790_s3] sm:$0xff]  ;;  %430 = vst [vmem:[#allocation5 + $0x18] sm:$0xf] %v9876_v23  ;;  %2869 = vmatpush.bf16.msrb.mxu1 %v8925_v5 }
 0x122   : > { %v2002_v10 = vpack.c.bf16 %v1999_v38, %v1999_v38  ;;  %v10474_v27 = vmax.f32 %v1601_v32, %v7522_v16  ;;  %v1315_v37 = vrot.slane %v10446_v46, 2  ;;  %v2014_v7 = vrot.slane %v2004_v29, 6  ;;  %431 = vst [vmem:[#allocation5 + $0x1c] sm:$0xf] %v9876_v23  ;;  %2619 = vmatpush.bf16.msrb.mxu0 %v8901_v52 }
 0x123   : > { %12834 = vst [vmem:[#allocation16_spill] sm:$0xff] %v10468_v45  ;;  %v2026_v56 = vrot.slane %v2004_v29, 7  ;;  %v10481_v38 = vunpack.c.l.b16 %v2081_v61  ;;  %v1363_v30 = vmax.f32 %v1311_v17, %v7502_v34  ;;  %v1370_v21 = vpack.c.bf16 %v1362_v40, %v1362_v40 }
 0x124   : > { %v2029_v60 = vrot.slane %v2012_v53, 7  ;;  %v10484_v32 = vunpack.c.l.b16 %v2082_v44  ;;  %v2013_v16 = vrot.slane %v2004_v29, 4  ;;  %v1364_v22 = vmax.f32 %v1314_v43, %v7503_v3  ;;  %432 = vst [vmem:[#allocation7] sm:$0xf] %v9876_v23 }
 0x125   : > { %12835 = vst [vmem:[#allocation17_spill] sm:$0xff] %v10481_v38  ;;  %v2027_v26 = vsel %vm10138_vm6, %v2025_v59, %v2026_v56  ;;  %v2028_v31 = vrot.slane %v2026_v56, 2  ;;  %v2005_v17 = vunpack.c.l.bf16 %v2002_v10  ;;  %v10493_v44 = vrot.slane %v2014_v7, 7 }
 0x126   : > { %12836 = vst [vmem:[#allocation18_spill] sm:$0xff] %v10484_v32  ;;  %v7549_v34 = vrot.slane %v2027_v26, 9  ;;  %v1285_v29 = vunpack.c.l.bf16 %v1279_v12  ;;  %v1286_v53 = vunpack.c.l.bf16 %v1280_v6  ;;  %v1371_v59 = vpack.c.bf16 %v1363_v30, %v1363_v30 }
 0x127   : > { %v2030_v40 = vsel %vm10138_vm6, %v2028_v31, %v2029_v60  ;;  %12837 = vst [vmem:[#allocation19_spill] sm:$0xff] %v10493_v44  ;;  %v10496_v5 = vunpack.c.l.b16 %v1370_v21  ;;  %v855_v52 = vmax.f32 %v10403_v18, 0.0  ;;  %v2031_v43 = vrot.slane %v2029_v60, 2 }
 0x128   : > { %433 = vst [vmem:[#allocation7 + $0x4] sm:$0xf] %v9876_v23  ;;  %v2075_v56 = vmax.f32 %v2027_v26, %v7549_v34  ;;  %v10500_v3 = vrot.slane %v2013_v16, 7  ;;  %v1288_v31 = vmax.f32 %v626_v54, %v1285_v29  ;;  %v1289_v10 = vmax.f32 %v1283_v48, %v1286_v53  ;;  %v609_v54 = vpop.f32.mrf.mxu0  ;;  %v10537_v29 = vld [vmem:[%s12789_s2] ss:$0 sm:$0xff] }
 0x129   : > { %434 = vst [vmem:[#allocation7 + $0x8] sm:$0xf] %v9876_v23  ;;  %v2038_v21 = vrot.slane %v2005_v17, 7  ;;  %v7550_v6 = vrot.slane %v2030_v40, 9  ;;  %v9284_v26 = vpack.c.bf16 %v855_v52, %v854_v14  ;;  %v2037_v60 = vrot.slane %v10493_v44, 2 }
 0x12a   : > { %12838 = vst [vmem:[#allocation20_spill] sm:$0xff] %v10500_v3  ;;  %v2083_v18 = vpack.c.bf16 %v2075_v56, %v2075_v56  ;;  %v1291_v12 = vpack.c.bf16 %v1288_v31, %v1288_v31  ;;  %v10513_v20 = vadd.f32 %v10101_v50, %v1056_v58  ;;  %v1372_v48 = vpack.c.bf16 %v1364_v22, %v1364_v22  ;;  %v1059_v22 = vpop.f32.mrf.mxu2  ;;  %v836_v31 = vpop.f32.mrf.mxu1 }
 0x12b   : > { %435 = vst [vmem:[#allocation7 + $0xc] sm:$0xf] %v9876_v23  ;;  %v1292_v16 = vpack.c.bf16 %v1289_v10, %v1289_v10  ;;  %v10518_v14 = vunpack.c.l.b16 %v1371_v59  ;;  %v10523_v17 = vsel %vm10138_vm6, %v2031_v43, %v10500_v3  ;;  %v10530_v58 = vmax.f32 %v2030_v40, %v7550_v6  ;;  %v1272_v10 = vld [vmem:[#allocation3 + $0x10] sm:$0x1] }
 0x12c   : > { %436 = vst [vmem:[#allocation7 + $0x10] sm:$0xf] %v9876_v23  ;;  %v10532_v34 = vunpack.c.l.bf16 %v1291_v12  ;;  %v10540_v53 = vadd.f32 %v10537_v29, %v609_v54  ;;  %v1254_v59 = vrot.slane %v10378_v63, 2  ;;  %v10545_v15 = vsel %vm10138_vm6, %v2037_v60, %v2038_v21  ;;  %v2270_v21 = vld [vmem:[#allocation3] sm:$0x8] }
 0x12d   : > { %437 = vst [vmem:[#allocation7 + $0x14] sm:$0xf] %v9876_v23  ;;  %v1253_v23 = vsel %vm1252_vm8, %v1251_v35, %v10397_v25  ;;  %v10547_v25 = vunpack.c.l.b16 %v2083_v18  ;;  %v10550_v35 = vadd.f32 %v10537_v29, %v834_v24  ;;  %v1256_v40 = vrot.slane %v10390_v8, 1  ;;  %v10566_v18 = vld [vmem:[#allocation3 + $0x4] sm:$0xf] }
 0x12e   : > { %9534 = vst [vmem:[#allocation2 + $0x68] sm:$0xff] %v9284_v26   ;;  %v10553_v56 = vunpack.c.l.bf16 %v1292_v16  ;;  %v1255_v52 = vsel %vm1152_vm5, %v1254_v59, %v1253_v23  ;;  %v10556_v43 = vunpack.c.l.b16 %v1372_v48  ;;  %v1316_v8 = vrot.slane %v10532_v34, 7  ;;  %v8917_v23 = vld [vmem:[#allocation3 + $0x4] sm:$0xff]  ;;  %v1266_v26 = vld [vmem:[#allocation3 + $0xc] sm:$0xf] }
 0x12f   : > { %12839 = vst [vmem:[#allocation21_spill] sm:$0xff] %v10523_v17  ;;  %v1302_v54 = vrot.slane %v10532_v34, 2  ;;  %v856_v16 = vmax.f32 %v10550_v35, 0.0  ;;  %v1258_v24 = vsel %vm1257_vm9, %v1256_v40, %v1255_v52  ;;  %v1303_v59 = vrot.slane %v10532_v34, 4  ;;  %v8970_v52 = vld [vmem:[%s12790_s3 + $0x1a8] sm:$0xff] }
 0x130   : > { %12840 = vst [vmem:[#allocation22_spill] sm:$0xff] %v10530_v58  ;;  %v1259_v6 = vpack.c.b16 %v1258_v24, %v1258_v24  ;;  %v12799_v12 = vunpack.c.l.b16 %v10566_v18  ;;  %v10580_v35 = vsel %vm10138_vm6, %v1315_v37, %v1316_v8  ;;  %v611_v24 = vpop.f32.mrf.mxu0  ;;  %v10588_v63 = vrot.slane %v1316_v8, 2 }
 0x131   : > { %12841 = vst [vmem:[#allocation23_spill] sm:$0xff] %v10545_v15  ;;  %v10590_v7 = vrot.slane %v1302_v54, 7  ;;  %v2741_v41 = vshll.u32 %v8917_v23, 16  ;;  %v12847_v8 = vpack.c.b16 %v10326_v36, %v10326_v36  ;;  %v612_v50 = vadd.f32 %v10537_v29, %v611_v24 }
 0x132   : > { %12842 = vst [vmem:[#allocation24_spill] sm:$0xff] %v10547_v25  ;;  %v1267_v46 = vsel %vm10584_vm12, %v1259_v6, %v1266_v26  ;;  %v1060_v6 = vadd.f32 %v10537_v29, %v1059_v22  ;;  %v2739_v26 = vshrl.u32 %v8917_v23, 16  ;;  %v837_v30 = vadd.f32 %v10537_v29, %v836_v31  ;;  %v8940_v22 = vld [vmem:[%s12790_s3 + $0xf8] sm:$0xff] }
 0x133   : > { %1268 = vst [vmem:[#allocation3 + $0xc] sm:$0xf] %v1267_v46  ;;  %v1273_v54 = vsel %vm10595_vm14, %v12847_v8, %v1272_v10  ;;  %v632_v25 = vmax.f32 %v612_v50, 0.0  ;;  %3139 = vmatpush.bf16.msrb.mxu2 %v8940_v22  ;;  %v10615_v50 = vrot.slane %v1303_v59, 7  ;;  %v12850_v15 = vrot.slane %v10532_v34, 6 }
 0x134   : > { %1274 = vst [vmem:[#allocation3 + $0x10] sm:$0x1] %v1273_v54  ;;  %v857_v36 = vmax.f32 %v837_v30, 0.0 }
 0x135   : > { %v1704_v48 = vld [vmem:[#allocation2 + $0x6c] sm:$0xf]  ;;  %v10641_v17 = vrot.slane %v12850_v15, 7 }
 0x136   : > { %v1710_v61 = vunpack.c.l.bf16 %v1704_v48  ;;  %v2465_v48 = vunpack.c.l.b16 %v2270_v21  ;;  %v9289_v38 = vpack.c.bf16 %v857_v36, %v856_v16 }
 0x138   : > { %v1713_v40 = vmax.f32 %v852_v1, %v1710_v61  ;;  %v1061_v1 = vpop.f32.mrf.mxu2  ;;  %v2466_v21 = vpack.c.b16 %v12799_v12, %v2465_v48  ;;  %v1081_v48 = vmax.f32 %v1060_v6, 0.0  ;;  %v2743_v12 = vrot.slane %v2741_v41, 1  ;;  %9535 = vst [vmem:[#allocation2 + $0x70] sm:$0xff] %v9289_v38   ;;  %v614_v22 = vpop.f32.mrf.mxu0 }
 0x139   : > { %v12848_v38 = vunpack.c.l.bf16 %v10157_v9  ;;  %v7504_v9 = vrot.slane %v10580_v35, 9  ;;  %v615_v15 = vadd.f32 %v10537_v29, %v614_v22 }
 0x13a   : > { %v1716_v61 = vpack.c.bf16 %v1713_v40, %v1713_v40  ;;  %v1062_v40 = vadd.f32 %v10537_v29, %v1061_v1  ;;  %v2477_v60 = vshrl.u32 %v2466_v21, 16  ;;  %v2480_v51 = vshll.u32 %v2466_v21, 16  ;;  %v9552_v30 = vld [vmem:[#allocation3 + $0x8] sm:$0xff]  }
 0x13b   : > { %v2744_v6 = vor.u32 %v2743_v12, %v2739_v26  ;;  %v10622_v36 = vld [vmem:[#allocation3 + $0xc] sm:$0xff]  ;;  %v9370_v59 = vunpack.c.l.b16 %v9552_v30  ;;  %v839_v12 = vpop.f32.mrf.mxu1 }
 0x13c   : > { %v1719_v46 = vunpack.c.l.bf16 %v1716_v61  ;;  %v1082_v32 = vmax.f32 %v1062_v40, 0.0  ;;  %v2479_v54 = vrot.slane %v2477_v60, 3  ;;  %v2482_v31 = vrot.slane %v2480_v51, 4  ;;  %v8939_v40 = vld [vmem:[%s12790_s3 + $0xf0] sm:$0xff] }
 0x13d   : > { %3140 = vmatpush.bf16.msrb.mxu2 %v8939_v40  ;;  %v8938_v40 = vld [vmem:[%s12790_s3 + $0xe8] sm:$0xff] }
 0x13e   : > { %v1725_v10 = vrot.slane %v1719_v46, 2  ;;  %v1726_v23 = vrot.slane %v1719_v46, 4  ;;  %v1727_v8 = vrot.slane %v1719_v46, 6  ;;  %v7527_v24 = vrot.slane %v1719_v46, 9 }
 0x13f   : > { %v9329_v41 = vpack.c.bf16 %v1082_v32, %v1081_v48  ;;  %v2483_v46 = vor.u32 %v2482_v31, %v2479_v54  ;;  %v2485_v48 = vshrl.u32 %v9552_v30, 16  ;;  %v1430_v54 = vmax.f32 %v632_v25, %v12848_v38 }
 0x140   : > { %v1733_v1 = vrot.slane %v1725_v10, 7  ;;  %v1736_v61 = vrot.slane %v1726_v23, 7  ;;  %v10613_v21 = vrot.slane %v1727_v8, 7  ;;  %v2488_v10 = vshll.u32 %v9552_v30, 16  ;;  %v1064_v26 = vpop.f32.mrf.mxu2 }
 0x141   : > { %9543 = vst [vmem:[#allocation2 + $0xb0] sm:$0xff] %v9329_v41   ;;  %v12849_v41 = vunpack.c.l.b16 %v10566_v18  ;;  %3141 = vmatpush.bf16.msrb.mxu2 %v8938_v40  ;;  %v10648_v18 = vsel %vm10138_vm6, %v10588_v63, %v10590_v7  ;;  %v10669_v40 = vadd.f32 %v10537_v29, %v839_v12  ;;  %v12852_v12 = vmax.f32 %v10332_v57, 0.0 }
 0x142   : > { %v1734_v60 = vsel %vm10138_vm6, %v7527_v24, %v1733_v1  ;;  %v1735_v51 = vrot.slane %v1733_v1, 2  ;;  %v1738_v16 = vrot.slane %v1736_v61, 2  ;;  %v2746_v24 = vshll.u32 %v10622_v36, 16 }
 0x143   : > { %v7528_v32 = vrot.slane %v1734_v60, 9  ;;  %v2351_v30 = vpack.c.b16 %v9370_v59, %v12849_v41  ;;  %v841_v22 = vpop.f32.mrf.mxu1 }
 0x144   : > { %v1737_v23 = vsel %vm10138_vm6, %v1735_v51, %v1736_v61  ;;  %v1740_v8 = vsel %vm10138_vm6, %v1738_v16, %v10613_v21  ;;  %v2487_v61 = vrot.slane %v2485_v48, 3  ;;  %v2490_v51 = vrot.slane %v2488_v10, 4  ;;  %v1705_v10 = vld [vmem:[#allocation2 + $0x70] sm:$0xf] }
 0x145   : > { %v7529_v31 = vrot.slane %v1737_v23, 9  ;;  %v7530_v1 = vrot.slane %v1740_v8, 9  ;;  %v1788_v45 = vmax.f32 %v1734_v60, %v7528_v32  ;;  %v10637_v58 = vrot.slane %v2746_v24, 1  ;;  %2423 = vmatmul.bf16.vlgmr.msra.gmra.mxu3 %v2351_v30  ;;  %v1703_v60 = vld [vmem:[#allocation2 + $0x68] sm:$0x1] }
 0x146   : > { %v1433_v16 = vpack.c.bf16 %v1430_v54, %v1430_v54  ;;  %v10650_v32 = vor.u32 %v2490_v51, %v2487_v61  ;;  %v1711_v41 = vunpack.c.l.bf16 %v1705_v10  ;;  %v633_v30 = vmax.f32 %v615_v15, 0.0  ;;  %v616_v61 = vpop.f32.mrf.mxu0 }
 0x147   : > { %v1789_v25 = vmax.f32 %v1737_v23, %v7529_v31  ;;  %v2749_v34 = vsel %vm2737_vm15, %v2744_v6, %v10637_v58  ;;  %v1790_v59 = vmax.f32 %v1740_v8, %v7530_v1  ;;  %v1796_v48 = vpack.c.bf16 %v1788_v45, %v1788_v45  ;;  %v8937_v23 = vld [vmem:[%s12790_s3 + $0xe0] sm:$0xff]  ;;  %v1706_v6 = vld [vmem:[#allocation2 + $0x74] sm:$0x1] }
 0x148   : > { %2870 = vmatmul.bf16.vlgmr.msrb.gmra.mxu1 %v2749_v34  ;;  %v2492_v38 = vsel %vm2475_vm0, %v2483_v46, %v10650_v32  ;;  %v10662_v54 = vunpack.c.l.bf16 %v1433_v16  ;;  %v10666_v45 = vmax.f32 %v10580_v35, %v7504_v9  ;;  %v1709_v8 = vunpack.c.l.bf16 %v1703_v60  ;;  %v2130_v1 = vld [vmem:[#allocation2 + $0xb4] sm:$0xf]  ;;  %3142 = vmatpush.bf16.msrb.mxu2 %v8937_v23  ;;  %v1066_v35 = vpop.f32.mrf.mxu2  ;;  %v8936_v9 = vld [vmem:[%s12790_s3 + $0xd8] sm:$0xff] }
 0x149   : > { %v1797_v31 = vpack.c.bf16 %v1789_v25, %v1789_v25  ;;  %2620 = vmatmul.bf16.vlgmr.msrb.gmra.mxu0 %v2492_v38  ;;  %v1798_v46 = vpack.c.bf16 %v1790_v59, %v1790_v59  ;;  %v10671_v51 = vunpack.c.l.b16 %v1796_v48  ;;  %v1712_v16 = vunpack.c.l.bf16 %v1706_v6 }
 0x14a   : > { %v1065_v34 = vadd.f32 %v10537_v29, %v1064_v26  ;;  %v1444_v25 = vrot.slane %v10662_v54, 2  ;;  %v1445_v60 = vrot.slane %v10662_v54, 4  ;;  %v1714_v15 = vmax.f32 %v12852_v12, %v1711_v41 }
 0x14b   : > { %12851 = vst [vmem:[#allocation25_spill] sm:$0xff] %v10671_v51  ;;  %v2136_v10 = vunpack.c.l.bf16 %v2130_v1  ;;  %v10681_v59 = vunpack.c.l.b16 %v1797_v31  ;;  %v1446_v48 = vrot.slane %v10662_v54, 6  ;;  %v1715_v23 = vmax.f32 %v1709_v8, %v1712_v16  ;;  %v8935_v8 = vld [vmem:[%s12790_s3 + $0xd0] sm:$0xff] }
 0x14c   : > { %v617_v26 = vadd.f32 %v10537_v29, %v616_v61  ;;  %3143 = vmatpush.bf16.msrb.mxu2 %v8936_v9  ;;  %v1717_v38 = vpack.c.bf16 %v1714_v15, %v1714_v15  ;;  %v12854_v6 = vmax.f32 %v10441_v0, 0.0  ;;  %v10688_v24 = vadd.f32 %v10537_v29, %v841_v22 }
 0x14d   : > { %12853 = vst [vmem:[#allocation26_spill] sm:$0xff] %v10681_v59  ;;  %v1067_v3 = vadd.f32 %v10537_v29, %v1066_v35  ;;  %v12811_v57 = vrot.slane %v10662_v54, 7  ;;  %v858_v31 = vmax.f32 %v10669_v40, 0.0  ;;  %v1083_v1 = vmax.f32 %v1065_v34, 0.0  ;;  %v10704_v35 = vld [vmem:[#allocation2 + $0xb0] sm:$0x1] }
 0x14e   : > { %v2139_v63 = vmax.f32 %v12854_v6, %v2136_v10  ;;  %v634_v41 = vmax.f32 %v617_v26, 0.0  ;;  %v10696_v61 = vunpack.c.l.bf16 %v1717_v38  ;;  %v859_v0 = vmax.f32 %v10688_v24, 0.0  ;;  %v9702_v26 = vld [vmem:[#allocation3 + $0xc] sm:$0xff]  }
 0x14f   : > { %v1084_v9 = vmax.f32 %v1067_v3, 0.0  ;;  %v1741_v22 = vrot.slane %v10613_v21, 2  ;;  %v10700_v12 = vrot.slane %v1444_v25, 7  ;;  %v10702_v29 = vrot.slane %v1445_v60, 7  ;;  %v8934_v25 = vld [vmem:[%s12790_s3 + $0xc8] sm:$0xff] }
 0x150   : > { %v2142_v16 = vpack.c.bf16 %v2139_v63, %v2139_v63  ;;  %v9254_v40 = vpack.c.bf16 %v634_v41, %v633_v30  ;;  %3144 = vmatpush.bf16.msrb.mxu2 %v8935_v8  ;;  %v10706_v34 = vunpack.c.l.b16 %v1798_v46  ;;  %v10709_v10 = vrot.slane %v1446_v48, 7 }
 0x151   : > { %v1718_v63 = vpack.c.bf16 %v1715_v23, %v1715_v23  ;;  %v1742_v24 = vrot.slane %v10696_v61, 7  ;;  %v9334_v21 = vpack.c.bf16 %v1084_v9, %v1083_v1  ;;  %v10718_v46 = vrot.slane %v12811_v57, 2 }
 0x152   : > { %12855 = vst [vmem:[#allocation27_spill] sm:$0xff] %v10706_v34  ;;  %v2145_v3 = vunpack.c.l.bf16 %v2142_v16  ;;  %v1728_v60 = vrot.slane %v10696_v61, 2  ;;  %v12857_v16 = vrot.slane %v10590_v7, 2  ;;  %v12866_v51 = vunpack.c.l.bf16 %v10163_v13 }
 0x153   : > { %9528 = vst [vmem:[#allocation2 + $0x38] sm:$0xff] %v9254_v40   ;;  %v10724_v41 = vunpack.c.l.bf16 %v1718_v63  ;;  %v12858_v40 = vrot.slane %v10615_v50, 2  ;;  %v1744_v63 = vrot.slane %v1742_v24, 2 }
 0x154   : > { %v2151_v6 = vrot.slane %v2145_v3, 2  ;;  %v2152_v1 = vrot.slane %v2145_v3, 4  ;;  %3145 = vmatpush.bf16.msrb.mxu2 %v8934_v25  ;;  %v2153_v8 = vrot.slane %v2145_v3, 6  ;;  %9544 = vst [vmem:[#allocation2 + $0xb8] sm:$0xff] %v9334_v21   ;;  %v10731_v9 = vsel %vm10138_vm6, %v12857_v16, %v10615_v50 }
 0x155   : > { %2428 = vmatmul.bf16.gmra.mxu3 %v9702_v26  ;;  %12856 = vst [vmem:[#allocation28_spill] sm:$0xff] %v10724_v41  ;;  %v10738_v30 = vsel %vm10138_vm6, %v12858_v40, %v10641_v17  ;;  %v1729_v26 = vrot.slane %v10696_v61, 4  ;;  %v7554_v25 = vrot.slane %v2145_v3, 9  ;;  %v10741_v21 = vrot.slane %v1728_v60, 7 }
 0x156   : > { %v2159_v15 = vrot.slane %v2151_v6, 7  ;;  %v2162_v38 = vrot.slane %v2152_v1, 7  ;;  %v10743_v7 = vrot.slane %v2153_v8, 7  ;;  %v1743_v16 = vsel %vm10138_vm6, %v1741_v22, %v1742_v24 }
 0x157   : > { %12859 = vst [vmem:[#allocation29_spill] sm:$0xff] %v10741_v21  ;;  %v1730_v40 = vrot.slane %v10696_v61, 6  ;;  %v12860_v3 = vunpack.c.l.bf16 %v10182_v33  ;;  %v10752_v60 = vrot.slane %v1729_v26, 7  ;;  %v1327_v22 = vrot.slane %v10641_v17, 2 }
 0x158   : > { %v2160_v50 = vsel %vm10138_vm6, %v7554_v25, %v2159_v15  ;;  %v2161_v23 = vrot.slane %v2159_v15, 2  ;;  %v2164_v48 = vrot.slane %v2162_v38, 2  ;;  %v10760_v15 = vsel %vm10138_vm6, %v1744_v63, %v10741_v21 }
 0x159   : > { %v7555_v57 = vrot.slane %v2160_v50, 9  ;;  %v1855_v6 = vmax.f32 %v858_v31, %v12860_v3  ;;  %12861 = vst [vmem:[#allocation30_spill] sm:$0xff] %v10752_v60  ;;  %v7531_v61 = vrot.slane %v1743_v16, 9  ;;  %v12863_v25 = vunpack.c.l.bf16 %v10187_v39 }
 0x15a   : > { %v1419_v44 = vld [vmem:[#allocation2 + $0x38] sm:$0x1]  ;;  %v2163_v1 = vsel %vm10138_vm6, %v2161_v23, %v2162_v38  ;;  %v1420_v8 = vld [vmem:[#allocation2 + $0x3c] sm:$0xf]  ;;  %12862 = vst [vmem:[#allocation31_spill] sm:$0xff] %v10760_v15  ;;  %v2166_v33 = vsel %vm10138_vm6, %v2164_v48, %v10743_v7  ;;  %v12865_v3 = vmax.f32 %v10540_v53, 0.0 }
 0x15b   : > { %v1425_v47 = vunpack.c.l.bf16 %v1419_v44  ;;  %v1426_v31 = vunpack.c.l.bf16 %v1420_v8  ;;  %v7556_v24 = vrot.slane %v2163_v1, 9  ;;  %v2214_v26 = vmax.f32 %v2160_v50, %v7555_v57 }
 0x15c   : > { %v1856_v23 = vmax.f32 %v859_v0, %v12863_v25  ;;  %v1858_v38 = vpack.c.bf16 %v1855_v6, %v1855_v6  ;;  %v10767_v44 = vrot.slane %v1730_v40, 7  ;;  %v7557_v59 = vrot.slane %v2166_v33, 9  ;;  %v10786_v6 = vld [vmem:[#allocation2 + $0xb8] sm:$0xf] }
 0x15d   : > { %v1429_v63 = vmax.f32 %v12865_v3, %v1426_v31  ;;  %v1431_v48 = vmax.f32 %v1425_v47, %v12866_v51  ;;  %v12867_v57 = vrot.slane %v10553_v56, 7  ;;  %v10788_v31 = vmax.f32 %v1743_v16, %v7531_v61  ;;  %v2132_v61 = vld [vmem:[#allocation2 + $0xbc] sm:$0x1] }
 0x15e   : > { %12864 = vst [vmem:[#allocation32_spill] sm:$0xff] %v10767_v44  ;;  %v10775_v8 = vunpack.c.l.bf16 %v1858_v38  ;;  %v2215_v13 = vmax.f32 %v2163_v1, %v7556_v24  ;;  %v2222_v47 = vpack.c.bf16 %v2214_v26, %v2214_v26  ;;  %v1859_v51 = vpack.c.bf16 %v1856_v23, %v1856_v23 }
 0x15f   : > { %v10781_v39 = vsel %vm10138_vm6, %v1327_v22, %v12867_v57  ;;  %v1432_v40 = vpack.c.bf16 %v1429_v63, %v1429_v63  ;;  %12868 = vst [vmem:[#allocation33_spill] sm:$0xff] %v10788_v31  ;;  %v2216_v3 = vmax.f32 %v2166_v33, %v7557_v59  ;;  %v1434_v57 = vpack.c.bf16 %v1431_v48, %v1431_v48 }
 0x160   : > { %v1867_v17 = vrot.slane %v10775_v8, 2  ;;  %v2137_v63 = vunpack.c.l.bf16 %v10786_v6  ;;  %v1868_v1 = vrot.slane %v10775_v8, 4  ;;  %v2223_v24 = vpack.c.bf16 %v2215_v13, %v2215_v13 }
 0x161   : > { %v1435_v25 = vunpack.c.l.bf16 %v1432_v40  ;;  %v10796_v26 = vunpack.c.l.b16 %v2222_v47  ;;  %v1862_v23 = vunpack.c.l.bf16 %v1859_v51  ;;  %v1869_v40 = vrot.slane %v10775_v8, 6 }
 0x162   : > { %v2224_v48 = vpack.c.bf16 %v2216_v3, %v2216_v3  ;;  %v10799_v38 = vunpack.c.l.bf16 %v1434_v57  ;;  %v1875_v6 = vrot.slane %v1867_v17, 7  ;;  %v2138_v22 = vunpack.c.l.bf16 %v2132_v61 }
 0x163   : > { %v1441_v53 = vrot.slane %v1435_v25, 2  ;;  %v1442_v50 = vrot.slane %v1435_v25, 4  ;;  %v1443_v16 = vrot.slane %v1435_v25, 6  ;;  %12869 = vst [vmem:[#allocation34_spill] sm:$0xff] %v10796_v26  ;;  %v7509_v0 = vrot.slane %v1435_v25, 9 }
 0x164   : > { %v1878_v13 = vrot.slane %v1868_v1, 7  ;;  %v1870_v51 = vrot.slane %v1862_v23, 2  ;;  %v1881_v44 = vrot.slane %v1869_v40, 7  ;;  %v10803_v21 = vunpack.c.l.b16 %v2223_v24 }
 0x165   : > { %v1449_v56 = vrot.slane %v1441_v53, 7  ;;  %v1452_v59 = vrot.slane %v1442_v50, 7  ;;  %v1455_v33 = vrot.slane %v1443_v16, 7  ;;  %v7536_v17 = vrot.slane %v10775_v8, 9 }
 0x166   : > { %12870 = vst [vmem:[#allocation35_spill] sm:$0xff] %v10803_v21  ;;  %v10810_v57 = vunpack.c.l.b16 %v2224_v48  ;;  %v1871_v16 = vrot.slane %v1862_v23, 4  ;;  %v1872_v1 = vrot.slane %v1862_v23, 6  ;;  %v1880_v61 = vrot.slane %v1878_v13, 2 }
 0x167   : > { %v1450_v34 = vsel %vm10138_vm6, %v7509_v0, %v1449_v56  ;;  %v1451_v31 = vrot.slane %v1449_v56, 2  ;;  %v1454_v15 = vrot.slane %v1452_v59, 2  ;;  %v1457_v47 = vrot.slane %v1455_v33, 2 }
 0x168   : > { %v7510_v41 = vrot.slane %v1450_v34, 9  ;;  %v1877_v56 = vrot.slane %v1875_v6, 2  ;;  %12871 = vst [vmem:[#allocation36_spill] sm:$0xff] %v10810_v57  ;;  %v12872_v24 = vrot.slane %v10662_v54, 7  ;;  %v1876_v54 = vsel %vm10138_vm6, %v7536_v17, %v1875_v6 }
 0x169   : > { %v1453_v50 = vsel %vm10138_vm6, %v1451_v31, %v1452_v59  ;;  %v1456_v53 = vsel %vm10138_vm6, %v1454_v15, %v1455_v33  ;;  %v1883_v31 = vrot.slane %v1881_v44, 2  ;;  %v1884_v59 = vrot.slane %v1862_v23, 7 }
 0x16a   : > { %v7511_v25 = vrot.slane %v1453_v50, 9  ;;  %v7512_v3 = vrot.slane %v1456_v53, 9  ;;  %v1504_v0 = vmax.f32 %v1450_v34, %v7510_v41  ;;  %v10816_v40 = vsel %vm10138_vm6, %v1457_v47, %v12872_v24 }
 0x16b   : > { %v10818_v15 = vrot.slane %v1870_v51, 7  ;;  %v1879_v47 = vsel %vm10138_vm6, %v1877_v56, %v1878_v13  ;;  %v1882_v51 = vsel %vm10138_vm6, %v1880_v61, %v1881_v44  ;;  %v10831_v8 = vrot.slane %v1871_v16, 7  ;;  %v8933_v13 = vld [vmem:[%s12790_s3 + $0xc0] sm:$0xff] }
 0x16c   : > { %v1505_v33 = vmax.f32 %v1453_v50, %v7511_v25  ;;  %v1506_v48 = vmax.f32 %v1456_v53, %v7512_v3  ;;  %v1512_v60 = vpack.c.bf16 %v1504_v0, %v1504_v0  ;;  %v1885_v50 = vsel %vm10138_vm6, %v1883_v31, %v1884_v59  ;;  %3146 = vmatpush.bf16.msrb.mxu2 %v8933_v13 }
 0x16d   : > { %v10835_v53 = vrot.slane %v1884_v59, 2  ;;  %v10838_v6 = vrot.slane %v1872_v1, 7  ;;  %v7537_v3 = vrot.slane %v1876_v54, 9  ;;  %v7538_v0 = vrot.slane %v1879_v47, 9 }
 0x16e   : > { %v1513_v17 = vpack.c.bf16 %v1505_v33, %v1505_v33  ;;  %v12873_v44 = vmax.f32 %v10513_v20, 0.0  ;;  %v1514_v16 = vpack.c.bf16 %v1506_v48, %v1506_v48  ;;  %v10845_v61 = vunpack.c.l.b16 %v1512_v60 }
 0x16f   : > { %v12874_v31 = vunpack.c.l.bf16 %v10704_v35  ;;  %v12875_v24 = vrot.slane %v10648_v18, 9  ;;  %v7539_v25 = vrot.slane %v1882_v51, 9  ;;  %v12876_v23 = vrot.slane %v10731_v9, 9 }
 0x170   : > { %v2140_v56 = vmax.f32 %v12873_v44, %v2137_v63  ;;  %v7540_v63 = vrot.slane %v1885_v50, 9  ;;  %v12877_v60 = vrot.slane %v10738_v30, 9  ;;  %v12878_v35 = vrot.slane %v10781_v39, 9 }
 0x171   : > { %v2141_v59 = vmax.f32 %v12874_v31, %v2138_v22  ;;  %v1366_v1 = vmax.f32 %v10648_v18, %v12875_v24  ;;  %v1367_v20 = vmax.f32 %v10731_v9, %v12876_v23  ;;  %v1373_v18 = vpack.c.bf16 %v10666_v45, %v10666_v45 }
 0x172   : > { %v2143_v33 = vpack.c.bf16 %v2140_v56, %v2140_v56  ;;  %v1368_v48 = vmax.f32 %v10738_v30, %v12877_v60  ;;  %v1369_v22 = vmax.f32 %v10781_v39, %v12878_v35  ;;  %v1930_v24 = vmax.f32 %v1876_v54, %v7537_v3  ;;  %v8948_v30 = vld [vmem:[%s12790_s3 + $0x138] sm:$0xff] }
 0x173   : > { %v1931_v13 = vmax.f32 %v1879_v47, %v7538_v0  ;;  %v1374_v56 = vpack.c.bf16 %v1366_v1, %v1366_v1  ;;  %v10864_v31 = vunpack.c.l.b16 %v1513_v17  ;;  %v2144_v34 = vpack.c.bf16 %v2141_v59, %v2141_v59  ;;  %3284 = vmatpush.bf16.msrb.mxu3 %v8948_v30  ;;  %v8947_v17 = vld [vmem:[%s12790_s3 + $0x130] sm:$0xff] }
 0x174   : > { %v2146_v44 = vunpack.c.l.bf16 %v2143_v33  ;;  %v1375_v9 = vpack.c.bf16 %v1367_v20, %v1367_v20  ;;  %v1376_v23 = vpack.c.bf16 %v1368_v48, %v1368_v48  ;;  %v10869_v35 = vunpack.c.l.b16 %v1514_v16 }
 0x175   : > { %v1377_v54 = vpack.c.bf16 %v1369_v22, %v1369_v22  ;;  %v1389_v47 = vunpack.c.l.b16 %v1373_v18  ;;  %v1390_v1 = vunpack.c.l.b16 %v1374_v56  ;;  %v10875_v33 = vmax.f32 %v1882_v51, %v7539_v25 }
 0x176   : > { %v2154_v60 = vrot.slane %v2146_v44, 2  ;;  %v2155_v41 = vrot.slane %v2146_v44, 4  ;;  %v2156_v57 = vrot.slane %v2146_v44, 6  ;;  %v2168_v39 = vrot.slane %v2146_v44, 7 }
 0x177   : > { %v1938_v20 = vpack.c.bf16 %v1930_v24, %v1930_v24  ;;  %v1939_v48 = vpack.c.bf16 %v1931_v13, %v1931_v13  ;;  %v2147_v44 = vunpack.c.l.bf16 %v2144_v34  ;;  %v12879_v16 = vrot.slane %v10743_v7, 2  ;;  %3285 = vmatpush.bf16.msrb.mxu3 %v8947_v17 }
 0x178   : > { %v2170_v3 = vrot.slane %v2168_v39, 2  ;;  %v2171_v0 = vrot.slane %v2154_v60, 7  ;;  %v2174_v59 = vrot.slane %v2155_v41, 7  ;;  %v2177_v18 = vrot.slane %v2156_v57, 7 }
 0x179   : > { %v2169_v22 = vsel %vm10138_vm6, %v12879_v16, %v2168_v39  ;;  %v1391_v30 = vunpack.c.l.b16 %v1375_v9  ;;  %v1392_v45 = vunpack.c.l.b16 %v1376_v23  ;;  %v1393_v26 = vunpack.c.l.b16 %v1377_v54 }
 0x17a   : > { %v2172_v21 = vsel %vm10138_vm6, %v2170_v3, %v2171_v0  ;;  %v12880_v41 = vrot.slane %v10496_v5, 7  ;;  %v12881_v51 = vrot.slane %v10518_v14, 6  ;;  %v1397_v34 = vrot.slane %v10556_v43, 5 }
 0x17b   : > { %v2173_v7 = vrot.slane %v2171_v0, 2  ;;  %v2176_v24 = vrot.slane %v2174_v59, 2  ;;  %v1399_v13 = vrot.slane %v1389_v47, 4  ;;  %v1401_v56 = vrot.slane %v1390_v1, 3  ;;  %v1414_v47 = vld [vmem:[#allocation3 + $0x18] sm:$0x1] }
 0x17c   : > { %v1396_v25 = vsel %vm1148_vm1, %v12881_v51, %v12880_v41  ;;  %v10889_v57 = vmax.f32 %v1885_v50, %v7540_v63  ;;  %v10891_v9 = vunpack.c.l.b16 %v1938_v20  ;;  %v10893_v23 = vunpack.c.l.b16 %v1939_v48  ;;  %v8946_v50 = vld [vmem:[%s12790_s3 + $0x128] sm:$0xff]  ;;  %v1411_v51 = vld [vmem:[#allocation3 + $0x14] sm:$0xf] }
 0x17d   : > { %v2180_v60 = vrot.slane %v2147_v44, 7  ;;  %v2179_v39 = vrot.slane %v2177_v18, 2  ;;  %v7558_v5 = vrot.slane %v2169_v22, 9  ;;  %v1398_v14 = vsel %vm1247_vm7, %v1397_v34, %v1396_v25  ;;  %v2927_v48 = vld [vmem:[#allocation3 + $0x8] sm:$0x8]  ;;  %3286 = vmatpush.bf16.msrb.mxu3 %v8946_v50 }
 0x17e   : > { %v1403_v54 = vrot.slane %v1391_v30, 2  ;;  %v1537_v3 = vrot.slane %v10864_v31, 6  ;;  %v7559_v43 = vrot.slane %v2172_v21, 9  ;;  %v1400_v17 = vsel %vm1150_vm3, %v1399_v13, %v1398_v14  ;;  %v10915_v41 = vld [vmem:[#allocation3 + $0xc] sm:$0xf] }
 0x17f   : > { %v1405_v0 = vrot.slane %v1392_v45, 1  ;;  %v10903_v63 = vsel %vm10138_vm6, %v2173_v7, %v2174_v59  ;;  %v10907_v1 = vsel %vm10138_vm6, %v2176_v24, %v2177_v18  ;;  %v1402_v20 = vsel %vm1252_vm8, %v1401_v56, %v1400_v17 }
 0x180   : > { %v1408_v31 = vpack.c.b16 %v1393_v26, %v1393_v26  ;;  %v1940_v45 = vpack.c.bf16 %v10875_v33, %v10875_v33  ;;  %v1962_v44 = vrot.slane %v10891_v9, 7  ;;  %v1963_v16 = vrot.slane %v10893_v23, 6  ;;  %v1982_v23 = vld [vmem:[#allocation3 + $0x38] sm:$0x1] }
 0x181   : > { %v1404_v30 = vsel %vm1152_vm5, %v1403_v54, %v1402_v20  ;;  %v10919_v59 = vsel %vm10138_vm6, %v2179_v39, %v2180_v60  ;;  %v10921_v18 = vmax.f32 %v2169_v22, %v7558_v5  ;;  %v7560_v34 = vrot.slane %v10903_v63, 9 }
 0x182   : > { %v1406_v26 = vsel %vm1257_vm9, %v1405_v0, %v1404_v30  ;;  %v1415_v25 = vsel %vm10595_vm14, %v1408_v31, %v1414_v47  ;;  %v7561_v7 = vrot.slane %v10907_v1, 9  ;;  %v2977_v13 = vunpack.c.l.b16 %v2927_v48 }
 0x183   : > { %v1407_v24 = vpack.c.b16 %v1406_v26, %v1406_v26  ;;  %1416 = vst [vmem:[#allocation3 + $0x18] sm:$0x1] %v1415_v25  ;;  %v10928_v56 = vmax.f32 %v2172_v21, %v7559_v43  ;;  %v2978_v60 = vunpack.c.l.b16 %v10915_v41  ;;  %v1462_v22 = vsel %vm10138_vm6, %v10718_v46, %v10700_v12 }
 0x184   : > { %v12882_v39 = vrot.slane %v10700_v12, 2  ;;  %v12883_v21 = vrot.slane %v10702_v29, 2  ;;  %v1469_v43 = vrot.slane %v10709_v10, 2  ;;  %v7514_v17 = vrot.slane %v1462_v22, 9 }
 0x185   : > { %v1412_v14 = vsel %vm10584_vm12, %v1407_v24, %v1411_v51  ;;  %v2750_v46 = vshrl.u32 %v10622_v36, 16  ;;  %v2994_v12 = vpack.c.b16 %v2978_v60, %v2977_v13  ;;  %v12884_v50 = vrot.slane %v10799_v38, 7 }
 0x186   : > { %v1465_v5 = vsel %vm10138_vm6, %v12882_v39, %v10702_v29  ;;  %v1468_v54 = vsel %vm10138_vm6, %v12883_v21, %v10709_v10  ;;  %1413 = vst [vmem:[#allocation3 + $0x14] sm:$0xf] %v1412_v14  ;;  %v12885_v29 = vrot.slane %v10816_v40, 9  ;;  %v1508_v48 = vmax.f32 %v1462_v22, %v7514_v17 }
 0x187   : > { %v7515_v0 = vrot.slane %v1465_v5, 9  ;;  %v7516_v47 = vrot.slane %v1468_v54, 9  ;;  %v1471_v20 = vsel %vm10138_vm6, %v1469_v43, %v12884_v50  ;;  %v12886_v10 = vrot.slane %v10845_v61, 7 }
 0x188   : > { %v1507_v31 = vmax.f32 %v10816_v40, %v12885_v29  ;;  %v3004_v36 = vshrl.u32 %v2994_v12, 16  ;;  %v3007_v26 = vshll.u32 %v2994_v12, 16  ;;  %v7517_v51 = vrot.slane %v1471_v20, 9 }
 0x189   : > { %v1538_v30 = vsel %vm1148_vm1, %v1537_v3, %v12886_v10  ;;  %v1509_v25 = vmax.f32 %v1465_v5, %v7515_v0  ;;  %v1510_v24 = vmax.f32 %v1468_v54, %v7516_v47  ;;  %v1516_v39 = vpack.c.bf16 %v1508_v48, %v1508_v48 }
 0x18a   : > { %v1515_v13 = vpack.c.bf16 %v1507_v31, %v1507_v31  ;;  %v1539_v38 = vrot.slane %v10869_v35, 5  ;;  %v3006_v14 = vrot.slane %v3004_v36, 3  ;;  %v3009_v21 = vrot.slane %v3007_v26, 4 }
 0x18b   : > { %v1511_v43 = vmax.f32 %v1471_v20, %v7517_v51  ;;  %v1517_v50 = vpack.c.bf16 %v1509_v25, %v1509_v25  ;;  %v2752_v40 = vor.u32 %v2750_v46, %v10637_v58  ;;  %v1518_v22 = vpack.c.bf16 %v1510_v24, %v1510_v24 }
 0x18c   : > { %v1531_v17 = vunpack.c.l.b16 %v1515_v13  ;;  %v1532_v61 = vunpack.c.l.b16 %v1516_v39  ;;  %v3010_v29 = vor.u32 %v3009_v21, %v3006_v14  ;;  %v1540_v12 = vsel %vm1247_vm7, %v1539_v38, %v1538_v30  ;;  %v1556_v13 = vld [vmem:[#allocation3 + $0x20] sm:$0x1] }
 0x18d   : > { %v1519_v3 = vpack.c.bf16 %v1511_v43, %v1511_v43  ;;  %v1533_v10 = vunpack.c.l.b16 %v1517_v50  ;;  %v9704_v5 = vld [vmem:[#allocation3 + $0x14] sm:$0xff]   ;;  %v1534_v35 = vunpack.c.l.b16 %v1518_v22  ;;  %v12887_v20 = vrot.slane %v10414_v19, 2  ;;  %v8945_v39 = vld [vmem:[%s12790_s3 + $0x120] sm:$0xff] }
 0x18e   : > { %v10964_v54 = vld [vmem:[#allocation3 + $0x10] sm:$0xff]   ;;  %v1541_v47 = vrot.slane %v1531_v17, 4  ;;  %v1543_v31 = vrot.slane %v1532_v61, 3  ;;  %v12888_v30 = vrot.slane %v10436_v2, 2  ;;  %2433 = vmatmul.bf16.gmra.mxu3 %v9704_v5  ;;  %v1611_v22 = vrot.slane %v10438_v4, 2 }
 0x18f   : > { %v10966_v0 = vld [vmem:[#allocation3 + $0x14] sm:$0xff]  ;;  %v1607_v58 = vsel %vm10138_vm6, %v12887_v20, %v10436_v2  ;;  %v2494_v46 = vshrl.u32 %v10964_v54, 16  ;;  %v2497_v48 = vshll.u32 %v10964_v54, 16  ;;  %v1535_v36 = vunpack.c.l.b16 %v1519_v3  ;;  %3287 = vmatpush.bf16.msrb.mxu3 %v8945_v39 }
 0x190   : > { %v1610_v26 = vsel %vm10138_vm6, %v12888_v30, %v10438_v4  ;;  %v2754_v51 = vshll.u32 %v10966_v0, 16  ;;  %v1542_v25 = vsel %vm1150_vm3, %v1541_v47, %v1540_v12  ;;  %v1545_v19 = vrot.slane %v1533_v10, 2  ;;  %v1553_v10 = vld [vmem:[#allocation3 + $0x1c] sm:$0xf] }
 0x191   : > { %v1547_v24 = vrot.slane %v1534_v35, 1  ;;  %v2496_v38 = vrot.slane %v2494_v46, 3  ;;  %v2499_v14 = vrot.slane %v2497_v48, 4  ;;  %v1544_v21 = vsel %vm1252_vm8, %v1543_v31, %v1542_v25 }
 0x192   : > { %v1550_v2 = vpack.c.b16 %v1535_v36, %v1535_v36  ;;  %v10986_v43 = vrot.slane %v2754_v51, 1  ;;  %v1546_v50 = vsel %vm1152_vm5, %v1545_v19, %v1544_v21  ;;  %v7524_v17 = vrot.slane %v1607_v58, 9 }
 0x193   : > { %v10990_v61 = vor.u32 %v2499_v14, %v2496_v38  ;;  %v1548_v3 = vsel %vm1257_vm9, %v1547_v24, %v1546_v50  ;;  %v7525_v5 = vrot.slane %v1610_v26, 9  ;;  %v2758_v31 = vshrl.u32 %v10966_v0, 16 }
 0x194   : > { %v1557_v12 = vsel %vm10595_vm14, %v1550_v2, %v1556_v13  ;;  %v2757_v35 = vsel %vm2737_vm15, %v2752_v40, %v10986_v43  ;;  %v1549_v47 = vpack.c.b16 %v1548_v3, %v1548_v3  ;;  %v12889_v4 = vrot.slane %v10384_v11, 7 }
 0x195   : > { %1558 = vst [vmem:[#allocation3 + $0x20] sm:$0x1] %v1557_v12  ;;  %v2501_v46 = vsel %vm2475_vm0, %v10650_v32, %v10990_v61  ;;  %2875 = vmatmul.bf16.gmra.mxu1 %v2757_v35  ;;  %v3019_v48 = vsel %vm2475_vm0, %v3010_v29, %v10990_v61  ;;  %v12890_v40 = vrot.slane %v10452_v42, 9  ;;  %v1651_v0 = vmax.f32 %v1607_v58, %v7524_v17  ;;  %v12893_v58 = vld [vmem:[#allocation30_spill] sm:$0xff] }
 0x196   : > { %v1613_v20 = vsel %vm10138_vm6, %v1611_v22, %v12889_v4  ;;  %2625 = vmatmul.bf16.gmra.mxu0 %v2501_v46  ;;  %3147 = vmatmul.bf16.vlgmr.msrb.gmra.mxu2 %v3019_v48  ;;  %v1554_v11 = vsel %vm10584_vm12, %v1549_v47, %v1553_v10  ;;  %v1652_v51 = vmax.f32 %v1610_v26, %v7525_v5  ;;  %v1681_v25 = vrot.slane %v10363_v62, 5  ;;  %v12894_v26 = vld [vmem:[#allocation29_spill] sm:$0xff]  ;;  %v12896_v22 = vld [vmem:[#allocation32_spill] sm:$0xff]  ;;  %v1698_v48 = vld [vmem:[#allocation3 + $0x28] sm:$0x1] }
 0x197   : > { %v7526_v36 = vrot.slane %v1613_v20, 9  ;;  %v1650_v30 = vmax.f32 %v10452_v42, %v12890_v40  ;;  %1555 = vst [vmem:[#allocation3 + $0x1c] sm:$0xf] %v1554_v11  ;;  %v1657_v19 = vpack.c.bf16 %v10474_v27, %v10474_v27  ;;  %v12891_v24 = vrot.slane %v10338_v28, 7  ;;  %v12900_v11 = vld [vmem:[#allocation31_spill] sm:$0xff] }
 0x198   : > { %v12892_v13 = vrot.slane %v10347_v49, 6  ;;  %v1659_v39 = vpack.c.bf16 %v1651_v0, %v1651_v0  ;;  %v1660_v38 = vpack.c.bf16 %v1652_v51, %v1652_v51  ;;  %v12895_v21 = vrot.slane %v12894_v26, 2 }
 0x199   : > { %v1653_v32 = vmax.f32 %v1613_v20, %v7526_v36  ;;  %v1658_v29 = vpack.c.bf16 %v1650_v30, %v1650_v30  ;;  %v1673_v50 = vunpack.c.l.b16 %v1657_v19  ;;  %v12897_v28 = vrot.slane %v12893_v58, 2  ;;  %v12898_v36 = vld [vmem:[#allocation28_spill] sm:$0xff] }
 0x19a   : > { %v1680_v42 = vsel %vm1148_vm1, %v12892_v13, %v12891_v24  ;;  %v1749_v62 = vsel %vm10138_vm6, %v12895_v21, %v12893_v58  ;;  %v1675_v17 = vunpack.c.l.b16 %v1659_v39  ;;  %v1676_v3 = vunpack.c.l.b16 %v1660_v38  ;;  %v12902_v58 = vld [vmem:[#allocation33_spill] sm:$0xff] }
 0x19b   : > { %v1682_v14 = vsel %vm1247_vm7, %v1681_v25, %v1680_v42  ;;  %v1661_v2 = vpack.c.bf16 %v1653_v32, %v1653_v32  ;;  %v1674_v27 = vunpack.c.l.b16 %v1658_v29  ;;  %v1752_v49 = vsel %vm10138_vm6, %v12897_v28, %v12896_v22 }
 0x19c   : > { %v1753_v10 = vrot.slane %v12896_v22, 2  ;;  %v7533_v12 = vrot.slane %v1749_v62, 9  ;;  %v1683_v35 = vrot.slane %v1673_v50, 4  ;;  %v7534_v4 = vrot.slane %v1752_v49, 9 }
 0x19d   : > { %v1677_v5 = vunpack.c.l.b16 %v1661_v2  ;;  %v1685_v47 = vrot.slane %v1674_v27, 3  ;;  %v1687_v20 = vrot.slane %v1675_v17, 2  ;;  %v1689_v46 = vrot.slane %v1676_v3, 1  ;;  %v8944_v3 = vld [vmem:[%s12790_s3 + $0x118] sm:$0xff] }
 0x19e   : > { %v12899_v40 = vrot.slane %v12898_v36, 7  ;;  %v12901_v0 = vrot.slane %v12900_v11, 9  ;;  %v1684_v25 = vsel %vm1150_vm3, %v1683_v35, %v1682_v14  ;;  %v1793_v29 = vmax.f32 %v1749_v62, %v7533_v12  ;;  %v9706_v24 = vld [vmem:[#allocation3 + $0x1c] sm:$0xff]   ;;  %3288 = vmatpush.bf16.msrb.mxu3 %v8944_v3 }
 0x19f   : > { %v1692_v32 = vpack.c.b16 %v1677_v5, %v1677_v5  ;;  %v11040_v13 = vld [vmem:[#allocation3 + $0x18] sm:$0xff]   ;;  %v1686_v39 = vsel %vm1252_vm8, %v1685_v47, %v1684_v25  ;;  %v1794_v38 = vmax.f32 %v1752_v49, %v7534_v4  ;;  %v1799_v26 = vpack.c.bf16 %v12902_v58, %v12902_v58  ;;  %2438 = vmatmul.bf16.gmra.mxu3 %v9706_v24  ;;  %v1695_v49 = vld [vmem:[#allocation3 + $0x24] sm:$0xf] }
 0x1a0   : > { %v1755_v30 = vsel %vm10138_vm6, %v1753_v10, %v12899_v40  ;;  %v1792_v51 = vmax.f32 %v12900_v11, %v12901_v0  ;;  %v8920_v42 = vld [vmem:[#allocation3 + $0x1c] sm:$0xff]  ;;  %v2503_v2 = vshrl.u32 %v11040_v13, 16  ;;  %v2506_v50 = vshll.u32 %v11040_v13, 16  ;;  %v12903_v25 = vld [vmem:[#allocation25_spill] sm:$0xff] }
 0x1a1   : > { %v7535_v19 = vrot.slane %v1755_v30, 9  ;;  %v1688_v14 = vsel %vm1152_vm5, %v1687_v20, %v1686_v39  ;;  %v1699_v62 = vsel %vm10595_vm14, %v1692_v32, %v1698_v48  ;;  %v2760_v27 = vor.u32 %v2758_v31, %v10986_v43  ;;  %v12907_v39 = vld [vmem:[#allocation27_spill] sm:$0xff] }
 0x1a2   : > { %v1800_v21 = vpack.c.bf16 %v1792_v51, %v1792_v51  ;;  %v2762_v22 = vshll.u32 %v8920_v42, 16  ;;  %v1690_v28 = vsel %vm1257_vm9, %v1689_v46, %v1688_v14  ;;  %1700 = vst [vmem:[#allocation3 + $0x28] sm:$0x1] %v1699_v62  ;;  %v2505_v10 = vrot.slane %v2503_v2, 3 }
 0x1a3   : > { %v1795_v17 = vmax.f32 %v1755_v30, %v7535_v19  ;;  %v2508_v12 = vrot.slane %v2506_v50, 4  ;;  %v1691_v5 = vpack.c.b16 %v1690_v28, %v1690_v28  ;;  %v1801_v35 = vpack.c.bf16 %v1793_v29, %v1793_v29  ;;  %v12905_v19 = vld [vmem:[#allocation26_spill] sm:$0xff] }
 0x1a4   : > { %v2764_v47 = vrot.slane %v2762_v22, 1  ;;  %v1802_v4 = vpack.c.bf16 %v1794_v38, %v1794_v38  ;;  %v1815_v48 = vunpack.c.l.b16 %v1799_v26  ;;  %v1816_v46 = vunpack.c.l.b16 %v1800_v21  ;;  %v1840_v26 = vld [vmem:[#allocation3 + $0x30] sm:$0x1] }
 0x1a5   : > { %v1803_v20 = vpack.c.bf16 %v1795_v17, %v1795_v17  ;;  %v11055_v43 = vor.u32 %v2508_v12, %v2505_v10  ;;  %v1696_v31 = vsel %vm10584_vm12, %v1691_v5, %v1695_v49  ;;  %v1817_v36 = vunpack.c.l.b16 %v1801_v35 }
 0x1a6   : > { %v2765_v40 = vsel %vm2737_vm15, %v2760_v27, %v2764_v47  ;;  %1697 = vst [vmem:[#allocation3 + $0x24] sm:$0xf] %v1696_v31  ;;  %v2766_v30 = vshrl.u32 %v8920_v42, 16  ;;  %v1818_v11 = vunpack.c.l.b16 %v1802_v4  ;;  %v12904_v32 = vrot.slane %v12903_v25, 7 }
 0x1a7   : > { %v1819_v0 = vunpack.c.l.b16 %v1803_v20  ;;  %v2510_v51 = vsel %vm2475_vm0, %v10990_v61, %v11055_v43  ;;  %2880 = vmatmul.bf16.gmra.mxu1 %v2765_v40  ;;  %v12906_v29 = vrot.slane %v12905_v19, 6  ;;  %v1823_v38 = vrot.slane %v12907_v39, 5 }
 0x1a8   : > { %v1825_v58 = vrot.slane %v1815_v48, 4  ;;  %2630 = vmatmul.bf16.gmra.mxu0 %v2510_v51  ;;  %3152 = vmatmul.bf16.gmra.mxu2 %v2510_v51  ;;  %v1827_v42 = vrot.slane %v1816_v46, 3  ;;  %v1829_v21 = vrot.slane %v1817_v36, 2  ;;  %v1831_v2 = vrot.slane %v1818_v11, 1  ;;  %v1837_v36 = vld [vmem:[#allocation3 + $0x2c] sm:$0xf] }
 0x1a9   : > { %v1822_v24 = vsel %vm1148_vm1, %v12906_v29, %v12904_v32  ;;  %v1834_v50 = vpack.c.b16 %v1819_v0, %v1819_v0  ;;  %v1888_v61 = vsel %vm10138_vm6, %v10835_v53, %v10818_v15  ;;  %v12908_v62 = vrot.slane %v10818_v15, 2 }
 0x1aa   : > { %v1824_v14 = vsel %vm1247_vm7, %v1823_v38, %v1822_v24  ;;  %v12909_v22 = vrot.slane %v10831_v8, 2  ;;  %v1895_v3 = vrot.slane %v10838_v6, 2  ;;  %v7541_v53 = vrot.slane %v1888_v61, 9 }
 0x1ab   : > { %v1891_v27 = vsel %vm10138_vm6, %v12908_v62, %v10831_v8  ;;  %v1826_v49 = vsel %vm1150_vm3, %v1825_v58, %v1824_v14  ;;  %v1841_v17 = vsel %vm10595_vm14, %v1834_v50, %v1840_v26  ;;  %v2768_v10 = vor.u32 %v2766_v30, %v2764_v47  ;;  %v12910_v8 = vld [vmem:[#allocation15_spill] sm:$0xff] }
 0x1ac   : > { %v1894_v28 = vsel %vm10138_vm6, %v12909_v22, %v10838_v6  ;;  %v1828_v15 = vsel %vm1252_vm8, %v1827_v42, %v1826_v49  ;;  %1842 = vst [vmem:[#allocation3 + $0x30] sm:$0x1] %v1841_v17  ;;  %v7542_v12 = vrot.slane %v1891_v27, 9  ;;  %v12911_v4 = vrot.slane %v12910_v8, 7 }
 0x1ad   : > { %v7543_v5 = vrot.slane %v1894_v28, 9  ;;  %v1830_v35 = vsel %vm1152_vm5, %v1829_v21, %v1828_v15  ;;  %v1934_v48 = vmax.f32 %v1888_v61, %v7541_v53  ;;  %v1941_v31 = vpack.c.bf16 %v10889_v57, %v10889_v57  ;;  %v9555_v46 = vld [vmem:[#allocation3 + $0x20] sm:$0xff]  }
 0x1ae   : > { %v1897_v20 = vsel %vm10138_vm6, %v1895_v3, %v12911_v4  ;;  %v11096_v6 = vld [vmem:[#allocation3 + $0x24] sm:$0xff]  ;;  %v1832_v47 = vsel %vm1257_vm9, %v1831_v2, %v1830_v35  ;;  %v1935_v30 = vmax.f32 %v1891_v27, %v7542_v12  ;;  %v2512_v0 = vshrl.u32 %v9555_v46, 16 }
 0x1af   : > { %v7544_v40 = vrot.slane %v1897_v20, 9  ;;  %v1936_v11 = vmax.f32 %v1894_v28, %v7543_v5  ;;  %v2515_v51 = vshll.u32 %v9555_v46, 16  ;;  %v1833_v25 = vpack.c.b16 %v1832_v47, %v1832_v47  ;;  %v9708_v39 = vld [vmem:[#allocation3 + $0x24] sm:$0xff]  }
 0x1b0   : > { %v1942_v32 = vpack.c.bf16 %v1934_v48, %v1934_v48  ;;  %v2770_v19 = vshll.u32 %v11096_v6, 16  ;;  %v1943_v24 = vpack.c.bf16 %v1935_v30, %v1935_v30  ;;  %v1956_v57 = vunpack.c.l.b16 %v1940_v45  ;;  %2443 = vmatmul.bf16.gmra.mxu3 %v9708_v39  ;;  %v8943_v45 = vld [vmem:[%s12790_s3 + $0x110] sm:$0xff]  ;;  %v12912_v5 = vld [vmem:[#allocation19_spill] sm:$0xff] }
 0x1b1   : > { %v1937_v29 = vmax.f32 %v1897_v20, %v7544_v40  ;;  %v2514_v38 = vrot.slane %v2512_v0, 3  ;;  %v2517_v58 = vrot.slane %v2515_v51, 4  ;;  %v1838_v26 = vsel %vm10584_vm12, %v1833_v25, %v1837_v36  ;;  %3289 = vmatpush.bf16.msrb.mxu3 %v8943_v45  ;;  %v12913_v35 = vld [vmem:[#allocation20_spill] sm:$0xff]  ;;  %v12915_v48 = vld [vmem:[#allocation21_spill] sm:$0xff]  ;;  %v12917_v46 = vld [vmem:[#allocation23_spill] sm:$0xff] }
 0x1b2   : > { %v1944_v42 = vpack.c.bf16 %v1936_v11, %v1936_v11  ;;  %v7562_v21 = vrot.slane %v10919_v59, 9  ;;  %1839 = vst [vmem:[#allocation3 + $0x2c] sm:$0xf] %v1838_v26  ;;  %v1957_v50 = vunpack.c.l.b16 %v1941_v31  ;;  %v1958_v14 = vunpack.c.l.b16 %v1942_v32 }
 0x1b3   : > { %v1945_v2 = vpack.c.bf16 %v1937_v29, %v1937_v29  ;;  %v11106_v61 = vrot.slane %v2770_v19, 1  ;;  %v1959_v62 = vunpack.c.l.b16 %v1943_v24  ;;  %v1964_v33 = vsel %vm1148_vm1, %v1963_v16, %v1962_v44  ;;  %v1979_v29 = vld [vmem:[#allocation3 + $0x34] sm:$0xf] }
 0x1b4   : > { %v1960_v27 = vunpack.c.l.b16 %v1944_v42  ;;  %v2225_v22 = vpack.c.bf16 %v10921_v18, %v10921_v18  ;;  %v11118_v28 = vor.u32 %v2517_v58, %v2514_v38  ;;  %v1965_v17 = vrot.slane %v1956_v57, 5  ;;  %v12919_v57 = vld [vmem:[#allocation22_spill] sm:$0xff]  ;;  %v12921_v58 = vld [vmem:[#allocation16_spill] sm:$0xff]  ;;  %v12923_v42 = vld [vmem:[#allocation17_spill] sm:$0xff] }
 0x1b5   : > { %v1961_v49 = vunpack.c.l.b16 %v1945_v2  ;;  %v2773_v3 = vsel %vm2737_vm15, %v2768_v10, %v11106_v61  ;;  %v1967_v53 = vrot.slane %v1957_v50, 4  ;;  %v1969_v9 = vrot.slane %v1958_v14, 3 }
 0x1b6   : > { %v1971_v15 = vrot.slane %v1959_v62, 2  ;;  %v1966_v44 = vsel %vm1247_vm7, %v1965_v17, %v1964_v33  ;;  %v1973_v16 = vrot.slane %v1960_v27, 1  ;;  %v12914_v8 = vrot.slane %v12913_v35, 2 }
 0x1b7   : > { %v1976_v12 = vpack.c.b16 %v1961_v49, %v1961_v49  ;;  %v1968_v4 = vsel %vm1150_vm3, %v1967_v53, %v1966_v44  ;;  %v12916_v10 = vrot.slane %v12915_v48, 9  ;;  %v12918_v47 = vrot.slane %v12917_v46, 9  ;;  %2885 = vmatmul.bf16.gmra.mxu1 %v2773_v3  ;;  %v12925_v44 = vld [vmem:[#allocation18_spill] sm:$0xff] }
 0x1b8   : > { %v2036_v18 = vsel %vm10138_vm6, %v12914_v8, %v12912_v5  ;;  %v2226_v40 = vpack.c.bf16 %v10928_v56, %v10928_v56  ;;  %v11140_v30 = vsel %vm2475_vm0, %v11055_v43, %v11118_v28  ;;  %v1970_v11 = vsel %vm1252_vm8, %v1969_v9, %v1968_v4 }
 0x1b9   : > { %v7552_v20 = vrot.slane %v2036_v18, 9  ;;  %v2077_v31 = vmax.f32 %v12915_v48, %v12916_v10  ;;  %v2079_v36 = vmax.f32 %v12917_v46, %v12918_v47  ;;  %v1983_v0 = vsel %vm10595_vm14, %v1976_v12, %v1982_v23  ;;  %2635 = vmatmul.bf16.gmra.mxu0 %v11140_v30  ;;  %3157 = vmatmul.bf16.gmra.mxu2 %v11140_v30  ;;  %v9556_v32 = vld [vmem:[#allocation3 + $0x28] sm:$0xff]  }
 0x1ba   : > { %v1972_v51 = vsel %vm1152_vm5, %v1971_v15, %v1970_v11  ;;  %1984 = vst [vmem:[#allocation3 + $0x38] sm:$0x1] %v1983_v0  ;;  %v12920_v39 = vpack.c.bf16 %v12919_v57, %v12919_v57  ;;  %v12922_v26 = vrot.slane %v12921_v58, 7  ;;  %v12924_v2 = vrot.slane %v12923_v42, 6  ;;  %v11161_v27 = vld [vmem:[#allocation3 + $0x2c] sm:$0xff] }
 0x1bb   : > { %v2078_v25 = vmax.f32 %v2036_v18, %v7552_v20  ;;  %v2085_v56 = vpack.c.bf16 %v2077_v31, %v2077_v31  ;;  %v1974_v19 = vsel %vm1257_vm9, %v1973_v16, %v1972_v51  ;;  %v2087_v24 = vpack.c.bf16 %v2079_v36, %v2079_v36  ;;  %v9710_v36 = vld [vmem:[#allocation3 + $0x2c] sm:$0xff]  }
 0x1bc   : > { %v2100_v38 = vunpack.c.l.b16 %v12920_v39  ;;  %v2106_v50 = vsel %vm1148_vm1, %v12924_v2, %v12922_v26  ;;  %v2219_v14 = vmax.f32 %v10903_v63, %v7560_v34  ;;  %v2221_v62 = vmax.f32 %v10919_v59, %v7562_v21  ;;  %v2124_v63 = vld [vmem:[#allocation3 + $0x40] sm:$0x1]  ;;  %v12927_v59 = vld [vmem:[#allocation24_spill] sm:$0xff]  ;;  %v12931_v26 = vld [vmem:[#allocation35_spill] sm:$0xff] }
 0x1bd   : > { %v1975_v33 = vpack.c.b16 %v1974_v19, %v1974_v19  ;;  %v2086_v45 = vpack.c.bf16 %v2078_v25, %v2078_v25  ;;  %v2241_v49 = vunpack.c.l.b16 %v2225_v22  ;;  %v2242_v17 = vunpack.c.l.b16 %v2226_v40 }
 0x1be   : > { %v2101_v3 = vunpack.c.l.b16 %v2085_v56  ;;  %v2103_v53 = vunpack.c.l.b16 %v2087_v24  ;;  %v2521_v9 = vshrl.u32 %v9556_v32, 16  ;;  %v12926_v16 = vrot.slane %v12925_v44, 5  ;;  %v8964_v44 = vld [vmem:[%s12790_s3 + $0x178] sm:$0xff] }
 0x1bf   : > { %v1980_v15 = vsel %vm10584_vm12, %v1975_v33, %v1979_v29  ;;  %v2102_v23 = vunpack.c.l.b16 %v2086_v45  ;;  %v2524_v34 = vshll.u32 %v9556_v32, 16  ;;  %v12928_v21 = vrot.slane %v12927_v59, 4  ;;  %v2121_v32 = vld [vmem:[#allocation3 + $0x3c] sm:$0xf]  ;;  %v8941_v59 = vld [vmem:[%s12790_s3 + $0x100] sm:$0xff]  ;;  %3549 = vmatpush.bf16.msra.mxu0 %v8964_v44 }
 0x1c0   : > { %v2108_v12 = vsel %vm1247_vm7, %v12926_v16, %v2106_v50  ;;  %1981 = vst [vmem:[#allocation3 + $0x34] sm:$0xf] %v1980_v15  ;;  %v2111_v22 = vrot.slane %v2100_v38, 3  ;;  %v2113_v35 = vrot.slane %v2101_v3, 2  ;;  %v2227_v8 = vpack.c.bf16 %v2219_v14, %v2219_v14  ;;  %2448 = vmatmul.bf16.gmra.mxu3 %v9710_v36  ;;  %v12929_v38 = vld [vmem:[#allocation34_spill] sm:$0xff]  ;;  %v12933_v50 = vld [vmem:[#allocation36_spill] sm:$0xff] }
 0x1c1   : > { %v2110_v5 = vsel %vm1150_vm3, %v12928_v21, %v2108_v12  ;;  %v2778_v18 = vshll.u32 %v11161_v27, 16  ;;  %v2115_v4 = vrot.slane %v2102_v23, 1  ;;  %v2118_v20 = vpack.c.b16 %v2103_v53, %v2103_v53  ;;  %v8972_v16 = vld [vmem:[%s12790_s3 + $0x1b8] sm:$0xff] }
 0x1c2   : > { %v2229_v48 = vpack.c.bf16 %v2221_v62, %v2221_v62  ;;  %v2251_v10 = vrot.slane %v2241_v49, 4  ;;  %v2112_v31 = vsel %vm1252_vm8, %v2111_v22, %v2110_v5  ;;  %v9398_v46 = vunpack.c.l.b16 %v10964_v54  ;;  %3826 = vmatpush.bf16.msra.mxu1 %v8972_v16  ;;  %v8963_v22 = vld [vmem:[%s12790_s3 + $0x170] sm:$0xff] }
 0x1c3   : > { %v2253_v47 = vrot.slane %v2242_v17, 3  ;;  %v2114_v40 = vsel %vm1152_vm5, %v2113_v35, %v2112_v31  ;;  %v2125_v11 = vsel %vm10595_vm14, %v2118_v20, %v2124_v63  ;;  %v2220_v0 = vmax.f32 %v10907_v1, %v7561_v7  ;;  %v8942_v1 = vld [vmem:[%s12790_s3 + $0x108] sm:$0xff]  ;;  %v8971_v35 = vld [vmem:[%s12790_s3 + $0x1b0] sm:$0xff]  ;;  %3550 = vmatpush.bf16.msra.mxu0 %v8963_v22 }
 0x1c4   : > { %v2523_v51 = vrot.slane %v2521_v9, 3  ;;  %v2526_v25 = vrot.slane %v2524_v34, 4  ;;  %v2116_v56 = vsel %vm1257_vm9, %v2115_v4, %v2114_v40  ;;  %2126 = vst [vmem:[#allocation3 + $0x40] sm:$0x1] %v2125_v11  ;;  %v11183_v54 = vpack.c.b16 %v9398_v46, %v2978_v60  ;;  %3290 = vmatpush.bf16.msrb.mxu3 %v8942_v1  ;;  %v8962_v46 = vld [vmem:[%s12790_s3 + $0x168] sm:$0xff]  ;;  %v8968_v1 = vld [vmem:[%s12790_s3 + $0x198] sm:$0xff] }
 0x1c5   : > { %v2774_v19 = vshrl.u32 %v11096_v6, 16  ;;  %v11186_v29 = vrot.slane %v2778_v18, 1  ;;  %v2117_v24 = vpack.c.b16 %v2116_v56, %v2116_v56  ;;  %v2228_v7 = vpack.c.bf16 %v2220_v0, %v2220_v0  ;;  %v8961_v0 = vld [vmem:[%s12790_s3 + $0x160] sm:$0xff] }
 0x1c6   : > { %v2245_v57 = vunpack.c.l.b16 %v2229_v48  ;;  %v2243_v39 = vunpack.c.l.b16 %v2227_v8  ;;  %v12930_v58 = vrot.slane %v12929_v38, 7  ;;  %v12932_v42 = vrot.slane %v12931_v26, 6  ;;  %v2621_v12 = vpop.f32.mrf.mxu0  ;;  %v2263_v8 = vld [vmem:[#allocation3 + $0x44] sm:$0xf]  ;;  %v2266_v48 = vld [vmem:[#allocation3 + $0x48] sm:$0x1]  ;;  %3827 = vmatpush.bf16.msra.mxu1 %v8971_v35 }
 0x1c7   : > { %v2776_v60 = vor.u32 %v2774_v19, %v11106_v61  ;;  %v2122_v6 = vsel %vm10584_vm12, %v2117_v24, %v2121_v32  ;;  %v2244_v2 = vunpack.c.l.b16 %v2228_v7  ;;  %v12934_v14 = vrot.slane %v12933_v50, 5  ;;  %v9557_v23 = vld [vmem:[#allocation3 + $0x30] sm:$0xff]   ;;  %3551 = vmatpush.bf16.msra.mxu0 %v8962_v46  ;;  %v8969_v56 = vld [vmem:[%s12790_s3 + $0x1a0] sm:$0xff] }
 0x1c8   : > { %v2248_v41 = vsel %vm1148_vm1, %v12932_v42, %v12930_v58  ;;  %v2527_v33 = vor.u32 %v2526_v25, %v2523_v51  ;;  %2123 = vst [vmem:[#allocation3 + $0x3c] sm:$0xf] %v2122_v6  ;;  %v2255_v49 = vrot.slane %v2243_v39, 2  ;;  %v2260_v15 = vpack.c.b16 %v2245_v57, %v2245_v57  ;;  %v2424_v63 = vpop.f32.mrf.mxu3  ;;  %v11220_v34 = vld [vmem:[#allocation3 + $0x34] sm:$0xff]  ;;  %3291 = vmatpush.bf16.msrb.mxu3 %v8941_v59 }
 0x1c9   : > { %v2250_v62 = vsel %vm1247_vm7, %v12934_v14, %v2248_v41  ;;  %v2781_v17 = vsel %vm2737_vm15, %v2776_v60, %v11186_v29  ;;  %v2257_v61 = vrot.slane %v2244_v2, 1  ;;  %v11225_v5 = vadd.f32 %v2621_v12, %v2424_v63  ;;  %v9711_v40 = vld [vmem:[#allocation3 + $0x34] sm:$0xff]  }
 0x1ca   : > { %v2252_v45 = vsel %vm1150_vm3, %v2251_v10, %v2250_v62  ;;  %v11208_v53 = vsel %vm2475_vm0, %v11118_v28, %v2527_v33  ;;  %2890 = vmatmul.bf16.gmra.mxu1 %v2781_v17  ;;  %v2530_v18 = vshrl.u32 %v9557_v23, 16  ;;  %v2533_v4 = vshll.u32 %v9557_v23, 16  ;;  %v8959_v57 = vld [vmem:[%s12790_s3 + $0x150] sm:$0xff] }
 0x1cb   : > { %v2254_v3 = vsel %vm1252_vm8, %v2253_v47, %v2252_v45  ;;  %2640 = vmatmul.bf16.gmra.mxu0 %v11208_v53  ;;  %3162 = vmatmul.bf16.gmra.mxu2 %v11208_v53  ;;  %v2267_v10 = vsel %vm10595_vm14, %v2260_v15, %v2266_v48  ;;  %v2786_v31 = vshll.u32 %v11220_v34, 16  ;;  %v2782_v37 = vshrl.u32 %v11161_v27, 16  ;;  %v8960_v27 = vld [vmem:[%s12790_s3 + $0x158] sm:$0xff]  ;;  %v8979_v39 = vld [vmem:[%s12790_s3 + $0x1f0] sm:$0xff]  ;;  %v2286_v38 = vld [vmem:[#allocation3 + $0x40] sm:$0xf] }
 0x1cc   : > { %v2256_v9 = vsel %vm1152_vm5, %v2255_v49, %v2254_v3  ;;  %2268 = vst [vmem:[#allocation3 + $0x48] sm:$0x1] %v2267_v10  ;;  %v2532_v47 = vrot.slane %v2530_v18, 3  ;;  %v2535_v36 = vrot.slane %v2533_v4, 4  ;;  %3828 = vmatpush.bf16.msra.mxu1 %v8970_v52  ;;  %3552 = vmatpush.bf16.msra.mxu0 %v8961_v0  ;;  %v8967_v41 = vld [vmem:[%s12790_s3 + $0x190] sm:$0xff]  ;;  %v2350_v60 = vunpack.c.l.b16 %v2286_v38  ;;  %vm11586_vm5 = vmand %vm4441_vm2, %vm4442_vm4 }
 0x1cd   : > { %v2258_v28 = vsel %vm1257_vm9, %v2257_v61, %v2256_v9  ;;  %v2788_v11 = vrot.slane %v2786_v31, 1  ;;  %v2784_v25 = vor.u32 %v2782_v37, %v11186_v29  ;;  %v8980_v29 = vld [vmem:[%s12790_s3 + $0x1f8] sm:$0xff]  ;;  %v2790_v50 = vshrl.u32 %v11220_v34, 16  ;;  %v3614_v4 = vld [vmem:[#allocation3 + $0x10] sm:$0x8]  ;;  %v2871_v37 = vpop.f32.mrf.mxu1 }
 0x1ce   : > { %v2259_v21 = vpack.c.b16 %v2258_v28, %v2258_v28  ;;  %v2536_v51 = vor.u32 %v2535_v36, %v2532_v47  ;;  %3971 = vmatpush.bf16.msra.mxu2 %v8980_v29  ;;  %v2474_v9 = vpack.c.b16 %v2350_v60, %v2350_v60  ;;  %v3664_v36 = vunpack.c.l.b16 %v3614_v4 }
 0x1cf   : > { %v2789_v32 = vsel %vm2737_vm15, %v2784_v25, %v2788_v11  ;;  %v9558_v24 = vld [vmem:[#allocation3 + $0x38] sm:$0xff]   ;;  %v8966_v25 = vld [vmem:[%s12790_s3 + $0x188] sm:$0xff] }
 0x1d0   : > { %v2264_v20 = vsel %vm10584_vm12, %v2259_v21, %v2263_v8  ;;  %2453 = vmatmul.bf16.gmra.mxu3 %v9711_v40  ;;  %v11254_v19 = vsel %vm2475_vm0, %v2527_v33, %v2536_v51  ;;  %3829 = vmatpush.bf16.msra.mxu1 %v8969_v56  ;;  %v8924_v7 = vld [vmem:[#allocation3 + $0x3c] sm:$0xff]  ;;  %v9395_v58 = vunpack.c.h.b16 %v9558_v24  ;;  %v2539_v26 = vshrl.u32 %v9558_v24, 16  ;;  %v8978_v56 = vld [vmem:[%s12790_s3 + $0x1e8] sm:$0xff]  ;;  %v11310_v29 = vpop.f32.mrf.mxu3 }
 0x1d1   : > { %2265 = vst [vmem:[#allocation3 + $0x44] sm:$0xf] %v2264_v20  ;;  %3553 = vmatpush.bf16.msra.mxu0 %v8960_v27  ;;  %v2542_v42 = vshll.u32 %v9558_v24, 16  ;;  %v2794_v6 = vshll.u32 %v8924_v7, 16  ;;  %v2792_v33 = vor.u32 %v2790_v50, %v2788_v11  ;;  %v2548_v16 = vshrl.u32 %v2474_v9, 16  ;;  %v8949_v24 = vld [vmem:[#allocation3 + $0xc] sm:$0xff] }
 0x1d2   : > { %3972 = vmatpush.bf16.msra.mxu2 %v8979_v39  ;;  %v2358_v2 = vpack.c.b16 %v2350_v60, %v9395_v58  ;;  %v2541_v14 = vrot.slane %v2539_v26, 3  ;;  %v2551_v28 = vshll.u32 %v2474_v9, 16  ;;  %v2798_v34 = vshrl.u32 %v8924_v7, 16  ;;  %v11283_v20 = vld [vmem:[#allocation3 + $0x14] sm:$0xf]  ;;  %v8965_v7 = vld [vmem:[%s12790_s3 + $0x180] sm:$0xff] }
 0x1d3   : > { %v2544_v62 = vrot.slane %v2542_v42, 4  ;;  %v2796_v45 = vrot.slane %v2794_v6, 1  ;;  %v2550_v21 = vrot.slane %v2548_v16, 3  ;;  %v2943_v18 = vld [vmem:[#allocation3 + $0x48] sm:$0xf]  ;;  %v3665_v52 = vunpack.c.l.b16 %v11283_v20  ;;  %v8950_v58 = vld [vmem:[#allocation3 + $0x14] sm:$0xff] }
 0x1d4   : > { %3830 = vmatpush.bf16.msra.mxu1 %v8968_v1  ;;  %v2553_v22 = vrot.slane %v2551_v28, 4  ;;  %v2993_v47 = vunpack.c.l.b16 %v2943_v18  ;;  %v8957_v1 = vld [vmem:[%s12790_s3 + $0x140] sm:$0xff]  ;;  %v8996_v26 = vld [vmem:[%s12790_s3 + $0x238] sm:$0xff]  ;;  %v3428_v6 = vshll.u32 %v8949_v24, 16  ;;  %v3426_v9 = vshrl.u32 %v8949_v24, 16  ;;  %v8995_v28 = vld [vmem:[%s12790_s3 + $0x230] sm:$0xff]  ;;  %v11351_v18 = vpop.f32.mrf.mxu0 }
 0x1d5   : > { %3554 = vmatpush.bf16.msra.mxu0 %v8959_v57  ;;  %v2545_v17 = vor.u32 %v2544_v62, %v2541_v14  ;;  %v2797_v3 = vsel %vm2737_vm15, %v2792_v33, %v2796_v45  ;;  %v2800_v48 = vor.u32 %v2798_v34, %v2796_v45  ;;  %v3681_v27 = vpack.c.b16 %v3665_v52, %v3664_v36  ;;  %v9678_v62 = vld [vmem:[#allocation3 + $0x14] sm:$0xff]  }
 0x1d6   : > { %v2554_v31 = vor.u32 %v2553_v22, %v2550_v21  ;;  %3973 = vmatpush.bf16.msra.mxu2 %v8978_v56  ;;  %4236 = vmatpush.bf16.msra.mxu3 %v8996_v26  ;;  %v3433_v14 = vshll.u32 %v8950_v58, 16  ;;  %v8974_v21 = vld [vmem:[%s12790_s3 + $0x1c8] sm:$0xff] }
 0x1d7   : > { %v11279_v15 = vsel %vm2475_vm0, %v2536_v51, %v2545_v17  ;;  %v8958_v51 = vld [vmem:[%s12790_s3 + $0x148] sm:$0xff]  ;;  %v3691_v42 = vshrl.u32 %v3681_v27, 16 }
 0x1d8   : > { %3831 = vmatpush.bf16.msra.mxu1 %v8967_v41  ;;  %v2677_v49 = vld [vmem:[#allocation3 + $0x44] sm:$0x1]  ;;  %v2555_v11 = vsel %vm2475_vm0, %v2545_v17, %v2554_v31  ;;  %v3694_v41 = vshll.u32 %v3681_v27, 16  ;;  %v8994_v22 = vld [vmem:[%s12790_s3 + $0x228] sm:$0xff]  ;;  %v9426_v31 = vunpack.c.l.b16 %v11040_v13 }
 0x1d9   : > { %v2727_v61 = vunpack.c.l.b16 %v2677_v49  ;;  %v9565_v23 = vld [vmem:[#allocation3 + $0x40] sm:$0xff]   ;;  %3555 = vmatpush.bf16.msra.mxu0 %v8958_v51  ;;  %v3693_v33 = vrot.slane %v3691_v42, 3  ;;  %v8976_v49 = vld [vmem:[%s12790_s3 + $0x1d8] sm:$0xff] }
 0x1da   : > { %2895 = vmatmul.bf16.gmra.mxu1 %v2789_v32  ;;  %v3066_v12 = vshrl.u32 %v9565_v23, 16  ;;  %v3069_v63 = vshll.u32 %v9565_v23, 16  ;;  %v11306_v32 = vadd.f32 %v2871_v37, %v11225_v5  ;;  %v9423_v57 = vunpack.c.h.b16 %v9565_v23  ;;  %v8977_v5 = vld [vmem:[%s12790_s3 + $0x1e0] sm:$0xff]  ;;  %4237 = vmatpush.bf16.msra.mxu3 %v8995_v28 }
 0x1db   : > { %2645 = vmatmul.bf16.gmra.mxu0 %v11254_v19  ;;  %3167 = vmatmul.bf16.gmra.mxu2 %v11254_v19  ;;  %v2736_v44 = vpack.c.b16 %v2727_v61, %v2727_v61  ;;  %v3696_v45 = vrot.slane %v3694_v41, 4  ;;  %v3435_v23 = vrot.slane %v3433_v14, 1  ;;  %v8993_v13 = vld [vmem:[%s12790_s3 + $0x220] sm:$0xff] }
 0x1dc   : > { %v3068_v35 = vrot.slane %v3066_v12, 3  ;;  %v3071_v8 = vrot.slane %v3069_v63, 4  ;;  %3832 = vmatpush.bf16.msra.mxu1 %v8966_v25  ;;  %v11324_v60 = vpack.c.b16 %v2993_v47, %v9423_v57  ;;  %3974 = vmatpush.bf16.msra.mxu2 %v8977_v5  ;;  %v3907_v25 = vpack.c.b16 %v9426_v31, %v3665_v52  ;;  %v8952_v52 = vld [vmem:[#allocation3 + $0x24] sm:$0xff] }
 0x1dd   : > { %v2802_v59 = vshll.u32 %v2736_v44, 16  ;;  %3556 = vmatpush.bf16.msra.mxu0 %v8957_v1  ;;  %v8975_v44 = vld [vmem:[%s12790_s3 + $0x1d0] sm:$0xff]  ;;  %v3697_v16 = vor.u32 %v3696_v45, %v3693_v33  ;;  %v8992_v45 = vld [vmem:[%s12790_s3 + $0x218] sm:$0xff] }
 0x1de   : > { %v11286_v46 = vor.u32 %v3071_v8, %v3068_v35  ;;  %4238 = vmatpush.bf16.msra.mxu3 %v8994_v22  ;;  %v8951_v35 = vld [vmem:[#allocation3 + $0x1c] sm:$0xff]  ;;  %v11349_v8 = vpop.f32.mrf.mxu1 }
 0x1df   : > { %v2804_v10 = vrot.slane %v2802_v59, 1  ;;  %v3706_v63 = vsel %vm2475_vm0, %v3697_v16, %v11055_v43  ;;  %v8973_v43 = vld [vmem:[%s12790_s3 + $0x1c0] sm:$0xff] }
 0x1e0   : > { %2458 = vmatmul.bf16.gmra.mxu3 %v2358_v2  ;;  %v11293_v0 = vsel %vm2475_vm0, %v2545_v17, %v11286_v46  ;;  %3833 = vmatpush.bf16.msra.mxu1 %v8965_v7  ;;  %v3430_v17 = vrot.slane %v3428_v6, 1 }
 0x1e1   : > { %v2805_v40 = vsel %vm2737_vm15, %v2800_v48, %v2804_v10  ;;  %3975 = vmatpush.bf16.msra.mxu2 %v8976_v49  ;;  %v3441_v48 = vshll.u32 %v8951_v35, 16  ;;  %v9680_v10 = vld [vmem:[#allocation3 + $0x1c] sm:$0xff]  }
 0x1e2   : > { %v3431_v12 = vor.u32 %v3430_v17, %v3426_v9  ;;  %4239 = vmatpush.bf16.msra.mxu3 %v8993_v13  ;;  %v8953_v17 = vld [vmem:[#allocation3 + $0x2c] sm:$0xff] }
 0x1e3   : > { %v3443_v36 = vrot.slane %v3441_v48, 1  ;;  %v3457_v16 = vshll.u32 %v8953_v17, 16  ;;  %v9692_v48 = vld [vmem:[#allocation3 + $0x24] sm:$0xff]  }
 0x1e4   : > { %v3436_v59 = vsel %vm2737_vm15, %v3431_v12, %v3435_v23  ;;  %v9684_v12 = vld [vmem:[#allocation3 + $0x2c] sm:$0xff]  }
 0x1e5   : > { %3976 = vmatpush.bf16.msra.mxu2 %v8975_v44 }
 0x1e6   : > { %4240 = vmatpush.bf16.msra.mxu3 %v8992_v45  ;;  %v8989_v45 = vld [vmem:[%s12790_s3 + $0x200] sm:$0xff] }
 0x1e9   : > { %3977 = vmatpush.bf16.msra.mxu2 %v8974_v21 }
 0x1ea   : > { %2900 = vmatmul.bf16.gmra.mxu1 %v2797_v3  ;;  %v2429_v3 = vpop.f32.mrf.mxu3 }
 0x1eb   : > { %2650 = vmatmul.bf16.gmra.mxu0 %v11279_v15  ;;  %3172 = vmatmul.bf16.gmra.mxu2 %v11279_v15 }
 0x1ed   : > { %3978 = vmatpush.bf16.msra.mxu2 %v8973_v43 }
 0x1f0   : > { %3292 = vmatmul.bf16.vlgmr.msrb.gmra.mxu3 %v11183_v54  ;;  %v3002_v54 = vpack.c.b16 %v2993_v47, %v2993_v47  ;;  %v3437_v47 = vshrl.u32 %v8950_v58, 16  ;;  %v3449_v58 = vshll.u32 %v8952_v52, 16 }
 0x1f2   : > { %v3075_v39 = vshrl.u32 %v3002_v54, 16  ;;  %v3078_v38 = vshll.u32 %v3002_v54, 16  ;;  %v2431_v4 = vpop.f32.mrf.mxu3  ;;  %v3439_v54 = vor.u32 %v3437_v47, %v3435_v23  ;;  %v8991_v47 = vld [vmem:[%s12790_s3 + $0x210] sm:$0xff] }
 0x1f3   : > { %4241 = vmatpush.bf16.msra.mxu3 %v8991_v47 }
 0x1f4   : > { %v3077_v2 = vrot.slane %v3075_v39, 3  ;;  %v3080_v50 = vrot.slane %v3078_v38, 4  ;;  %v3444_v56 = vsel %vm2737_vm15, %v3439_v54, %v3443_v36  ;;  %v9682_v38 = vld [vmem:[#allocation3 + $0x24] sm:$0xff]  }
 0x1f6   : > { %v3081_v61 = vor.u32 %v3080_v50, %v3077_v2  ;;  %v3451_v50 = vrot.slane %v3449_v58, 1 }
 0x1f8   : > { %v3082_v34 = vsel %vm2475_vm0, %v11286_v46, %v3081_v61 }
 0x1fa   : > { %2905 = vmatmul.bf16.gmra.mxu1 %v2805_v40 }
 0x1fb   : > { %2655 = vmatmul.bf16.gmra.mxu0 %v2555_v11  ;;  %3177 = vmatmul.bf16.gmra.mxu2 %v11293_v0 }
 0x200   : > { %3297 = vmatmul.bf16.gmra.mxu3 %v9678_v62 }
 0x20a   : > { %3834 = vmatmul.bf16.vlgmr.msra.gmra.mxu1 %v3706_v63  ;;  %v3453_v63 = vshrl.u32 %v8952_v52, 16 }
 0x20b   : > { %3182 = vmatmul.bf16.gmra.mxu2 %v3082_v34  ;;  %3557 = vmatmul.bf16.vlgmr.msra.gmra.mxu0 %v3436_v59  ;;  %v3459_v34 = vrot.slane %v3457_v16, 1 }
 0x210   : > { %3302 = vmatmul.bf16.gmra.mxu3 %v9680_v10 }
 0x211   : > { %v2434_v11 = vpop.f32.mrf.mxu3 }
 0x212   : > { %v2876_v40 = vpop.f32.mrf.mxu1 }
 0x213   : > { %v2626_v37 = vpop.f32.mrf.mxu0 }
 0x214   : > { %v2627_v51 = vadd.f32 %v2626_v37, %v2429_v3 }
 0x216   : > { %v2913_v27 = vadd.f32 %v2876_v40, %v2627_v51  ;;  %v8954_v40 = vld [vmem:[#allocation3 + $0x34] sm:$0xff] }
 0x219   : > { %v3148_v24 = vpop.f32.mrf.mxu2  ;;  %v2436_v20 = vpop.f32.mrf.mxu3 }
 0x21a   : > { %3839 = vmatmul.bf16.gmra.mxu1 %v11140_v30  ;;  %v11362_v1 = vadd.f32 %v3148_v24, %v11306_v32  ;;  %v2878_v7 = vpop.f32.mrf.mxu1  ;;  %v3445_v30 = vshrl.u32 %v8951_v35, 16  ;;  %v9690_v32 = vld [vmem:[#allocation3 + $0x1c] sm:$0xff]   ;;  %v3455_v35 = vor.u32 %v3453_v63, %v3451_v50  ;;  %v3461_v24 = vshrl.u32 %v8953_v17, 16 }
 0x21b   : > { %3562 = vmatmul.bf16.gmra.mxu0 %v3444_v56  ;;  %3979 = vmatmul.bf16.vlgmr.msra.gmra.mxu2 %v3907_v25  ;;  %v2628_v57 = vpop.f32.mrf.mxu0  ;;  %v3465_v56 = vshll.u32 %v8954_v40, 16 }
 0x21c   : > { %v2629_v5 = vadd.f32 %v2628_v57, %v2431_v4  ;;  %v3447_v42 = vor.u32 %v3445_v30, %v3443_v36  ;;  %v3460_v10 = vsel %vm2737_vm15, %v3455_v35, %v3459_v34  ;;  %v9694_v30 = vld [vmem:[#allocation3 + $0x2c] sm:$0xff]  }
 0x21e   : > { %v2914_v39 = vadd.f32 %v2878_v7, %v2629_v5  ;;  %v3452_v62 = vsel %vm2737_vm15, %v3447_v42, %v3451_v50  ;;  %v3467_v7 = vrot.slane %v3465_v56, 1 }
 0x220   : > { %3307 = vmatmul.bf16.gmra.mxu3 %v9682_v38 }
 0x221   : > { %v11364_v26 = vpop.f32.mrf.mxu2 }
 0x222   : > { %v2439_v2 = vpop.f32.mrf.mxu3 }
 0x224   : > { %v2881_v41 = vpop.f32.mrf.mxu1 }
 0x225   : > { %v2631_v6 = vpop.f32.mrf.mxu0 }
 0x226   : > { %v2632_v14 = vadd.f32 %v2631_v6, %v2434_v11 }
 0x228   : > { %v2915_v33 = vadd.f32 %v2881_v41, %v2632_v14  ;;  %v8990_v41 = vld [vmem:[%s12790_s3 + $0x208] sm:$0xff] }
 0x229   : > { %4242 = vmatpush.bf16.msra.mxu3 %v8990_v41 }
 0x22a   : > { %3844 = vmatmul.bf16.gmra.mxu1 %v11208_v53  ;;  %v2441_v23 = vpop.f32.mrf.mxu3 }
 0x22b   : > { %3567 = vmatmul.bf16.gmra.mxu0 %v3452_v62  ;;  %3984 = vmatmul.bf16.gmra.mxu2 %v9690_v32  ;;  %v3153_v49 = vpop.f32.mrf.mxu2 }
 0x22c   : > { %v11371_v3 = vadd.f32 %v3153_v49, %v2913_v27  ;;  %v2883_v61 = vpop.f32.mrf.mxu1  ;;  %v3469_v49 = vshrl.u32 %v8954_v40, 16 }
 0x22d   : > { %v2633_v9 = vpop.f32.mrf.mxu0  ;;  %4243 = vmatpush.bf16.msra.mxu3 %v8989_v45 }
 0x22e   : > { %v2634_v44 = vadd.f32 %v2633_v9, %v2436_v20 }
 0x230   : > { %v2916_v28 = vadd.f32 %v2883_v61, %v2634_v44  ;;  %3312 = vmatmul.bf16.gmra.mxu3 %v9684_v12  ;;  %v3471_v61 = vor.u32 %v3469_v49, %v3467_v7 }
 0x233   : > { %v3155_v53 = vpop.f32.mrf.mxu2  ;;  %v2444_v43 = vpop.f32.mrf.mxu3 }
 0x234   : > { %v11373_v59 = vadd.f32 %v3155_v53, %v2914_v39  ;;  %v2886_v21 = vpop.f32.mrf.mxu1  ;;  %v3463_v39 = vor.u32 %v3461_v24, %v3459_v34  ;;  %v9696_v53 = vld [vmem:[#allocation3 + $0x34] sm:$0xff]   ;;  %v11406_v34 = vld [vmem:[#allocation3 + $0x48] sm:$0xff]  }
 0x235   : > { %v8981_v24 = vld [vmem:[#allocation3 + $0x14] sm:$0xff] }
 0x236   : > { %v2636_v22 = vpop.f32.mrf.mxu0  ;;  %v3468_v58 = vsel %vm2737_vm15, %v3463_v39, %v3467_v7  ;;  %v8982_v39 = vld [vmem:[#allocation3 + $0x1c] sm:$0xff]  ;;  %v4115_v41 = vshll.u32 %v8981_v24, 16 }
 0x237   : > { %v2637_v4 = vadd.f32 %v2636_v22, %v2439_v2  ;;  %v8955_v2 = vld [vmem:[#allocation3 + $0x3c] sm:$0xff]  ;;  %v3753_v22 = vshrl.u32 %v11406_v34, 16 }
 0x238   : > { %v3477_v40 = vshrl.u32 %v8955_v2, 16 }
 0x239   : > { %v2917_v31 = vadd.f32 %v2886_v21, %v2637_v4  ;;  %v8956_v4 = vld [vmem:[#allocation3 + $0x44] sm:$0xff] }
 0x23a   : > { %3849 = vmatmul.bf16.gmra.mxu1 %v11254_v19  ;;  %v9686_v19 = vld [vmem:[#allocation3 + $0x34] sm:$0xff]  }
 0x23b   : > { %3572 = vmatmul.bf16.gmra.mxu0 %v3460_v10  ;;  %3989 = vmatmul.bf16.gmra.mxu2 %v9692_v48  ;;  %v11382_v51 = vpop.f32.mrf.mxu3 }
 0x23c   : > { %v3158_v36 = vpop.f32.mrf.mxu2  ;;  %v2888_v11 = vpop.f32.mrf.mxu1 }
 0x23d   : > { %v11380_v37 = vadd.f32 %v3158_v36, %v2915_v33  ;;  %v3473_v33 = vshll.u32 %v8955_v2, 16 }
 0x23e   : > { %v2638_v54 = vpop.f32.mrf.mxu0 }
 0x23f   : > { %v2639_v25 = vadd.f32 %v2638_v54, %v2441_v23  ;;  %v3475_v9 = vrot.slane %v3473_v33, 1  ;;  %v3630_v54 = vld [vmem:[#allocation3 + $0x50] sm:$0xf]  ;;  %v4120_v33 = vshll.u32 %v8982_v39, 16 }
 0x240   : > { %3317 = vmatmul.bf16.gmra.mxu3 %v9686_v19  ;;  %v11419_v56 = vunpack.c.l.b16 %v3630_v54 }
 0x241   : > { %v2918_v27 = vadd.f32 %v2888_v11, %v2639_v25  ;;  %v3476_v63 = vsel %vm2737_vm15, %v3471_v61, %v3475_v9  ;;  %v3481_v11 = vshll.u32 %v8956_v4, 16  ;;  %v3479_v19 = vor.u32 %v3477_v40, %v3475_v9 }
 0x243   : > { %v2449_v5 = vpop.f32.mrf.mxu3 }
 0x244   : > { %v3160_v13 = vpop.f32.mrf.mxu2 }
 0x245   : > { %v11384_v57 = vadd.f32 %v3160_v13, %v2916_v28  ;;  %v3483_v13 = vrot.slane %v3481_v11, 1 }
 0x247   : > { %v2891_v20 = vpop.f32.mrf.mxu1 }
 0x248   : > { %v2641_v52 = vpop.f32.mrf.mxu0 }
 0x249   : > { %v2642_v38 = vadd.f32 %v2641_v52, %v2444_v43  ;;  %v3756_v43 = vshll.u32 %v11406_v34, 16 }
 0x24a   : > { %3854 = vmatmul.bf16.gmra.mxu1 %v11279_v15  ;;  %v9687_v15 = vld [vmem:[#allocation3 + $0x3c] sm:$0xff]  }
 0x24b   : > { %v2919_v42 = vadd.f32 %v2891_v20, %v2642_v38  ;;  %3577 = vmatmul.bf16.gmra.mxu0 %v3468_v58  ;;  %3994 = vmatmul.bf16.gmra.mxu2 %v9694_v30  ;;  %v11397_v62 = vpop.f32.mrf.mxu3  ;;  %v3758_v36 = vrot.slane %v3756_v43, 4  ;;  %v3365_v20 = vld [vmem:[#allocation3 + $0x4c] sm:$0x1]  ;;  %v9698_v58 = vld [vmem:[#allocation3 + $0x3c] sm:$0xff]   ;;  %v3485_v43 = vshrl.u32 %v8956_v4, 16 }
 0x24e   : > { %v3163_v6 = vpop.f32.mrf.mxu2 }
 0x24f   : > { %v11391_v50 = vadd.f32 %v3163_v6, %v2917_v31  ;;  %v11393_v14 = vpop.f32.mrf.mxu1  ;;  %v3415_v6 = vunpack.c.l.b16 %v3365_v20 }
 0x250   : > { %v11395_v32 = vpop.f32.mrf.mxu0  ;;  %3322 = vmatmul.bf16.gmra.mxu3 %v9687_v15 }
 0x251   : > { %v3424_v61 = vpack.c.b16 %v3415_v6, %v3415_v6 }
 0x253   : > { %v2454_v28 = vpop.f32.mrf.mxu3 }
 0x256   : > { %v3165_v17 = vpop.f32.mrf.mxu2 }
 0x257   : > { %v11402_v23 = vadd.f32 %v3165_v17, %v2918_v27  ;;  %v2896_v44 = vpop.f32.mrf.mxu1  ;;  %v4117_v17 = vrot.slane %v4115_v41, 1  ;;  %v4124_v41 = vshrl.u32 %v8982_v39, 16 }
 0x258   : > { %v2646_v16 = vpop.f32.mrf.mxu0 }
 0x259   : > { %v2647_v12 = vadd.f32 %v2646_v16, %v2449_v5 }
 0x25a   : > { %3859 = vmatmul.bf16.gmra.mxu1 %v11293_v0  ;;  %v3755_v0 = vrot.slane %v3753_v22, 3 }
 0x25b   : > { %v2921_v21 = vadd.f32 %v2896_v44, %v2647_v12  ;;  %3582 = vmatmul.bf16.gmra.mxu0 %v3476_v63  ;;  %3999 = vmatmul.bf16.gmra.mxu2 %v9696_v53  ;;  %v11416_v47 = vpop.f32.mrf.mxu3  ;;  %v4122_v12 = vrot.slane %v4120_v33, 1 }
 0x25c   : > { %v3759_v25 = vor.u32 %v3758_v36, %v3755_v0 }
 0x25e   : > { %v3168_v35 = vpop.f32.mrf.mxu2  ;;  %v3760_v30 = vsel %vm2475_vm0, %v11286_v46, %v3759_v25 }
 0x25f   : > { %v11410_v48 = vadd.f32 %v3168_v35, %v2919_v42  ;;  %v11412_v10 = vpop.f32.mrf.mxu1  ;;  %v3484_v42 = vsel %vm2737_vm15, %v3479_v19, %v3483_v13  ;;  %v3489_v35 = vshll.u32 %v3424_v61, 16 }
 0x260   : > { %v11414_v31 = vpop.f32.mrf.mxu0  ;;  %3327 = vmatmul.bf16.gmra.mxu3 %v11324_v60  ;;  %v3689_v60 = vpack.c.b16 %v11419_v56, %v11419_v56 }
 0x261   : > { %v3491_v11 = vrot.slane %v3489_v35, 1 }
 0x262   : > { %v3762_v15 = vshrl.u32 %v3689_v60, 16  ;;  %v3765_v45 = vshll.u32 %v3689_v60, 16 }
 0x263   : > { %v2459_v5 = vpop.f32.mrf.mxu3 }
 0x264   : > { %v3764_v53 = vrot.slane %v3762_v15, 3  ;;  %v3767_v63 = vrot.slane %v3765_v45, 4  ;;  %v9451_v45 = vunpack.c.h.b16 %v11406_v34 }
 0x266   : > { %v11421_v27 = vpop.f32.mrf.mxu2  ;;  %v3768_v36 = vor.u32 %v3767_v63, %v3764_v53 }
 0x267   : > { %v2901_v7 = vpop.f32.mrf.mxu1 }
 0x268   : > { %v2651_v52 = vpop.f32.mrf.mxu0  ;;  %v3769_v4 = vsel %vm2475_vm0, %v3759_v25, %v3768_v36  ;;  %v4126_v25 = vor.u32 %v4124_v41, %v4122_v12 }
 0x269   : > { %v2652_v38 = vadd.f32 %v2651_v52, %v2454_v28  ;;  %v4113_v28 = vshrl.u32 %v8981_v24, 16  ;;  %v9699_v52 = vld [vmem:[#allocation3 + $0x44] sm:$0xff]  }
 0x26a   : > { %3864 = vmatmul.bf16.gmra.mxu1 %v3760_v30 }
 0x26b   : > { %v2923_v2 = vadd.f32 %v2901_v7, %v2652_v38  ;;  %3587 = vmatmul.bf16.gmra.mxu0 %v3484_v42  ;;  %4004 = vmatmul.bf16.gmra.mxu2 %v9698_v58  ;;  %v11434_v16 = vpop.f32.mrf.mxu3  ;;  %v4118_v22 = vor.u32 %v4117_v17, %v4113_v28  ;;  %v2624_v7 = vadd.f32 %v11351_v18, %v11310_v29  ;;  %v8983_v58 = vld [vmem:[#allocation3 + $0x24] sm:$0xff]  ;;  %v8984_v17 = vld [vmem:[#allocation3 + $0x2c] sm:$0xff] }
 0x26c   : > { %v4128_v29 = vshll.u32 %v8983_v58, 16  ;;  %v4132_v53 = vshrl.u32 %v8983_v58, 16 }
 0x26d   : > { %v4123_v0 = vsel %vm2737_vm15, %v4118_v22, %v4122_v12 }
 0x26e   : > { %v3173_v49 = vpop.f32.mrf.mxu2  ;;  %v4130_v33 = vrot.slane %v4128_v29, 1 }
 0x26f   : > { %v11428_v9 = vadd.f32 %v3173_v49, %v2921_v21  ;;  %v11430_v46 = vpop.f32.mrf.mxu1  ;;  %v3487_v21 = vor.u32 %v3485_v43, %v3483_v13  ;;  %v2912_v13 = vadd.f32 %v11349_v8, %v2624_v7 }
 0x270   : > { %v11432_v44 = vpop.f32.mrf.mxu0  ;;  %4244 = vmatmul.bf16.vlgmr.msra.gmra.mxu3 %v4123_v0  ;;  %v4131_v15 = vsel %vm2737_vm15, %v4126_v25, %v4130_v33  ;;  %v4134_v34 = vor.u32 %v4132_v53, %v4130_v33 }
 0x271   : > { %v3492_v30 = vsel %vm2737_vm15, %v3487_v21, %v3491_v11  ;;  %v3189_v18 = vadd.f32 %v11364_v26, %v2912_v13  ;;  %v3914_v26 = vpack.c.b16 %v11419_v56, %v9451_v45  ;;  %v4140_v21 = vshrl.u32 %v8984_v17, 16 }
 0x273   : > { %v3293_v19 = vpop.f32.mrf.mxu3 }
 0x274   : > { %v11442_v20 = vadd.f32 %v3293_v19, %v11362_v1 }
 0x276   : > { %v11437_v40 = vpop.f32.mrf.mxu2 }
 0x277   : > { %v2906_v38 = vpop.f32.mrf.mxu1 }
 0x278   : > { %v2656_v54 = vpop.f32.mrf.mxu0 }
 0x279   : > { %v2657_v24 = vadd.f32 %v2656_v54, %v2459_v5 }
 0x27a   : > { %3869 = vmatmul.bf16.gmra.mxu1 %v3769_v4 }
 0x27b   : > { %v2925_v60 = vadd.f32 %v2906_v38, %v2657_v24  ;;  %3592 = vmatmul.bf16.gmra.mxu0 %v3492_v30  ;;  %4009 = vmatmul.bf16.gmra.mxu2 %v9699_v52  ;;  %v3295_v5 = vpop.f32.mrf.mxu3  ;;  %v8986_v24 = vld [vmem:[#allocation3 + $0x3c] sm:$0xff] }
 0x27c   : > { %v11450_v6 = vadd.f32 %v3295_v5, %v3189_v18  ;;  %v4152_v52 = vshll.u32 %v8986_v24, 16  ;;  %v4156_v29 = vshrl.u32 %v8986_v24, 16 }
 0x27e   : > { %v3178_v42 = vpop.f32.mrf.mxu2  ;;  %v4154_v58 = vrot.slane %v4152_v52, 1 }
 0x27f   : > { %v11448_v1 = vadd.f32 %v3178_v42, %v2923_v2  ;;  %v4136_v2 = vshll.u32 %v8984_v17, 16  ;;  %v8987_v42 = vld [vmem:[#allocation3 + $0x44] sm:$0xff] }
 0x280   : > { %4249 = vmatmul.bf16.gmra.mxu3 %v4131_v15  ;;  %v4160_v18 = vshll.u32 %v8987_v42, 16  ;;  %v4158_v5 = vor.u32 %v4156_v29, %v4154_v58 }
 0x281   : > { %v4138_v63 = vrot.slane %v4136_v2, 1 }
 0x282   : > { %v4162_v25 = vrot.slane %v4160_v18, 1 }
 0x283   : > { %v3298_v8 = vpop.f32.mrf.mxu3  ;;  %v4139_v43 = vsel %vm2737_vm15, %v4134_v34, %v4138_v63  ;;  %v4142_v19 = vor.u32 %v4140_v21, %v4138_v63 }
 0x284   : > { %v11457_v39 = vadd.f32 %v3298_v8, %v11371_v3  ;;  %v8985_v3 = vld [vmem:[#allocation3 + $0x34] sm:$0xff]  ;;  %v4163_v33 = vsel %vm2737_vm15, %v4158_v5, %v4162_v25  ;;  %v4164_v8 = vshrl.u32 %v8987_v42, 16 }
 0x285   : > { %v4144_v56 = vshll.u32 %v8985_v3, 16  ;;  %v4148_v38 = vshrl.u32 %v8985_v3, 16 }
 0x286   : > { %v11454_v49 = vpop.f32.mrf.mxu2 }
 0x287   : > { %v4146_v11 = vrot.slane %v4144_v56, 1 }
 0x289   : > { %v4150_v30 = vor.u32 %v4148_v38, %v4146_v11 }
 0x28b   : > { %4014 = vmatmul.bf16.gmra.mxu2 %v3914_v26  ;;  %v3300_v12 = vpop.f32.mrf.mxu3  ;;  %v11489_v26 = vpop.f32.mrf.mxu0 }
 0x28c   : > { %v11463_v22 = vadd.f32 %v3300_v12, %v11373_v59  ;;  %v4147_v59 = vsel %vm2737_vm15, %v4142_v19, %v4146_v11 }
 0x28e   : > { %v3183_v61 = vpop.f32.mrf.mxu2 }
 0x28f   : > { %v11460_v28 = vadd.f32 %v3183_v61, %v2925_v60  ;;  %v4166_v61 = vor.u32 %v4164_v8, %v4162_v25 }
 0x290   : > { %4254 = vmatmul.bf16.gmra.mxu3 %v4139_v43  ;;  %v11494_v43 = vpop.f32.mrf.mxu1 }
 0x293   : > { %v3303_v35 = vpop.f32.mrf.mxu3  ;;  %v3558_v3 = vpop.f32.mrf.mxu0 }
 0x294   : > { %v11467_v0 = vadd.f32 %v3303_v35, %v11380_v37  ;;  %v3598_v42 = vadd.f32 %v3558_v3, %v11442_v20 }
 0x296   : > { %v11496_v35 = vpop.f32.mrf.mxu2 }
 0x29b   : > { %v3305_v36 = vpop.f32.mrf.mxu3  ;;  %v3560_v38 = vpop.f32.mrf.mxu0 }
 0x29c   : > { %v11470_v54 = vadd.f32 %v3305_v36, %v11384_v57  ;;  %v4155_v57 = vsel %vm2737_vm15, %v4150_v30, %v4154_v58 }
 0x29e   : > { %v3980_v24 = vpop.f32.mrf.mxu2 }
 0x2a0   : > { %4259 = vmatmul.bf16.gmra.mxu3 %v4147_v59 }
 0x2a3   : > { %v3308_v7 = vpop.f32.mrf.mxu3 }
 0x2a4   : > { %v11474_v4 = vadd.f32 %v3308_v7, %v11391_v50  ;;  %v3835_v7 = vpop.f32.mrf.mxu1 }
 0x2ab   : > { %v3310_v37 = vpop.f32.mrf.mxu3 }
 0x2ac   : > { %v11477_v60 = vadd.f32 %v3310_v37, %v11402_v23  ;;  %v8988_v23 = vld [vmem:[#allocation3 + $0x4c] sm:$0xff]  ;;  %v3837_v58 = vpop.f32.mrf.mxu1 }
 0x2ad   : > { %v4168_v17 = vshll.u32 %v8988_v23, 16  ;;  %v4172_v36 = vshrl.u32 %v8988_v23, 16 }
 0x2af   : > { %v4170_v12 = vrot.slane %v4168_v17, 1 }
 0x2b0   : > { %4264 = vmatmul.bf16.gmra.mxu3 %v4155_v57  ;;  %v3982_v57 = vpop.f32.mrf.mxu2 }
 0x2b1   : > { %v4171_v63 = vsel %vm2737_vm15, %v4166_v61, %v4170_v12  ;;  %v4174_v11 = vor.u32 %v4172_v36, %v4170_v12 }
 0x2b3   : > { %v3313_v13 = vpop.f32.mrf.mxu3 }
 0x2b4   : > { %v11481_v41 = vadd.f32 %v3313_v13, %v11410_v48  ;;  %v4052_v48 = vld [vmem:[#allocation3 + $0x54] sm:$0x1]  ;;  %v3840_v29 = vpop.f32.mrf.mxu1 }
 0x2b5   : > { %v4102_v53 = vunpack.c.l.b16 %v4052_v48 }
 0x2b7   : > { %v4111_v34 = vpack.c.b16 %v4102_v53, %v4102_v53 }
 0x2b8   : > { %v3985_v18 = vpop.f32.mrf.mxu2 }
 0x2b9   : > { %v4176_v21 = vshll.u32 %v4111_v34, 16 }
 0x2bb   : > { %v11483_v50 = vpop.f32.mrf.mxu3  ;;  %v4178_v19 = vrot.slane %v4176_v21, 1 }
 0x2bc   : > { %v3842_v48 = vpop.f32.mrf.mxu1 }
 0x2bd   : > { %v4179_v52 = vsel %vm2737_vm15, %v4174_v11, %v4178_v19 }
 0x2c0   : > { %4269 = vmatmul.bf16.gmra.mxu3 %v4163_v33  ;;  %v3875_v33 = vadd.f32 %v3835_v7, %v3598_v42  ;;  %v3987_v12 = vpop.f32.mrf.mxu2 }
 0x2c2   : > { %v4020_v23 = vadd.f32 %v3980_v24, %v3875_v33 }
 0x2c3   : > { %v3318_v15 = vpop.f32.mrf.mxu3 }
 0x2c4   : > { %v11487_v45 = vadd.f32 %v3318_v15, %v11428_v9  ;;  %v3599_v15 = vadd.f32 %v3560_v38, %v11450_v6  ;;  %v3845_v24 = vpop.f32.mrf.mxu1 }
 0x2c6   : > { %v3876_v8 = vadd.f32 %v3837_v58, %v3599_v15 }
 0x2c8   : > { %v4021_v61 = vadd.f32 %v3982_v57, %v3876_v8 }
 0x2cb   : > { %v11491_v2 = vpop.f32.mrf.mxu3 }
 0x2d0   : > { %4274 = vmatmul.bf16.gmra.mxu3 %v4171_v63 }
 0x2d3   : > { %v3323_v9 = vpop.f32.mrf.mxu3 }
 0x2d4   : > { %v11499_v56 = vadd.f32 %v3323_v9, %v11448_v1  ;;  %v3563_v1 = vpop.f32.mrf.mxu0 }
 0x2d5   : > { %v3600_v6 = vadd.f32 %v3563_v1, %v11457_v39  ;;  %v3847_v39 = vpop.f32.mrf.mxu1 }
 0x2d7   : > { %v3877_v19 = vadd.f32 %v3840_v29, %v3600_v6 }
 0x2d9   : > { %v4022_v38 = vadd.f32 %v3985_v18, %v3877_v19 }
 0x2db   : > { %v11501_v59 = vpop.f32.mrf.mxu3 }
 0x2dc   : > { %v3565_v5 = vpop.f32.mrf.mxu0 }
 0x2dd   : > { %v3601_v7 = vadd.f32 %v3565_v5, %v11463_v22  ;;  %v3850_v18 = vpop.f32.mrf.mxu1 }
 0x2df   : > { %v3878_v58 = vadd.f32 %v3842_v48, %v3601_v7  ;;  %v9012_v48 = vld [vmem:[#allocation8 + $0x78] sm:$0xff] }
 0x2e0   : > { %4279 = vmatmul.bf16.gmra.mxu3 %v4179_v52  ;;  %v3990_v52 = vpop.f32.mrf.mxu2  ;;  %4773 = vmatpush.bf16.msrb.mxu0 %v9012_v48 }
 0x2e1   : > { %v4023_v42 = vadd.f32 %v3987_v12, %v3878_v58 }
 0x2e3   : > { %v3328_v37 = vpop.f32.mrf.mxu3 }
 0x2e4   : > { %v11505_v30 = vadd.f32 %v3328_v37, %v11460_v28  ;;  %v11514_v28 = vld [vmem:[%s12791_s4] ss:$0 sm:$0xff]  ;;  %v3568_v20 = vpop.f32.mrf.mxu0 }
 0x2e5   : > { %v3602_v5 = vadd.f32 %v3568_v20, %v11467_v0 }
 0x2eb   : > { %v11507_v13 = vpop.f32.mrf.mxu3 }
 0x2ec   : > { %v3570_v37 = vpop.f32.mrf.mxu0 }
 0x2ed   : > { %v3603_v12 = vadd.f32 %v3570_v37, %v11470_v54 }
 0x2f3   : > { %v4245_v25 = vpop.f32.mrf.mxu3 }
 0x2f4   : > { %v4285_v17 = vadd.f32 %v4245_v25, %v4020_v23  ;;  %v3992_v23 = vpop.f32.mrf.mxu2  ;;  %v3573_v8 = vpop.f32.mrf.mxu0 }
 0x2f6   : > { %v4304_v63 = vadd.f32 %v11514_v28, %v4285_v17 }
 0x2f8   : > { %v4320_v3 = vmax.f32 %v4304_v63, 0.0 }
 0x2fb   : > { %v4247_v53 = vpop.f32.mrf.mxu3 }
 0x2fc   : > { %v4286_v34 = vadd.f32 %v4247_v53, %v4021_v61  ;;  %v3879_v53 = vadd.f32 %v3845_v24, %v3602_v5  ;;  %v3995_v63 = vpop.f32.mrf.mxu2 }
 0x2fe   : > { %v4305_v9 = vadd.f32 %v11514_v28, %v4286_v34  ;;  %v3575_v34 = vpop.f32.mrf.mxu0  ;;  %v4024_v6 = vadd.f32 %v3990_v52, %v3879_v53  ;;  %v3604_v52 = vadd.f32 %v3573_v8, %v11474_v4 }
 0x300   : > { %v4321_v36 = vmax.f32 %v4305_v9, 0.0  ;;  %v9011_v9 = vld [vmem:[#allocation8 + $0x70] sm:$0xff] }
 0x301   : > { %4774 = vmatpush.bf16.msrb.mxu0 %v9011_v9 }
 0x302   : > { %v9455_v21 = vpack.c.bf16 %v4321_v36, %v4320_v3  ;;  %v3880_v3 = vadd.f32 %v3847_v39, %v3603_v12 }
 0x303   : > { %v4250_v11 = vpop.f32.mrf.mxu3 }
 0x304   : > { %9456 = vst [vmem:[#allocation4] sm:$0xff] %v9455_v21   ;;  %v4287_v57 = vadd.f32 %v4250_v11, %v4022_v38  ;;  %v4025_v21 = vadd.f32 %v3992_v23, %v3880_v3  ;;  %v3852_v38 = vpop.f32.mrf.mxu1  ;;  %v3997_v24 = vpop.f32.mrf.mxu2  ;;  %v3605_v23 = vadd.f32 %v3575_v34, %v11477_v60 }
 0x306   : > { %v4306_v33 = vadd.f32 %v11514_v28, %v4287_v57  ;;  %v3578_v37 = vpop.f32.mrf.mxu0  ;;  %v3882_v48 = vadd.f32 %v3852_v38, %v3605_v23 }
 0x308   : > { %v4322_v29 = vmax.f32 %v4306_v33, 0.0  ;;  %v4027_v3 = vadd.f32 %v3997_v24, %v3882_v48  ;;  %v9028_v48 = vld [vmem:[#allocation8 + $0xf8] sm:$0xff] }
 0x309   : > { %5114 = vmatpush.bf16.msrb.mxu3 %v9028_v48 }
 0x30b   : > { %v4252_v25 = vpop.f32.mrf.mxu3  ;;  %v4368_v7 = vld [vmem:[#allocation4] sm:$0xf] }
 0x30c   : > { %v4288_v15 = vadd.f32 %v4252_v25, %v4023_v42  ;;  %v4372_v57 = vunpack.c.l.bf16 %v4368_v7  ;;  %v4000_v5 = vpop.f32.mrf.mxu2 }
 0x30e   : > { %v4307_v1 = vadd.f32 %v11514_v28, %v4288_v15  ;;  %v3580_v53 = vpop.f32.mrf.mxu0 }
 0x310   : > { %v4323_v17 = vmax.f32 %v4307_v1, 0.0  ;;  %v3881_v1 = vadd.f32 %v3850_v18, %v3604_v52 }
 0x312   : > { %v9460_v22 = vpack.c.bf16 %v4323_v17, %v4322_v29  ;;  %v3855_v17 = vpop.f32.mrf.mxu1 }
 0x313   : > { %v4255_v61 = vpop.f32.mrf.mxu3 }
 0x314   : > { %9633 = vst [vmem:[#allocation4 + $0x8] sm:$0xff] %v9460_v22   ;;  %v4289_v36 = vadd.f32 %v4255_v61, %v4024_v6  ;;  %v4026_v22 = vadd.f32 %v3995_v63, %v3881_v1  ;;  %v4369_v6 = vld [vmem:[#allocation4 + $0x4] sm:$0x1]  ;;  %v2644_v63 = vadd.f32 %v11395_v32, %v11382_v51  ;;  %v3606_v51 = vadd.f32 %v3578_v37, %v11481_v41  ;;  %v9010_v37 = vld [vmem:[#allocation8 + $0x68] sm:$0xff] }
 0x315   : > { %v4373_v8 = vunpack.c.l.bf16 %v4369_v6  ;;  %v2649_v6 = vadd.f32 %v11414_v31, %v11397_v62  ;;  %4775 = vmatpush.bf16.msrb.mxu0 %v9010_v37 }
 0x316   : > { %v4308_v0 = vadd.f32 %v11514_v28, %v4289_v36  ;;  %v11532_v24 = vpop.f32.mrf.mxu0 }
 0x318   : > { %v4324_v42 = vmax.f32 %v4308_v0, 0.0 }
 0x31a   : > { %v3857_v7 = vpop.f32.mrf.mxu1 }
 0x31b   : > { %v4370_v11 = vld [vmem:[#allocation4 + $0x8] sm:$0xf]  ;;  %v4257_v19 = vpop.f32.mrf.mxu3  ;;  %v4371_v61 = vld [vmem:[#allocation4 + $0xc] sm:$0x1] }
 0x31c   : > { %v4290_v20 = vadd.f32 %v4257_v19, %v4025_v21  ;;  %v4374_v58 = vunpack.c.l.bf16 %v4370_v11  ;;  %v4375_v36 = vunpack.c.l.bf16 %v4371_v61  ;;  %v9020_v61 = vld [vmem:[#allocation8 + $0xb8] sm:$0xff] }
 0x31d   : > { %4996 = vmatpush.bf16.msrb.mxu2 %v9020_v61 }
 0x31e   : > { %v4309_v54 = vadd.f32 %v11514_v28, %v4290_v20  ;;  %v4376_v33 = vmax.f32 %v4372_v57, %v4374_v58  ;;  %v4377_v19 = vmax.f32 %v4373_v8, %v4375_v36  ;;  %v4002_v58 = vpop.f32.mrf.mxu2 }
 0x320   : > { %v4325_v25 = vmax.f32 %v4309_v54, 0.0  ;;  %v4378_v29 = vpack.c.bf16 %v4376_v33, %v4376_v33  ;;  %v4379_v54 = vpack.c.bf16 %v4377_v19, %v4377_v19 }
 0x322   : > { %v9465_v15 = vpack.c.bf16 %v4325_v25, %v4324_v42  ;;  %v4380_v12 = vunpack.c.l.bf16 %v4378_v29  ;;  %v2920_v25 = vadd.f32 %v11393_v14, %v2644_v63  ;;  %v4381_v32 = vunpack.c.l.bf16 %v4379_v54  ;;  %v9004_v14 = vld [vmem:[#allocation8 + $0x38] sm:$0xff]  ;;  %v9009_v63 = vld [vmem:[#allocation8 + $0x60] sm:$0xff] }
 0x323   : > { %v4260_v39 = vpop.f32.mrf.mxu3  ;;  %4873 = vmatpush.bf16.msrb.mxu1 %v9004_v14  ;;  %4776 = vmatpush.bf16.msrb.mxu0 %v9009_v63 }
 0x324   : > { %9634 = vst [vmem:[#allocation4 + $0x10] sm:$0xff] %v9465_v15   ;;  %v4291_v9 = vadd.f32 %v4260_v39, %v4026_v22  ;;  %v4384_v21 = vrot.slane %v4380_v12, 2  ;;  %v4385_v34 = vrot.slane %v4380_v12, 4  ;;  %v4386_v57 = vrot.slane %v4380_v12, 6 }
 0x325   : > { %v3197_v15 = vadd.f32 %v11421_v27, %v2920_v25  ;;  %v7947_v29 = vrot.slane %v4380_v12, 9  ;;  %v4398_v8 = vrot.slane %v4381_v32, 7 }
 0x326   : > { %v4310_v11 = vadd.f32 %v11514_v28, %v4291_v9  ;;  %v4389_v0 = vrot.slane %v4384_v21, 7  ;;  %v4392_v52 = vrot.slane %v4385_v34, 7  ;;  %v4395_v39 = vrot.slane %v4386_v57, 7  ;;  %v9019_v21 = vld [vmem:[#allocation8 + $0xb0] sm:$0xff]  ;;  %v3585_v34 = vpop.f32.mrf.mxu0 }
 0x327   : > { %v3342_v1 = vadd.f32 %v11483_v50, %v3197_v15  ;;  %v2922_v57 = vadd.f32 %v11412_v10, %v2649_v6  ;;  %4997 = vmatpush.bf16.msrb.mxu2 %v9019_v21 }
 0x328   : > { %v4326_v20 = vmax.f32 %v4310_v11, 0.0  ;;  %v4391_v33 = vrot.slane %v4389_v0, 2  ;;  %v4394_v23 = vrot.slane %v4392_v52, 2  ;;  %v4390_v50 = vsel %vm10138_vm6, %v7947_v29, %v4389_v0  ;;  %v9027_v11 = vld [vmem:[#allocation8 + $0xf0] sm:$0xff] }
 0x329   : > { %v3607_v27 = vadd.f32 %v3580_v53, %v3342_v1  ;;  %v4397_v12 = vrot.slane %v4395_v39, 2  ;;  %5115 = vmatpush.bf16.msrb.mxu3 %v9027_v11  ;;  %v3199_v1 = vadd.f32 %v11437_v40, %v2922_v57 }
 0x32a   : > { %v4393_v22 = vsel %vm10138_vm6, %v4391_v33, %v4392_v52  ;;  %v4396_v62 = vsel %vm10138_vm6, %v4394_v23, %v4395_v39 }
 0x32b   : > { %v4262_v4 = vpop.f32.mrf.mxu3  ;;  %v4447_v36 = vld [vmem:[#allocation4 + $0x10] sm:$0xf]  ;;  %v4448_v41 = vld [vmem:[#allocation4 + $0x14] sm:$0x1]  ;;  %v7949_v31 = vrot.slane %v4393_v22, 9  ;;  %v4399_v52 = vsel %vm10138_vm6, %v4397_v12, %v4398_v8  ;;  %v7950_v32 = vrot.slane %v4396_v62, 9  ;;  %v3344_v14 = vadd.f32 %v11491_v2, %v3199_v1 }
 0x32c   : > { %v4292_v18 = vadd.f32 %v4262_v4, %v4027_v3  ;;  %v3883_v3 = vadd.f32 %v3855_v17, %v3606_v51  ;;  %v11542_v4 = vpop.f32.mrf.mxu1  ;;  %v4451_v0 = vunpack.c.l.bf16 %v4447_v36  ;;  %v3608_v36 = vadd.f32 %v11532_v24, %v11487_v45 }
 0x32d   : > { %v4417_v39 = vmax.f32 %v4393_v22, %v7949_v31 }
 0x32e   : > { %v4311_v60 = vadd.f32 %v11514_v28, %v4292_v18  ;;  %v9003_v18 = vld [vmem:[#allocation8 + $0x30] sm:$0xff]  ;;  %v4028_v19 = vadd.f32 %v4000_v5, %v3883_v3  ;;  %v7948_v5 = vrot.slane %v4390_v50, 9  ;;  %v4418_v3 = vmax.f32 %v4396_v62, %v7950_v32 }
 0x32f   : > { %4874 = vmatpush.bf16.msrb.mxu1 %v9003_v18 }
 0x330   : > { %v4327_v38 = vmax.f32 %v4311_v60, 0.0  ;;  %v11546_v60 = vpop.f32.mrf.mxu2  ;;  %v4416_v61 = vmax.f32 %v4390_v50, %v7948_v5  ;;  %v3609_v5 = vadd.f32 %v3585_v34, %v3344_v14  ;;  %v2654_v14 = vadd.f32 %v11432_v44, %v11416_v47 }
 0x332   : > { %v9470_v42 = vpack.c.bf16 %v4327_v38, %v4326_v20  ;;  %v4452_v20 = vunpack.c.l.bf16 %v4448_v41  ;;  %v4420_v21 = vpack.c.bf16 %v4416_v61, %v4416_v61 }
 0x333   : > { %v4265_v9 = vpop.f32.mrf.mxu3 }
 0x334   : > { %9635 = vst [vmem:[#allocation4 + $0x18] sm:$0xff] %v9470_v42   ;;  %v3884_v42 = vadd.f32 %v3857_v7, %v3607_v27  ;;  %v4293_v25 = vadd.f32 %v4265_v9, %v4028_v19  ;;  %v7951_v7 = vrot.slane %v4399_v52, 9  ;;  %v4421_v27 = vpack.c.bf16 %v4417_v39, %v4417_v39  ;;  %v3862_v40 = vpop.f32.mrf.mxu1  ;;  %v3588_v19 = vpop.f32.mrf.mxu0 }
 0x336   : > { %v4029_v51 = vadd.f32 %v4002_v58, %v3884_v42  ;;  %v4312_v48 = vadd.f32 %v11514_v28, %v4293_v25  ;;  %v4419_v50 = vmax.f32 %v4399_v52, %v7951_v7  ;;  %v4429_v63 = vunpack.c.l.b16 %v4421_v27 }
 0x337   : > { %v3885_v42 = vadd.f32 %v11542_v4, %v3608_v36  ;;  %v4428_v52 = vunpack.c.l.b16 %v4420_v21 }
 0x338   : > { %v4007_v8 = vpop.f32.mrf.mxu2  ;;  %v4328_v11 = vmax.f32 %v4312_v48, 0.0  ;;  %v4423_v4 = vpack.c.bf16 %v4419_v50, %v4419_v50 }
 0x339   : > { %v4432_v27 = vrot.slane %v4428_v52, 7 }
 0x33b   : > { %v4449_v17 = vld [vmem:[#allocation4 + $0x18] sm:$0xf]  ;;  %v4450_v53 = vld [vmem:[#allocation4 + $0x1c] sm:$0x1]  ;;  %v4267_v10 = vpop.f32.mrf.mxu3 }
 0x33c   : > { %v4453_v38 = vunpack.c.l.bf16 %v4449_v17  ;;  %v4454_v54 = vunpack.c.l.bf16 %v4450_v53  ;;  %v4294_v9 = vadd.f32 %v4267_v10, %v4029_v51  ;;  %v4422_v53 = vpack.c.bf16 %v4418_v3, %v4418_v3  ;;  %v3865_v3 = vpop.f32.mrf.mxu1 }
 0x33d   : > { %v4433_v10 = vrot.slane %v4429_v63, 6 }
 0x33e   : > { %v4455_v33 = vmax.f32 %v4451_v0, %v4453_v38  ;;  %v4456_v15 = vmax.f32 %v4452_v20, %v4454_v54  ;;  %v4313_v22 = vadd.f32 %v11514_v28, %v4294_v9  ;;  %v4430_v34 = vunpack.c.l.b16 %v4422_v53 }
 0x340   : > { %v4457_v23 = vpack.c.bf16 %v4455_v33, %v4455_v33  ;;  %v4458_v29 = vpack.c.bf16 %v4456_v15, %v4456_v15  ;;  %v4329_v18 = vmax.f32 %v4313_v22, 0.0  ;;  %v4010_v22 = vpop.f32.mrf.mxu2  ;;  %v4435_v21 = vrot.slane %v4430_v34, 5  ;;  %v9008_v34 = vld [vmem:[#allocation8 + $0x58] sm:$0xff] }
 0x341   : > { %4777 = vmatpush.bf16.msrb.mxu0 %v9008_v34 }
 0x342   : > { %v4459_v6 = vunpack.c.l.bf16 %v4457_v23  ;;  %v4460_v58 = vunpack.c.l.bf16 %v4458_v29  ;;  %v9475_v20 = vpack.c.bf16 %v4329_v18, %v4328_v11  ;;  %v4030_v29 = vadd.f32 %v11546_v60, %v3885_v42  ;;  %v3590_v60 = vpop.f32.mrf.mxu0 }
 0x343   : > { %v4270_v57 = vpop.f32.mrf.mxu3  ;;  %v4431_v18 = vunpack.c.l.b16 %v4423_v4 }
 0x344   : > { %v4463_v41 = vrot.slane %v4459_v6, 2  ;;  %v4464_v37 = vrot.slane %v4459_v6, 4  ;;  %v4465_v12 = vrot.slane %v4459_v6, 6  ;;  %v7952_v2 = vrot.slane %v4459_v6, 9  ;;  %9636 = vst [vmem:[#allocation4 + $0x20] sm:$0xff] %v9475_v20  }
 0x345   : > { %v4477_v0 = vrot.slane %v4460_v58, 7  ;;  %v3886_v6 = vadd.f32 %v3862_v40, %v3609_v5  ;;  %v4295_v58 = vadd.f32 %v4270_v57, %v4030_v29  ;;  %v2924_v40 = vadd.f32 %v11430_v46, %v2654_v14 }
 0x346   : > { %v4468_v31 = vrot.slane %v4463_v41, 7  ;;  %v4471_v62 = vrot.slane %v4464_v37, 7  ;;  %v4474_v17 = vrot.slane %v4465_v12, 7  ;;  %v2659_v14 = vadd.f32 %v11489_v26, %v11434_v16 }
 0x347   : > { %v4031_v50 = vadd.f32 %v4007_v8, %v3886_v6  ;;  %v4314_v47 = vadd.f32 %v11514_v28, %v4295_v58  ;;  %v4444_v58 = vld [vmem:[#allocation5 + $0x8] sm:$0x7] }
 0x348   : > { %v4469_v45 = vsel %vm10138_vm6, %v7952_v2, %v4468_v31  ;;  %v4470_v24 = vrot.slane %v4468_v31, 2  ;;  %v4473_v38 = vrot.slane %v4471_v62, 2  ;;  %v4476_v54 = vrot.slane %v4474_v17, 2 }
 0x349   : > { %v7953_v25 = vrot.slane %v4469_v45, 9  ;;  %v4434_v2 = vsel %vm1148_vm1, %v4433_v10, %v4432_v27  ;;  %v4330_v5 = vmax.f32 %v4314_v47, 0.0 }
 0x34a   : > { %v4472_v33 = vsel %vm10138_vm6, %v4470_v24, %v4471_v62  ;;  %v4475_v15 = vsel %vm10138_vm6, %v4473_v38, %v4474_v17  ;;  %v4478_v51 = vsel %vm10138_vm6, %v4476_v54, %v4477_v0  ;;  %v4436_v20 = vsel %vm1247_vm7, %v4435_v21, %v4434_v2  ;;  %v3593_v29 = vpop.f32.mrf.mxu0  ;;  %v9000_v21 = vld [vmem:[#allocation8 + $0x18] sm:$0xff] }
 0x34b   : > { %v7954_v32 = vrot.slane %v4472_v33, 9  ;;  %v7955_v39 = vrot.slane %v4475_v15, 9  ;;  %v7956_v1 = vrot.slane %v4478_v51, 9  ;;  %v4495_v23 = vmax.f32 %v4469_v45, %v7953_v25  ;;  %v4272_v11 = vpop.f32.mrf.mxu3  ;;  %v4523_v6 = vld [vmem:[#allocation4 + $0x20] sm:$0xf] }
 0x34c   : > { %v4296_v44 = vadd.f32 %v4272_v11, %v4031_v50  ;;  %v3201_v45 = vadd.f32 %v11454_v49, %v2924_v40  ;;  %v3610_v24 = vadd.f32 %v3588_v19, %v11499_v56  ;;  %v4437_v38 = vrot.slane %v4431_v18, 4  ;;  %v4012_v49 = vpop.f32.mrf.mxu2  ;;  %v9026_v56 = vld [vmem:[#allocation8 + $0xe8] sm:$0xff] }
 0x34d   : > { %v4496_v7 = vmax.f32 %v4472_v33, %v7954_v32  ;;  %v4497_v61 = vmax.f32 %v4475_v15, %v7955_v39  ;;  %v4498_v48 = vmax.f32 %v4478_v51, %v7956_v1  ;;  %v4499_v9 = vpack.c.bf16 %v4495_v23, %v4495_v23  ;;  %v3867_v33 = vpop.f32.mrf.mxu1  ;;  %v9018_v39 = vld [vmem:[#allocation8 + $0xa8] sm:$0xff]  ;;  %5116 = vmatpush.bf16.msrb.mxu3 %v9026_v56 }
 0x34e   : > { %v4315_v8 = vadd.f32 %v11514_v28, %v4296_v44  ;;  %v4438_v46 = vsel %vm1150_vm3, %v4437_v38, %v4436_v20  ;;  %v3346_v52 = vadd.f32 %v11501_v59, %v3201_v45  ;;  %v3887_v32 = vadd.f32 %v3865_v3, %v3610_v24  ;;  %v9002_v1 = vld [vmem:[#allocation8 + $0x28] sm:$0xff]  ;;  %4998 = vmatpush.bf16.msrb.mxu2 %v9018_v39  ;;  %v9001_v59 = vld [vmem:[#allocation8 + $0x20] sm:$0xff] }
 0x34f   : > { %v4500_v36 = vpack.c.bf16 %v4496_v7, %v4496_v7  ;;  %v4501_v41 = vpack.c.bf16 %v4497_v61, %v4497_v61  ;;  %v4502_v37 = vpack.c.bf16 %v4498_v48, %v4498_v48  ;;  %v4507_v12 = vunpack.c.l.b16 %v4499_v9  ;;  %4875 = vmatpush.bf16.msrb.mxu1 %v9002_v1  ;;  %v9007_v61 = vld [vmem:[#allocation8 + $0x50] sm:$0xff]  ;;  %v9017_v48 = vld [vmem:[#allocation8 + $0xa0] sm:$0xff]  ;;  %v9006_v11 = vld [vmem:[#allocation8 + $0x48] sm:$0xff] }
 0x350   : > { %v4331_v25 = vmax.f32 %v4315_v8, 0.0  ;;  %v3611_v23 = vadd.f32 %v3590_v60, %v3346_v52  ;;  %v4439_v4 = vpack.c.b16 %v4438_v46, %v4438_v46  ;;  %v4032_v10 = vadd.f32 %v4010_v22, %v3887_v32  ;;  %v9025_v9 = vld [vmem:[#allocation8 + $0xe0] sm:$0xff]  ;;  %v4676_v60 = vld [vmem:[#allocation5] sm:$0x8]  ;;  %4778 = vmatpush.bf16.msrb.mxu0 %v9007_v61  ;;  %v8998_v1 = vld [vmem:[#allocation8 + $0x8] sm:$0xff] }
 0x351   : > { %v4508_v31 = vunpack.c.l.b16 %v4500_v36  ;;  %v4509_v62 = vunpack.c.l.b16 %v4501_v41  ;;  %v4510_v17 = vunpack.c.l.b16 %v4502_v37  ;;  %v4511_v53 = vrot.slane %v4507_v12, 7  ;;  %v4524_v36 = vld [vmem:[#allocation4 + $0x24] sm:$0x1]  ;;  %v4520_v37 = vld [vmem:[#allocation5 + $0xc] sm:$0x7]  ;;  %5117 = vmatpush.bf16.msrb.mxu3 %v9025_v9 }
 0x352   : > { %v9480_v51 = vpack.c.bf16 %v4331_v25, %v4330_v5  ;;  %v3888_v22 = vadd.f32 %v3867_v33, %v3611_v23  ;;  %v4445_v41 = vsel %vm11586_vm5, %v4439_v4, %v4444_v58  ;;  %v11592_v12 = vld [vmem:[#allocation5 + $0x4] sm:$0xf]  ;;  %4999 = vmatpush.bf16.msrb.mxu2 %v9017_v48  ;;  %v4793_v18 = vunpack.c.l.b16 %v4676_v60  ;;  %v8999_v5 = vld [vmem:[#allocation8 + $0x10] sm:$0xff]  ;;  %v9005_v25 = vld [vmem:[#allocation8 + $0x40] sm:$0xff] }
 0x353   : > { %v4512_v63 = vrot.slane %v4508_v31, 6  ;;  %v4514_v0 = vrot.slane %v4509_v62, 5  ;;  %v4516_v42 = vrot.slane %v4510_v17, 4  ;;  %v4275_v19 = vpop.f32.mrf.mxu3  ;;  %4446 = vst [vmem:[#allocation5 + $0x8] sm:$0x7] %v4445_v41  ;;  %v4717_v26 = vunpack.c.l.b16 %v11592_v12  ;;  %4876 = vmatpush.bf16.msrb.mxu1 %v9001_v59 }
 0x354   : > { %9637 = vst [vmem:[#allocation4 + $0x28] sm:$0xff] %v9480_v51   ;;  %v4297_v3 = vadd.f32 %v4275_v19, %v4032_v10  ;;  %v4033_v50 = vadd.f32 %v4012_v49, %v3888_v22  ;;  %v2926_v2 = vadd.f32 %v11494_v43, %v2659_v14  ;;  %v4527_v31 = vunpack.c.l.bf16 %v4523_v6  ;;  %v4015_v38 = vpop.f32.mrf.mxu2  ;;  %4779 = vmatpush.bf16.msrb.mxu0 %v9006_v11 }
 0x355   : > { %v4513_v54 = vsel %vm1148_vm1, %v4512_v63, %v4511_v53  ;;  %v4528_v62 = vunpack.c.l.bf16 %v4524_v36  ;;  %v3870_v53 = vpop.f32.mrf.mxu1  ;;  %v4794_v8 = vpack.c.b16 %v4717_v26, %v4793_v18  ;;  %v3612_v24 = vadd.f32 %v3593_v29, %v11505_v30 }
 0x356   : > { %v4515_v57 = vsel %vm1247_vm7, %v4514_v0, %v4513_v54  ;;  %v4316_v44 = vadd.f32 %v11514_v28, %v4297_v3  ;;  %v3203_v45 = vadd.f32 %v11496_v35, %v2926_v2  ;;  %v3595_v54 = vpop.f32.mrf.mxu0 }
 0x357   : > { %v4517_v15 = vsel %vm1150_vm3, %v4516_v42, %v4515_v57  ;;  %4877 = vmatpush.bf16.msrb.mxu1 %v9000_v21  ;;  %v4798_v46 = vshrl.u32 %v4794_v8, 16  ;;  %v4801_v33 = vshll.u32 %v4794_v8, 16  ;;  %v3889_v49 = vadd.f32 %v3870_v53, %v3612_v24 }
 0x358   : > { %v4518_v7 = vpack.c.b16 %v4517_v15, %v4517_v15  ;;  %v3348_v52 = vadd.f32 %v11507_v13, %v3203_v45  ;;  %v4332_v32 = vmax.f32 %v4316_v44, 0.0  ;;  %4780 = vmatpush.bf16.msrb.mxu0 %v9005_v25 }
 0x359   : > { %v4800_v29 = vrot.slane %v4798_v46, 3  ;;  %v4803_v34 = vrot.slane %v4801_v33, 4  ;;  %v4034_v9 = vadd.f32 %v4015_v38, %v3889_v49 }
 0x35a   : > { %v4521_v16 = vsel %vm11586_vm5, %v4518_v7, %v4520_v37  ;;  %v3613_v30 = vadd.f32 %v3595_v54, %v3348_v52  ;;  %v8997_v37 = vld [vmem:[#allocation8] sm:$0xff] }
 0x35b   : > { %4522 = vst [vmem:[#allocation5 + $0xc] sm:$0x7] %v4521_v16  ;;  %v4525_v17 = vld [vmem:[#allocation4 + $0x28] sm:$0xf]  ;;  %v4526_v47 = vld [vmem:[#allocation4 + $0x2c] sm:$0x1]  ;;  %v4277_v40 = vpop.f32.mrf.mxu3  ;;  %4878 = vmatpush.bf16.msrb.mxu1 %v8999_v5  ;;  %v4804_v11 = vor.u32 %v4803_v34, %v4800_v29 }
 0x35c   : > { %v4529_v63 = vunpack.c.l.bf16 %v4525_v17  ;;  %v4530_v0 = vunpack.c.l.bf16 %v4526_v47  ;;  %v4298_v20 = vadd.f32 %v4277_v40, %v4033_v50  ;;  %v4017_v60 = vpop.f32.mrf.mxu2 }
 0x35d   : > { %v3872_v58 = vpop.f32.mrf.mxu1 }
 0x35e   : > { %v4531_v57 = vmax.f32 %v4527_v31, %v4529_v63  ;;  %v4532_v43 = vmax.f32 %v4528_v62, %v4530_v0  ;;  %v4317_v42 = vadd.f32 %v11514_v28, %v4298_v20  ;;  %v3890_v16 = vadd.f32 %v3872_v58, %v3613_v30 }
 0x35f   : > { %4879 = vmatpush.bf16.msrb.mxu1 %v8998_v1  ;;  %v9023_v1 = vld [vmem:[#allocation8 + $0xd0] sm:$0xff] }
 0x360   : > { %v4533_v15 = vpack.c.bf16 %v4531_v57, %v4531_v57  ;;  %v4534_v51 = vpack.c.bf16 %v4532_v43, %v4532_v43  ;;  %v4333_v35 = vmax.f32 %v4317_v42, 0.0  ;;  %v4035_v47 = vadd.f32 %v4017_v60, %v3890_v16  ;;  %v5019_v16 = vld [vmem:[#allocation5 + $0x4] sm:$0x8] }
 0x362   : > { %v11603_v39 = vld [vmem:[#allocation5 + $0x8] sm:$0xff]   ;;  %v4535_v56 = vunpack.c.l.bf16 %v4533_v15  ;;  %v9485_v19 = vpack.c.bf16 %v4333_v35, %v4332_v32  ;;  %v4536_v4 = vunpack.c.l.bf16 %v4534_v51  ;;  %v9016_v51 = vld [vmem:[#allocation8 + $0x98] sm:$0xff] }
 0x363   : > { %v11606_v23 = vunpack.c.l.b16 %v11603_v39  ;;  %v4280_v13 = vpop.f32.mrf.mxu3  ;;  %v4806_v10 = vshrl.u32 %v11603_v39, 16  ;;  %v4809_v7 = vshll.u32 %v11603_v39, 16  ;;  %4880 = vmatpush.bf16.msrb.mxu1 %v8997_v37  ;;  %v9024_v32 = vld [vmem:[#allocation8 + $0xd8] sm:$0xff]  ;;  %5000 = vmatpush.bf16.msrb.mxu2 %v9016_v51  ;;  %v9034_v37 = vld [vmem:[#allocation8 + $0x128] sm:$0xff]  ;;  %v9059_v51 = vld [vmem:[#allocation8 + $0x1f0] sm:$0xff] }
 0x364   : > { %v4539_v59 = vrot.slane %v4535_v56, 2  ;;  %v4540_v61 = vrot.slane %v4535_v56, 4  ;;  %v4541_v48 = vrot.slane %v4535_v56, 6  ;;  %9638 = vst [vmem:[#allocation4 + $0x30] sm:$0xff] %v9485_v19   ;;  %v7957_v14 = vrot.slane %v4535_v56, 9  ;;  %v9036_v35 = vld [vmem:[#allocation8 + $0x138] sm:$0xff]  ;;  %5118 = vmatpush.bf16.msrb.mxu3 %v9024_v32 }
 0x365   : > { %v4721_v6 = vpack.c.b16 %v11606_v23, %v4717_v26  ;;  %v4808_v3 = vrot.slane %v4806_v10, 3  ;;  %v4811_v12 = vrot.slane %v4809_v7, 4  ;;  %v4553_v50 = vrot.slane %v4536_v4, 7  ;;  %v9015_v19 = vld [vmem:[#allocation8 + $0x90] sm:$0xff]  ;;  %5205 = vmatpush.bf16.msra.mxu0 %v9036_v35 }
 0x366   : > { %v4544_v22 = vrot.slane %v4539_v59, 7  ;;  %v4547_v36 = vrot.slane %v4540_v61, 7  ;;  %v4550_v41 = vrot.slane %v4541_v48, 7  ;;  %v4299_v21 = vadd.f32 %v4280_v13, %v4034_v9  ;;  %v9035_v13 = vld [vmem:[#allocation8 + $0x130] sm:$0xff]  ;;  %v9044_v61 = vld [vmem:[#allocation8 + $0x178] sm:$0xff] }
 0x367   : > { %4781 = vmatmul.bf16.vlgmr.msrb.gmra.mxu0 %v4721_v6  ;;  %v11617_v17 = vor.u32 %v4811_v12, %v4808_v3  ;;  %5001 = vmatpush.bf16.msrb.mxu2 %v9015_v19  ;;  %v9014_v3 = vld [vmem:[#allocation8 + $0x88] sm:$0xff]  ;;  %v9043_v12 = vld [vmem:[#allocation8 + $0x170] sm:$0xff] }
 0x368   : > { %v4545_v26 = vsel %vm10138_vm6, %v7957_v14, %v4544_v22  ;;  %v4546_v18 = vrot.slane %v4544_v22, 2  ;;  %v4549_v2 = vrot.slane %v4547_v36, 2  ;;  %v4552_v31 = vrot.slane %v4550_v41, 2  ;;  %v4892_v14 = vld [vmem:[#allocation5 + $0x4] sm:$0xf]  ;;  %5119 = vmatpush.bf16.msrb.mxu3 %v9023_v1  ;;  %v9022_v22 = vld [vmem:[#allocation8 + $0xc8] sm:$0xff]  ;;  %5332 = vmatpush.bf16.msra.mxu1 %v9044_v61 }
 0x369   : > { %v7958_v62 = vrot.slane %v4545_v26, 9  ;;  %v4318_v45 = vadd.f32 %v11514_v28, %v4299_v21  ;;  %v4813_v24 = vsel %vm2475_vm0, %v4804_v11, %v11617_v17  ;;  %5206 = vmatpush.bf16.msra.mxu0 %v9035_v13  ;;  %v9031_v13 = vld [vmem:[#allocation8 + $0x110] sm:$0xff]  ;;  %v11641_v61 = vunpack.c.h.b16 %v11603_v39 }
 0x36a   : > { %v4548_v44 = vsel %vm10138_vm6, %v4546_v18, %v4547_v36  ;;  %v4554_v40 = vsel %vm10138_vm6, %v4552_v31, %v4553_v50  ;;  %v4551_v8 = vsel %vm10138_vm6, %v4549_v2, %v4550_v41  ;;  %4881 = vmatmul.bf16.vlgmr.msrb.gmra.mxu1 %v4813_v24  ;;  %v4918_v36 = vunpack.c.l.b16 %v4892_v14  ;;  %v9050_v14 = vld [vmem:[#allocation8 + $0x1a8] sm:$0xff] }
 0x36b   : > { %v7959_v53 = vrot.slane %v4548_v44, 9  ;;  %v7961_v63 = vrot.slane %v4554_v40, 9  ;;  %v4571_v0 = vmax.f32 %v4545_v26, %v7958_v62  ;;  %v4282_v20 = vpop.f32.mrf.mxu3  ;;  %v7960_v42 = vrot.slane %v4551_v8, 9  ;;  %v4599_v48 = vld [vmem:[#allocation4 + $0x30] sm:$0xf]  ;;  %5002 = vmatpush.bf16.msrb.mxu2 %v9014_v3 }
 0x36c   : > { %v4300_v38 = vadd.f32 %v4282_v20, %v4035_v47  ;;  %v4334_v46 = vmax.f32 %v4318_v45, 0.0  ;;  %v4600_v6 = vld [vmem:[#allocation4 + $0x34] sm:$0x1]  ;;  %v4603_v60 = vunpack.c.l.bf16 %v4599_v48  ;;  %v4596_v62 = vld [vmem:[#allocation5 + $0x10] sm:$0x7]  ;;  %5120 = vmatpush.bf16.msrb.mxu3 %v9022_v22  ;;  %5333 = vmatpush.bf16.msra.mxu1 %v9043_v12 }
 0x36d   : > { %v4572_v54 = vmax.f32 %v4548_v44, %v7959_v53  ;;  %v4574_v57 = vmax.f32 %v4554_v40, %v7961_v63  ;;  %v4575_v5 = vpack.c.bf16 %v4571_v0, %v4571_v0  ;;  %v4573_v49 = vmax.f32 %v4551_v8, %v7960_v42  ;;  %v9013_v44 = vld [vmem:[#allocation8 + $0x80] sm:$0xff]  ;;  %5207 = vmatpush.bf16.msra.mxu0 %v9034_v37  ;;  %v9042_v45 = vld [vmem:[#allocation8 + $0x168] sm:$0xff] }
 0x36e   : > { %v4319_v43 = vadd.f32 %v11514_v28, %v4300_v38  ;;  %v4604_v26 = vunpack.c.l.bf16 %v4600_v6  ;;  %v9021_v40 = vld [vmem:[#allocation8 + $0xc0] sm:$0xff]  ;;  %v11633_v53 = vpack.c.b16 %v11606_v23, %v4918_v36  ;;  %v5039_v63 = vunpack.c.l.b16 %v5019_v16  ;;  %v9052_v38 = vld [vmem:[#allocation8 + $0x1b8] sm:$0xff] }
 0x36f   : > { %v4576_v25 = vpack.c.bf16 %v4572_v54, %v4572_v54  ;;  %v4578_v33 = vpack.c.bf16 %v4574_v57, %v4574_v57  ;;  %v4583_v30 = vunpack.c.l.b16 %v4575_v5  ;;  %v4577_v29 = vpack.c.bf16 %v4573_v49, %v4573_v49  ;;  %v9033_v8 = vld [vmem:[#allocation8 + $0x120] sm:$0xff]  ;;  %v9060_v54 = vld [vmem:[#allocation8 + $0x1f8] sm:$0xff]  ;;  %5003 = vmatpush.bf16.msrb.mxu2 %v9013_v44 }
 0x370   : > { %v4335_v52 = vmax.f32 %v4319_v43, 0.0  ;;  %5121 = vmatpush.bf16.msrb.mxu3 %v9021_v40  ;;  %v4929_v42 = vshll.u32 %v11633_v53, 16  ;;  %v5041_v5 = vpack.c.b16 %v11606_v23, %v5039_v63  ;;  %5334 = vmatpush.bf16.msra.mxu1 %v9042_v45 }
 0x371   : > { %v4584_v56 = vunpack.c.l.b16 %v4576_v25  ;;  %v4586_v4 = vunpack.c.l.b16 %v4578_v33  ;;  %v4587_v34 = vrot.slane %v4583_v30, 7  ;;  %v4585_v59 = vunpack.c.l.b16 %v4577_v29  ;;  %5208 = vmatpush.bf16.msra.mxu0 %v9033_v8 }
 0x372   : > { %v9490_v15 = vpack.c.bf16 %v4335_v52, %v4334_v46  ;;  %v9032_v46 = vld [vmem:[#allocation8 + $0x118] sm:$0xff]  ;;  %v9041_v52 = vld [vmem:[#allocation8 + $0x160] sm:$0xff]  ;;  %v4927_v30 = vshrl.u32 %v11633_v53, 16  ;;  %v5044_v19 = vshrl.u32 %v5041_v5, 16  ;;  %v5047_v1 = vshll.u32 %v5041_v5, 16 }
 0x373   : > { %v4588_v28 = vrot.slane %v4584_v56, 6  ;;  %v4590_v58 = vrot.slane %v4585_v59, 5  ;;  %v4592_v41 = vrot.slane %v4586_v4, 4  ;;  %5450 = vmatpush.bf16.msra.mxu2 %v9052_v38  ;;  %v4931_v56 = vrot.slane %v4929_v42, 1 }
 0x374   : > { %9639 = vst [vmem:[#allocation4 + $0x38] sm:$0xff] %v9490_v15   ;;  %5541 = vmatpush.bf16.msra.mxu3 %v9060_v54  ;;  %v9051_v15 = vld [vmem:[#allocation8 + $0x1b0] sm:$0xff]  ;;  %5335 = vmatpush.bf16.msra.mxu1 %v9041_v52  ;;  %v11648_v12 = vrot.slane %v5044_v19, 3 }
 0x375   : > { %v4589_v9 = vsel %vm1148_vm1, %v4588_v28, %v4587_v34  ;;  %5209 = vmatpush.bf16.msra.mxu0 %v9032_v46  ;;  %v9040_v34 = vld [vmem:[#allocation8 + $0x158] sm:$0xff]  ;;  %v4932_v53 = vor.u32 %v4931_v56, %v4927_v30  ;;  %v9057_v30 = vld [vmem:[#allocation8 + $0x1e0] sm:$0xff] }
 0x376   : > { %v4591_v11 = vsel %vm1247_vm7, %v4590_v58, %v4589_v9 }
 0x377   : > { %v4593_v31 = vsel %vm1150_vm3, %v4592_v41, %v4591_v11  ;;  %5451 = vmatpush.bf16.msra.mxu2 %v9051_v15  ;;  %v9039_v11 = vld [vmem:[#allocation8 + $0x150] sm:$0xff] }
 0x378   : > { %v4594_v47 = vpack.c.b16 %v4593_v31, %v4593_v31  ;;  %5542 = vmatpush.bf16.msra.mxu3 %v9059_v51  ;;  %5336 = vmatpush.bf16.msra.mxu1 %v9040_v34  ;;  %v9037_v34 = vld [vmem:[#allocation8 + $0x140] sm:$0xff] }
 0x379   : > { %5210 = vmatpush.bf16.msra.mxu0 %v9031_v13 }
 0x37a   : > { %v4597_v24 = vsel %vm11586_vm5, %v4594_v47, %v4596_v62  ;;  %v9030_v62 = vld [vmem:[#allocation8 + $0x108] sm:$0xff] }
 0x37b   : > { %v4601_v50 = vld [vmem:[#allocation4 + $0x38] sm:$0xf]  ;;  %v4602_v21 = vld [vmem:[#allocation4 + $0x3c] sm:$0x1]  ;;  %4598 = vst [vmem:[#allocation5 + $0x10] sm:$0x7] %v4597_v24  ;;  %5452 = vmatpush.bf16.msra.mxu2 %v9050_v14 }
 0x37c   : > { %v4605_v18 = vunpack.c.l.bf16 %v4601_v50  ;;  %v4606_v2 = vunpack.c.l.bf16 %v4602_v21  ;;  %v11656_v21 = vrot.slane %v5047_v1, 4  ;;  %5337 = vmatpush.bf16.msra.mxu1 %v9039_v11 }
 0x37d   : > { %5211 = vmatpush.bf16.msra.mxu0 %v9030_v62  ;;  %v9054_v62 = vld [vmem:[#allocation8 + $0x1c8] sm:$0xff] }
 0x37e   : > { %v4607_v0 = vmax.f32 %v4603_v60, %v4605_v18  ;;  %v4608_v20 = vmax.f32 %v4604_v26, %v4606_v2  ;;  %v5050_v13 = vor.u32 %v11656_v21, %v11648_v12  ;;  %v9068_v21 = vld [vmem:[#allocation8 + $0x228] sm:$0xff] }
 0x380   : > { %v4609_v57 = vpack.c.bf16 %v4607_v0, %v4607_v0  ;;  %v4610_v43 = vpack.c.bf16 %v4608_v20, %v4608_v20 }
 0x382   : > { %v4611_v25 = vunpack.c.l.bf16 %v4609_v57  ;;  %v4612_v33 = vunpack.c.l.bf16 %v4610_v43  ;;  %v4680_v48 = vld [vmem:[#allocation5 + $0x10] sm:$0xf] }
 0x383   : > { %v11643_v9 = vld [vmem:[#allocation5 + $0x10] sm:$0xf]  ;;  %v4720_v41 = vunpack.c.l.b16 %v4680_v48 }
 0x384   : > { %v4615_v32 = vrot.slane %v4611_v25, 2  ;;  %v4616_v35 = vrot.slane %v4611_v25, 4  ;;  %v4617_v49 = vrot.slane %v4611_v25, 6  ;;  %v7962_v29 = vrot.slane %v4611_v25, 9  ;;  %v9038_v57 = vld [vmem:[#allocation8 + $0x148] sm:$0xff]  ;;  %v9029_v25 = vld [vmem:[#allocation8 + $0x100] sm:$0xff] }
 0x385   : > { %v4629_v59 = vrot.slane %v4612_v33, 7  ;;  %v4921_v37 = vunpack.c.l.b16 %v11643_v9  ;;  %v4722_v47 = vpack.c.b16 %v4720_v41, %v11641_v61  ;;  %v4796_v44 = vpack.c.b16 %v4720_v41, %v4720_v41  ;;  %v9058_v43 = vld [vmem:[#allocation8 + $0x1e8] sm:$0xff]  ;;  %v9049_v33 = vld [vmem:[#allocation8 + $0x1a0] sm:$0xff]  ;;  %5338 = vmatpush.bf16.msra.mxu1 %v9038_v57  ;;  %5212 = vmatpush.bf16.msra.mxu0 %v9029_v25  ;;  %v9065_v57 = vld [vmem:[#allocation8 + $0x210] sm:$0xff] }
 0x386   : > { %v4620_v23 = vrot.slane %v4615_v32, 7  ;;  %v4623_v28 = vrot.slane %v4616_v35, 7  ;;  %v4626_v4 = vrot.slane %v4617_v49, 7  ;;  %v9070_v49 = vld [vmem:[#allocation8 + $0x238] sm:$0xff]  ;;  %5543 = vmatpush.bf16.msra.mxu3 %v9058_v43  ;;  %5453 = vmatpush.bf16.msra.mxu2 %v9049_v33 }
 0x387   : > { %v11662_v40 = vpack.c.b16 %v4921_v37, %v11641_v61  ;;  %4786 = vmatmul.bf16.gmra.mxu0 %v4722_v47  ;;  %v4815_v24 = vshrl.u32 %v4796_v44, 16  ;;  %v4818_v38 = vshll.u32 %v4796_v44, 16  ;;  %v9045_v47 = vld [vmem:[#allocation8 + $0x180] sm:$0xff]  ;;  %v9066_v44 = vld [vmem:[#allocation8 + $0x218] sm:$0xff] }
 0x388   : > { %v4621_v6 = vsel %vm10138_vm6, %v7962_v29, %v4620_v23  ;;  %v4622_v3 = vrot.slane %v4620_v23, 2  ;;  %v4625_v58 = vrot.slane %v4623_v28, 2  ;;  %v4628_v22 = vrot.slane %v4626_v4, 2  ;;  %v9048_v23 = vld [vmem:[#allocation8 + $0x198] sm:$0xff] }
 0x389   : > { %v7963_v36 = vrot.slane %v4621_v6, 9  ;;  %v4934_v45 = vshll.u32 %v11662_v40, 16  ;;  %v4938_v54 = vshrl.u32 %v11662_v40, 16  ;;  %v4817_v51 = vrot.slane %v4815_v24, 3  ;;  %5668 = vmatpush.bf16.msrb.mxu0 %v9070_v49  ;;  %5339 = vmatpush.bf16.msra.mxu1 %v9037_v34  ;;  %v9064_v49 = vld [vmem:[#allocation8 + $0x208] sm:$0xff] }
 0x38a   : > { %v4624_v16 = vsel %vm10138_vm6, %v4622_v3, %v4623_v28  ;;  %v4627_v60 = vsel %vm10138_vm6, %v4625_v58, %v4626_v4  ;;  %v4630_v50 = vsel %vm10138_vm6, %v4628_v22, %v4629_v59  ;;  %v4820_v32 = vrot.slane %v4818_v38, 4  ;;  %v9069_v58 = vld [vmem:[#allocation8 + $0x230] sm:$0xff]  ;;  %5544 = vmatpush.bf16.msra.mxu3 %v9057_v30  ;;  %v9056_v22 = vld [vmem:[#allocation8 + $0x1d8] sm:$0xff]  ;;  %5454 = vmatpush.bf16.msra.mxu2 %v9048_v23 }
 0x38b   : > { %v7964_v26 = vrot.slane %v4624_v16, 9  ;;  %v7965_v18 = vrot.slane %v4627_v60, 9  ;;  %v7966_v2 = vrot.slane %v4630_v50, 9  ;;  %v4647_v31 = vmax.f32 %v4621_v6, %v7963_v36  ;;  %v5232_v38 = vld [vmem:[#allocation5 + $0x18] sm:$0x1] }
 0x38c   : > { %v11666_v15 = vrot.slane %v4934_v45, 1  ;;  %v5051_v35 = vrot.slane %v4938_v54, 3  ;;  %v5052_v19 = vrot.slane %v4934_v45, 4  ;;  %v4821_v4 = vor.u32 %v4820_v32, %v4817_v51 }
 0x38d   : > { %v4648_v63 = vmax.f32 %v4624_v16, %v7964_v26  ;;  %v4650_v0 = vmax.f32 %v4630_v50, %v7966_v2  ;;  %v4651_v20 = vpack.c.bf16 %v4647_v31, %v4647_v31  ;;  %v4649_v8 = vmax.f32 %v4627_v60, %v7965_v18  ;;  %v9047_v16 = vld [vmem:[#allocation8 + $0x190] sm:$0xff]  ;;  %5669 = vmatpush.bf16.msrb.mxu0 %v9069_v58  ;;  %v9046_v18 = vld [vmem:[#allocation8 + $0x188] sm:$0xff]  ;;  %v9067_v31 = vld [vmem:[#allocation8 + $0x220] sm:$0xff] }
 0x38e   : > { %v4937_v28 = vsel %vm2737_vm15, %v4932_v53, %v11666_v15  ;;  %v11674_v59 = vor.u32 %v5052_v19, %v5051_v35  ;;  %v4822_v3 = vsel %vm2475_vm0, %v11617_v17, %v4821_v4  ;;  %v4672_v17 = vld [vmem:[#allocation5 + $0x14] sm:$0x7]  ;;  %5545 = vmatpush.bf16.msra.mxu3 %v9056_v22  ;;  %v9055_v26 = vld [vmem:[#allocation8 + $0x1d0] sm:$0xff]  ;;  %5455 = vmatpush.bf16.msra.mxu2 %v9047_v16  ;;  %v9053_v53 = vld [vmem:[#allocation8 + $0x1c0] sm:$0xff] }
 0x38f   : > { %v4652_v42 = vpack.c.bf16 %v4648_v63, %v4648_v63  ;;  %v4654_v5 = vpack.c.bf16 %v4650_v0, %v4650_v0  ;;  %v4653_v46 = vpack.c.bf16 %v4649_v8, %v4649_v8  ;;  %v4659_v52 = vunpack.c.l.b16 %v4651_v20  ;;  %5004 = vmatmul.bf16.vlgmr.msrb.gmra.mxu2 %v4937_v28  ;;  %4886 = vmatmul.bf16.gmra.mxu1 %v4822_v3  ;;  %v9063_v28 = vld [vmem:[#allocation8 + $0x200] sm:$0xff] }
 0x390   : > { %v5054_v41 = vsel %vm2475_vm0, %v5050_v13, %v11674_v59  ;;  %v5267_v63 = vrot.slane %v4809_v7, 1  ;;  %v5258_v7 = vunpack.c.l.b16 %v5232_v38  ;;  %v4940_v35 = vor.u32 %v4938_v54, %v11666_v15  ;;  %v9061_v15 = vld [vmem:[#allocation5 + $0xc] sm:$0xff] }
 0x391   : > { %v4662_v56 = vunpack.c.l.b16 %v4654_v5  ;;  %v4660_v1 = vunpack.c.l.b16 %v4652_v42  ;;  %v4661_v29 = vunpack.c.l.b16 %v4653_v46  ;;  %v4663_v48 = vrot.slane %v4659_v52, 7  ;;  %5122 = vmatmul.bf16.vlgmr.msrb.gmra.mxu3 %v5054_v41  ;;  %5670 = vmatpush.bf16.msrb.mxu0 %v9068_v21  ;;  %v5355_v46 = vld [vmem:[#allocation5 + $0x8] sm:$0x8] }
 0x392   : > { %5546 = vmatpush.bf16.msra.mxu3 %v9055_v26  ;;  %5456 = vmatpush.bf16.msra.mxu2 %v9046_v18  ;;  %v5268_v42 = vor.u32 %v5267_v63, %v4806_v10  ;;  %v5375_v10 = vunpack.c.l.b16 %v5355_v46  ;;  %v5261_v23 = vpack.c.b16 %v5258_v7, %v5258_v7  ;;  %v5568_v26 = vld [vmem:[#allocation5 + $0x1c] sm:$0x1] }
 0x393   : > { %v4664_v14 = vrot.slane %v4660_v1, 6  ;;  %v4666_v6 = vrot.slane %v4661_v29, 5  ;;  %v4668_v36 = vrot.slane %v4662_v56, 4 }
 0x394   : > { %v5377_v54 = vpack.c.b16 %v11641_v61, %v5375_v10  ;;  %v5278_v13 = vshll.u32 %v5261_v23, 16 }
 0x395   : > { %v4665_v12 = vsel %vm1148_vm1, %v4664_v14, %v4663_v48  ;;  %5671 = vmatpush.bf16.msrb.mxu0 %v9067_v31  ;;  %v5601_v48 = vshll.u32 %v9061_v15, 16 }
 0x396   : > { %v4667_v60 = vsel %vm1247_vm7, %v4666_v6, %v4665_v12  ;;  %5547 = vmatpush.bf16.msra.mxu3 %v9054_v62  ;;  %5457 = vmatpush.bf16.msra.mxu2 %v9045_v47  ;;  %v5383_v34 = vshll.u32 %v5377_v54, 16  ;;  %v5280_v6 = vrot.slane %v5278_v13, 1 }
 0x397   : > { %v4669_v50 = vsel %vm1150_vm3, %v4668_v36, %v4667_v60  ;;  %5213 = vmatmul.bf16.vlgmr.msra.gmra.mxu0 %v11603_v39  ;;  %v5603_v41 = vrot.slane %v5601_v48, 1  ;;  %vm5748_vm3 = vcmask 1041408  }
 0x398   : > { %v4670_v11 = vpack.c.b16 %v4669_v50, %v4669_v50 }
 0x399   : > { %5672 = vmatpush.bf16.msrb.mxu0 %v9066_v44  ;;  %v5594_v44 = vunpack.c.l.b16 %v5568_v26 }
 0x39a   : > { %v4673_v2 = vsel %vm11586_vm5, %v4670_v11, %v4672_v17  ;;  %5548 = vmatpush.bf16.msra.mxu3 %v9053_v53  ;;  %v5599_v17 = vshrl.u32 %v9061_v15, 16 }
 0x39b   : > { %4674 = vst [vmem:[#allocation5 + $0x14] sm:$0x7] %v4673_v2 }
 0x39c   : > { %v5604_v18 = vor.u32 %v5603_v41, %v5599_v17 }
 0x39d   : > { %5673 = vmatpush.bf16.msrb.mxu0 %v9065_v57 }
 0x3a1   : > { %5674 = vmatpush.bf16.msrb.mxu0 %v9064_v49 }
 0x3a2   : > { %v5020_v0 = vld [vmem:[#allocation5 + $0x14] sm:$0xff]  }
 0x3a3   : > { %v11688_v27 = vld [vmem:[#allocation5 + $0x10] sm:$0xff]   ;;  %v5040_v8 = vunpack.c.l.b16 %v5020_v0  ;;  %v5376_v60 = vunpack.c.h.b16 %v5020_v0  ;;  %v5597_v0 = vpack.c.b16 %v5594_v44, %v5594_v44 }
 0x3a4   : > { %v4896_v20 = vld [vmem:[#allocation5 + $0x14] sm:$0x1]  ;;  %v5270_v45 = vshll.u32 %v11688_v27, 16  ;;  %v5274_v4 = vshrl.u32 %v11688_v27, 16  ;;  %v9506_v50 = vunpack.c.l.b16 %v11688_v27  ;;  %v9507_v57 = vunpack.c.h.b16 %v11688_v27 }
 0x3a5   : > { %v4922_v24 = vunpack.c.l.b16 %v4896_v20  ;;  %v5042_v43 = vpack.c.b16 %v5040_v8, %v5040_v8  ;;  %v5154_v19 = vpack.c.b16 %v5040_v8, %v4921_v37  ;;  %5675 = vmatpush.bf16.msrb.mxu0 %v9063_v28  ;;  %v9062_v9 = vld [vmem:[#allocation5 + $0x14] sm:$0xff]  ;;  %v5380_v37 = vshrl.u32 %v5377_v54, 16 }
 0x3a6   : > { %v5272_v5 = vrot.slane %v5270_v45, 1  ;;  %v5387_v3 = vrot.slane %v5274_v4, 3  ;;  %v5388_v58 = vrot.slane %v5270_v45, 4  ;;  %v5606_v22 = vshll.u32 %v9062_v9, 16 }
 0x3a7   : > { %v4925_v25 = vpack.c.b16 %v4922_v24, %v4922_v24  ;;  %v5056_v51 = vshrl.u32 %v5042_v43, 16  ;;  %v5059_v32 = vshll.u32 %v5042_v43, 16  ;;  %5218 = vmatmul.bf16.gmra.mxu0 %v5154_v19  ;;  %v5382_v36 = vrot.slane %v5380_v37, 3 }
 0x3a8   : > { %v5273_v52 = vsel %vm2737_vm15, %v5268_v42, %v5272_v5  ;;  %v5276_v14 = vor.u32 %v5274_v4, %v5272_v5  ;;  %v5389_v16 = vor.u32 %v5388_v58, %v5387_v3  ;;  %v5608_v21 = vrot.slane %v5606_v22, 1 }
 0x3a9   : > { %v4942_v33 = vshll.u32 %v4925_v25, 16  ;;  %5340 = vmatmul.bf16.vlgmr.msra.gmra.mxu1 %v5273_v52  ;;  %v5058_v56 = vrot.slane %v5056_v51, 3  ;;  %v5061_v39 = vrot.slane %v5059_v32, 4  ;;  %v5378_v31 = vpack.c.b16 %v5376_v60, %v5376_v60 }
 0x3aa   : > { %v5281_v12 = vsel %vm2737_vm15, %v5276_v14, %v5280_v6  ;;  %v5489_v62 = vpack.c.b16 %v9506_v50, %v11641_v61  ;;  %v5609_v47 = vsel %vm2737_vm15, %v5604_v18, %v5608_v21  ;;  %v5614_v45 = vshll.u32 %v5597_v0, 16 }
 0x3ab   : > { %v4944_v30 = vrot.slane %v4942_v33, 1  ;;  %v5062_v29 = vor.u32 %v5061_v39, %v5058_v56  ;;  %v5392_v53 = vshrl.u32 %v5378_v31, 16  ;;  %v5395_v63 = vshll.u32 %v5378_v31, 16 }
 0x3ac   : > { %v5610_v24 = vshrl.u32 %v9062_v9, 16  ;;  %v5616_v42 = vrot.slane %v5614_v45, 1  ;;  %v5490_v61 = vpack.c.b16 %v5376_v60, %v9507_v57 }
 0x3ad   : > { %v4945_v1 = vsel %vm2737_vm15, %v4940_v35, %v4944_v30  ;;  %v5063_v40 = vsel %vm2475_vm0, %v11674_v59, %v5062_v29  ;;  %v5385_v59 = vrot.slane %v5383_v34, 4  ;;  %v5394_v20 = vrot.slane %v5392_v53, 3 }
 0x3ae   : > { %5009 = vmatmul.bf16.gmra.mxu2 %v4945_v1  ;;  %5127 = vmatmul.bf16.gmra.mxu3 %v5063_v40  ;;  %v5397_v8 = vrot.slane %v5395_v63, 4  ;;  %v5612_v43 = vor.u32 %v5610_v24, %v5608_v21 }
 0x3af   : > { %v5386_v11 = vor.u32 %v5385_v59, %v5382_v36 }
 0x3b0   : > { %v5398_v38 = vor.u32 %v5397_v8, %v5394_v20  ;;  %v5617_v25 = vsel %vm2737_vm15, %v5612_v43, %v5616_v42  ;;  %v8329_v42 = vld [vmem:[%s12794_s7 + $0xf0] sm:$0xf] }
 0x3b1   : > { %v5390_v2 = vsel %vm2475_vm0, %v5386_v11, %v5389_v16  ;;  %v11715_v11 = vld [vmem:[%s12793_s6] ss:$0 sm:$0xff] }
 0x3b2   : > { %v5399_v5 = vsel %vm2475_vm0, %v5389_v16, %v5398_v38 }
 0x3b7   : > { %5676 = vmatmul.bf16.vlgmr.msrb.gmra.mxu0 %v5609_v47 }
 0x3b9   : > { %5345 = vmatmul.bf16.gmra.mxu1 %v5281_v12 }
 0x3be   : > { %5458 = vmatmul.bf16.vlgmr.msra.gmra.mxu2 %v5390_v2  ;;  %5549 = vmatmul.bf16.vlgmr.msra.gmra.mxu3 %v5489_v62 }
 0x3c7   : > { %5681 = vmatmul.bf16.gmra.mxu0 %v5617_v25 }
 0x3ce   : > { %5463 = vmatmul.bf16.gmra.mxu2 %v5399_v5  ;;  %5554 = vmatmul.bf16.gmra.mxu3 %v5490_v61  ;;  %v9102_v5 = vld [vmem:[%s12794_s7 + $0xf4] sm:$0xf0]  ;;  %v9101_v61 = vld [vmem:[%s12794_s7 + $0xf4] sm:$0xf] }
 0x3e4   : > { %v4782_v7 = vpop.f32.mrf.mxu0 }
 0x3e7   : > { %v4882_v51 = vpop.f32.mrf.mxu1 }
 0x3e8   : > { %v4883_v28 = vadd.f32 %v4882_v51, %v4782_v7  ;;  %v8330_v7 = vor.u32 %v9102_v5, %v8329_v42 }
 0x3ea   : > { %5917 = vmatpush.bf16.msrb.mxu1 %v8330_v7  ;;  %v9082_v7 = vld [vmem:[%s12794_s7 + $0x54] sm:$0xf0] }
 0x3ec   : > { %v4784_v46 = vpop.f32.mrf.mxu0 }
 0x3ef   : > { %v4884_v49 = vpop.f32.mrf.mxu1 }
 0x3f0   : > { %v4885_v37 = vadd.f32 %v4884_v49, %v4784_v46  ;;  %v8331_v46 = vld [vmem:[%s12794_s7 + $0xf8] sm:$0xf0] }
 0x3f1   : > { %v8334_v49 = vor.u32 %v9101_v61, %v8331_v46  ;;  %v9081_v46 = vld [vmem:[%s12794_s7 + $0x54] sm:$0xf] }
 0x3f3   : > { %5931 = vmatpush.bf16.msrb.mxu2 %v8334_v49  ;;  %v9093_v49 = vld [vmem:[%s12794_s7 + $0xb4] sm:$0xf] }
 0x404   : > { %v4787_v52 = vpop.f32.mrf.mxu0 }
 0x40c   : > { %v4789_v33 = vpop.f32.mrf.mxu0  ;;  %v4887_v56 = vpop.f32.mrf.mxu1 }
 0x40d   : > { %v4888_v41 = vadd.f32 %v4887_v56, %v4787_v52  ;;  %v8323_v56 = vld [vmem:[%s12794_s7 + $0xe8] sm:$0xf0] }
 0x412   : > { %v5005_v35 = vpop.f32.mrf.mxu2 }
 0x413   : > { %v5015_v40 = vadd.f32 %v5005_v35, %v4883_v28 }
 0x414   : > { %v5214_v32 = vpop.f32.mrf.mxu0  ;;  %v5123_v30 = vpop.f32.mrf.mxu3 }
 0x415   : > { %v4889_v29 = vpop.f32.mrf.mxu1  ;;  %v5133_v4 = vadd.f32 %v5123_v30, %v5015_v40  ;;  %v9100_v30 = vld [vmem:[%s12794_s7 + $0xe4] sm:$0xf0]  ;;  %v8395_v40 = vld [vmem:[%s12794_s7 + $0x78] sm:$0xf0] }
 0x416   : > { %v4890_v62 = vadd.f32 %v4889_v29, %v4789_v33  ;;  %v8321_v33 = vld [vmem:[%s12794_s7 + $0xe0] sm:$0xf]  ;;  %v9085_v29 = vld [vmem:[%s12794_s7 + $0x74] sm:$0xf] }
 0x417   : > { %v5224_v34 = vadd.f32 %v5214_v32, %v5133_v4 }
 0x41a   : > { %v5007_v39 = vpop.f32.mrf.mxu2 }
 0x41b   : > { %v5016_v48 = vadd.f32 %v5007_v39, %v4885_v37  ;;  %v8315_v37 = vld [vmem:[%s12794_s7 + $0xd8] sm:$0xf0] }
 0x41c   : > { %v5216_v27 = vpop.f32.mrf.mxu0  ;;  %v5125_v10 = vpop.f32.mrf.mxu3 }
 0x41d   : > { %v5134_v3 = vadd.f32 %v5125_v10, %v5016_v48  ;;  %v8322_v10 = vor.u32 %v9100_v30, %v8321_v33  ;;  %v8297_v33 = vld [vmem:[%s12794_s7 + $0xb0] sm:$0xf] }
 0x41f   : > { %v5225_v12 = vadd.f32 %v5216_v27, %v5134_v3  ;;  %v9099_v27 = vld [vmem:[%s12794_s7 + $0xe4] sm:$0xf]  ;;  %v8387_v3 = vld [vmem:[%s12794_s7 + $0x68] sm:$0xf0]  ;;  %5918 = vmatpush.bf16.msrb.mxu1 %v8322_v10 }
 0x424   : > { %v5219_v19 = vpop.f32.mrf.mxu0 }
 0x426   : > { %v5341_v13 = vpop.f32.mrf.mxu1 }
 0x427   : > { %v5351_v14 = vadd.f32 %v5341_v13, %v5224_v34  ;;  %v8398_v13 = vor.u32 %v9085_v29, %v8395_v40  ;;  %v8385_v34 = vld [vmem:[%s12794_s7 + $0x60] sm:$0xf] }
 0x429   : > { %6061 = vmatpush.bf16.msra.mxu0 %v8398_v13 }
 0x42c   : > { %v5221_v54 = vpop.f32.mrf.mxu0 }
 0x42e   : > { %v5343_v59 = vpop.f32.mrf.mxu1 }
 0x42f   : > { %v5352_v60 = vadd.f32 %v5343_v59, %v5225_v12  ;;  %v8305_v59 = vld [vmem:[%s12794_s7 + $0xc0] sm:$0xf] }
 0x431   : > { %v5010_v1 = vpop.f32.mrf.mxu2  ;;  %v5128_v23 = vpop.f32.mrf.mxu3 }
 0x432   : > { %v5017_v50 = vadd.f32 %v5010_v1, %v4888_v41  ;;  %v9086_v1 = vld [vmem:[%s12794_s7 + $0x74] sm:$0xf0] }
 0x434   : > { %v5677_v22 = vpop.f32.mrf.mxu0  ;;  %v5135_v2 = vadd.f32 %v5128_v23, %v5017_v50  ;;  %v8326_v23 = vor.u32 %v9099_v27, %v8323_v56  ;;  %v9096_v50 = vld [vmem:[%s12794_s7 + $0xc4] sm:$0xf0]  ;;  %v8299_v27 = vld [vmem:[%s12794_s7 + $0xb8] sm:$0xf0]  ;;  %v8369_v56 = vld [vmem:[%s12794_s7 + $0x40] sm:$0xf] }
 0x436   : > { %v5346_v44 = vpop.f32.mrf.mxu1  ;;  %v5226_v20 = vadd.f32 %v5219_v19, %v5135_v2  ;;  %v8393_v19 = vld [vmem:[%s12794_s7 + $0x70] sm:$0xf]  ;;  %5932 = vmatpush.bf16.msrb.mxu2 %v8326_v23  ;;  %v9095_v2 = vld [vmem:[%s12794_s7 + $0xc4] sm:$0xf] }
 0x437   : > { %v8394_v28 = vor.u32 %v9086_v1, %v8393_v19  ;;  %v8302_v1 = vor.u32 %v9093_v49, %v8299_v27  ;;  %v9079_v23 = vld [vmem:[%s12794_s7 + $0x44] sm:$0xf]  ;;  %v8347_v49 = vld [vmem:[%s12794_s7 + $0x18] sm:$0xf0] }
 0x438   : > { %v5353_v57 = vadd.f32 %v5346_v44, %v5226_v20  ;;  %v8306_v44 = vor.u32 %v9096_v50, %v8305_v59 }
 0x439   : > { %v5012_v15 = vpop.f32.mrf.mxu2  ;;  %v5130_v9 = vpop.f32.mrf.mxu3  ;;  %6047 = vmatpush.bf16.msrb.mxu3 %v8394_v28  ;;  %v8371_v28 = vld [vmem:[%s12794_s7 + $0x48] sm:$0xf0] }
 0x43a   : > { %v5018_v0 = vadd.f32 %v5012_v15, %v4890_v62  ;;  %v9098_v15 = vld [vmem:[%s12794_s7 + $0xd4] sm:$0xf0]  ;;  %v8374_v40 = vor.u32 %v9079_v23, %v8371_v28 }
 0x43c   : > { %v5679_v47 = vpop.f32.mrf.mxu0  ;;  %v5136_v38 = vadd.f32 %v5130_v9, %v5018_v0  ;;  %v9097_v9 = vld [vmem:[%s12794_s7 + $0xd4] sm:$0xf] }
 0x43e   : > { %v5227_v32 = vadd.f32 %v5221_v54, %v5136_v38  ;;  %v5348_v39 = vpop.f32.mrf.mxu1  ;;  %v8313_v54 = vld [vmem:[%s12794_s7 + $0xd0] sm:$0xf] }
 0x440   : > { %v5354_v48 = vadd.f32 %v5348_v39, %v5227_v32  ;;  %v9080_v39 = vld [vmem:[%s12794_s7 + $0x44] sm:$0xf0] }
 0x441   : > { %v5459_v6 = vpop.f32.mrf.mxu2  ;;  %v5550_v36 = vpop.f32.mrf.mxu3  ;;  %v8370_v29 = vor.u32 %v9080_v39, %v8369_v56  ;;  %v9116_v39 = vld [vmem:[%s12794_s7 + $0x164] sm:$0xf0] }
 0x442   : > { %v5469_v58 = vadd.f32 %v5459_v6, %v5351_v14  ;;  %v9084_v14 = vld [vmem:[%s12794_s7 + $0x64] sm:$0xf0]  ;;  %v9083_v6 = vld [vmem:[%s12794_s7 + $0x64] sm:$0xf] }
 0x444   : > { %v5560_v16 = vadd.f32 %v5550_v36, %v5469_v58  ;;  %v5682_v35 = vpop.f32.mrf.mxu0  ;;  %v8314_v58 = vor.u32 %v9098_v15, %v8313_v54  ;;  %v8390_v36 = vor.u32 %v9083_v6, %v8387_v3  ;;  %v8289_v54 = vld [vmem:[%s12794_s7 + $0xa0] sm:$0xf]  ;;  %v9092_v15 = vld [vmem:[%s12794_s7 + $0xa4] sm:$0xf0]  ;;  %v9077_v6 = vld [vmem:[%s12794_s7 + $0x34] sm:$0xf] }
 0x445   : > { %v8290_v13 = vor.u32 %v9092_v15, %v8289_v54  ;;  %v8363_v3 = vld [vmem:[%s12794_s7 + $0x38] sm:$0xf0]  ;;  %v9071_v54 = vld [vmem:[%s12794_s7 + $0x4] sm:$0xf]  ;;  %v8339_v15 = vld [vmem:[%s12794_s7 + $0x8] sm:$0xf0] }
 0x446   : > { %v5687_v21 = vadd.f32 %v5677_v22, %v5560_v16  ;;  %v8386_v22 = vor.u32 %v9084_v14, %v8385_v34  ;;  %v8318_v16 = vor.u32 %v9097_v9, %v8315_v37  ;;  %5919 = vmatpush.bf16.msrb.mxu1 %v8314_v58  ;;  %6062 = vmatpush.bf16.msra.mxu0 %v8390_v36  ;;  %v8291_v9 = vld [vmem:[%s12794_s7 + $0xa8] sm:$0xf0]  ;;  %v8361_v37 = vld [vmem:[%s12794_s7 + $0x30] sm:$0xf]  ;;  %v9078_v34 = vld [vmem:[%s12794_s7 + $0x34] sm:$0xf0] }
 0x447   : > { %v8362_v14 = vor.u32 %v9078_v34, %v8361_v37  ;;  %v8281_v58 = vld [vmem:[%s12794_s7 + $0x90] sm:$0xf]  ;;  %v9134_v34 = vld [vmem:[%s12794_s7 + $0x1f4] sm:$0xf0] }
 0x448   : > { %v5694_v53 = vadd.f32 %v11715_v11, %v5687_v21  ;;  %6048 = vmatpush.bf16.msrb.mxu3 %v8386_v22  ;;  %5933 = vmatpush.bf16.msrb.mxu2 %v8318_v16  ;;  %v8521_v37 = vld [vmem:[%s12794_s7 + $0x1f0] sm:$0xf] }
 0x449   : > { %v5461_v17 = vpop.f32.mrf.mxu2  ;;  %v5552_v18 = vpop.f32.mrf.mxu3 }
 0x44a   : > { %v5470_v26 = vadd.f32 %v5461_v17, %v5352_v60  ;;  %v5698_v45 = vmax.f32 %v5694_v53, 0.0  ;;  %5920 = vmatpush.bf16.msrb.mxu1 %v8306_v44 }
 0x44c   : > { %v5561_v31 = vadd.f32 %v5552_v18, %v5470_v26 }
 0x44e   : > { %v5688_v63 = vadd.f32 %v5679_v47, %v5561_v31  ;;  %v8307_v31 = vld [vmem:[%s12794_s7 + $0xc8] sm:$0xf0] }
 0x44f   : > { %v8310_v0 = vor.u32 %v9095_v2, %v8307_v31  ;;  %v9076_v31 = vld [vmem:[%s12794_s7 + $0x24] sm:$0xf0] }
 0x450   : > { %v5695_v8 = vadd.f32 %v11715_v11, %v5688_v63  ;;  %v5684_v63 = vpop.f32.mrf.mxu0 }
 0x451   : > { %v5464_v25 = vpop.f32.mrf.mxu2  ;;  %v5555_v51 = vpop.f32.mrf.mxu3  ;;  %5934 = vmatpush.bf16.msrb.mxu2 %v8310_v0  ;;  %v9088_v0 = vld [vmem:[%s12794_s7 + $0x84] sm:$0xf0] }
 0x452   : > { %v5699_v24 = vmax.f32 %v5695_v8, 0.0  ;;  %v5471_v52 = vadd.f32 %v5464_v25, %v5353_v57  ;;  %v8377_v25 = vld [vmem:[%s12794_s7 + $0x50] sm:$0xf] }
 0x454   : > { %v9511_v43 = vpack.c.bf16 %v5699_v24, %v5698_v45  ;;  %v5562_v4 = vadd.f32 %v5555_v51, %v5471_v52  ;;  %v8379_v52 = vld [vmem:[%s12794_s7 + $0x58] sm:$0xf0] }
 0x455   : > { %v8382_v32 = vor.u32 %v9081_v46, %v8379_v52  ;;  %5935 = vmatpush.bf16.msrb.mxu2 %v8302_v1  ;;  %v8459_v46 = vld [vmem:[%s12794_s7 + $0x178] sm:$0xf0]  ;;  %v9074_v52 = vld [vmem:[%s12794_s7 + $0x14] sm:$0xf0] }
 0x456   : > { %9512 = vst [vmem:[#allocation6] sm:$0xff] %v9511_v43   ;;  %v5689_v26 = vadd.f32 %v5682_v35, %v5562_v4  ;;  %v9094_v35 = vld [vmem:[%s12794_s7 + $0xb4] sm:$0xf0]  ;;  %v9091_v4 = vld [vmem:[%s12794_s7 + $0xa4] sm:$0xf] }
 0x457   : > { %v8298_v30 = vor.u32 %v9094_v35, %v8297_v33  ;;  %6063 = vmatpush.bf16.msra.mxu0 %v8382_v32  ;;  %v9073_v35 = vld [vmem:[%s12794_s7 + $0x14] sm:$0xf] }
 0x458   : > { %v5696_v8 = vadd.f32 %v11715_v11, %v5689_v26  ;;  %v8283_v26 = vld [vmem:[%s12794_s7 + $0x98] sm:$0xf0]  ;;  %v8350_v56 = vor.u32 %v9073_v35, %v8347_v49  ;;  %v8497_v49 = vld [vmem:[%s12794_s7 + $0x1c0] sm:$0xf] }
 0x459   : > { %v5466_v60 = vpop.f32.mrf.mxu2  ;;  %v5557_v62 = vpop.f32.mrf.mxu3  ;;  %5921 = vmatpush.bf16.msrb.mxu1 %v8298_v30  ;;  %v8449_v30 = vld [vmem:[%s12794_s7 + $0x160] sm:$0xf] }
 0x45a   : > { %v5472_v18 = vadd.f32 %v5466_v60, %v5354_v48  ;;  %v5700_v43 = vmax.f32 %v5696_v8, 0.0  ;;  %v8294_v48 = vor.u32 %v9091_v4, %v8291_v9  ;;  %v8450_v28 = vor.u32 %v9116_v39, %v8449_v30  ;;  %v8499_v39 = vld [vmem:[%s12794_s7 + $0x1c8] sm:$0xf0] }
 0x45b   : > { %6064 = vmatpush.bf16.msra.mxu0 %v8374_v40  ;;  %v9072_v40 = vld [vmem:[%s12794_s7 + $0x4] sm:$0xf0] }
 0x45c   : > { %v5563_v53 = vadd.f32 %v5557_v62, %v5472_v18  ;;  %v8353_v18 = vld [vmem:[%s12794_s7 + $0x20] sm:$0xf]  ;;  %5936 = vmatpush.bf16.msrb.mxu2 %v8294_v48  ;;  %v9075_v62 = vld [vmem:[%s12794_s7 + $0x24] sm:$0xf] }
 0x45d   : > { %v5710_v41 = vld [vmem:[#allocation6] sm:$0x7]  ;;  %v5711_v12 = vld [vmem:[#allocation6 + $0x4] sm:$0x7]  ;;  %5922 = vmatpush.bf16.msrb.mxu1 %v8290_v13  ;;  %v8354_v44 = vor.u32 %v9076_v31, %v8353_v18  ;;  %v9132_v18 = vld [vmem:[%s12794_s7 + $0x1e4] sm:$0xf0] }
 0x45e   : > { %v5712_v17 = vunpack.c.l.bf16 %v5710_v41  ;;  %v5713_v21 = vunpack.c.l.bf16 %v5711_v12  ;;  %v5690_v45 = vadd.f32 %v5684_v63, %v5563_v53  ;;  %v8366_v41 = vor.u32 %v9077_v6, %v8363_v3  ;;  %v9090_v12 = vld [vmem:[%s12794_s7 + $0x94] sm:$0xf0]  ;;  %v8355_v53 = vld [vmem:[%s12794_s7 + $0x28] sm:$0xf0]  ;;  %v8273_v63 = vld [vmem:[%s12794_s7 + $0x80] sm:$0xf] }
 0x45f   : > { %v8522_v6 = vor.u32 %v9134_v34, %v8521_v37  ;;  %v9133_v3 = vld [vmem:[%s12794_s7 + $0x1f4] sm:$0xf]  ;;  %v8515_v31 = vld [vmem:[%s12794_s7 + $0x1e8] sm:$0xf0] }
 0x460   : > { %v5714_v47 = vmax.f32 %v5712_v17, %v5713_v21  ;;  %v5697_v38 = vadd.f32 %v11715_v11, %v5690_v45  ;;  %v8378_v11 = vor.u32 %v9082_v7, %v8377_v25  ;;  %v8282_v17 = vor.u32 %v9090_v12, %v8281_v58  ;;  %v9089_v21 = vld [vmem:[%s12794_s7 + $0x94] sm:$0xf]  ;;  %6065 = vmatpush.bf16.msra.mxu0 %v8366_v41  ;;  %v8523_v58 = vld [vmem:[%s12794_s7 + $0x1f8] sm:$0xf0]  ;;  %v9114_v41 = vld [vmem:[%s12794_s7 + $0x154] sm:$0xf0] }
 0x461   : > { %v8286_v2 = vor.u32 %v9089_v21, %v8283_v26  ;;  %v8358_v45 = vor.u32 %v9075_v62, %v8355_v53  ;;  %v9113_v12 = vld [vmem:[%s12794_s7 + $0x154] sm:$0xf]  ;;  %v8513_v21 = vld [vmem:[%s12794_s7 + $0x1e0] sm:$0xf] }
 0x462   : > { %v5715_v20 = vpack.c.bf16 %v5714_v47, %v5714_v47  ;;  %v5701_v42 = vmax.f32 %v5697_v38, 0.0  ;;  %6049 = vmatpush.bf16.msrb.mxu3 %v8378_v11  ;;  %v8275_v38 = vld [vmem:[%s12794_s7 + $0x88] sm:$0xf0]  ;;  %5923 = vmatpush.bf16.msrb.mxu1 %v8282_v17  ;;  %v8345_v11 = vld [vmem:[%s12794_s7 + $0x10] sm:$0xf] }
 0x463   : > { %5937 = vmatpush.bf16.msrb.mxu2 %v8286_v2  ;;  %v8346_v32 = vor.u32 %v9074_v52, %v8345_v11  ;;  %v8443_v17 = vld [vmem:[%s12794_s7 + $0x158] sm:$0xf0]  ;;  %v9131_v2 = vld [vmem:[%s12794_s7 + $0x1e4] sm:$0xf]  ;;  %v8433_v53 = vld [vmem:[%s12794_s7 + $0x140] sm:$0xf] }
 0x464   : > { %v5716_v24 = vunpack.c.l.bf16 %v5715_v20  ;;  %v9516_v61 = vpack.c.bf16 %v5701_v42, %v5700_v43  ;;  %v8274_v43 = vor.u32 %v9088_v0, %v8273_v63  ;;  %v8457_v42 = vld [vmem:[%s12794_s7 + $0x170] sm:$0xf]  ;;  %6066 = vmatpush.bf16.msra.mxu0 %v8358_v45  ;;  %v8446_v26 = vor.u32 %v9113_v12, %v8443_v17  ;;  %v9112_v63 = vld [vmem:[%s12794_s7 + $0x144] sm:$0xf0]  ;;  %v8435_v45 = vld [vmem:[%s12794_s7 + $0x148] sm:$0xf0] }
 0x465   : > { %v9125_v34 = vld [vmem:[%s12794_s7 + $0x1b4] sm:$0xf]  ;;  %v8411_v12 = vld [vmem:[%s12794_s7 + $0x118] sm:$0xf0]  ;;  %v5751_v17 = vld [vmem:[#allocation7 + $0x8] sm:$0x3] }
 0x466   : > { %v5718_v57 = vrot.slane %v5716_v24, 2  ;;  %9644 = vst [vmem:[#allocation6 + $0x8] sm:$0xff] %v9516_v61   ;;  %v8263_v51 = vrot.slane %v5716_v24, 9  ;;  %v8264_v19 = vrot.slane %v5716_v24, 11  ;;  %6050 = vmatpush.bf16.msrb.mxu3 %v8370_v29  ;;  %v9087_v24 = vld [vmem:[%s12794_s7 + $0x84] sm:$0xf]  ;;  %5924 = vmatpush.bf16.msrb.mxu1 %v8274_v43 }
 0x467   : > { %v9117_v61 = vld [vmem:[%s12794_s7 + $0x174] sm:$0xf]  ;;  %v8278_v25 = vor.u32 %v9087_v24, %v8275_v38  ;;  %v8337_v29 = vld [vmem:[%s12794_s7] sm:$0xf]  ;;  %v8505_v24 = vld [vmem:[%s12794_s7 + $0x1d0] sm:$0xf] }
 0x468   : > { %v5722_v5 = vrot.slane %v5718_v57, 7  ;;  %v8338_v9 = vor.u32 %v9072_v40, %v8337_v29  ;;  %6067 = vmatpush.bf16.msra.mxu0 %v8350_v56  ;;  %v9130_v43 = vld [vmem:[%s12794_s7 + $0x1d4] sm:$0xf0]  ;;  %v9127_v56 = vld [vmem:[%s12794_s7 + $0x1c4] sm:$0xf] }
 0x469   : > { %5938 = vmatpush.bf16.msrb.mxu2 %v8278_v25  ;;  %v8425_v25 = vld [vmem:[%s12794_s7 + $0x130] sm:$0xf]  ;;  %v9108_v29 = vld [vmem:[%s12794_s7 + $0x124] sm:$0xf0]  ;;  %v9107_v40 = vld [vmem:[%s12794_s7 + $0x124] sm:$0xf] }
 0x46a   : > { %v5724_v10 = vrot.slane %v5722_v5, 2  ;;  %v5723_v22 = vsel %vm10138_vm6, %v8263_v51, %v5722_v5  ;;  %6051 = vmatpush.bf16.msrb.mxu3 %v8362_v14  ;;  %v9118_v5 = vld [vmem:[%s12794_s7 + $0x174] sm:$0xf0]  ;;  %v8462_v51 = vor.u32 %v9117_v61, %v8459_v46  ;;  %v8342_v14 = vor.u32 %v9071_v54, %v8339_v15  ;;  %v8419_v54 = vld [vmem:[%s12794_s7 + $0x128] sm:$0xf0] }
 0x46b   : > { %v8265_v20 = vrot.slane %v5723_v22, 9  ;;  %v8458_v7 = vor.u32 %v9118_v5, %v8457_v42  ;;  %v9129_v42 = vld [vmem:[%s12794_s7 + $0x1d4] sm:$0xf]  ;;  %v8507_v5 = vld [vmem:[%s12794_s7 + $0x1d8] sm:$0xf0] }
 0x46c   : > { %v5726_v16 = vsel %vm10138_vm6, %v5724_v10, %v8264_v19  ;;  %v9115_v10 = vld [vmem:[%s12794_s7 + $0x164] sm:$0xf]  ;;  %v8451_v19 = vld [vmem:[%s12794_s7 + $0x168] sm:$0xf0]  ;;  %6068 = vmatpush.bf16.msra.mxu0 %v8342_v14  ;;  %v8510_v35 = vor.u32 %v9129_v42, %v8507_v5  ;;  %v8475_v42 = vld [vmem:[%s12794_s7 + $0x198] sm:$0xf0] }
 0x46d   : > { %v5754_v36 = vld [vmem:[#allocation6 + $0x8] sm:$0x7]  ;;  %v5755_v59 = vld [vmem:[#allocation6 + $0xc] sm:$0x7]  ;;  %v8266_v8 = vrot.slane %v5726_v16, 9  ;;  %v5735_v23 = vmax.f32 %v5723_v22, %v8265_v20  ;;  %6195 = vmatpush.bf16.msra.mxu1 %v8458_v7  ;;  %6209 = vmatpush.bf16.msra.mxu2 %v8462_v51  ;;  %v8454_v13 = vor.u32 %v9115_v10, %v8451_v19  ;;  %v8518_v20 = vor.u32 %v9131_v2, %v8515_v31 }
 0x46e   : > { %v5756_v60 = vunpack.c.l.bf16 %v5754_v36  ;;  %v5757_v50 = vunpack.c.l.bf16 %v5755_v59  ;;  %6052 = vmatpush.bf16.msrb.mxu3 %v8354_v44  ;;  %v8441_v22 = vld [vmem:[%s12794_s7 + $0x150] sm:$0xf]  ;;  %v8526_v59 = vor.u32 %v9133_v3, %v8523_v58  ;;  %v8514_v44 = vor.u32 %v9132_v18, %v8513_v21  ;;  %v9110_v7 = vld [vmem:[%s12794_s7 + $0x134] sm:$0xf0]  ;;  %v9109_v51 = vld [vmem:[%s12794_s7 + $0x134] sm:$0xf] }
 0x46f   : > { %v5736_v27 = vmax.f32 %v5726_v16, %v8266_v8  ;;  %v5737_v16 = vpack.c.bf16 %v5735_v23, %v5735_v23  ;;  %v9111_v8 = vld [vmem:[%s12794_s7 + $0x144] sm:$0xf]  ;;  %v8409_v3 = vld [vmem:[%s12794_s7 + $0x110] sm:$0xf]  ;;  %v9106_v58 = vld [vmem:[%s12794_s7 + $0x114] sm:$0xf0] }
 0x470   : > { %v5758_v47 = vmax.f32 %v5756_v60, %v5757_v50  ;;  %v8442_v50 = vor.u32 %v9114_v41, %v8441_v22  ;;  %6363 = vmatpush.bf16.msrb.mxu0 %v8526_v59  ;;  %v8438_v61 = vor.u32 %v9111_v8, %v8435_v45  ;;  %v9105_v41 = vld [vmem:[%s12794_s7 + $0x114] sm:$0xf]  ;;  %v8410_v21 = vor.u32 %v9106_v58, %v8409_v3  ;;  %v8483_v18 = vld [vmem:[%s12794_s7 + $0x1a8] sm:$0xf0] }
 0x471   : > { %v5738_v48 = vpack.c.bf16 %v5736_v27, %v5736_v27  ;;  %6196 = vmatpush.bf16.msra.mxu1 %v8450_v28  ;;  %6210 = vmatpush.bf16.msra.mxu2 %v8454_v13  ;;  %v5741_v38 = vunpack.c.l.b16 %v5737_v16  ;;  %v8426_v27 = vor.u32 %v9110_v7, %v8425_v25  ;;  %v8498_v28 = vor.u32 %v9128_v55, %v8497_v49  ;;  %v8489_v13 = vld [vmem:[%s12794_s7 + $0x1b0] sm:$0xf]  ;;  %v8481_v16 = vld [vmem:[%s12794_s7 + $0x1a0] sm:$0xf]  ;;  %v8403_v8 = vld [vmem:[%s12794_s7 + $0x108] sm:$0xf0] }
 0x472   : > { %v5759_v57 = vpack.c.bf16 %v5758_v47, %v5758_v47  ;;  %6053 = vmatpush.bf16.msrb.mxu3 %v8346_v32  ;;  %v8427_v32 = vld [vmem:[%s12794_s7 + $0x138] sm:$0xf0]  ;;  %v9772_v25 = vld [vmem:[#allocation7] sm:$0x8] }
 0x473   : > { %v5742_v62 = vunpack.c.l.b16 %v5738_v48  ;;  %v5743_v30 = vrot.slane %v5741_v38, 7  ;;  %v8430_v19 = vor.u32 %v9109_v51, %v8427_v32  ;;  %v8491_v48 = vld [vmem:[%s12794_s7 + $0x1b8] sm:$0xf0]  ;;  %v9122_v38 = vld [vmem:[%s12794_s7 + $0x194] sm:$0xf0] }
 0x474   : > { %v11911_v33 = vunpack.c.l.bf16 %v5759_v57  ;;  %v8434_v57 = vor.u32 %v9112_v63, %v8433_v53  ;;  %6364 = vmatpush.bf16.msrb.mxu0 %v8518_v20  ;;  %v9103_v20 = vld [vmem:[%s12794_s7 + $0x104] sm:$0xf]  ;;  %v8587_v32 = vld [vmem:[%s12794_s7 + $0x278] sm:$0xf0]  ;;  %v9120_v49 = vld [vmem:[%s12794_s7 + $0x184] sm:$0xf0] }
 0x475   : > { %6197 = vmatpush.bf16.msra.mxu1 %v8442_v50  ;;  %6211 = vmatpush.bf16.msra.mxu2 %v8446_v26  ;;  %v5744_v46 = vrot.slane %v5742_v62, 6  ;;  %v9124_v50 = vld [vmem:[%s12794_s7 + $0x1a4] sm:$0xf0]  ;;  %v9123_v26 = vld [vmem:[%s12794_s7 + $0x1a4] sm:$0xf]  ;;  %v8414_v62 = vor.u32 %v9105_v41, %v8411_v12 }
 0x476   : > { %v5762_v1 = vrot.slane %v11911_v33, 2  ;;  %v8268_v60 = vrot.slane %v11911_v33, 11  ;;  %6054 = vmatpush.bf16.msrb.mxu3 %v8338_v9  ;;  %v8267_v47 = vrot.slane %v11911_v33, 9  ;;  %v8506_v33 = vor.u32 %v9130_v43, %v8505_v24  ;;  %v9126_v9 = vld [vmem:[%s12794_s7 + $0x1b4] sm:$0xf0] }
 0x477   : > { %v5745_v15 = vsel %vm1148_vm1, %v5744_v46, %v5743_v30  ;;  %v8490_v59 = vor.u32 %v9126_v9, %v8489_v13  ;;  %v8486_v45 = vor.u32 %v9123_v26, %v8483_v18  ;;  %v8473_v24 = vld [vmem:[%s12794_s7 + $0x190] sm:$0xf]  ;;  %v9121_v43 = vld [vmem:[%s12794_s7 + $0x194] sm:$0xf]  ;;  %v9146_v12 = vld [vmem:[%s12794_s7 + $0x254] sm:$0xf0] }
 0x478   : > { %v5766_v4 = vrot.slane %v5762_v1, 7  ;;  %v8417_v1 = vld [vmem:[%s12794_s7 + $0x120] sm:$0xf]  ;;  %6365 = vmatpush.bf16.msrb.mxu0 %v8510_v35  ;;  %v5746_v22 = vpack.c.b16 %v5745_v15, %v5745_v15  ;;  %v8474_v46 = vor.u32 %v9122_v38, %v8473_v24  ;;  %v8478_v51 = vor.u32 %v9121_v43, %v8475_v42  ;;  %v8579_v15 = vld [vmem:[%s12794_s7 + $0x268] sm:$0xf0] }
 0x479   : > { %6198 = vmatpush.bf16.msra.mxu1 %v8434_v57  ;;  %6212 = vmatpush.bf16.msra.mxu2 %v8438_v61  ;;  %v8418_v37 = vor.u32 %v9108_v29, %v8417_v1  ;;  %v8406_v61 = vor.u32 %v9103_v20, %v8403_v8  ;;  %v8465_v35 = vld [vmem:[%s12794_s7 + $0x180] sm:$0xf]  ;;  %v8569_v41 = vld [vmem:[%s12794_s7 + $0x250] sm:$0xf]  ;;  %v8571_v18 = vld [vmem:[%s12794_s7 + $0x258] sm:$0xf0] }
 0x47a   : > { %v5768_v36 = vrot.slane %v5766_v4, 2  ;;  %6349 = vmatpush.bf16.msra.mxu3 %v8522_v6  ;;  %v5767_v11 = vsel %vm10138_vm6, %v8267_v47, %v5766_v4  ;;  %v8502_v4 = vor.u32 %v9127_v56, %v8499_v39  ;;  %v8422_v6 = vor.u32 %v9107_v40, %v8419_v54  ;;  %v8401_v47 = vld [vmem:[%s12794_s7 + $0x100] sm:$0xf]  ;;  %v9119_v56 = vld [vmem:[%s12794_s7 + $0x184] sm:$0xf] }
 0x47b   : > { %v8269_v10 = vrot.slane %v5767_v11, 9  ;;  %v8467_v39 = vld [vmem:[%s12794_s7 + $0x188] sm:$0xf0]  ;;  %v8577_v29 = vld [vmem:[%s12794_s7 + $0x260] sm:$0xf]  ;;  %v8570_v20 = vor.u32 %v9146_v12, %v8569_v41 }
 0x47c   : > { %v5770_v0 = vsel %vm10138_vm6, %v5768_v36, %v8268_v60  ;;  %6366 = vmatpush.bf16.msrb.mxu0 %v8502_v4  ;;  %v8494_v60 = vor.u32 %v9125_v34, %v8491_v48  ;;  %vm5749_vm6 = vsmask.f32 1282  ;;  %v9148_v40 = vld [vmem:[%s12794_s7 + $0x264] sm:$0xf0]  ;;  %v9147_v54 = vld [vmem:[%s12794_s7 + $0x264] sm:$0xf]  ;;  %v8470_v4 = vor.u32 %v9119_v56, %v8467_v39 }
 0x47d   : > { %v8270_v52 = vrot.slane %v5770_v0, 9  ;;  %6199 = vmatpush.bf16.msra.mxu1 %v8426_v27  ;;  %v5779_v14 = vmax.f32 %v5767_v11, %v8269_v10  ;;  %6213 = vmatpush.bf16.msra.mxu2 %v8430_v19  ;;  %vm12084_vm7 = vmand %vm5748_vm3, %vm5749_vm6  ;;  %v8585_v11 = vld [vmem:[%s12794_s7 + $0x270] sm:$0xf]  ;;  %v9856_v27 = vld [vmem:[#allocation7] sm:$0xf0]  }
 0x47e   : > { %6350 = vmatpush.bf16.msra.mxu3 %v8514_v44  ;;  %v9104_v44 = vld [vmem:[%s12794_s7 + $0x104] sm:$0xf0]  ;;  %v5752_v53 = vsel %vm12084_vm7, %v5746_v22, %v5751_v17  ;;  %v9773_v13 = vor.u32 %v9856_v27, %v9772_v25  ;;  %v9166_v34 = vld [vmem:[%s12794_s7 + $0x2f4] sm:$0xf0]  ;;  %v9165_v48 = vld [vmem:[%s12794_s7 + $0x2f4] sm:$0xf] }
 0x47f   : > { %v5780_v23 = vmax.f32 %v5770_v0, %v8270_v52  ;;  %v5781_v31 = vpack.c.bf16 %v5779_v14, %v5779_v14  ;;  %v8482_v0 = vor.u32 %v9124_v50, %v8481_v16  ;;  %5753 = vst [vmem:[#allocation7 + $0x8] sm:$0x3] %v5752_v53  ;;  %v8402_v57 = vor.u32 %v9104_v44, %v8401_v47  ;;  %v9150_v52 = vld [vmem:[%s12794_s7 + $0x274] sm:$0xf0]  ;;  %v8651_v22 = vld [vmem:[%s12794_s7 + $0x2f8] sm:$0xf0] }
 0x480   : > { %6367 = vmatpush.bf16.msrb.mxu0 %v8494_v60  ;;  %v8586_v19 = vor.u32 %v9150_v52, %v8585_v11  ;;  %v5950_v14 = vshrl.u32 %v9773_v13, 16  ;;  %v9145_v16 = vld [vmem:[%s12794_s7 + $0x254] sm:$0xf]  ;;  %v9164_v47 = vld [vmem:[%s12794_s7 + $0x2e4] sm:$0xf0] }
 0x481   : > { %v5782_v36 = vpack.c.bf16 %v5780_v23, %v5780_v23  ;;  %6200 = vmatpush.bf16.msra.mxu1 %v8418_v37  ;;  %6214 = vmatpush.bf16.msra.mxu2 %v8422_v6  ;;  %v5785_v5 = vunpack.c.l.b16 %v5781_v31  ;;  %v8466_v23 = vor.u32 %v9120_v49, %v8465_v35  ;;  %v8649_v37 = vld [vmem:[%s12794_s7 + $0x2f0] sm:$0xf]  ;;  %v5953_v6 = vshll.u32 %v9773_v13, 16  ;;  %v9163_v44 = vld [vmem:[%s12794_s7 + $0x2e4] sm:$0xf] }
 0x482   : > { %6351 = vmatpush.bf16.msra.mxu3 %v8506_v33  ;;  %v9149_v33 = vld [vmem:[%s12794_s7 + $0x274] sm:$0xf]  ;;  %v5952_v50 = vrot.slane %v5950_v14, 3  ;;  %v8650_v31 = vor.u32 %v9166_v34, %v8649_v37  ;;  %v8643_v8 = vld [vmem:[%s12794_s7 + $0x2e8] sm:$0xf0]  ;;  %v8574_v38 = vor.u32 %v9145_v16, %v8571_v18 }
 0x483   : > { %v5786_v63 = vunpack.c.l.b16 %v5782_v36  ;;  %v5787_v55 = vrot.slane %v5785_v5, 7  ;;  %v8590_v1 = vor.u32 %v9149_v33, %v8587_v32  ;;  %v8578_v36 = vor.u32 %v9148_v40, %v8577_v29  ;;  %v9144_v43 = vld [vmem:[%s12794_s7 + $0x244] sm:$0xf0]  ;;  %v8633_v33 = vld [vmem:[%s12794_s7 + $0x2d0] sm:$0xf] }
 0x484   : > { %6368 = vmatpush.bf16.msrb.mxu0 %v8486_v45  ;;  %v5955_v17 = vrot.slane %v5953_v6, 4  ;;  %v5792_v45 = vld [vmem:[#allocation7 + $0xc] sm:$0x3]  ;;  %v8646_v52 = vor.u32 %v9163_v44, %v8643_v8  ;;  %v9142_v56 = vld [vmem:[%s12794_s7 + $0x234] sm:$0xf0] }
 0x485   : > { %6201 = vmatpush.bf16.msra.mxu1 %v8410_v21  ;;  %6215 = vmatpush.bf16.msra.mxu2 %v8414_v62  ;;  %v5788_v7 = vrot.slane %v5786_v63, 6  ;;  %v8641_v62 = vld [vmem:[%s12794_s7 + $0x2e0] sm:$0xf]  ;;  %v9161_v49 = vld [vmem:[%s12794_s7 + $0x2d4] sm:$0xf] }
 0x486   : > { %6352 = vmatpush.bf16.msra.mxu3 %v8498_v28  ;;  %v5797_v30 = vld [vmem:[#allocation7 + $0x4] sm:$0xff]   ;;  %v5956_v53 = vor.u32 %v5955_v17, %v5952_v50  ;;  %v8642_v2 = vor.u32 %v9164_v47, %v8641_v62  ;;  %v9141_v39 = vld [vmem:[%s12794_s7 + $0x234] sm:$0xf]  ;;  %v9159_v29 = vld [vmem:[%s12794_s7 + $0x2c4] sm:$0xf] }
 0x487   : > { %v5834_v10 = vunpack.c.h.b16 %v5797_v30  ;;  %v5789_v28 = vsel %vm1148_vm1, %v5788_v7, %v5787_v55  ;;  %5925 = vmatmul.bf16.vlgmr.msrb.gmra.mxu1 %v5797_v30  ;;  %5939 = vmatmul.bf16.vlgmr.msrb.gmra.mxu2 %v5797_v30  ;;  %v12187_v24 = vld [vmem:[#allocation7 + $0x4] sm:$0xff]   ;;  %v9143_v7 = vld [vmem:[%s12794_s7 + $0x244] sm:$0xf]  ;;  %v8635_v55 = vld [vmem:[%s12794_s7 + $0x2d8] sm:$0xf0]  ;;  %vm7210_vm1 = vcmask 8192  }
 0x488   : > { %6369 = vmatpush.bf16.msrb.mxu0 %v8478_v51  ;;  %v5790_v60 = vpack.c.b16 %v5789_v28, %v5789_v28  ;;  %v6098_v5 = vunpack.c.h.b16 %v12187_v24  ;;  %v9162_v51 = vld [vmem:[%s12794_s7 + $0x2d4] sm:$0xf0]  ;;  %v8553_v30 = vld [vmem:[%s12794_s7 + $0x230] sm:$0xf]  ;;  %v8638_v28 = vor.u32 %v9161_v49, %v8635_v55  ;;  %v8627_v40 = vld [vmem:[%s12794_s7 + $0x2c8] sm:$0xf0] }
 0x489   : > { %6202 = vmatpush.bf16.msra.mxu1 %v8402_v57  ;;  %6216 = vmatpush.bf16.msra.mxu2 %v8406_v61  ;;  %v5948_v9 = vpack.c.b16 %v5834_v10, %v5834_v10  ;;  %v8561_v57 = vld [vmem:[%s12794_s7 + $0x240] sm:$0xf]  ;;  %v6227_v61 = vld [vmem:[#allocation7 + $0x4] sm:$0x8]  ;;  %v8555_v10 = vld [vmem:[%s12794_s7 + $0x238] sm:$0xf0]  ;;  %v8630_v12 = vor.u32 %v9159_v29, %v8627_v40 }
 0x48a   : > { %6353 = vmatpush.bf16.msra.mxu3 %v8490_v59  ;;  %v8582_v59 = vor.u32 %v9147_v54, %v8579_v15  ;;  %v5793_v42 = vsel %vm12084_vm7, %v5790_v60, %v5792_v45  ;;  %v6247_v11 = vunpack.c.l.b16 %v6227_v61  ;;  %v8562_v32 = vor.u32 %v9144_v43, %v8561_v57  ;;  %v8545_v54 = vld [vmem:[%s12794_s7 + $0x220] sm:$0xf]  ;;  %v9139_v14 = vld [vmem:[%s12794_s7 + $0x224] sm:$0xf]  ;;  %v8547_v6 = vld [vmem:[%s12794_s7 + $0x228] sm:$0xf0] }
 0x48b   : > { %v5958_v3 = vshrl.u32 %v5948_v9, 16  ;;  %v5961_v58 = vshll.u32 %v5948_v9, 16  ;;  %5794 = vst [vmem:[#allocation7 + $0xc] sm:$0x3] %v5793_v42  ;;  %v6105_v15 = vshll.u32 %v12187_v24, 16  ;;  %v8558_v13 = vor.u32 %v9141_v39, %v8555_v10 }
 0x48c   : > { %6370 = vmatpush.bf16.msrb.mxu0 %v8470_v4  ;;  %v6249_v27 = vpack.c.b16 %v6098_v5, %v6247_v11  ;;  %v8554_v4 = vor.u32 %v9142_v56, %v8553_v30  ;;  %v9140_v9 = vld [vmem:[%s12794_s7 + $0x224] sm:$0xf0]  ;;  %v9158_v41 = vld [vmem:[%s12794_s7 + $0x2b4] sm:$0xf0]  ;;  %v9157_v17 = vld [vmem:[%s12794_s7 + $0x2b4] sm:$0xf]  ;;  %v8550_v18 = vor.u32 %v9139_v14, %v8547_v6 }
 0x48d   : > { %6479 = vmatpush.bf16.msrb.mxu1 %v8586_v19  ;;  %6493 = vmatpush.bf16.msrb.mxu2 %v8590_v1  ;;  %v5960_v21 = vrot.slane %v5958_v3, 3  ;;  %v5963_v26 = vrot.slane %v5961_v58, 4  ;;  %v8625_v19 = vld [vmem:[%s12794_s7 + $0x2c0] sm:$0xf]  ;;  %v9160_v1 = vld [vmem:[%s12794_s7 + $0x2c4] sm:$0xf0] }
 0x48e   : > { %6354 = vmatpush.bf16.msra.mxu3 %v8482_v0  ;;  %v8654_v0 = vor.u32 %v9165_v48, %v8651_v22  ;;  %v6252_v48 = vshrl.u32 %v6249_v27, 16  ;;  %v6255_v22 = vshll.u32 %v6249_v27, 16  ;;  %v6107_v60 = vrot.slane %v6105_v15, 1  ;;  %v8537_v47 = vld [vmem:[%s12794_s7 + $0x210] sm:$0xf] }
 0x48f   : > { %v5964_v63 = vor.u32 %v5963_v26, %v5960_v21  ;;  %v8619_v21 = vld [vmem:[%s12794_s7 + $0x2b8] sm:$0xf0]  ;;  %v8546_v26 = vor.u32 %v9140_v9, %v8545_v54  ;;  %v9138_v44 = vld [vmem:[%s12794_s7 + $0x214] sm:$0xf0]  ;;  %v9137_v8 = vld [vmem:[%s12794_s7 + $0x214] sm:$0xf] }
 0x490   : > { %v6254_v62 = vrot.slane %v6252_v48, 3  ;;  %v8539_v57 = vld [vmem:[%s12794_s7 + $0x218] sm:$0xf0]  ;;  %v8609_v43 = vld [vmem:[%s12794_s7 + $0x2a0] sm:$0xf] }
 0x491   : > { %6480 = vmatpush.bf16.msrb.mxu1 %v8578_v36  ;;  %6494 = vmatpush.bf16.msrb.mxu2 %v8582_v59  ;;  %v5965_v25 = vsel %vm2475_vm0, %v5956_v53, %v5964_v63  ;;  %v8626_v36 = vor.u32 %v9160_v1, %v8625_v19  ;;  %v8617_v59 = vld [vmem:[%s12794_s7 + $0x2b0] sm:$0xf]  ;;  %v6257_v63 = vrot.slane %v6255_v22, 4  ;;  %v9156_v42 = vld [vmem:[%s12794_s7 + $0x2a4] sm:$0xf0]  ;;  %v8542_v55 = vor.u32 %v9137_v8, %v8539_v57 }
 0x492   : > { %6355 = vmatpush.bf16.msra.mxu3 %v8474_v46  ;;  %v8563_v46 = vld [vmem:[%s12794_s7 + $0x248] sm:$0xf0]  ;;  %6069 = vmatmul.bf16.vlgmr.msra.gmra.mxu0 %v5965_v25  ;;  %v6077_v37 = vld [vmem:[#allocation7 + $0xc] sm:$0x1]  ;;  %v8618_v45 = vor.u32 %v9158_v41, %v8617_v59  ;;  %v9155_v11 = vld [vmem:[%s12794_s7 + $0x2a4] sm:$0xf]  ;;  %v8610_v29 = vor.u32 %v9156_v42, %v8609_v43 }
 0x493   : > { %6055 = vmatmul.bf16.vlgmr.msrb.gmra.mxu3 %v5965_v25  ;;  %6645 = vmatpush.bf16.msra.mxu0 %v8654_v0  ;;  %v8566_v35 = vor.u32 %v9143_v7, %v8563_v46  ;;  %v12250_v34 = vld [vmem:[#allocation7 + $0xc] sm:$0xff]   ;;  %v6099_v3 = vunpack.c.l.b16 %v6077_v37  ;;  %v9135_v30 = vld [vmem:[%s12794_s7 + $0x204] sm:$0xf]  ;;  %v8531_v27 = vld [vmem:[%s12794_s7 + $0x208] sm:$0xf0] }
 0x494   : > { %v12259_v58 = vunpack.c.l.b16 %v12250_v34  ;;  %v6513_v56 = vld [vmem:[#allocation7 + $0x10] sm:$0x1]  ;;  %v8713_v39 = vld [vmem:[%s12794_s7 + $0x370] sm:$0xf]  ;;  %v9181_v19 = vld [vmem:[%s12794_s7 + $0x374] sm:$0xf]  ;;  %v8534_v48 = vor.u32 %v9135_v30, %v8531_v27 }
 0x495   : > { %6481 = vmatpush.bf16.msrb.mxu1 %v8570_v20  ;;  %6495 = vmatpush.bf16.msrb.mxu2 %v8574_v38  ;;  %v6101_v16 = vpack.c.b16 %v6099_v3, %v6099_v3  ;;  %v8622_v38 = vor.u32 %v9157_v17, %v8619_v21  ;;  %v9182_v10 = vld [vmem:[%s12794_s7 + $0x374] sm:$0xf0]  ;;  %v8601_v40 = vld [vmem:[%s12794_s7 + $0x290] sm:$0xf]  ;;  %v6535_v15 = vunpack.c.l.b16 %v6513_v56  ;;  %v8705_v14 = vld [vmem:[%s12794_s7 + $0x360] sm:$0xf] }
 0x496   : > { %6356 = vmatpush.bf16.msra.mxu3 %v8466_v23  ;;  %v8634_v23 = vor.u32 %v9162_v51, %v8633_v33  ;;  %v6250_v50 = vpack.c.b16 %v12259_v58, %v12259_v58  ;;  %v8529_v33 = vld [vmem:[%s12794_s7 + $0x200] sm:$0xf]  ;;  %v9136_v51 = vld [vmem:[%s12794_s7 + $0x204] sm:$0xf0]  ;;  %v9154_v54 = vld [vmem:[%s12794_s7 + $0x294] sm:$0xf0]  ;;  %v8714_v6 = vor.u32 %v9182_v10, %v8713_v39 }
 0x497   : > { %6646 = vmatpush.bf16.msra.mxu0 %v8646_v52  ;;  %v6110_v53 = vshll.u32 %v6101_v16, 16  ;;  %v8611_v52 = vld [vmem:[%s12794_s7 + $0x2a8] sm:$0xf0]  ;;  %v12338_v9 = vld [vmem:[#allocation7 + $0x8] sm:$0xff]   ;;  %v8530_v37 = vor.u32 %v9136_v51, %v8529_v33  ;;  %v9180_v22 = vld [vmem:[%s12794_s7 + $0x364] sm:$0xf0]  ;;  %v8602_v41 = vor.u32 %v9154_v54, %v8601_v40 }
 0x498   : > { %v6260_v0 = vshrl.u32 %v6250_v50, 16  ;;  %v6263_v20 = vshll.u32 %v6250_v50, 16  ;;  %v8707_v59 = vld [vmem:[%s12794_s7 + $0x368] sm:$0xf0]  ;;  %v8593_v16 = vld [vmem:[%s12794_s7 + $0x280] sm:$0xf]  ;;  %v6537_v50 = vpack.c.b16 %v6535_v15, %v6535_v15 }
 0x499   : > { %6482 = vmatpush.bf16.msrb.mxu1 %v8562_v32  ;;  %6496 = vmatpush.bf16.msrb.mxu2 %v8566_v35  ;;  %v6112_v25 = vrot.slane %v6110_v53, 1  ;;  %v6258_v35 = vor.u32 %v6257_v63, %v6254_v62  ;;  %v6541_v17 = vshll.u32 %v12338_v9, 16  ;;  %v9151_v21 = vld [vmem:[%s12794_s7 + $0x284] sm:$0xf]  ;;  %v9197_v62 = vld [vmem:[%s12794_s7 + $0x3f4] sm:$0xf] }
 0x49a   : > { %6631 = vmatpush.bf16.msrb.mxu3 %v8650_v31  ;;  %v6103_v31 = vshrl.u32 %v12187_v24, 16  ;;  %v6262_v7 = vrot.slane %v6260_v0, 3  ;;  %v6265_v46 = vrot.slane %v6263_v20, 4  ;;  %v8697_v20 = vld [vmem:[%s12794_s7 + $0x350] sm:$0xf] }
 0x49b   : > { %6647 = vmatpush.bf16.msra.mxu0 %v8638_v28  ;;  %v8715_v28 = vld [vmem:[%s12794_s7 + $0x378] sm:$0xf0]  ;;  %v6543_v8 = vrot.slane %v6541_v17, 1  ;;  %v9178_v43 = vld [vmem:[%s12794_s7 + $0x354] sm:$0xf0] }
 0x49c   : > { %v6108_v61 = vor.u32 %v6107_v60, %v6103_v31  ;;  %v6266_v49 = vor.u32 %v6265_v46, %v6262_v7  ;;  %v8718_v3 = vor.u32 %v9181_v19, %v8715_v28  ;;  %v9152_v60 = vld [vmem:[%s12794_s7 + $0x284] sm:$0xf0]  ;;  %v9198_v31 = vld [vmem:[%s12794_s7 + $0x3f4] sm:$0xf0]  ;;  %v9177_v42 = vld [vmem:[%s12794_s7 + $0x354] sm:$0xf] }
 0x49d   : > { %6483 = vmatpush.bf16.msrb.mxu1 %v8554_v4  ;;  %6497 = vmatpush.bf16.msrb.mxu2 %v8558_v13  ;;  %v9153_v4 = vld [vmem:[%s12794_s7 + $0x294] sm:$0xf]  ;;  %v8603_v13 = vld [vmem:[%s12794_s7 + $0x298] sm:$0xf0]  ;;  %v8594_v63 = vor.u32 %v9152_v60, %v8593_v16  ;;  %v8769_v7 = vld [vmem:[%s12794_s7 + $0x3e0] sm:$0xf] }
 0x49e   : > { %6632 = vmatpush.bf16.msrb.mxu3 %v8642_v2  ;;  %v8538_v2 = vor.u32 %v9138_v44, %v8537_v47  ;;  %v6113_v32 = vsel %vm2737_vm15, %v6108_v61, %v6112_v25  ;;  %v6267_v1 = vsel %vm2475_vm0, %v6258_v35, %v6266_v49  ;;  %v8779_v47 = vld [vmem:[%s12794_s7 + $0x3f8] sm:$0xf0]  ;;  %v8706_v44 = vor.u32 %v9180_v22, %v8705_v14  ;;  %v9196_v46 = vld [vmem:[%s12794_s7 + $0x3e4] sm:$0xf0]  ;;  %v8689_v35 = vld [vmem:[%s12794_s7 + $0x340] sm:$0xf] }
 0x49f   : > { %6648 = vmatpush.bf16.msra.mxu0 %v8630_v12  ;;  %6203 = vmatmul.bf16.vlgmr.msra.gmra.mxu1 %v6113_v32  ;;  %v8606_v12 = vor.u32 %v9153_v4, %v8603_v13  ;;  %v8782_v57 = vor.u32 %v9197_v62, %v8779_v47  ;;  %v8699_v61 = vld [vmem:[%s12794_s7 + $0x358] sm:$0xf0]  ;;  %v6539_v25 = vshrl.u32 %v12338_v9, 16  ;;  %v6397_v49 = vpack.c.b16 %v12259_v58, %v6098_v5  ;;  %v9175_v30 = vld [vmem:[%s12794_s7 + $0x344] sm:$0xf] }
 0x4a0   : > { %6217 = vmatmul.bf16.vlgmr.msra.gmra.mxu2 %v6113_v32  ;;  %v8702_v33 = vor.u32 %v9177_v42, %v8699_v61  ;;  %v8691_v27 = vld [vmem:[%s12794_s7 + $0x348] sm:$0xf0]  ;;  %v8770_v56 = vor.u32 %v9196_v46, %v8769_v7  ;;  %v8761_v24 = vld [vmem:[%s12794_s7 + $0x3d0] sm:$0xf]  ;;  %v9194_v5 = vld [vmem:[%s12794_s7 + $0x3d4] sm:$0xf0]  ;;  %v9521_v14 = vunpack.c.h.b16 %v12338_v9 }
 0x4a1   : > { %6484 = vmatpush.bf16.msrb.mxu1 %v8546_v26  ;;  %6498 = vmatpush.bf16.msrb.mxu2 %v8550_v18  ;;  %v8595_v26 = vld [vmem:[%s12794_s7 + $0x288] sm:$0xf0]  ;;  %v8777_v18 = vld [vmem:[%s12794_s7 + $0x3f0] sm:$0xf]  ;;  %v6544_v51 = vor.u32 %v6543_v8, %v6539_v25  ;;  %v9193_v58 = vld [vmem:[%s12794_s7 + $0x3d4] sm:$0xf]  ;;  %v8762_v40 = vor.u32 %v9194_v5, %v8761_v24 }
 0x4a2   : > { %6633 = vmatpush.bf16.msrb.mxu3 %v8634_v23  ;;  %v8614_v23 = vor.u32 %v9155_v11, %v8611_v52  ;;  %6371 = vmatmul.bf16.vlgmr.msrb.gmra.mxu0 %v6267_v1  ;;  %v8598_v0 = vor.u32 %v9151_v21, %v8595_v26  ;;  %v9195_v11 = vld [vmem:[%s12794_s7 + $0x3e4] sm:$0xf]  ;;  %v8698_v52 = vor.u32 %v9178_v43, %v8697_v20  ;;  %v8763_v10 = vld [vmem:[%s12794_s7 + $0x3d8] sm:$0xf0]  ;;  %v6663_v19 = vld [vmem:[#allocation7 + $0x8] sm:$0x8] }
 0x4a3   : > { %6649 = vmatpush.bf16.msra.mxu0 %v8622_v38  ;;  %6357 = vmatmul.bf16.vlgmr.msra.gmra.mxu3 %v6267_v1  ;;  %v8778_v38 = vor.u32 %v9198_v31, %v8777_v18  ;;  %v8681_v28 = vld [vmem:[%s12794_s7 + $0x330] sm:$0xf]  ;;  %v9174_v54 = vld [vmem:[%s12794_s7 + $0x334] sm:$0xf0]  ;;  %v9173_v15 = vld [vmem:[%s12794_s7 + $0x334] sm:$0xf]  ;;  %v8766_v13 = vor.u32 %v9193_v58, %v8763_v10 }
 0x4a4   : > { %v8683_v4 = vld [vmem:[%s12794_s7 + $0x338] sm:$0xf0]  ;;  %v9191_v22 = vld [vmem:[%s12794_s7 + $0x3c4] sm:$0xf]  ;;  %v8745_v17 = vld [vmem:[%s12794_s7 + $0x3b0] sm:$0xf] }
 0x4a5   : > { %6485 = vmatpush.bf16.msrb.mxu1 %v8538_v2  ;;  %6499 = vmatpush.bf16.msrb.mxu2 %v8542_v55  ;;  %v8771_v2 = vld [vmem:[%s12794_s7 + $0x3e8] sm:$0xf0]  ;;  %v9176_v55 = vld [vmem:[%s12794_s7 + $0x344] sm:$0xf0]  ;;  %v9171_v60 = vld [vmem:[%s12794_s7 + $0x324] sm:$0xf] }
 0x4a6   : > { %6634 = vmatpush.bf16.msrb.mxu3 %v8626_v36  ;;  %v9179_v36 = vld [vmem:[%s12794_s7 + $0x364] sm:$0xf]  ;;  %v8774_v39 = vor.u32 %v9195_v11, %v8771_v2  ;;  %v9190_v26 = vld [vmem:[%s12794_s7 + $0x3b4] sm:$0xf0]  ;;  %v9189_v18 = vld [vmem:[%s12794_s7 + $0x3b4] sm:$0xf] }
 0x4a7   : > { %6650 = vmatpush.bf16.msra.mxu0 %v8614_v23  ;;  %v8710_v53 = vor.u32 %v9179_v36, %v8707_v59  ;;  %v8694_v23 = vor.u32 %v9175_v30, %v8691_v27  ;;  %v8755_v36 = vld [vmem:[%s12794_s7 + $0x3c8] sm:$0xf0]  ;;  %v8682_v59 = vor.u32 %v9174_v54, %v8681_v28  ;;  %v8747_v31 = vld [vmem:[%s12794_s7 + $0x3b8] sm:$0xf0]  ;;  %v9169_v20 = vld [vmem:[%s12794_s7 + $0x314] sm:$0xf] }
 0x4a8   : > { %v8758_v21 = vor.u32 %v9191_v22, %v8755_v36  ;;  %v8667_v8 = vld [vmem:[%s12794_s7 + $0x318] sm:$0xf0]  ;;  %v9188_v43 = vld [vmem:[%s12794_s7 + $0x3a4] sm:$0xf0]  ;;  %v9187_v42 = vld [vmem:[%s12794_s7 + $0x3a4] sm:$0xf] }
 0x4a9   : > { %6486 = vmatpush.bf16.msrb.mxu1 %v8530_v37  ;;  %6500 = vmatpush.bf16.msrb.mxu2 %v8534_v48  ;;  %v8753_v37 = vld [vmem:[%s12794_s7 + $0x3c0] sm:$0xf]  ;;  %v9192_v48 = vld [vmem:[%s12794_s7 + $0x3c4] sm:$0xf0]  ;;  %v8739_v61 = vld [vmem:[%s12794_s7 + $0x3a8] sm:$0xf0] }
 0x4aa   : > { %6635 = vmatpush.bf16.msrb.mxu3 %v8618_v45  ;;  %v6546_v45 = vshll.u32 %v6537_v50, 16  ;;  %v8754_v16 = vor.u32 %v9192_v48, %v8753_v37  ;;  %v8675_v50 = vld [vmem:[%s12794_s7 + $0x328] sm:$0xf0]  ;;  %v8657_v2 = vld [vmem:[%s12794_s7 + $0x300] sm:$0xf]  ;;  %v8742_v27 = vor.u32 %v9187_v42, %v8739_v61 }
 0x4ab   : > { %6651 = vmatpush.bf16.msra.mxu0 %v8606_v12  ;;  %v8673_v12 = vld [vmem:[%s12794_s7 + $0x320] sm:$0xf]  ;;  %v8729_v24 = vld [vmem:[%s12794_s7 + $0x390] sm:$0xf]  ;;  %v9213_v37 = vld [vmem:[%s12794_s7 + $0x464] sm:$0xf0] }
 0x4ac   : > { %v6548_v32 = vrot.slane %v6546_v45, 1  ;;  %v8746_v45 = vor.u32 %v9190_v26, %v8745_v17  ;;  %v9212_v36 = vld [vmem:[%s12794_s7 + $0x464] sm:$0xf]  ;;  %v8829_v17 = vld [vmem:[%s12794_s7 + $0x450] sm:$0xf] }
 0x4ad   : > { %6785 = vmatpush.bf16.msra.mxu1 %v8714_v6  ;;  %6799 = vmatpush.bf16.msra.mxu2 %v8718_v3  ;;  %v6683_v6 = vunpack.c.l.b16 %v6663_v19  ;;  %v12450_v3 = vunpack.c.h.b16 %v12250_v34  ;;  %v9172_v34 = vld [vmem:[%s12794_s7 + $0x324] sm:$0xf0]  ;;  %v9207_v42 = vld [vmem:[%s12794_s7 + $0x434] sm:$0xf0]  ;;  %v9206_v9 = vld [vmem:[%s12794_s7 + $0x434] sm:$0xf] }
 0x4ae   : > { %6636 = vmatpush.bf16.msrb.mxu3 %v8610_v29  ;;  %v6549_v1 = vsel %vm2737_vm15, %v6544_v51, %v6548_v32  ;;  %v8690_v29 = vor.u32 %v9176_v55, %v8689_v35  ;;  %v8670_v32 = vor.u32 %v9169_v20, %v8667_v8  ;;  %v8659_v35 = vld [vmem:[%s12794_s7 + $0x308] sm:$0xf0]  ;;  %v9215_v55 = vld [vmem:[%s12794_s7 + $0x474] sm:$0xf0]  ;;  %v9208_v20 = vld [vmem:[%s12794_s7 + $0x444] sm:$0xf] }
 0x4af   : > { %6652 = vmatpush.bf16.msra.mxu0 %v8598_v0  ;;  %6487 = vmatmul.bf16.vlgmr.msrb.gmra.mxu1 %v6397_v49  ;;  %v6685_v62 = vpack.c.b16 %v9521_v14, %v6683_v6  ;;  %v6686_v47 = vpack.c.b16 %v12450_v3, %v12450_v3  ;;  %v9170_v0 = vld [vmem:[%s12794_s7 + $0x314] sm:$0xf0]  ;;  %v8823_v8 = vld [vmem:[%s12794_s7 + $0x448] sm:$0xf0] }
 0x4b0   : > { %6501 = vmatmul.bf16.vlgmr.msrb.gmra.mxu2 %v6397_v49  ;;  %v8845_v49 = vld [vmem:[%s12794_s7 + $0x470] sm:$0xf] }
 0x4b1   : > { %6786 = vmatpush.bf16.msra.mxu1 %v8706_v44  ;;  %6800 = vmatpush.bf16.msra.mxu2 %v8710_v53  ;;  %v8665_v44 = vld [vmem:[%s12794_s7 + $0x310] sm:$0xf]  ;;  %v8674_v53 = vor.u32 %v9172_v34, %v8673_v12  ;;  %v6688_v25 = vshrl.u32 %v6685_v62, 16  ;;  %v6691_v7 = vshll.u32 %v6685_v62, 16  ;;  %v6696_v46 = vshrl.u32 %v6686_v47, 16 }
 0x4b2   : > { %6637 = vmatpush.bf16.msrb.mxu3 %v8602_v41  ;;  %6653 = vmatmul.bf16.vlgmr.msra.gmra.mxu0 %v6549_v1  ;;  %v8686_v41 = vor.u32 %v9173_v15, %v8683_v4  ;;  %v6699_v11 = vshll.u32 %v6686_v47, 16  ;;  %v8666_v51 = vor.u32 %v9170_v0, %v8665_v44  ;;  %v8846_v54 = vor.u32 %v9215_v55, %v8845_v49  ;;  %v9184_v12 = vld [vmem:[%s12794_s7 + $0x384] sm:$0xf0]  ;;  %v9183_v34 = vld [vmem:[%s12794_s7 + $0x384] sm:$0xf] }
 0x4b3   : > { %6929 = vmatpush.bf16.msrb.mxu0 %v8782_v57  ;;  %v8737_v57 = vld [vmem:[%s12794_s7 + $0x3a0] sm:$0xf]  ;;  %v6690_v5 = vrot.slane %v6688_v25, 3  ;;  %v6693_v58 = vrot.slane %v6691_v7, 4  ;;  %v6698_v10 = vrot.slane %v6696_v46, 3 }
 0x4b4   : > { %v8738_v30 = vor.u32 %v9188_v43, %v8737_v57  ;;  %v6701_v19 = vrot.slane %v6699_v11, 4  ;;  %v9210_v62 = vld [vmem:[%s12794_s7 + $0x454] sm:$0xf]  ;;  %v8831_v47 = vld [vmem:[%s12794_s7 + $0x458] sm:$0xf0]  ;;  %v8826_v57 = vor.u32 %v9208_v20, %v8823_v8 }
 0x4b5   : > { %6787 = vmatpush.bf16.msra.mxu1 %v8698_v52  ;;  %6801 = vmatpush.bf16.msra.mxu2 %v8702_v33  ;;  %v9168_v52 = vld [vmem:[%s12794_s7 + $0x304] sm:$0xf0]  ;;  %v9167_v33 = vld [vmem:[%s12794_s7 + $0x304] sm:$0xf]  ;;  %v6694_v48 = vor.u32 %v6693_v58, %v6690_v5  ;;  %v8813_v43 = vld [vmem:[%s12794_s7 + $0x430] sm:$0xf] }
 0x4b6   : > { %6638 = vmatpush.bf16.msrb.mxu3 %v8594_v63  ;;  %v8678_v63 = vor.u32 %v9171_v60, %v8675_v50  ;;  %v8658_v28 = vor.u32 %v9168_v52, %v8657_v2  ;;  %v6702_v6 = vor.u32 %v6701_v19, %v6698_v10  ;;  %v9209_v0 = vld [vmem:[%s12794_s7 + $0x444] sm:$0xf0]  ;;  %v8814_v61 = vor.u32 %v9207_v42, %v8813_v43  ;;  %v8805_v7 = vld [vmem:[%s12794_s7 + $0x420] sm:$0xf]  ;;  %v9204_v11 = vld [vmem:[%s12794_s7 + $0x424] sm:$0xf] }
 0x4b7   : > { %6930 = vmatpush.bf16.msrb.mxu0 %v8774_v39  ;;  %v8847_v39 = vld [vmem:[%s12794_s7 + $0x478] sm:$0xf0]  ;;  %v9205_v46 = vld [vmem:[%s12794_s7 + $0x424] sm:$0xf0]  ;;  %v8807_v2 = vld [vmem:[%s12794_s7 + $0x428] sm:$0xf0] }
 0x4b8   : > { %v9199_v52 = vld [vmem:[#allocation7 + $0xc] sm:$0xff]  ;;  %v8789_v5 = vld [vmem:[%s12794_s7 + $0x400] sm:$0xf]  ;;  %v9201_v58 = vld [vmem:[%s12794_s7 + $0x404] sm:$0xf0] }
 0x4b9   : > { %6639 = vmatmul.bf16.vlgmr.msrb.gmra.mxu3 %v6549_v1  ;;  %6788 = vmatpush.bf16.msra.mxu1 %v8690_v29  ;;  %v9186_v1 = vld [vmem:[%s12794_s7 + $0x394] sm:$0xf0]  ;;  %v9185_v29 = vld [vmem:[%s12794_s7 + $0x394] sm:$0xf]  ;;  %v9200_v10 = vld [vmem:[%s12794_s7 + $0x404] sm:$0xf] }
 0x4ba   : > { %6915 = vmatpush.bf16.msra.mxu3 %v8778_v38  ;;  %6802 = vmatpush.bf16.msra.mxu2 %v8694_v23  ;;  %v8750_v38 = vor.u32 %v9189_v18, %v8747_v31  ;;  %v8731_v23 = vld [vmem:[%s12794_s7 + $0x398] sm:$0xf0]  ;;  %v8730_v4 = vor.u32 %v9186_v1, %v8729_v24  ;;  %v9211_v31 = vld [vmem:[%s12794_s7 + $0x454] sm:$0xf0]  ;;  %v9202_v55 = vld [vmem:[%s12794_s7 + $0x414] sm:$0xf] }
 0x4bb   : > { %6931 = vmatpush.bf16.msrb.mxu0 %v8766_v13  ;;  %v8837_v13 = vld [vmem:[%s12794_s7 + $0x460] sm:$0xf]  ;;  %v8734_v22 = vor.u32 %v9185_v29, %v8731_v23  ;;  %v8830_v44 = vor.u32 %v9211_v31, %v8829_v17  ;;  %v9203_v49 = vld [vmem:[%s12794_s7 + $0x414] sm:$0xf0]  ;;  %v8791_v19 = vld [vmem:[%s12794_s7 + $0x408] sm:$0xf0]  ;;  %v8790_v23 = vor.u32 %v9201_v58, %v8789_v5 }
 0x4bc   : > { %v8838_v60 = vor.u32 %v9213_v37, %v8837_v13 }
 0x4bd   : > { %6789 = vmatpush.bf16.msra.mxu1 %v8682_v59  ;;  %v8839_v59 = vld [vmem:[%s12794_s7 + $0x468] sm:$0xf0] }
 0x4be   : > { %6916 = vmatpush.bf16.msra.mxu3 %v8770_v56  ;;  %6803 = vmatpush.bf16.msra.mxu2 %v8686_v41  ;;  %v9214_v56 = vld [vmem:[%s12794_s7 + $0x474] sm:$0xf]  ;;  %v8721_v41 = vld [vmem:[%s12794_s7 + $0x380] sm:$0xf]  ;;  %v8842_v50 = vor.u32 %v9212_v36, %v8839_v59 }
 0x4bf   : > { %6932 = vmatpush.bf16.msrb.mxu0 %v8758_v21  ;;  %v8850_v15 = vor.u32 %v9214_v56, %v8847_v39  ;;  %v6703_v21 = vsel %vm2475_vm0, %v6694_v48, %v6702_v6  ;;  %v8722_v26 = vor.u32 %v9184_v12, %v8721_v41  ;;  %v6977_v56 = vshll.u32 %v9199_v52, 16 }
 0x4c1   : > { %6790 = vmatpush.bf16.msra.mxu1 %v8674_v53  ;;  %v8834_v53 = vor.u32 %v9210_v62, %v8831_v47  ;;  %v6979_v1 = vrot.slane %v6977_v56, 1  ;;  %v7152_v62 = vld [vmem:[%s12796_s9 + $0x78] sm:$0xff]  ;;  %v7151_v47 = vld [vmem:[%s12796_s9 + $0x70] sm:$0xff]  ;;  %v7166_v56 = vld [vmem:[%s12796_s9 + $0xe8] sm:$0xff] }
 0x4c2   : > { %6917 = vmatpush.bf16.msra.mxu3 %v8762_v40  ;;  %6804 = vmatpush.bf16.msra.mxu2 %v8678_v63  ;;  %v8662_v40 = vor.u32 %v9167_v33, %v8659_v35  ;;  %v8821_v63 = vld [vmem:[%s12794_s7 + $0x440] sm:$0xf]  ;;  %v8797_v35 = vld [vmem:[%s12794_s7 + $0x410] sm:$0xf] }
 0x4c3   : > { %6933 = vmatpush.bf16.msrb.mxu0 %v8750_v38  ;;  %v8822_v38 = vor.u32 %v9209_v0, %v8821_v63  ;;  %v8798_v39 = vor.u32 %v9203_v49, %v8797_v35  ;;  %v7150_v63 = vld [vmem:[%s12796_s9 + $0x68] sm:$0xff]  ;;  %v7167_v49 = vld [vmem:[%s12796_s9 + $0xf0] sm:$0xff] }
 0x4c5   : > { %6791 = vmatpush.bf16.msra.mxu1 %v8666_v51  ;;  %v8806_v51 = vor.u32 %v9205_v46, %v8805_v7 }
 0x4c6   : > { %6918 = vmatpush.bf16.msra.mxu3 %v8754_v16  ;;  %6805 = vmatpush.bf16.msra.mxu2 %v8670_v32  ;;  %v8723_v16 = vld [vmem:[%s12794_s7 + $0x388] sm:$0xf0]  ;;  %v8810_v32 = vor.u32 %v9204_v11, %v8807_v2  ;;  %v7149_v2 = vld [vmem:[%s12796_s9 + $0x60] sm:$0xff] }
 0x4c7   : > { %6934 = vmatpush.bf16.msrb.mxu0 %v8742_v27  ;;  %v8726_v18 = vor.u32 %v9183_v34, %v8723_v16 }
 0x4c9   : > { %6792 = vmatpush.bf16.msra.mxu1 %v8658_v28  ;;  %v8794_v28 = vor.u32 %v9200_v10, %v8791_v19 }
 0x4ca   : > { %6919 = vmatpush.bf16.msra.mxu3 %v8746_v45  ;;  %6806 = vmatpush.bf16.msra.mxu2 %v8662_v40  ;;  %v6833_v45 = vpack.c.b16 %v12450_v3, %v9521_v14  ;;  %v8815_v14 = vld [vmem:[%s12794_s7 + $0x438] sm:$0xf0]  ;;  %v6975_v40 = vshrl.u32 %v9199_v52, 16 }
 0x4cb   : > { %6935 = vmatpush.bf16.msrb.mxu0 %v8734_v22  ;;  %v6949_v3 = vld [vmem:[#allocation7 + $0x14] sm:$0x1]  ;;  %v8818_v25 = vor.u32 %v9206_v9, %v8815_v14 }
 0x4cc   : > { %6793 = vmatmul.bf16.vlgmr.msra.gmra.mxu1 %v6703_v21  ;;  %v6971_v33 = vunpack.c.l.b16 %v6949_v3  ;;  %v7168_v52 = vld [vmem:[%s12796_s9 + $0xf8] sm:$0xff] }
 0x4cd   : > { %7067 = vmatpush.bf16.msrb.mxu1 %v8846_v54  ;;  %6807 = vmatmul.bf16.vlgmr.msra.gmra.mxu2 %v6703_v21  ;;  %v6980_v54 = vor.u32 %v6979_v1, %v6975_v40  ;;  %v7165_v40 = vld [vmem:[%s12796_s9 + $0xe0] sm:$0xff] }
 0x4ce   : > { %6920 = vmatpush.bf16.msra.mxu3 %v8738_v30  ;;  %7081 = vmatpush.bf16.msrb.mxu2 %v8850_v15  ;;  %v8799_v30 = vld [vmem:[%s12794_s7 + $0x418] sm:$0xf0]  ;;  %v6973_v27 = vpack.c.b16 %v6971_v33, %v6971_v33 }
 0x4cf   : > { %6936 = vmatpush.bf16.msrb.mxu0 %v8726_v18  ;;  %v8802_v24 = vor.u32 %v9202_v55, %v8799_v30  ;;  %v7148_v33 = vld [vmem:[%s12796_s9 + $0x58] sm:$0xff] }
 0x4d0   : > { %v6982_v29 = vshll.u32 %v6973_v27, 16  ;;  %v7147_v27 = vld [vmem:[%s12796_s9 + $0x50] sm:$0xff] }
 0x4d1   : > { %7068 = vmatpush.bf16.msrb.mxu1 %v8838_v60 }
 0x4d2   : > { %6921 = vmatpush.bf16.msra.mxu3 %v8730_v4  ;;  %7082 = vmatpush.bf16.msrb.mxu2 %v8842_v50  ;;  %v6984_v15 = vrot.slane %v6982_v29, 1  ;;  %v12677_v29 = vld [vmem:[%s12795_s8] sm:$0x3] }
 0x4d3   : > { %6937 = vmatmul.bf16.vlgmr.msrb.gmra.mxu0 %v6833_v45 }
 0x4d4   : > { %v6985_v4 = vsel %vm2737_vm15, %v6980_v54, %v6984_v15  ;;  %7190 = vmatpush.msra.mxu0 %v7168_v52  ;;  %v7145_v54 = vld [vmem:[%s12796_s9 + $0x40] sm:$0xff] }
 0x4d5   : > { %7069 = vmatpush.bf16.msrb.mxu1 %v8830_v44 }
 0x4d6   : > { %6922 = vmatpush.bf16.msra.mxu3 %v8722_v26  ;;  %7083 = vmatpush.bf16.msrb.mxu2 %v8834_v53 }
 0x4d7   : > { %7191 = vmatpush.msra.mxu0 %v7167_v49 }
 0x4d9   : > { %6923 = vmatmul.bf16.vlgmr.msra.gmra.mxu3 %v6833_v45  ;;  %7070 = vmatpush.bf16.msrb.mxu1 %v8822_v38 }
 0x4da   : > { %7084 = vmatpush.bf16.msrb.mxu2 %v8826_v57  ;;  %7170 = vmatpush.msrb.mxu3 %v7152_v62 }
 0x4db   : > { %7192 = vmatpush.msra.mxu0 %v7166_v56 }
 0x4dc   : > { %7171 = vmatpush.msrb.mxu3 %v7151_v47 }
 0x4dd   : > { %7071 = vmatpush.bf16.msrb.mxu1 %v8814_v61  ;;  %7193 = vmatpush.msra.mxu0 %v7165_v40 }
 0x4de   : > { %7085 = vmatpush.bf16.msrb.mxu2 %v8818_v25  ;;  %7172 = vmatpush.msrb.mxu3 %v7150_v63  ;;  %v7141_v63 = vld [vmem:[%s12796_s9 + $0x20] sm:$0xff] }
 0x4e0   : > { %7173 = vmatpush.msrb.mxu3 %v7149_v2  ;;  %v7157_v2 = vld [vmem:[%s12796_s9 + $0xa0] sm:$0xff] }
 0x4e1   : > { %7072 = vmatpush.bf16.msrb.mxu1 %v8806_v51 }
 0x4e2   : > { %7086 = vmatpush.bf16.msrb.mxu2 %v8810_v32  ;;  %7174 = vmatpush.msrb.mxu3 %v7148_v33 }
 0x4e4   : > { %7175 = vmatpush.msrb.mxu3 %v7147_v27  ;;  %v7155_v27 = vld [vmem:[%s12796_s9 + $0x90] sm:$0xff] }
 0x4e5   : > { %7073 = vmatpush.bf16.msrb.mxu1 %v8798_v39 }
 0x4e6   : > { %7087 = vmatpush.bf16.msrb.mxu2 %v8802_v24 }
 0x4e9   : > { %7074 = vmatpush.bf16.msrb.mxu1 %v8790_v23 }
 0x4ea   : > { %7088 = vmatpush.bf16.msrb.mxu2 %v8794_v28  ;;  %v7146_v28 = vld [vmem:[%s12796_s9 + $0x48] sm:$0xff] }
 0x4eb   : > { %7176 = vmatpush.msrb.mxu3 %v7146_v28 }
 0x4ec   : > { %7075 = vmatmul.bf16.vlgmr.msrb.gmra.mxu1 %v6985_v4 }
 0x4ed   : > { %7089 = vmatmul.bf16.vlgmr.msrb.gmra.mxu2 %v6985_v4  ;;  %7177 = vmatpush.msrb.mxu3 %v7145_v54 }
 0x504   : > { %v5926_v13 = vpop.f32.mrf.mxu1 }
 0x50a   : > { %v5940_v37 = vpop.f32.mrf.mxu2 }
 0x50c   : > { %v5928_v48 = vpop.f32.mrf.mxu1 }
 0x50f   : > { %v6070_v22 = vpop.f32.mrf.mxu0 }
 0x510   : > { %v6071_v57 = vadd.f32 %v6070_v22, %v5940_v37  ;;  %v7164_v37 = vld [vmem:[%s12796_s9 + $0xd8] sm:$0xff] }
 0x511   : > { %v7144_v22 = vld [vmem:[%s12796_s9 + $0x38] sm:$0xff]  ;;  %7194 = vmatpush.msra.mxu0 %v7164_v37 }
 0x512   : > { %v5942_v36 = vpop.f32.mrf.mxu2  ;;  %7178 = vmatpush.msrb.mxu3 %v7144_v22 }
 0x516   : > { %v6056_v6 = vpop.f32.mrf.mxu3 }
 0x517   : > { %v6072_v34 = vpop.f32.mrf.mxu0  ;;  %v6057_v43 = vadd.f32 %v6056_v6, %v5926_v13 }
 0x518   : > { %v6073_v25 = vadd.f32 %v6072_v34, %v5942_v36  ;;  %v7163_v36 = vld [vmem:[%s12796_s9 + $0xd0] sm:$0xff] }
 0x519   : > { %7195 = vmatpush.msra.mxu0 %v7163_v36 }
 0x51c   : > { %v6204_v59 = vpop.f32.mrf.mxu1 }
 0x51d   : > { %v6223_v3 = vadd.f32 %v6204_v59, %v6057_v43 }
 0x51e   : > { %v6058_v41 = vpop.f32.mrf.mxu3 }
 0x51f   : > { %v6372_v17 = vpop.f32.mrf.mxu0  ;;  %v6059_v7 = vadd.f32 %v6058_v41, %v5928_v48 }
 0x523   : > { %v6218_v12 = vpop.f32.mrf.mxu2 }
 0x524   : > { %v6206_v16 = vpop.f32.mrf.mxu1  ;;  %v6224_v42 = vadd.f32 %v6218_v12, %v6071_v57  ;;  %v7100_v12 = vperm.slane %v12677_v29, 0  ;;  %v7159_v57 = vld [vmem:[%s12796_s9 + $0xb0] sm:$0xff] }
 0x525   : > { %v6225_v51 = vadd.f32 %v6206_v16, %v6059_v7  ;;  %v7143_v16 = vld [vmem:[%s12796_s9 + $0x30] sm:$0xff] }
 0x526   : > { %v6358_v60 = vpop.f32.mrf.mxu3  ;;  %v6378_v11 = vadd.f32 %v6372_v17, %v6224_v42  ;;  %7179 = vmatpush.msrb.mxu3 %v7143_v16 }
 0x527   : > { %v6374_v31 = vpop.f32.mrf.mxu0  ;;  %v6377_v46 = vadd.f32 %v6358_v60, %v6223_v3  ;;  %v7162_v60 = vld [vmem:[%s12796_s9 + $0xc8] sm:$0xff]  ;;  %v7139_v3 = vld [vmem:[%s12796_s9 + $0x10] sm:$0xff] }
 0x528   : > { %7196 = vmatpush.msra.mxu0 %v7162_v60 }
 0x52b   : > { %v6220_v50 = vpop.f32.mrf.mxu2 }
 0x52c   : > { %v6488_v21 = vpop.f32.mrf.mxu1  ;;  %v6226_v32 = vadd.f32 %v6220_v50, %v6073_v25 }
 0x52d   : > { %v6507_v35 = vadd.f32 %v6488_v21, %v6377_v46 }
 0x52e   : > { %v6360_v26 = vpop.f32.mrf.mxu3  ;;  %v6380_v19 = vadd.f32 %v6374_v31, %v6226_v32  ;;  %v7161_v31 = vld [vmem:[%s12796_s9 + $0xc0] sm:$0xff]  ;;  %v7156_v32 = vld [vmem:[%s12796_s9 + $0x98] sm:$0xff] }
 0x52f   : > { %v6654_v20 = vpop.f32.mrf.mxu0  ;;  %v6379_v39 = vadd.f32 %v6360_v26, %v6225_v51  ;;  %7197 = vmatpush.msra.mxu0 %v7161_v31  ;;  %v7137_v51 = vld [vmem:[%s12796_s9] sm:$0xff] }
 0x533   : > { %v6502_v18 = vpop.f32.mrf.mxu2 }
 0x534   : > { %v6490_v44 = vpop.f32.mrf.mxu1  ;;  %v6508_v55 = vadd.f32 %v6502_v18, %v6378_v11  ;;  %v7142_v18 = vld [vmem:[%s12796_s9 + $0x28] sm:$0xff] }
 0x535   : > { %v6509_v10 = vadd.f32 %v6490_v44, %v6379_v39  ;;  %7180 = vmatpush.msrb.mxu3 %v7142_v18  ;;  %v7138_v11 = vld [vmem:[%s12796_s9 + $0x8] sm:$0xff] }
 0x536   : > { %v6660_v23 = vadd.f32 %v6654_v20, %v6508_v55 }
 0x537   : > { %v6656_v9 = vpop.f32.mrf.mxu0  ;;  %7181 = vmatpush.msrb.mxu3 %v7141_v63 }
 0x53b   : > { %v6504_v0 = vpop.f32.mrf.mxu2 }
 0x53c   : > { %v6640_v53 = vpop.f32.mrf.mxu3  ;;  %v6510_v15 = vadd.f32 %v6504_v0, %v6380_v19  ;;  %v7160_v0 = vld [vmem:[%s12796_s9 + $0xb8] sm:$0xff] }
 0x53d   : > { %v6659_v24 = vadd.f32 %v6640_v53, %v6507_v35  ;;  %7198 = vmatpush.msra.mxu0 %v7160_v0 }
 0x53e   : > { %v6662_v50 = vadd.f32 %v6656_v9, %v6510_v15 }
 0x53f   : > { %7199 = vmatpush.msra.mxu0 %v7159_v57 }
 0x544   : > { %v6642_v45 = vpop.f32.mrf.mxu3 }
 0x545   : > { %v6661_v4 = vadd.f32 %v6642_v45, %v6509_v10  ;;  %v7153_v10 = vld [vmem:[%s12796_s9 + $0x80] sm:$0xff] }
 0x549   : > { %v6794_v8 = vpop.f32.mrf.mxu1 }
 0x54a   : > { %v6813_v1 = vadd.f32 %v6794_v8, %v6659_v24  ;;  %v7101_v8 = vperm.slane %v12677_v29, 1  ;;  %v7154_v24 = vld [vmem:[%s12796_s9 + $0x88] sm:$0xff] }
 0x550   : > { %v6808_v38 = vpop.f32.mrf.mxu2  ;;  %v6938_v5 = vpop.f32.mrf.mxu0 }
 0x551   : > { %v6796_v14 = vpop.f32.mrf.mxu1  ;;  %v6814_v48 = vadd.f32 %v6808_v38, %v6660_v23  ;;  %v7140_v38 = vld [vmem:[%s12796_s9 + $0x18] sm:$0xff] }
 0x552   : > { %v6815_v59 = vadd.f32 %v6796_v14, %v6661_v4  ;;  %7182 = vmatpush.msrb.mxu3 %v7140_v38 }
 0x553   : > { %v6944_v21 = vadd.f32 %v6938_v5, %v6814_v48 }
 0x554   : > { %7183 = vmatpush.msrb.mxu3 %v7139_v3 }
 0x556   : > { %7184 = vmatpush.msrb.mxu3 %v7138_v11 }
 0x558   : > { %v6810_v30 = vpop.f32.mrf.mxu2  ;;  %v6940_v53 = vpop.f32.mrf.mxu0  ;;  %7185 = vmatpush.msrb.mxu3 %v7137_v51 }
 0x559   : > { %v6816_v62 = vadd.f32 %v6810_v30, %v6662_v50 }
 0x55b   : > { %v6946_v43 = vadd.f32 %v6940_v53, %v6816_v62 }
 0x55c   : > { %v6924_v61 = vpop.f32.mrf.mxu3 }
 0x55d   : > { %v6943_v13 = vadd.f32 %v6924_v61, %v6813_v1  ;;  %v7158_v61 = vld [vmem:[%s12796_s9 + $0xa8] sm:$0xff] }
 0x55e   : > { %7200 = vmatpush.msra.mxu0 %v7158_v61 }
 0x560   : > { %7201 = vmatpush.msra.mxu0 %v7157_v2 }
 0x562   : > { %7202 = vmatpush.msra.mxu0 %v7156_v32 }
 0x564   : > { %v6926_v6 = vpop.f32.mrf.mxu3  ;;  %7203 = vmatpush.msra.mxu0 %v7155_v27 }
 0x565   : > { %v6945_v17 = vadd.f32 %v6926_v6, %v6815_v59  ;;  %v7169_v6 = vld [vmem:[%s12797_s10] sm:$0x1] }
 0x566   : > { %7204 = vmatpush.msra.mxu0 %v7154_v24 }
 0x568   : > { %7205 = vmatpush.msra.mxu0 %v7153_v10 }
 0x569   : > { %v7076_v58 = vpop.f32.mrf.mxu1 }
 0x56a   : > { %v7095_v41 = vadd.f32 %v7076_v58, %v6943_v13 }
 0x56c   : > { %v7104_v47 = vadd.f32 %v7100_v12, %v7095_v41 }
 0x56e   : > { %v7108_v42 = vmax.f32 %v7104_v47, 0.0 }
 0x570   : > { %v7090_v34 = vpop.f32.mrf.mxu2 }
 0x571   : > { %v7078_v26 = vpop.f32.mrf.mxu1  ;;  %v7096_v20 = vadd.f32 %v7090_v34, %v6944_v21 }
 0x572   : > { %v7097_v44 = vadd.f32 %v7078_v26, %v6945_v17 }
 0x573   : > { %v7105_v25 = vadd.f32 %v7101_v8, %v7096_v20 }
 0x574   : > { %v7106_v45 = vadd.f32 %v7100_v12, %v7097_v44 }
 0x575   : > { %v7109_v35 = vmax.f32 %v7105_v25, 0.0 }
 0x576   : > { %v7110_v9 = vmax.f32 %v7106_v45, 0.0 }
 0x578   : > { %v7092_v14 = vpop.f32.mrf.mxu2  ;;  %v7112_v7 = vadd.f32 %v7110_v9, %v7108_v42 }
 0x579   : > { %v7098_v46 = vadd.f32 %v7092_v14, %v6946_v43 }
 0x57a   : > { %v7116_v52 = vrot.slane %v7112_v7, 1 }
 0x57b   : > { %v7107_v33 = vadd.f32 %v7101_v8, %v7098_v46 }
 0x57c   : > { %v7121_v49 = vsel %vm5748_vm3, %v7116_v52, 0.0 }
 0x57d   : > { %v7111_v55 = vmax.f32 %v7107_v33, 0.0  ;;  %v7122_v30 = vrot.slane %v7121_v49, 4 }
 0x57f   : > { %v7113_v56 = vadd.f32 %v7111_v55, %v7109_v35  ;;  %v7123_v39 = vadd.f32 %v7122_v30, %v7121_v49 }
 0x581   : > { %v7117_v5 = vrot.slane %v7113_v56, 1  ;;  %v7124_v58 = vrot.slane %v7123_v39, 2 }
 0x583   : > { %v7128_v19 = vsel %vm5748_vm3, %v7117_v5, 0.0  ;;  %v7125_v1 = vadd.f32 %v7124_v58, %v7123_v39 }
 0x584   : > { %v7129_v29 = vrot.slane %v7128_v19, 4 }
 0x585   : > { %v7126_v23 = vrot.slane %v7125_v1, 1 }
 0x586   : > { %v7130_v28 = vadd.f32 %v7129_v29, %v7128_v19 }
 0x587   : > { %v7127_v54 = vadd.f32 %v7126_v23, %v7125_v1 }
 0x588   : > { %v7131_v40 = vrot.slane %v7130_v28, 2 }
 0x589   : > { %v7135_v4 = vmul.f32 0.25, %v7127_v54 }
 0x58a   : > { %v7132_v15 = vadd.f32 %v7131_v40, %v7130_v28 }
 0x58b   : > { %7186 = vmatmul.f32.vlgmr.msrb.gmra.mxu3 %v7135_v4 }
 0x58c   : > { %v7133_v13 = vrot.slane %v7132_v15, 1 }
 0x58e   : > { %v7134_v37 = vadd.f32 %v7133_v13, %v7132_v15 }
 0x590   : > { %v7136_v48 = vmul.f32 0.25, %v7134_v37 }
 0x592   : > { %7206 = vmatmul.f32.vlgmr.msra.gmra.mxu0 %v7136_v48 }
 0x60e   : > { %v7187_v22 = vpop.f32.mrf.mxu3 }
 0x60f   : > { %v7188_v36 = vadd.f32 %v7187_v22, %v7169_v6  ;;  %v7207_v59 = vpop.f32.mrf.mxu0 }
 0x611   : > { %v7208_v41 = vadd.f32 %v7207_v59, %v7188_v36 }
 0x613   : > { %7211 = vst.msk [vmem:[%s395_s15] sm:$0x1] %vm7210_vm1, %v7208_v41 }
 0x614   : > { %9831 = shalt.err (!%p9828_p8)
}
 0x615   : > { %9717 = dma.vmem_to_hbm [thread:$0]  (%p9975_p5), %s7224_s5, 16, %s7226_s30, %s7213_s16  }
 0x616 PF: > { %p9729_p9 = scmp.ge.s32.totalorder %s9871_s20, 2  ;;  %s7237_s24 = sand.u32 1, %s9859_s17  }
 0x617   : > { %s7238_s14 = scalar_lea.sflag [#allocation10], %s7237_s24 }
 0x618   : > { %p9724_p10 = pnand %p9729_p9, %p9979_p6 }
 0x61a   : > { %p9725_p11 = pneg %p9724_p10 }
 0x61c   : > { %9853 = dma.done.wait (%p9725_p11), %s7238_s14, 16  }
 0x61d   : > { %9855 = vsyncadd (%p9725_p11), %s7238_s14, 4294967280  ;;  %s12939_s15 = sld [smem:[#allocation14_spill]]  ;;  %p22_p12 = scmp.ge.s32.totalorder %s9962_s23, 4  }
 0x61e   : > { %s12940_s17 = smov %s9863_s18  ;;  %s12941_s18 = smov %s9867_s19 }
 0x61f   : > { %s12943_s20 = smov %s9962_s23  ;;  %24 = sbr.rel (!%p22_p12) target bundleno = 6 (0x6), region = 104 }
 0x623   : > { %s12942_s19 = smov %s12939_s15 }
 0x624   :  { %7243 = vsyncpa [#allocation9], 1 }
 0x625   :  { %7245 = vsyncpa [#allocation9 + $0x1], 1 }
 0x626   :  { %7246 = vsyncpa [#allocation10], 1 }
 0x627   :  { %7248 = vsyncpa [#allocation10 + $0x1], 1 }

</bundles_post_ra>
